<compile_context>
chip_gen: v6e
topology: v6e:2x2x1
jax: 0.10.0
libtpu: 0.0.40
codegen_flags: <defaults>
</compile_context>

<pallas_src>
import functools

import jax
import jax.numpy as jnp
from jax.experimental import pallas as pl
from jax.experimental.pallas import tpu as pltpu


# ----------------------------------------------------------------------------
# Fused kernel: all DenseLayers + head for one image per grid step.
# ----------------------------------------------------------------------------
def _densenet_kernel(x_ref, ml_ref, mr_ref, *refs, depth, W, use_gated):
    # refs layout: [w1, b1, w2flat, b2] * depth, then head refs, then out ref.
    o_ref = refs[-1]
    refs = refs[:-1]
    layer_refs = refs[:4 * depth]
    head_refs = refs[4 * depth:]

    feats = x_ref[0]                      # (M, C0) pixel-major, f32
    M = feats.shape[0]
    ml = ml_ref[...]                      # (M, 1) mask: 0 where x-coord == 0
    mr = mr_ref[...]                      # (M, 1) mask: 0 where x-coord == W-1

    # Sublane-aligned zero halo (>= W+1 rows) applied to h, so the 3x3 conv's
    # zero padding semantics are exact and the axis-0 concat stays 8-aligned.
    P = ((W + 1 + 7) // 8) * 8

    for L in range(depth):
        w1 = layer_refs[4 * L + 0][...]   # (Cin, Cin)
        b1 = layer_refs[4 * L + 1][...]   # (1, Cin)
        w2 = layer_refs[4 * L + 2][...]   # (9*Cin, growth)  (dy, dx, ci) rows
        b2 = layer_refs[4 * L + 3][...]   # (1, growth)

        # ---- 1x1 conv + ReLU (pointwise -> one MXU matmul) ------------------
        h = jnp.dot(feats, w1, preferred_element_type=jnp.float32) + b1
        h = jnp.maximum(h, 0.0)
        cin = h.shape[1]

        # ---- in-VMEM im2col for the 3x3 conv --------------------------------
        zrows = jnp.zeros((P, cin), jnp.float32)
        hp = jnp.concatenate([zrows, h, zrows], axis=0)     # (M + 2P, Cin)

        taps = []
        for dy in range(3):
            for dx in range(3):
                start = P + (dy - 1) * W + (dx - 1)
                t = hp[start:start + M, :]                  # shifted view
                if dx == 0:
                    t = t * ml        # reads x-1: zero where x == 0
                elif dx == 2:
                    t = t * mr        # reads x+1: zero where x == W-1
                taps.append(t)
        patches = jnp.concatenate(taps, axis=1)             # (M, 9*Cin)

        # ---- 3x3 conv + ReLU as ONE big-K matmul ----------------------------
        g = jnp.dot(patches, w2, preferred_element_type=jnp.float32) + b2
        g = jnp.maximum(g, 0.0)                             # (M, growth)

        # ---- DenseNet concat, kept in VMEM (no HBM copies) ------------------
        feats = jnp.concatenate([feats, g], axis=1)

    # ---- head: 1x1 conv (gated or plain), Cout padded to 128 lanes ----------
    if use_gated:
        wa, ba, wb, bb, wc, bc = (r[...] for r in head_refs)
        a = jnp.dot(feats, wa, preferred_element_type=jnp.float32) + ba
        b = jnp.dot(feats, wb, preferred_element_type=jnp.float32) + bb
        c = jnp.dot(feats, wc, preferred_element_type=jnp.float32) + bc
        out = a + b * jax.nn.sigmoid(c)                     # (M, Cpad)
    else:
        wf, bf = (r[...] for r in head_refs)
        out = jnp.dot(feats, wf, preferred_element_type=jnp.float32) + bf

    o_ref[0] = out.astype(o_ref.dtype)                      # lane-dense store


# ----------------------------------------------------------------------------
# Wrapper: layout plumbing + pallas_call.
# ----------------------------------------------------------------------------
def densenet_forward(x_nchw, params, n_outputs, use_gated_conv):
    N, C0, H, W = x_nchw.shape
    M = H * W
    cpad = ((n_outputs + 127) // 128) * 128                 # lane-dense Cout
    depth = len(params["dense_layers"])

    # NCHW -> per-image pixel-major slabs (M, C): channels on the lane axis.
    x3 = jnp.transpose(x_nchw.reshape(N, C0, M), (0, 2, 1))  # (N, M, C0)

    # Precomputed horizontal-border masks for the in-kernel im2col.
    xcoord = jnp.arange(M, dtype=jnp.int32) % W
    ml = (xcoord != 0).astype(jnp.float32).reshape(M, 1)
    mr = (xcoord != W - 1).astype(jnp.float32).reshape(M, 1)

    inputs = [x3, ml, mr]
    in_specs = [
        pl.BlockSpec((1, M, C0), lambda n: (n, 0, 0)),
        pl.BlockSpec((M, 1), lambda n: (0, 0)),
        pl.BlockSpec((M, 1), lambda n: (0, 0)),
    ]

    flops = 0
    for layer in params["dense_layers"]:
        w1, b1 = layer["w1"], layer["b1"]
        w2, b2 = layer["w2"], layer["b2"]
        cin = w1.shape[0]
        growth = w2.shape[-1]
        w2f = w2.reshape(9 * cin, growth)    # (3,3,Cin,G) -> (9*Cin, G), dy-major
        inputs += [w1, b1.reshape(1, cin), w2f, b2.reshape(1, growth)]
        in_specs += [pl.BlockSpec((cin, cin), lambda n: (0, 0)),
                     pl.BlockSpec((1, cin), lambda n: (0, 0)),
                     pl.BlockSpec((9 * cin, growth), lambda n: (0, 0)),
                     pl.BlockSpec((1, growth), lambda n: (0, 0))]
        flops += 2 * M * cin * cin + 2 * M * (9 * cin) * growth

    ctot = params["wf"].shape[0]
    if use_gated_conv:
        wf, bf = params["wf"], params["bf"]          # (Ctot, 3*n_out), (3*n_out,)
        for k in range(3):                           # split a/b/c -> 3 clean dots
            wk = wf[:, k * n_outputs:(k + 1) * n_outputs]
            bk = bf[k * n_outputs:(k + 1) * n_outputs]
            wk = jnp.pad(wk, ((0, 0), (0, cpad - n_outputs)))
            bk = jnp.pad(bk, (0, cpad - n_outputs)).reshape(1, cpad)
            inputs += [wk, bk]
            in_specs += [pl.BlockSpec((ctot, cpad), lambda n: (0, 0)),
                         pl.BlockSpec((1, cpad), lambda n: (0, 0))]
        flops += 3 * 2 * M * ctot * cpad
        transcendentals = M * cpad
    else:
        wfp = jnp.pad(params["wf"], ((0, 0), (0, cpad - n_outputs)))
        bfp = jnp.pad(params["bf"], (0, cpad - n_outputs)).reshape(1, cpad)
        inputs += [wfp, bfp]
        in_specs += [pl.BlockSpec((ctot, cpad), lambda n: (0, 0)),
                     pl.BlockSpec((1, cpad), lambda n: (0, 0))]
        flops += 2 * M * ctot * cpad
        transcendentals = 0
    flops *= N
    transcendentals *= N
    bytes_accessed = sum(int(a.size) * 4 for a in inputs) + N * M * cpad * 4

    kernel = functools.partial(_densenet_kernel, depth=depth, W=W,
                               use_gated=use_gated_conv)

    out3 = pl.pallas_call(
        kernel,
        out_shape=jax.ShapeDtypeStruct((N, M, cpad), jnp.float32),
        grid=(N,),
        in_specs=in_specs,
        out_specs=pl.BlockSpec((1, M, cpad), lambda n: (n, 0, 0)),
        compiler_params=pltpu.CompilerParams(
            dimension_semantics=("parallel",),       # shard batch across TCs (v7x)
            vmem_limit_bytes=32 * 1024 * 1024),      # explicit, fits all gens
        cost_estimate=pl.CostEstimate(flops=flops,
                                      transcendentals=transcendentals,
                                      bytes_accessed=bytes_accessed),
    )(*inputs)

    out = out3[:, :, :n_outputs]                              # (N, M, n_out)
    out = jnp.transpose(out, (0, 2, 1)).reshape(N, n_outputs, H, W)
    return out                                                # NCHW


# ----------------------------------------------------------------------------
# Parameter construction (deterministic, synthetic; natural conv shapes).
# ----------------------------------------------------------------------------
def init_densenet_params(key, n_inputs, n_outputs, depth, growth, use_gated_conv):
    params = {"dense_layers": []}
    total = n_inputs
    for _ in range(depth):
        key, k1, k2, k3, k4 = jax.random.split(key, 5)
        params["dense_layers"].append({
            "w1": jax.random.normal(k1, (total, total), jnp.float32)
                  / jnp.sqrt(total),
            "b1": 0.01 * jax.random.normal(k2, (total,), jnp.float32),
            "w2": jax.random.normal(k3, (3, 3, total, growth), jnp.float32)
                  / jnp.sqrt(9.0 * total),
            "b2": 0.01 * jax.random.normal(k4, (growth,), jnp.float32),
        })
        total += growth
    key, kf1, kf2 = jax.random.split(key, 3)
    final_out = 3 * n_outputs if use_gated_conv else n_outputs
    params["wf"] = jax.random.normal(kf1, (total, final_out), jnp.float32) \
                   / jnp.sqrt(total)
    params["bf"] = 0.01 * jax.random.normal(kf2, (final_out,), jnp.float32)
    return params


# ----------------------------------------------------------------------------
if __name__ == "__main__":
    batch, n_inputs, spatial = 2, 4, 16
    n_outputs, depth, growth = 4, 2, 4
    use_gated_conv = True     # args.use_gated_conv
    dropout_p = 0.0           # TODO(synk): dropout_p=0.0 -> identity; no dropout op emitted.

    key = jax.random.PRNGKey(0)
    kx, kp = jax.random.split(key)
    x = jax.random.normal(kx, (batch, n_inputs, spatial, spatial), jnp.float32)
    params = init_densenet_params(kp, n_inputs, n_outputs, depth, growth,
                                  use_gated_conv)

    fwd = jax.jit(functools.partial(densenet_forward,
                                    n_outputs=n_outputs,
                                    use_gated_conv=use_gated_conv))
    y = fwd(x, params)
    jax.block_until_ready(y)

    assert y.shape == (batch, n_outputs, spatial, spatial), y.shape
    assert bool(jnp.all(jnp.isfinite(y)))
    print("KERNEL_OK")
</pallas_src>

<mosaic_0001>
module attributes {stable_mosaic.version = 11 : i64} {
  func.func @_densenet_kernel(%arg0: i32, %arg1: memref<1x256x4xf32, #tpu.memory_space<vmem>>, %arg2: memref<256x1xf32, #tpu.memory_space<vmem>>, %arg3: memref<256x1xf32, #tpu.memory_space<vmem>>, %arg4: memref<4x4xf32, #tpu.memory_space<vmem>>, %arg5: memref<1x4xf32, #tpu.memory_space<vmem>>, %arg6: memref<36x4xf32, #tpu.memory_space<vmem>>, %arg7: memref<1x4xf32, #tpu.memory_space<vmem>>, %arg8: memref<8x8xf32, #tpu.memory_space<vmem>>, %arg9: memref<1x8xf32, #tpu.memory_space<vmem>>, %arg10: memref<72x4xf32, #tpu.memory_space<vmem>>, %arg11: memref<1x4xf32, #tpu.memory_space<vmem>>, %arg12: memref<12x128xf32, #tpu.memory_space<vmem>>, %arg13: memref<1x128xf32, #tpu.memory_space<vmem>>, %arg14: memref<12x128xf32, #tpu.memory_space<vmem>>, %arg15: memref<1x128xf32, #tpu.memory_space<vmem>>, %arg16: memref<12x128xf32, #tpu.memory_space<vmem>>, %arg17: memref<1x128xf32, #tpu.memory_space<vmem>>, %arg18: memref<1x256x128xf32, #tpu.memory_space<vmem>>) attributes {dimension_semantics = [#tpu.dimension_semantics<parallel>], iteration_bounds = array<i64: 2>, scalar_prefetch = 0 : i64, scratch_operands = 0 : i64, tpu.core_type = #tpu.core_type<tc>, window_params = [{transform_indices = @transform_0, window_bounds = array<i64: 1, 256, 4>}, {pipeline_mode = #tpu.pipeline_mode<synchronous>, transform_indices = @transform_1, window_bounds = array<i64: 256, 1>}, {pipeline_mode = #tpu.pipeline_mode<synchronous>, transform_indices = @transform_2, window_bounds = array<i64: 256, 1>}, {pipeline_mode = #tpu.pipeline_mode<synchronous>, transform_indices = @transform_3, window_bounds = array<i64: 4, 4>}, {pipeline_mode = #tpu.pipeline_mode<synchronous>, transform_indices = @transform_4, window_bounds = array<i64: 1, 4>}, {pipeline_mode = #tpu.pipeline_mode<synchronous>, transform_indices = @transform_5, window_bounds = array<i64: 36, 4>}, {pipeline_mode = #tpu.pipeline_mode<synchronous>, transform_indices = @transform_6, window_bounds = array<i64: 1, 4>}, {pipeline_mode = #tpu.pipeline_mode<synchronous>, transform_indices = @transform_7, window_bounds = array<i64: 8, 8>}, {pipeline_mode = #tpu.pipeline_mode<synchronous>, transform_indices = @transform_8, window_bounds = array<i64: 1, 8>}, {pipeline_mode = #tpu.pipeline_mode<synchronous>, transform_indices = @transform_9, window_bounds = array<i64: 72, 4>}, {pipeline_mode = #tpu.pipeline_mode<synchronous>, transform_indices = @transform_10, window_bounds = array<i64: 1, 4>}, {pipeline_mode = #tpu.pipeline_mode<synchronous>, transform_indices = @transform_11, window_bounds = array<i64: 12, 128>}, {pipeline_mode = #tpu.pipeline_mode<synchronous>, transform_indices = @transform_12, window_bounds = array<i64: 1, 128>}, {pipeline_mode = #tpu.pipeline_mode<synchronous>, transform_indices = @transform_13, window_bounds = array<i64: 12, 128>}, {pipeline_mode = #tpu.pipeline_mode<synchronous>, transform_indices = @transform_14, window_bounds = array<i64: 1, 128>}, {pipeline_mode = #tpu.pipeline_mode<synchronous>, transform_indices = @transform_15, window_bounds = array<i64: 12, 128>}, {pipeline_mode = #tpu.pipeline_mode<synchronous>, transform_indices = @transform_16, window_bounds = array<i64: 1, 128>}, {transform_indices = @transform_17, window_bounds = array<i64: 1, 256, 128>}]} {
    %c0 = arith.constant 0 : index
    %c0_0 = arith.constant 0 : index
    %c0_1 = arith.constant 0 : index
    %0 = vector.load %arg1[%c0, %c0_0, %c0_1] : memref<1x256x4xf32, #tpu.memory_space<vmem>>, vector<1x256x4xf32>
    %1 = vector.shape_cast %0 : vector<1x256x4xf32> to vector<256x4xf32>
    %c0_2 = arith.constant 0 : index
    %c0_3 = arith.constant 0 : index
    %2 = vector.load %arg2[%c0_2, %c0_3] : memref<256x1xf32, #tpu.memory_space<vmem>>, vector<256x1xf32>
    %c0_4 = arith.constant 0 : index
    %c0_5 = arith.constant 0 : index
    %3 = vector.load %arg3[%c0_4, %c0_5] : memref<256x1xf32, #tpu.memory_space<vmem>>, vector<256x1xf32>
    %c0_6 = arith.constant 0 : index
    %c0_7 = arith.constant 0 : index
    %4 = vector.load %arg4[%c0_6, %c0_7] : memref<4x4xf32, #tpu.memory_space<vmem>>, vector<4x4xf32>
    %c0_8 = arith.constant 0 : index
    %c0_9 = arith.constant 0 : index
    %5 = vector.load %arg5[%c0_8, %c0_9] : memref<1x4xf32, #tpu.memory_space<vmem>>, vector<1x4xf32>
    %c0_10 = arith.constant 0 : index
    %c0_11 = arith.constant 0 : index
    %6 = vector.load %arg6[%c0_10, %c0_11] : memref<36x4xf32, #tpu.memory_space<vmem>>, vector<36x4xf32>
    %c0_12 = arith.constant 0 : index
    %c0_13 = arith.constant 0 : index
    %7 = vector.load %arg7[%c0_12, %c0_13] : memref<1x4xf32, #tpu.memory_space<vmem>>, vector<1x4xf32>
    %cst = arith.constant dense<0.000000e+00> : vector<256x4xf32>
    %8 = tpu.matmul %1, %4, %cst {dimension_numbers = #tpu.dot_dimension_numbers<[1], [0], [0], [1], [0, 0, 1, 1], [], []>} : vector<256x4xf32>, vector<4x4xf32>, vector<256x4xf32> -> vector<256x4xf32>
    %9 = vector.broadcast %5 : vector<1x4xf32> to vector<256x4xf32>
    %10 = arith.addf %8, %9 : vector<256x4xf32>
    %cst_14 = arith.constant 0.000000e+00 : f32
    %11 = vector.broadcast %cst_14 : f32 to vector<256x4xf32>
    %12 = arith.maximumf %10, %11 : vector<256x4xf32>
    %cst_15 = arith.constant 0.000000e+00 : f32
    %13 = vector.broadcast %cst_15 : f32 to vector<24x4xf32>
    %14 = tpu.concatenate %13, %12, %13 in 0 : vector<24x4xf32>, vector<256x4xf32>, vector<24x4xf32> -> vector<304x4xf32>
    %15 = vector.extract_strided_slice %14 {offsets = [7, 0], sizes = [256, 4], strides = [1, 1]} : vector<304x4xf32> to vector<256x4xf32>
    %16 = vector.broadcast %2 : vector<256x1xf32> to vector<256x4xf32>
    %17 = arith.mulf %15, %16 : vector<256x4xf32>
    %18 = vector.extract_strided_slice %14 {offsets = [8, 0], sizes = [256, 4], strides = [1, 1]} : vector<304x4xf32> to vector<256x4xf32>
    %19 = vector.extract_strided_slice %14 {offsets = [9, 0], sizes = [256, 4], strides = [1, 1]} : vector<304x4xf32> to vector<256x4xf32>
    %20 = vector.broadcast %3 : vector<256x1xf32> to vector<256x4xf32>
    %21 = arith.mulf %19, %20 : vector<256x4xf32>
    %22 = vector.extract_strided_slice %14 {offsets = [23, 0], sizes = [256, 4], strides = [1, 1]} : vector<304x4xf32> to vector<256x4xf32>
    %23 = vector.broadcast %2 : vector<256x1xf32> to vector<256x4xf32>
    %24 = arith.mulf %22, %23 : vector<256x4xf32>
    %25 = vector.extract_strided_slice %14 {offsets = [24, 0], sizes = [256, 4], strides = [1, 1]} : vector<304x4xf32> to vector<256x4xf32>
    %26 = vector.extract_strided_slice %14 {offsets = [25, 0], sizes = [256, 4], strides = [1, 1]} : vector<304x4xf32> to vector<256x4xf32>
    %27 = vector.broadcast %3 : vector<256x1xf32> to vector<256x4xf32>
    %28 = arith.mulf %26, %27 : vector<256x4xf32>
    %29 = vector.extract_strided_slice %14 {offsets = [39, 0], sizes = [256, 4], strides = [1, 1]} : vector<304x4xf32> to vector<256x4xf32>
    %30 = vector.broadcast %2 : vector<256x1xf32> to vector<256x4xf32>
    %31 = arith.mulf %29, %30 : vector<256x4xf32>
    %32 = vector.extract_strided_slice %14 {offsets = [40, 0], sizes = [256, 4], strides = [1, 1]} : vector<304x4xf32> to vector<256x4xf32>
    %33 = vector.extract_strided_slice %14 {offsets = [41, 0], sizes = [256, 4], strides = [1, 1]} : vector<304x4xf32> to vector<256x4xf32>
    %34 = vector.broadcast %3 : vector<256x1xf32> to vector<256x4xf32>
    %35 = arith.mulf %33, %34 : vector<256x4xf32>
    %36 = tpu.concatenate %17, %18, %21, %24, %25, %28, %31, %32, %35 in 1 : vector<256x4xf32>, vector<256x4xf32>, vector<256x4xf32>, vector<256x4xf32>, vector<256x4xf32>, vector<256x4xf32>, vector<256x4xf32>, vector<256x4xf32>, vector<256x4xf32> -> vector<256x36xf32>
    %cst_16 = arith.constant dense<0.000000e+00> : vector<256x4xf32>
    %37 = tpu.matmul %36, %6, %cst_16 {dimension_numbers = #tpu.dot_dimension_numbers<[1], [0], [0], [1], [0, 0, 1, 1], [], []>} : vector<256x36xf32>, vector<36x4xf32>, vector<256x4xf32> -> vector<256x4xf32>
    %38 = vector.broadcast %7 : vector<1x4xf32> to vector<256x4xf32>
    %39 = arith.addf %37, %38 : vector<256x4xf32>
    %cst_17 = arith.constant 0.000000e+00 : f32
    %40 = vector.broadcast %cst_17 : f32 to vector<256x4xf32>
    %41 = arith.maximumf %39, %40 : vector<256x4xf32>
    %42 = tpu.concatenate %1, %41 in 1 : vector<256x4xf32>, vector<256x4xf32> -> vector<256x8xf32>
    %c0_18 = arith.constant 0 : index
    %c0_19 = arith.constant 0 : index
    %43 = vector.load %arg8[%c0_18, %c0_19] : memref<8x8xf32, #tpu.memory_space<vmem>>, vector<8x8xf32>
    %c0_20 = arith.constant 0 : index
    %c0_21 = arith.constant 0 : index
    %44 = vector.load %arg9[%c0_20, %c0_21] : memref<1x8xf32, #tpu.memory_space<vmem>>, vector<1x8xf32>
    %c0_22 = arith.constant 0 : index
    %c0_23 = arith.constant 0 : index
    %45 = vector.load %arg10[%c0_22, %c0_23] : memref<72x4xf32, #tpu.memory_space<vmem>>, vector<72x4xf32>
    %c0_24 = arith.constant 0 : index
    %c0_25 = arith.constant 0 : index
    %46 = vector.load %arg11[%c0_24, %c0_25] : memref<1x4xf32, #tpu.memory_space<vmem>>, vector<1x4xf32>
    %cst_26 = arith.constant dense<0.000000e+00> : vector<256x8xf32>
    %47 = tpu.matmul %42, %43, %cst_26 {dimension_numbers = #tpu.dot_dimension_numbers<[1], [0], [0], [1], [0, 0, 1, 1], [], []>} : vector<256x8xf32>, vector<8x8xf32>, vector<256x8xf32> -> vector<256x8xf32>
    %48 = vector.broadcast %44 : vector<1x8xf32> to vector<256x8xf32>
    %49 = arith.addf %47, %48 : vector<256x8xf32>
    %cst_27 = arith.constant 0.000000e+00 : f32
    %50 = vector.broadcast %cst_27 : f32 to vector<256x8xf32>
    %51 = arith.maximumf %49, %50 : vector<256x8xf32>
    %cst_28 = arith.constant 0.000000e+00 : f32
    %52 = vector.broadcast %cst_28 : f32 to vector<24x8xf32>
    %53 = tpu.concatenate %52, %51, %52 in 0 : vector<24x8xf32>, vector<256x8xf32>, vector<24x8xf32> -> vector<304x8xf32>
    %54 = vector.extract_strided_slice %53 {offsets = [7, 0], sizes = [256, 8], strides = [1, 1]} : vector<304x8xf32> to vector<256x8xf32>
    %55 = vector.broadcast %2 : vector<256x1xf32> to vector<256x8xf32>
    %56 = arith.mulf %54, %55 : vector<256x8xf32>
    %57 = vector.extract_strided_slice %53 {offsets = [8, 0], sizes = [256, 8], strides = [1, 1]} : vector<304x8xf32> to vector<256x8xf32>
    %58 = vector.extract_strided_slice %53 {offsets = [9, 0], sizes = [256, 8], strides = [1, 1]} : vector<304x8xf32> to vector<256x8xf32>
    %59 = vector.broadcast %3 : vector<256x1xf32> to vector<256x8xf32>
    %60 = arith.mulf %58, %59 : vector<256x8xf32>
    %61 = vector.extract_strided_slice %53 {offsets = [23, 0], sizes = [256, 8], strides = [1, 1]} : vector<304x8xf32> to vector<256x8xf32>
    %62 = vector.broadcast %2 : vector<256x1xf32> to vector<256x8xf32>
    %63 = arith.mulf %61, %62 : vector<256x8xf32>
    %64 = vector.extract_strided_slice %53 {offsets = [24, 0], sizes = [256, 8], strides = [1, 1]} : vector<304x8xf32> to vector<256x8xf32>
    %65 = vector.extract_strided_slice %53 {offsets = [25, 0], sizes = [256, 8], strides = [1, 1]} : vector<304x8xf32> to vector<256x8xf32>
    %66 = vector.broadcast %3 : vector<256x1xf32> to vector<256x8xf32>
    %67 = arith.mulf %65, %66 : vector<256x8xf32>
    %68 = vector.extract_strided_slice %53 {offsets = [39, 0], sizes = [256, 8], strides = [1, 1]} : vector<304x8xf32> to vector<256x8xf32>
    %69 = vector.broadcast %2 : vector<256x1xf32> to vector<256x8xf32>
    %70 = arith.mulf %68, %69 : vector<256x8xf32>
    %71 = vector.extract_strided_slice %53 {offsets = [40, 0], sizes = [256, 8], strides = [1, 1]} : vector<304x8xf32> to vector<256x8xf32>
    %72 = vector.extract_strided_slice %53 {offsets = [41, 0], sizes = [256, 8], strides = [1, 1]} : vector<304x8xf32> to vector<256x8xf32>
    %73 = vector.broadcast %3 : vector<256x1xf32> to vector<256x8xf32>
    %74 = arith.mulf %72, %73 : vector<256x8xf32>
    %75 = tpu.concatenate %56, %57, %60, %63, %64, %67, %70, %71, %74 in 1 : vector<256x8xf32>, vector<256x8xf32>, vector<256x8xf32>, vector<256x8xf32>, vector<256x8xf32>, vector<256x8xf32>, vector<256x8xf32>, vector<256x8xf32>, vector<256x8xf32> -> vector<256x72xf32>
    %cst_29 = arith.constant dense<0.000000e+00> : vector<256x4xf32>
    %76 = tpu.matmul %75, %45, %cst_29 {dimension_numbers = #tpu.dot_dimension_numbers<[1], [0], [0], [1], [0, 0, 1, 1], [], []>} : vector<256x72xf32>, vector<72x4xf32>, vector<256x4xf32> -> vector<256x4xf32>
    %77 = vector.broadcast %46 : vector<1x4xf32> to vector<256x4xf32>
    %78 = arith.addf %76, %77 : vector<256x4xf32>
    %cst_30 = arith.constant 0.000000e+00 : f32
    %79 = vector.broadcast %cst_30 : f32 to vector<256x4xf32>
    %80 = arith.maximumf %78, %79 : vector<256x4xf32>
    %81 = tpu.concatenate %42, %80 in 1 : vector<256x8xf32>, vector<256x4xf32> -> vector<256x12xf32>
    %c0_31 = arith.constant 0 : index
    %c0_32 = arith.constant 0 : index
    %82 = vector.load %arg12[%c0_31, %c0_32] : memref<12x128xf32, #tpu.memory_space<vmem>>, vector<12x128xf32>
    %c0_33 = arith.constant 0 : index
    %c0_34 = arith.constant 0 : index
    %83 = vector.load %arg13[%c0_33, %c0_34] : memref<1x128xf32, #tpu.memory_space<vmem>>, vector<1x128xf32>
    %c0_35 = arith.constant 0 : index
    %c0_36 = arith.constant 0 : index
    %84 = vector.load %arg14[%c0_35, %c0_36] : memref<12x128xf32, #tpu.memory_space<vmem>>, vector<12x128xf32>
    %c0_37 = arith.constant 0 : index
    %c0_38 = arith.constant 0 : index
    %85 = vector.load %arg15[%c0_37, %c0_38] : memref<1x128xf32, #tpu.memory_space<vmem>>, vector<1x128xf32>
    %c0_39 = arith.constant 0 : index
    %c0_40 = arith.constant 0 : index
    %86 = vector.load %arg16[%c0_39, %c0_40] : memref<12x128xf32, #tpu.memory_space<vmem>>, vector<12x128xf32>
    %c0_41 = arith.constant 0 : index
    %c0_42 = arith.constant 0 : index
    %87 = vector.load %arg17[%c0_41, %c0_42] : memref<1x128xf32, #tpu.memory_space<vmem>>, vector<1x128xf32>
    %cst_43 = arith.constant dense<0.000000e+00> : vector<256x128xf32>
    %88 = tpu.matmul %81, %82, %cst_43 {dimension_numbers = #tpu.dot_dimension_numbers<[1], [0], [0], [1], [0, 0, 1, 1], [], []>} : vector<256x12xf32>, vector<12x128xf32>, vector<256x128xf32> -> vector<256x128xf32>
    %89 = vector.broadcast %83 : vector<1x128xf32> to vector<256x128xf32>
    %90 = arith.addf %88, %89 : vector<256x128xf32>
    %cst_44 = arith.constant dense<0.000000e+00> : vector<256x128xf32>
    %91 = tpu.matmul %81, %84, %cst_44 {dimension_numbers = #tpu.dot_dimension_numbers<[1], [0], [0], [1], [0, 0, 1, 1], [], []>} : vector<256x12xf32>, vector<12x128xf32>, vector<256x128xf32> -> vector<256x128xf32>
    %92 = vector.broadcast %85 : vector<1x128xf32> to vector<256x128xf32>
    %93 = arith.addf %91, %92 : vector<256x128xf32>
    %cst_45 = arith.constant dense<0.000000e+00> : vector<256x128xf32>
    %94 = tpu.matmul %81, %86, %cst_45 {dimension_numbers = #tpu.dot_dimension_numbers<[1], [0], [0], [1], [0, 0, 1, 1], [], []>} : vector<256x12xf32>, vector<12x128xf32>, vector<256x128xf32> -> vector<256x128xf32>
    %95 = vector.broadcast %87 : vector<1x128xf32> to vector<256x128xf32>
    %96 = arith.addf %94, %95 : vector<256x128xf32>
    %97 = arith.negf %96 : vector<256x128xf32>
    %98 = math.exp %97 : vector<256x128xf32>
    %cst_46 = arith.constant 1.000000e+00 : f32
    %99 = vector.broadcast %cst_46 : f32 to vector<256x128xf32>
    %100 = arith.addf %99, %98 : vector<256x128xf32>
    %101 = arith.divf %99, %100 : vector<256x128xf32>
    %102 = arith.mulf %93, %101 : vector<256x128xf32>
    %103 = arith.addf %90, %102 : vector<256x128xf32>
    %c0_47 = arith.constant 0 : index
    %c0_48 = arith.constant 0 : index
    %c0_49 = arith.constant 0 : index
    %104 = vector.load %arg18[%c0_47, %c0_48, %c0_49] : memref<1x256x128xf32, #tpu.memory_space<vmem>>, vector<1x256x128xf32>
    %105 = vector.shape_cast %104 : vector<1x256x128xf32> to vector<256x128xf32>
    %106 = vector.shape_cast %103 : vector<256x128xf32> to vector<1x256x128xf32>
    tpu.vector_store %arg18[%c0_47, %c0_48, %c0_49], %106 {strides = array<i32>} : memref<1x256x128xf32, #tpu.memory_space<vmem>>, vector<1x256x128xf32>,
    return
  }
  func.func @transform_0(%arg0: i32) -> (i32, i32, i32) {
    %c0_i32 = arith.constant 0 : i32
    %c0_i32_0 = arith.constant 0 : i32
    %c0_i32_1 = arith.constant 0 : i32
    return %arg0, %c0_i32, %c0_i32_0 : i32, i32, i32
  }
  func.func @transform_1(%arg0: i32) -> (i32, i32) {
    %c0_i32 = arith.constant 0 : i32
    %c0_i32_0 = arith.constant 0 : i32
    %c0_i32_1 = arith.constant 0 : i32
    return %c0_i32, %c0_i32_0 : i32, i32
  }
  func.func @transform_2(%arg0: i32) -> (i32, i32) {
    %c0_i32 = arith.constant 0 : i32
    %c0_i32_0 = arith.constant 0 : i32
    %c0_i32_1 = arith.constant 0 : i32
    return %c0_i32, %c0_i32_0 : i32, i32
  }
  func.func @transform_3(%arg0: i32) -> (i32, i32) {
    %c0_i32 = arith.constant 0 : i32
    %c0_i32_0 = arith.constant 0 : i32
    %c0_i32_1 = arith.constant 0 : i32
    return %c0_i32, %c0_i32_0 : i32, i32
  }
  func.func @transform_4(%arg0: i32) -> (i32, i32) {
    %c0_i32 = arith.constant 0 : i32
    %c0_i32_0 = arith.constant 0 : i32
    %c0_i32_1 = arith.constant 0 : i32
    return %c0_i32, %c0_i32_0 : i32, i32
  }
  func.func @transform_5(%arg0: i32) -> (i32, i32) {
    %c0_i32 = arith.constant 0 : i32
    %c0_i32_0 = arith.constant 0 : i32
    %c0_i32_1 = arith.constant 0 : i32
    return %c0_i32, %c0_i32_0 : i32, i32
  }
  func.func @transform_6(%arg0: i32) -> (i32, i32) {
    %c0_i32 = arith.constant 0 : i32
    %c0_i32_0 = arith.constant 0 : i32
    %c0_i32_1 = arith.constant 0 : i32
    return %c0_i32, %c0_i32_0 : i32, i32
  }
  func.func @transform_7(%arg0: i32) -> (i32, i32) {
    %c0_i32 = arith.constant 0 : i32
    %c0_i32_0 = arith.constant 0 : i32
    %c0_i32_1 = arith.constant 0 : i32
    return %c0_i32, %c0_i32_0 : i32, i32
  }
  func.func @transform_8(%arg0: i32) -> (i32, i32) {
    %c0_i32 = arith.constant 0 : i32
    %c0_i32_0 = arith.constant 0 : i32
    %c0_i32_1 = arith.constant 0 : i32
    return %c0_i32, %c0_i32_0 : i32, i32
  }
  func.func @transform_9(%arg0: i32) -> (i32, i32) {
    %c0_i32 = arith.constant 0 : i32
    %c0_i32_0 = arith.constant 0 : i32
    %c0_i32_1 = arith.constant 0 : i32
    return %c0_i32, %c0_i32_0 : i32, i32
  }
  func.func @transform_10(%arg0: i32) -> (i32, i32) {
    %c0_i32 = arith.constant 0 : i32
    %c0_i32_0 = arith.constant 0 : i32
    %c0_i32_1 = arith.constant 0 : i32
    return %c0_i32, %c0_i32_0 : i32, i32
  }
  func.func @transform_11(%arg0: i32) -> (i32, i32) {
    %c0_i32 = arith.constant 0 : i32
    %c0_i32_0 = arith.constant 0 : i32
    %c0_i32_1 = arith.constant 0 : i32
    return %c0_i32, %c0_i32_0 : i32, i32
  }
  func.func @transform_12(%arg0: i32) -> (i32, i32) {
    %c0_i32 = arith.constant 0 : i32
    %c0_i32_0 = arith.constant 0 : i32
    %c0_i32_1 = arith.constant 0 : i32
    return %c0_i32, %c0_i32_0 : i32, i32
  }
  func.func @transform_13(%arg0: i32) -> (i32, i32) {
    %c0_i32 = arith.constant 0 : i32
    %c0_i32_0 = arith.constant 0 : i32
    %c0_i32_1 = arith.constant 0 : i32
    return %c0_i32, %c0_i32_0 : i32, i32
  }
  func.func @transform_14(%arg0: i32) -> (i32, i32) {
    %c0_i32 = arith.constant 0 : i32
    %c0_i32_0 = arith.constant 0 : i32
    %c0_i32_1 = arith.constant 0 : i32
    return %c0_i32, %c0_i32_0 : i32, i32
  }
  func.func @transform_15(%arg0: i32) -> (i32, i32) {
    %c0_i32 = arith.constant 0 : i32
    %c0_i32_0 = arith.constant 0 : i32
    %c0_i32_1 = arith.constant 0 : i32
    return %c0_i32, %c0_i32_0 : i32, i32
  }
  func.func @transform_16(%arg0: i32) -> (i32, i32) {
    %c0_i32 = arith.constant 0 : i32
    %c0_i32_0 = arith.constant 0 : i32
    %c0_i32_1 = arith.constant 0 : i32
    return %c0_i32, %c0_i32_0 : i32, i32
  }
  func.func @transform_17(%arg0: i32) -> (i32, i32, i32) {
    %c0_i32 = arith.constant 0 : i32
    %c0_i32_0 = arith.constant 0 : i32
    %c0_i32_1 = arith.constant 0 : i32
    return %arg0, %c0_i32, %c0_i32_0 : i32, i32, i32
  }
}

</mosaic_0001>

<bundles_post_ra>
// kernel: densenet_forward.1
= control target key start
LH: loop header
LB: loop body
LE: loop exit
PB: predicated region body
PF: predicated region fallthrough
CT: control target
= control target key end

     0   :  { %s8795_s24 = smov 0   ;;  %s14929_s0 = inlined_call_operand.vmem [shape: f32[2,256,4], index: 0, kind: input, shape index: {}]   ;;  %s14930_s1 = inlined_call_operand.vmem [shape: f32[256,1], index: 1, kind: input, shape index: {}]   ;;  %s14931_s2 = inlined_call_operand.vmem [shape: f32[256,1], index: 2, kind: input, shape index: {}]   ;;  %s14932_s3 = inlined_call_operand.vmem [shape: f32[4,4], index: 3, kind: input, shape index: {}]   ;;  %s14933_s4 = inlined_call_operand.vmem [shape: f32[1,4], index: 4, kind: input, shape index: {}]   ;;  %s14934_s5 = inlined_call_operand.vmem [shape: f32[36,4], index: 5, kind: input, shape index: {}]   ;;  %s14935_s6 = inlined_call_operand.vmem [shape: f32[1,4], index: 6, kind: input, shape index: {}]   ;;  %s14936_s7 = inlined_call_operand.vmem [shape: f32[8,8], index: 7, kind: input, shape index: {}]   ;;  %s14937_s8 = inlined_call_operand.vmem [shape: f32[1,8], index: 8, kind: input, shape index: {}]   ;;  %s14938_s9 = inlined_call_operand.vmem [shape: f32[72,4], index: 9, kind: input, shape index: {}]   ;;  %s14939_s10 = inlined_call_operand.vmem [shape: f32[1,4], index: 10, kind: input, shape index: {}]   ;;  %s14940_s11 = inlined_call_operand.vmem [shape: f32[12,128], index: 11, kind: input, shape index: {}]   ;;  %s14941_s12 = inlined_call_operand.vmem [shape: f32[1,128], index: 12, kind: input, shape index: {}]   ;;  %s14942_s13 = inlined_call_operand.vmem [shape: f32[12,128], index: 13, kind: input, shape index: {}]   ;;  %s14943_s14 = inlined_call_operand.vmem [shape: f32[1,128], index: 14, kind: input, shape index: {}]   ;;  %s14944_s15 = inlined_call_operand.vmem [shape: f32[12,128], index: 15, kind: input, shape index: {}]   ;;  %s14945_s16 = inlined_call_operand.vmem [shape: f32[1,128], index: 16, kind: input, shape index: {}]   ;;  %s14946_s17 = inlined_call_operand.vmem [shape: f32[2,256,128], index: 17, kind: output, shape index: {}]  }
   0x1   :  { %15286 = sst [smem:[#allocation104_spill]] %s14929_s0 }
   0x2   :  { %15287 = sst [smem:[#allocation105_spill]] %s14930_s1 }
   0x3 LB: > { %s7566_s25 = sadd.s32 4294967295, %s8689_s24   ;;  %p7570_p0 = scmp.ge.s32.totalorder %s8689_s24, 1  ;;  %s8689_s24 = sphi %s8795_s24, %s27_s24  }
   0x4   : > { %p487_p1 = scmp.lt.s32.totalorder %s8689_s24, 3 }
   0x6   : > { %p488_p2 = pnand %p7570_p0, %p487_p1 }
   0x8   : > { %491 = sbr.rel (%p488_p2) target bundleno = 2314 (0x90a), region = 88 }
   0xd   : > { %s15288_s28 = sld [smem:[#allocation105_spill]]  ;;  %v645_v2 = vld [vmem:[%s14932_s3] sm:$0xf]  ;;  %vm756_vm0 = vcmask 1043456   ;;  %v8691_v3 = vmov 0   ;;  %p539_p3 = scmp.lt.s32.totalorder %s7566_s25, 1 }
   0xe   : > { %8498 = vset.pattern.permute.xlu1 %v8691_v3  ;;  %8497 = vset.pattern.permute.xlu0 %v8691_v3  ;;  %vm659_vm1 = vcmask 31744   ;;  %s15289_s27 = sld [smem:[#allocation104_spill]]  ;;  %v613_v3 = vld [vmem:[%s14931_s2] sm:$0xff]  ;;  %s14971_s0 = smov 12   ;;  %vm1403_vm2 = vcmask 1040384   ;;  %vm1888_vm3 = vcmask 1045504  }
   0xf   : > { %8093 = vmatprep.subr.msk.mxu0 %vm756_vm0, %v645_v2  ;;  %8473 = vmatprep.subr.msk.mxu1 %vm756_vm0, %v645_v2  ;;  %s15766_s25 = smov (!%p539_p3, %s7566_s25), 1  ;;  %s8694_s30 = smov 4   ;;  %vm1145_vm4 = vcmask 1046528   ;;  %vm2947_vm5 = vcmask 64512   ;;  %vm2981_vm6 = vcmask 97280   ;;  %vm3015_vm7 = vcmask 130048  }
  0x10   : > { %8094 = vmatpush3.msk.msra.mxu0 %vm756_vm0, %v645_v2  ;;  %8474 = vmatpush3.msk.msra.mxu1 %vm756_vm0, %v645_v2  ;;  %s14970_s22 = sshll.u32 %s15766_s25, 8  ;;  %v614_v2 = vld [vmem:[%s14931_s2 + $0x8] sm:$0xff]  ;;  %s8695_s18 = smov 8   ;;  %vm3049_vm8 = vcmask 162816   ;;  %vm3083_vm9 = vcmask 195584   ;;  %vm3151_vm10 = vcmask 261120  }
  0x11   : > { %s8696_s20 = smov 24   ;;  %s8697_s21 = smov 16   ;;  %vm3117_vm11 = vcmask 228352   ;;  %vm3289_vm12 = vcmask 293888   ;;  %vm5694_vm13 = vcmask 326656   ;;  %vm5728_vm14 = vcmask 392192  }
  0x12   : > { %s8698_s23 = smov 20   ;;  %s8699_s26 = smov 28   ;;  %vm5796_vm15 = vcmask 523264  }
  0x13   : > { %v583_v0 = vld [vmem:[%s15288_s28 + $0x10] sm:$0xff]  ;;  %v581_v1 = vld [vmem:[%s15288_s28] sm:$0xff]  ;;  %v584_v4 = vld [vmem:[%s15288_s28 + $0x18] sm:$0xff]  ;;  %s8702_s19 = smov 40   ;;  %s8703_s1 = smov 56  }
  0x14   : > { %1027 = vperm.xlu1 %8498, %v583_v0   ;;  %1019 = vperm.xlu0 %8497, %v581_v1   ;;  %v582_v5 = vld [vmem:[%s15288_s28 + $0x8] sm:$0xff]  ;;  %s8830_s29 = scalar_lea.vmem %s15289_s27, %s14970_s22  ;;  %v585_v7 = vld [vmem:[%s15288_s28 + $0x20] sm:$0xff]  ;;  %v588_v16 = vld [vmem:[%s15288_s28 + $0x38] sm:$0xff]  ;;  %s8700_s27 = smov 32  }
  0x15   : > { %v586_v6 = vld [vmem:[%s15288_s28 + $0x28] sm:$0xff]  ;;  %v549_v8 = vld [vmem:[%s8830_s29] sm:$0xff]  ;;  %v551_v12 = vld [vmem:[%s8830_s29 + $0x10] sm:$0xff]  ;;  %s15360_s22 = smov 12  }
  0x16   : > { %v565_v9 = vld [vmem:[%s8830_s29 + $0x80] sm:$0xff]  ;;  %v550_v10 = vld [vmem:[%s8830_s29 + $0x8] sm:$0xff]  ;;  %8095 = vmatprep.mubr.msk.f32.mxu0 %vm659_vm1, %v549_v8  ;;  %v567_v13 = vld [vmem:[%s8830_s29 + $0x90] sm:$0xff] }
  0x17   : > { %8119 = vmatprep.mubr.msk.f32.mxu1 %vm659_vm1, %v565_v9  ;;  %v566_v11 = vld [vmem:[%s8830_s29 + $0x88] sm:$0xff]  ;;  %8096 = vmatmul.mubr.msk.f32.vlgmr.msra.gmra.mxu0 %vm659_vm1, %v550_v10  ;;  %v552_v14 = vld [vmem:[%s8830_s29 + $0x18] sm:$0xff]  ;;  %v587_v17 = vld [vmem:[%s15288_s28 + $0x30] sm:$0xff] }
  0x18   : > { %1031 = vperm.xlu1 %8498, %v584_v4   ;;  %1023 = vperm.xlu0 %8497, %v582_v5   ;;  %v568_v15 = vld [vmem:[%s8830_s29 + $0x98] sm:$0xff]  ;;  %v553_v18 = vld [vmem:[%s8830_s29 + $0x20] sm:$0xff]  ;;  %v554_v20 = vld [vmem:[%s8830_s29 + $0x28] sm:$0xff] }
  0x19   : > { %8120 = vmatmul.mubr.msk.f32.vlgmr.msra.gmra.mxu1 %vm659_vm1, %v566_v11  ;;  %8098 = vmatprep.mubr.msk.f32.mxu0 %vm659_vm1, %v551_v12  ;;  %v569_v19 = vld [vmem:[%s8830_s29 + $0xa0] sm:$0xff]  ;;  %v570_v21 = vld [vmem:[%s8830_s29 + $0xa8] sm:$0xff]  ;;  %v555_v24 = vld [vmem:[%s8830_s29 + $0x30] sm:$0xff] }
  0x1a   : > { %8122 = vmatprep.mubr.msk.f32.mxu1 %vm659_vm1, %v567_v13  ;;  %v590_v22 = vld [vmem:[%s15288_s28 + $0x48] sm:$0xff]  ;;  %v589_v23 = vld [vmem:[%s15288_s28 + $0x40] sm:$0xff]  ;;  %v571_v25 = vld [vmem:[%s8830_s29 + $0xb0] sm:$0xff] }
  0x1b   : > { %8099 = vmatmul.mubr.msk.f32.gmra.mxu0 %vm659_vm1, %v552_v14  ;;  %v556_v26 = vld [vmem:[%s8830_s29 + $0x38] sm:$0xff]  ;;  %v591_v29 = vld [vmem:[%s15288_s28 + $0x50] sm:$0xff]  ;;  %v557_v30 = vld [vmem:[%s8830_s29 + $0x40] sm:$0xff] }
  0x1c   : > { %1039 = vperm.xlu1 %8498, %v586_v6   ;;  %1035 = vperm.xlu0 %8497, %v585_v7   ;;  %v572_v27 = vld [vmem:[%s8830_s29 + $0xb8] sm:$0xff]  ;;  %v573_v31 = vld [vmem:[%s8830_s29 + $0xc0] sm:$0xff]  ;;  %v558_v32 = vld [vmem:[%s8830_s29 + $0x48] sm:$0xff] }
  0x1d   : > { %8123 = vmatmul.mubr.msk.f32.gmra.mxu1 %vm659_vm1, %v568_v15  ;;  %8101 = vmatprep.mubr.msk.f32.mxu0 %vm659_vm1, %v553_v18  ;;  %v592_v28 = vld [vmem:[%s15288_s28 + $0x58] sm:$0xff]  ;;  %v574_v33 = vld [vmem:[%s8830_s29 + $0xc8] sm:$0xff]  ;;  %v593_v35 = vld [vmem:[%s15288_s28 + $0x60] sm:$0xff] }
  0x1e   : > { %8125 = vmatprep.mubr.msk.f32.mxu1 %vm659_vm1, %v569_v19  ;;  %v594_v34 = vld [vmem:[%s15288_s28 + $0x68] sm:$0xff]  ;;  %v559_v36 = vld [vmem:[%s8830_s29 + $0x50] sm:$0xff]  ;;  %v560_v38 = vld [vmem:[%s8830_s29 + $0x58] sm:$0xff] }
  0x1f   : > { %8102 = vmatmul.mubr.msk.f32.gmra.mxu0 %vm659_vm1, %v554_v20  ;;  %v575_v37 = vld [vmem:[%s8830_s29 + $0xd0] sm:$0xff]  ;;  %v576_v39 = vld [vmem:[%s8830_s29 + $0xd8] sm:$0xff]  ;;  %v561_v42 = vld [vmem:[%s8830_s29 + $0x60] sm:$0xff] }
  0x20   : > { %1047 = vperm.xlu1 %8498, %v588_v16   ;;  %1043 = vperm.xlu0 %8497, %v587_v17   ;;  %v596_v40 = vld [vmem:[%s15288_s28 + $0x78] sm:$0xff]  ;;  %v595_v41 = vld [vmem:[%s15288_s28 + $0x70] sm:$0xff]  ;;  %v577_v43 = vld [vmem:[%s8830_s29 + $0xe0] sm:$0xff] }
  0x21   : > { %8126 = vmatmul.mubr.msk.f32.gmra.mxu1 %vm659_vm1, %v570_v21  ;;  %8104 = vmatprep.mubr.msk.f32.mxu0 %vm659_vm1, %v555_v24  ;;  %v562_v44 = vld [vmem:[%s8830_s29 + $0x68] sm:$0xff]  ;;  %v597_v47 = vld [vmem:[%s15288_s28 + $0x80] sm:$0xff]  ;;  %v563_v48 = vld [vmem:[%s8830_s29 + $0x70] sm:$0xff] }
  0x22   : > { %8128 = vmatprep.mubr.msk.f32.mxu1 %vm659_vm1, %v571_v25  ;;  %v578_v45 = vld [vmem:[%s8830_s29 + $0xe8] sm:$0xff]  ;;  %v579_v49 = vld [vmem:[%s8830_s29 + $0xf0] sm:$0xff]  ;;  %v564_v50 = vld [vmem:[%s8830_s29 + $0x78] sm:$0xff] }
  0x23   : > { %8105 = vmatmul.mubr.msk.f32.gmra.mxu0 %vm659_vm1, %v556_v26  ;;  %v598_v46 = vld [vmem:[%s15288_s28 + $0x88] sm:$0xff]  ;;  %v580_v51 = vld [vmem:[%s8830_s29 + $0xf8] sm:$0xff]  ;;  %v599_v53 = vld [vmem:[%s15288_s28 + $0x90] sm:$0xff] }
  0x24   : > { %1055 = vperm.xlu1 %8498, %v590_v22   ;;  %1051 = vperm.xlu0 %8497, %v589_v23   ;;  %v600_v52 = vld [vmem:[%s15288_s28 + $0x98] sm:$0xff]  ;;  %v602_v54 = vld [vmem:[%s15288_s28 + $0xa8] sm:$0xff]  ;;  %v601_v55 = vld [vmem:[%s15288_s28 + $0xa0] sm:$0xff] }
  0x25   : > { %8129 = vmatmul.mubr.msk.f32.gmra.mxu1 %vm659_vm1, %v572_v27  ;;  %8107 = vmatprep.mubr.msk.f32.mxu0 %vm659_vm1, %v557_v30  ;;  %v604_v56 = vld [vmem:[%s15288_s28 + $0xb8] sm:$0xff]  ;;  %v603_v57 = vld [vmem:[%s15288_s28 + $0xb0] sm:$0xff]  ;;  %v606_v58 = vld [vmem:[%s15288_s28 + $0xc8] sm:$0xff] }
  0x26   : > { %8131 = vmatprep.mubr.msk.f32.mxu1 %vm659_vm1, %v573_v31  ;;  %v605_v59 = vld [vmem:[%s15288_s28 + $0xc0] sm:$0xff]  ;;  %v608_v60 = vld [vmem:[%s15288_s28 + $0xd8] sm:$0xff]  ;;  %v607_v61 = vld [vmem:[%s15288_s28 + $0xd0] sm:$0xff] }
  0x27   : > { %8108 = vmatmul.mubr.msk.f32.gmra.mxu0 %vm659_vm1, %v558_v32  ;;  %v610_v62 = vld [vmem:[%s15288_s28 + $0xe8] sm:$0xff]  ;;  %v609_v63 = vld [vmem:[%s15288_s28 + $0xe0] sm:$0xff]  ;;  %v612_v0 = vld [vmem:[%s15288_s28 + $0xf8] sm:$0xff]  ;;  %v8692_v32 = vmov 0.0  }
  0x28   : > { %1063 = vperm.xlu1 %8498, %v592_v28   ;;  %1059 = vperm.xlu0 %8497, %v591_v29   ;;  %v611_v1 = vld [vmem:[%s15288_s28 + $0xf0] sm:$0xff]  ;;  %v616_v4 = vld [vmem:[%s14931_s2 + $0x18] sm:$0xff]  ;;  %v618_v6 = vld [vmem:[%s14931_s2 + $0x28] sm:$0xff] }
  0x29   : > { %8132 = vmatmul.mubr.msk.f32.gmra.mxu1 %vm659_vm1, %v574_v33  ;;  %8110 = vmatprep.mubr.msk.f32.mxu0 %vm659_vm1, %v559_v36  ;;  %v615_v5 = vld [vmem:[%s14931_s2 + $0x10] sm:$0xff]  ;;  %v617_v7 = vld [vmem:[%s14931_s2 + $0x20] sm:$0xff]  ;;  %v620_v8 = vld [vmem:[%s14931_s2 + $0x38] sm:$0xff]  ;;  %v9070_v33 = vrot.slane %v8692_v32, 1 }
  0x2a   : > { %8134 = vmatprep.mubr.msk.f32.mxu1 %vm659_vm1, %v575_v37  ;;  %v619_v9 = vld [vmem:[%s14931_s2 + $0x30] sm:$0xff]  ;;  %v622_v10 = vld [vmem:[%s14931_s2 + $0x48] sm:$0xff]  ;;  %v621_v11 = vld [vmem:[%s14931_s2 + $0x40] sm:$0xff] }
  0x2b   : > { %8111 = vmatmul.mubr.msk.f32.gmra.mxu0 %vm659_vm1, %v560_v38  ;;  %v624_v12 = vld [vmem:[%s14931_s2 + $0x58] sm:$0xff]  ;;  %v623_v13 = vld [vmem:[%s14931_s2 + $0x50] sm:$0xff]  ;;  %v626_v14 = vld [vmem:[%s14931_s2 + $0x68] sm:$0xff]  ;;  %15290 = vst [vmem:[#allocation2_spill] sm:$0xff] %v9070_v33 }
  0x2c   : > { %1071 = vperm.xlu1 %8498, %v594_v34   ;;  %1067 = vperm.xlu0 %8497, %v593_v35   ;;  %v625_v15 = vld [vmem:[%s14931_s2 + $0x60] sm:$0xff]  ;;  %v628_v16 = vld [vmem:[%s14931_s2 + $0x78] sm:$0xff]  ;;  %v627_v17 = vld [vmem:[%s14931_s2 + $0x70] sm:$0xff] }
  0x2d   : > { %8135 = vmatmul.mubr.msk.f32.gmra.mxu1 %vm659_vm1, %v576_v39  ;;  %8113 = vmatprep.mubr.msk.f32.mxu0 %vm659_vm1, %v561_v42  ;;  %v630_v18 = vld [vmem:[%s14931_s2 + $0x88] sm:$0xff]  ;;  %v629_v19 = vld [vmem:[%s14931_s2 + $0x80] sm:$0xff]  ;;  %v632_v20 = vld [vmem:[%s14931_s2 + $0x98] sm:$0xff]  ;;  %v9084_v39 = vpack.i.bf16 %v9070_v33, %v9070_v33 }
  0x2e   : > { %8137 = vmatprep.mubr.msk.f32.mxu1 %vm659_vm1, %v577_v43  ;;  %v631_v21 = vld [vmem:[%s14931_s2 + $0x90] sm:$0xff]  ;;  %v634_v22 = vld [vmem:[%s14931_s2 + $0xa8] sm:$0xff]  ;;  %v633_v23 = vld [vmem:[%s14931_s2 + $0xa0] sm:$0xff] }
  0x2f   : > { %8114 = vmatmul.mubr.msk.f32.gmra.mxu0 %vm659_vm1, %v562_v44  ;;  %v636_v24 = vld [vmem:[%s14931_s2 + $0xb8] sm:$0xff]  ;;  %v635_v25 = vld [vmem:[%s14931_s2 + $0xb0] sm:$0xff]  ;;  %v638_v26 = vld [vmem:[%s14931_s2 + $0xc8] sm:$0xff]  ;;  %15292 = vst [vmem:[#allocation4_spill] sm:$0xff] %v9084_v39 }
  0x30   : > { %1079 = vperm.xlu1 %8498, %v596_v40   ;;  %1075 = vperm.xlu0 %8497, %v595_v41   ;;  %v637_v27 = vld [vmem:[%s14931_s2 + $0xc0] sm:$0xff]  ;;  %v640_v28 = vld [vmem:[%s14931_s2 + $0xd8] sm:$0xff]  ;;  %v639_v29 = vld [vmem:[%s14931_s2 + $0xd0] sm:$0xff] }
  0x31   : > { %8138 = vmatmul.mubr.msk.f32.gmra.mxu1 %vm659_vm1, %v578_v45  ;;  %8116 = vmatprep.mubr.msk.f32.mxu0 %vm659_vm1, %v563_v48  ;;  %v642_v30 = vld [vmem:[%s14931_s2 + $0xe8] sm:$0xff]  ;;  %v641_v31 = vld [vmem:[%s14931_s2 + $0xe0] sm:$0xff]  ;;  %v644_v34 = vld [vmem:[%s14931_s2 + $0xf8] sm:$0xff] }
  0x32   : > { %8140 = vmatprep.mubr.msk.f32.mxu1 %vm659_vm1, %v579_v49  ;;  %v643_v35 = vld [vmem:[%s14931_s2 + $0xf0] sm:$0xff] }
  0x33   : > { %8117 = vmatmul.mubr.msk.f32.gmra.mxu0 %vm659_vm1, %v564_v50 }
  0x34   : > { %1087 = vperm.xlu1 %8498, %v598_v46   ;;  %1083 = vperm.xlu0 %8497, %v597_v47  }
  0x35   : > { %8141 = vmatmul.mubr.msk.f32.gmra.mxu1 %vm659_vm1, %v580_v51 }
  0x38   : > { %1095 = vperm.xlu1 %8498, %v600_v52   ;;  %1091 = vperm.xlu0 %8497, %v599_v53  }
  0x3c   : > { %1103 = vperm.xlu1 %8498, %v602_v54   ;;  %1099 = vperm.xlu0 %8497, %v601_v55  }
  0x40   : > { %1111 = vperm.xlu1 %8498, %v604_v56   ;;  %1107 = vperm.xlu0 %8497, %v603_v57  }
  0x44   : > { %1119 = vperm.xlu1 %8498, %v606_v58   ;;  %1115 = vperm.xlu0 %8497, %v605_v59  }
  0x48   : > { %1127 = vperm.xlu1 %8498, %v608_v60   ;;  %1123 = vperm.xlu0 %8497, %v607_v61  }
  0x4c   : > { %1135 = vperm.xlu1 %8498, %v610_v62   ;;  %1131 = vperm.xlu0 %8497, %v609_v63  }
  0x50   : > { %1143 = vperm.xlu1 %8498, %v612_v0   ;;  %1139 = vperm.xlu0 %8497, %v611_v1  }
  0x54   : > { %1281 = vperm.xlu1 %8498, %v614_v2   ;;  %1277 = vperm.xlu0 %8497, %v613_v3  }
  0x58   : > { %1289 = vperm.xlu1 %8498, %v616_v4   ;;  %1285 = vperm.xlu0 %8497, %v615_v5  }
  0x5c   : > { %1297 = vperm.xlu1 %8498, %v618_v6   ;;  %1293 = vperm.xlu0 %8497, %v617_v7  }
  0x60   : > { %1305 = vperm.xlu1 %8498, %v620_v8   ;;  %1301 = vperm.xlu0 %8497, %v619_v9  }
  0x64   : > { %1313 = vperm.xlu1 %8498, %v622_v10   ;;  %1309 = vperm.xlu0 %8497, %v621_v11  }
  0x68   : > { %1321 = vperm.xlu1 %8498, %v624_v12   ;;  %1317 = vperm.xlu0 %8497, %v623_v13  }
  0x6c   : > { %1329 = vperm.xlu1 %8498, %v626_v14   ;;  %1325 = vperm.xlu0 %8497, %v625_v15  }
  0x70   : > { %1337 = vperm.xlu1 %8498, %v628_v16   ;;  %1333 = vperm.xlu0 %8497, %v627_v17   ;;  %v9175_v17 = vld [vmem:[%s14933_s4] ss:$0 sm:$0xff] }
  0x74   : > { %1345 = vperm.xlu1 %8498, %v630_v18   ;;  %1341 = vperm.xlu0 %8497, %v629_v19  }
  0x78   : > { %1353 = vperm.xlu1 %8498, %v632_v20   ;;  %1349 = vperm.xlu0 %8497, %v631_v21  }
  0x7c   : > { %1361 = vperm.xlu1 %8498, %v634_v22   ;;  %1357 = vperm.xlu0 %8497, %v633_v23  }
  0x80   : > { %1369 = vperm.xlu1 %8498, %v636_v24   ;;  %1365 = vperm.xlu0 %8497, %v635_v25  }
  0x84   : > { %1377 = vperm.xlu1 %8498, %v638_v26   ;;  %1373 = vperm.xlu0 %8497, %v637_v27  }
  0x88   : > { %1385 = vperm.xlu1 %8498, %v640_v28   ;;  %1381 = vperm.xlu0 %8497, %v639_v29  }
  0x8c   : > { %1393 = vperm.xlu1 %8498, %v642_v30   ;;  %1389 = vperm.xlu0 %8497, %v641_v31  }
  0x8f   : > { %v9078_v36 = vpop.permute.xlu1 %1027  ;;  %v1020_v37 = vpop.permute.xlu0 %1019 }
  0x90   : > { %v9080_v38 = vrot.slane %v1020_v37, 1  ;;  %1401 = vperm.xlu1 %8498, %v644_v34   ;;  %1397 = vperm.xlu0 %8497, %v643_v35   ;;  %v1149_v19 = vrot.slane %v9078_v36, 1 }
  0x92   : > { %15291 = vst [vmem:[#allocation3_spill] sm:$0xff] %v9080_v38  ;;  %v9087_v40 = vmul.f32 0.0, %v9080_v38 }
  0x93   : > { %v9089_v41 = vpop.permute.xlu1 %1031  ;;  %v1024_v42 = vpop.permute.xlu0 %1023 }
  0x94   : > { %15293 = vst [vmem:[#allocation5_spill] sm:$0xff] %v9087_v40  ;;  %2086 = vrot.lane.b32.xlu1 %v9087_v40, %s14971_s0  ;;  %8500 = vrot.lane.b32.xlu0 %v9084_v39, %s8694_s30  ;;  %v1147_v20 = vrot.slane %v1024_v42, 1 }
  0x96   : > { %v9185_v25 = vsel %vm1145_vm4, %v1147_v20, %v1149_v19  ;;  %v9193_v28 = vsel %vm1145_vm4, %v9080_v38, %v1147_v20  ;;  %v1151_v20 = vrot.slane %v9089_v41, 1 }
  0x97   : > { %v9095_v43 = vpop.permute.xlu1 %1039  ;;  %v9097_v44 = vpop.permute.xlu0 %1035  ;;  %15316 = vst [vmem:[#allocation28_spill] sm:$0xff] %v9185_v25  ;;  %15317 = vst [vmem:[#allocation29_spill] sm:$0xff] %v9193_v28 }
  0x9b   : > { %v9099_v45 = vpop.permute.xlu1 %1047  ;;  %v9101_v46 = vpop.permute.xlu0 %1043 }
  0x9f   : > { %v9103_v47 = vpop.permute.xlu1 %1055  ;;  %v9105_v48 = vpop.permute.xlu0 %1051 }
  0xa3   : > { %v9107_v49 = vpop.permute.xlu1 %1063  ;;  %v9109_v50 = vpop.permute.xlu0 %1059 }
  0xa7   : > { %v9111_v51 = vpop.permute.xlu1 %1071  ;;  %v9113_v52 = vpop.permute.xlu0 %1067 }
  0xab   : > { %v9115_v53 = vpop.permute.xlu1 %1079  ;;  %v9117_v54 = vpop.permute.xlu0 %1075 }
  0xac   : > { %15294 = vst [vmem:[#allocation6_spill] sm:$0xff] %v9115_v53 }
  0xaf   : > { %v9119_v55 = vpop.permute.xlu1 %1087  ;;  %v9121_v56 = vpop.permute.xlu0 %1083 }
  0xb0   : > { %15295 = vst [vmem:[#allocation7_spill] sm:$0xff] %v9119_v55  ;;  %15296 = vst [vmem:[#allocation8_spill] sm:$0xff] %v9121_v56 }
  0xb3   : > { %v9123_v57 = vpop.permute.xlu1 %1095  ;;  %v9125_v58 = vpop.permute.xlu0 %1091 }
  0xb4   : > { %15297 = vst [vmem:[#allocation9_spill] sm:$0xff] %v9123_v57  ;;  %15298 = vst [vmem:[#allocation10_spill] sm:$0xff] %v9125_v58 }
  0xb7   : > { %v9127_v59 = vpop.permute.xlu1 %1103  ;;  %v9129_v60 = vpop.permute.xlu0 %1099 }
  0xb8   : > { %15299 = vst [vmem:[#allocation11_spill] sm:$0xff] %v9127_v59  ;;  %15300 = vst [vmem:[#allocation12_spill] sm:$0xff] %v9129_v60 }
  0xbb   : > { %v9131_v61 = vpop.permute.xlu1 %1111  ;;  %v9133_v62 = vpop.permute.xlu0 %1107 }
  0xbc   : > { %15301 = vst [vmem:[#allocation13_spill] sm:$0xff] %v9131_v61  ;;  %15302 = vst [vmem:[#allocation14_spill] sm:$0xff] %v9133_v62 }
  0xbf   : > { %v9135_v63 = vpop.permute.xlu1 %1119  ;;  %v9137_v0 = vpop.permute.xlu0 %1115 }
  0xc0   : > { %15303 = vst [vmem:[#allocation15_spill] sm:$0xff] %v9135_v63  ;;  %15304 = vst [vmem:[#allocation16_spill] sm:$0xff] %v9137_v0 }
  0xc3   : > { %v9139_v1 = vpop.permute.xlu1 %1127  ;;  %v9141_v2 = vpop.permute.xlu0 %1123 }
  0xc4   : > { %15305 = vst [vmem:[#allocation17_spill] sm:$0xff] %v9139_v1  ;;  %15306 = vst [vmem:[#allocation18_spill] sm:$0xff] %v9141_v2 }
  0xc7   : > { %v9143_v3 = vpop.permute.xlu1 %1135  ;;  %v9145_v4 = vpop.permute.xlu0 %1131 }
  0xc8   : > { %15307 = vst [vmem:[#allocation19_spill] sm:$0xff] %v9143_v3  ;;  %15308 = vst [vmem:[#allocation20_spill] sm:$0xff] %v9145_v4 }
  0xcb   : > { %v9147_v5 = vpop.permute.xlu1 %1143  ;;  %v9149_v6 = vpop.permute.xlu0 %1139 }
  0xcc   : > { %15309 = vst [vmem:[#allocation21_spill] sm:$0xff] %v9147_v5  ;;  %15310 = vst [vmem:[#allocation22_spill] sm:$0xff] %v9149_v6  ;;  %v1155_v5 = vrot.slane %v9095_v43, 1 }
  0xcf   : > { %v1282_v7 = vpop.permute.xlu1 %1281  ;;  %v1278_v8 = vpop.permute.xlu0 %1277 }
  0xd0   : > { %v1405_v9 = vrot.slane %v1282_v7, 7  ;;  %v9151_v10 = vrot.slane %v1278_v8, 7 }
  0xd2   : > { %15311 = vst [vmem:[#allocation23_spill] sm:$0xff] %v9151_v10  ;;  %v1500_v11 = vmul.f32 0.0, %v9151_v10  ;;  %v9156_v12 = vsel %vm1403_vm2, %v9151_v10, %v1405_v9 }
  0xd3   : > { %15312 = vst [vmem:[#allocation24_spill] sm:$0xff] %v9156_v12  ;;  %v1501_v13 = vmul.f32 0.0, %v9156_v12  ;;  %v1286_v34 = vpop.permute.xlu0 %1285 }
  0xd4   : > { %v9159_v14 = vrot.slane %v1500_v11, 2  ;;  %v1407_v7 = vrot.slane %v1286_v34, 7  ;;  %v9211_v11 = vpop.permute.xlu1 %1289 }
  0xd5   : > { %v9161_v15 = vrot.slane %v1501_v13, 2 }
  0xd6   : > { %15313 = vst [vmem:[#allocation25_spill] sm:$0xff] %v9159_v14  ;;  %1954 = vrot.lane.b32.xlu0 %v9159_v14, %s8695_s18 }
  0xd7   : > { %15314 = vst [vmem:[#allocation26_spill] sm:$0xff] %v9161_v15  ;;  %v9168_v16 = vsel %vm1888_vm3, %v9159_v14, %v9161_v15  ;;  %v8097_v18 = vpop.f32.mrf.mxu0 }
  0xd8   : > { %15315 = vst [vmem:[#allocation27_spill] sm:$0xff] %v9168_v16  ;;  %1956 = vrot.lane.b32.xlu1 %v9168_v16, %s8695_s18  ;;  %v832_v21 = vadd.f32 %v8097_v18, %v9175_v17 }
  0xd9   : > { %v826_v22 = vpop.f32.mrf.mxu0 }
  0xda   : > { %v9179_v23 = vmax.f32 %v832_v21, 0.0  ;;  %v827_v24 = vadd.f32 %v9175_v17, %v826_v22  ;;  %v14948_v21 = vrot.slane %v9097_v44, 1  ;;  %v1409_v22 = vrot.slane %v9211_v11, 7 }
  0xdb   : > { %v8100_v31 = vpop.f32.mrf.mxu0 }
  0xdc   : > { %v9187_v26 = vmax.f32 %v827_v24, 0.0  ;;  %v1534_v27 = vmul.f32 %v9185_v25, %v9179_v23  ;;  %v1598_v30 = vmul.f32 %v9080_v38, %v9179_v23  ;;  %v842_v35 = vadd.f32 %v8100_v31, %v9175_v17 }
  0xdd   : > { %v1698_v42 = vrot.slane %v9179_v23, 1  ;;  %v9221_v24 = vsel %vm1403_vm2, %v1405_v9, %v1407_v7  ;;  %v9234_v9 = vsel %vm1145_vm4, %v1151_v20, %v14948_v21  ;;  %v9238_v34 = vsel %vm1403_vm2, %v1407_v7, %v1409_v22  ;;  %v9255_v21 = vpop.permute.xlu1 %1297 }
  0xde   : > { %2090 = vrot.lane.b32.xlu1 %v1534_v27, %s14971_s0  ;;  %v1533_v29 = vmul.f32 %v9193_v28, %v9187_v26  ;;  %v1696_v32 = vrot.slane %v9187_v26, 1  ;;  %v1565_v8 = vmul.f32 %v9151_v10, %v9187_v26  ;;  %v9214_v18 = vmax.f32 %v842_v35, 0.0  ;;  %15319 = vst [vmem:[#allocation31_spill] sm:$0xff] %v9221_v24  ;;  %v836_v27 = vpop.f32.mrf.mxu0  ;;  %15320 = vst [vmem:[#allocation32_spill] sm:$0xff] %v9234_v9 }
  0xdf   : > { %v1502_v31 = vmul.f32 %v9221_v24, %v9187_v26  ;;  %15321 = vst [vmem:[#allocation33_spill] sm:$0xff] %v9238_v34  ;;  %v9245_v11 = vmul.f32 %v9238_v34, %v9179_v23  ;;  %v14961_v38 = vrot.slane %v9255_v21, 7 }
  0xe0   : > { %2088 = vrot.lane.b32.xlu0 %v1533_v29, %s14971_s0  ;;  %v1697_v37 = vsel %vm1145_vm4, %v9070_v33, %v1696_v32  ;;  %v1699_v13 = vsel %vm1145_vm4, %v1696_v32, %v1698_v42  ;;  %15318 = vst [vmem:[#allocation30_spill] sm:$0xff] %v9214_v18  ;;  %v2323_v29 = vrot.slane %v1565_v8, 2  ;;  %v1600_v41 = vmul.f32 %v9185_v25, %v9214_v18 }
  0xe1   : > { %v1536_v35 = vmul.f32 %v9234_v9, %v9214_v18  ;;  %v1892_v8 = vrot.slane %v1502_v31, 2  ;;  %v9300_v16 = vmul.f32 %v9156_v12, %v9214_v18 }
  0xe2   : > { %2520 = vrot.lane.b32.xlu1 %v1598_v30, %s8696_s20  ;;  %v1566_v30 = vmul.f32 %v9156_v12, %v9179_v23 }
  0xe3   : > { %v1893_v7 = vsel %vm1888_vm3, %v9161_v15, %v1892_v8 }
  0xe4   : > { %2191 = vrot.lane.b32.xlu0 %v1696_v32, %s8697_s21  ;;  %v837_v32 = vadd.f32 %v9175_v17, %v836_v27 }
  0xe6   : > { %1760 = vrot.lane.b32.xlu1 %v1697_v37, %s8694_s30  ;;  %v2324_v37 = vrot.slane %v1566_v30, 2 }
  0xe8   : > { %1762 = vrot.lane.b32.xlu0 %v1699_v13, %s8694_s30  ;;  %v2325_v27 = vsel %vm1888_vm3, %v2323_v29, %v2324_v37 }
  0xea   : > { %2193 = vrot.lane.b32.xlu1 %v1699_v13, %s8697_s21  ;;  %v9248_v13 = vmax.f32 %v837_v32, 0.0  ;;  %v1294_v32 = vpop.permute.xlu0 %1293 }
  0xec   : > { %2388 = vrot.lane.b32.xlu0 %v2323_v29, %s8698_s23  ;;  %15322 = vst [vmem:[#allocation34_spill] sm:$0xff] %v9248_v13  ;;  %v1700_v31 = vrot.slane %v9248_v13, 1  ;;  %v1599_v29 = vmul.f32 %v9193_v28, %v9248_v13 }
  0xee   : > { %2524 = vrot.lane.b32.xlu1 %v1600_v41, %s8696_s20  ;;  %v14949_v41 = vrot.slane %v9245_v11, 2 }
  0xf0   : > { %2094 = vrot.lane.b32.xlu0 %v1536_v35, %s14971_s0  ;;  %v1895_v30 = vsel %vm1888_vm3, %v1892_v8, %v14949_v41  ;;  %v9269_v35 = vsel %vm1145_vm4, %v1149_v19, %v1151_v20  ;;  %v9273_v8 = vpop.permute.xlu1 %1305  ;;  %v9278_v41 = vpop.permute.xlu0 %1301  ;;  %v1567_v19 = vmul.f32 %v9221_v24, %v9248_v13 }
  0xf1   : > { %15323 = vst [vmem:[#allocation35_spill] sm:$0xff] %v9269_v35  ;;  %v8103_v20 = vpop.f32.mrf.mxu0 }
  0xf2   : > { %2390 = vrot.lane.b32.xlu1 %v2325_v27, %s8698_s23  ;;  %v1701_v27 = vsel %vm1145_vm4, %v1698_v42, %v1700_v31  ;;  %v852_v14 = vadd.f32 %v8103_v20, %v9175_v17 }
  0xf4   : > { %1958 = vrot.lane.b32.xlu0 %v1893_v7, %s8695_s18  ;;  %v14951_v7 = vrot.slane %v9214_v18, 1  ;;  %v9287_v42 = vpop.permute.xlu1 %1313  ;;  %v9290_v15 = vpop.permute.xlu0 %1309  ;;  %v9316_v12 = vmax.f32 %v852_v14, 0.0 }
  0xf6   : > { %1960 = vrot.lane.b32.xlu1 %v1895_v30, %s8695_s18  ;;  %v1535_v30 = vmul.f32 %v9269_v35, %v9248_v13  ;;  %v1703_v36 = vsel %vm1145_vm4, %v1700_v31, %v14951_v7  ;;  %v1631_v7 = vmul.f32 %v9151_v10, %v9248_v13  ;;  %15326 = vst [vmem:[#allocation38_spill] sm:$0xff] %v9316_v12 }
  0xf8   : > { %2522 = vrot.lane.b32.xlu0 %v1599_v29, %s8696_s20  ;;  %v1411_v29 = vrot.slane %v1294_v32, 7  ;;  %v9305_v32 = vpop.permute.xlu1 %1321  ;;  %v2751_v39 = vrot.slane %v1631_v7, 2 }
  0xf9   : > { %v1425_v53 = vrot.slane %v9305_v32, 7 }
  0xfa   : > { %2195 = vrot.lane.b32.xlu1 %v1701_v27, %s8697_s21 }
  0xfc   : > { %2092 = vrot.lane.b32.xlu0 %v1535_v30, %s14971_s0  ;;  %v2326_v30 = vrot.slane %v1567_v19, 2  ;;  %v846_v19 = vpop.f32.mrf.mxu0  ;;  %v9332_v33 = vpop.permute.xlu1 %1329 }
  0xfd   : > { %v847_v7 = vadd.f32 %v9175_v17, %v846_v19 }
  0xfe   : > { %2622 = vrot.lane.b32.xlu1 %v1703_v36, %s8699_s26  ;;  %v2327_v10 = vsel %vm1888_vm3, %v2324_v37, %v2326_v30 }
  0xff   : > { %v9339_v6 = vmax.f32 %v847_v7, 0.0 }
 0x100   : > { %2620 = vrot.lane.b32.xlu0 %v1700_v31, %s8699_s26  ;;  %v9303_v31 = vsel %vm1403_vm2, %v1409_v22, %v1411_v29  ;;  %v9318_v22 = vpop.permute.xlu0 %1317  ;;  %v9355_v7 = vpop.permute.xlu1 %1337 }
 0x101   : > { %15324 = vst [vmem:[#allocation36_spill] sm:$0xff] %v9303_v31  ;;  %v1504_v20 = vmul.f32 %v9303_v31, %v9248_v13  ;;  %15327 = vst [vmem:[#allocation39_spill] sm:$0xff] %v9339_v6  ;;  %v1704_v2 = vrot.slane %v9339_v6, 1 }
 0x102   : > { %2197 = vrot.lane.b32.xlu1 %v1703_v36, %s8697_s21 }
 0x104   : > { %1764 = vrot.lane.b32.xlu0 %v1701_v27, %s8694_s30  ;;  %v9314_v27 = vsel %vm1403_vm2, %v1411_v29, %v14961_v38  ;;  %v14965_v29 = vrot.slane %v9101_v46, 1  ;;  %v1896_v38 = vrot.slane %v1504_v20, 2  ;;  %v9341_v3 = vpop.permute.xlu0 %1325  ;;  %v9377_v63 = vpop.permute.xlu1 %1345 }
 0x105   : > { %15325 = vst [vmem:[#allocation37_spill] sm:$0xff] %v9314_v27  ;;  %v9324_v37 = vmul.f32 %v9314_v27, %v9214_v18  ;;  %15332 = vst [vmem:[#allocation42_spill] sm:$0xff] %v9377_v63  ;;  %v1570_v57 = vmul.f32 %v9314_v27, %v9316_v12 }
 0x106   : > { %1766 = vrot.lane.b32.xlu1 %v1703_v36, %s8694_s30  ;;  %v14966_v36 = vrot.slane %v9300_v16, 2 }
 0x107   : > { %v14967_v19 = vrot.slane %v9324_v37, 2 }
 0x108   : > { %2392 = vrot.lane.b32.xlu0 %v2327_v10, %s8698_s23  ;;  %v2753_v14 = vsel %vm1888_vm3, %v2751_v39, %v14966_v36  ;;  %v1602_v10 = vmul.f32 %v9234_v9, %v9316_v12  ;;  %v15329_v36 = vrot.slane %v9097_v44, 1 }
 0x109   : > { %v1899_v20 = vsel %vm1888_vm3, %v1896_v38, %v14967_v19  ;;  %v15331_v19 = vrot.slane %v9245_v11, 2 }
 0x10a   : > { %2815 = vrot.lane.b32.xlu1 %v2751_v39, %s8700_s27  ;;  %v9347_v39 = vsel %vm1145_vm4, %v1155_v5, %v14965_v29  ;;  %v9362_v29 = vpop.permute.xlu0 %1333 }
 0x10b   : > { %15328 = vst [vmem:[#allocation40_spill] sm:$0xff] %v9347_v39  ;;  %v1538_v43 = vmul.f32 %v9347_v39, %v9316_v12  ;;  %v1897_v4 = vsel %vm1888_vm3, %v15331_v19, %v1896_v38  ;;  %v15333_v38 = vrot.slane %v9214_v18, 1  ;;  %v1706_v19 = vrot.slane %v9316_v12, 1 }
 0x10c   : > { %2817 = vrot.lane.b32.xlu0 %v2753_v14, %s8700_s27  ;;  %v1601_v14 = vmul.f32 %v9269_v35, %v9339_v6 }
 0x10d   : > { %v1707_v0 = vsel %vm1145_vm4, %v1704_v2, %v1706_v19 }
 0x10e   : > { %2528 = vrot.lane.b32.xlu1 %v1602_v10, %s8696_s20  ;;  %v1568_v10 = vmul.f32 %v9238_v34, %v9214_v18  ;;  %v9384_v11 = vpop.permute.xlu0 %1341 }
 0x110   : > { %1964 = vrot.lane.b32.xlu0 %v1899_v20, %s8695_s18  ;;  %v9368_v20 = vsel %vm1145_vm4, %v15329_v36, %v1155_v5  ;;  %v2328_v1 = vrot.slane %v1568_v10, 2  ;;  %v651_v5 = vld [vmem:[%s14934_s5 + $0x20] sm:$0xf]  ;;  %v1415_v36 = vrot.slane %v9278_v41, 7  ;;  %v649_v10 = vld [vmem:[%s14934_s5 + $0x10] sm:$0xff]  ;;  %v15335_v41 = vrot.slane %v9255_v21, 7 }
 0x111   : > { %15330 = vst [vmem:[#allocation41_spill] sm:$0xff] %v9368_v20  ;;  %8143 = vmatprep.subr.msk.mxu1 %vm756_vm0, %v651_v5  ;;  %v648_v21 = vld [vmem:[%s14934_s5 + $0x8] sm:$0xff] }
 0x112   : > { %2098 = vrot.lane.b32.xlu1 %v1538_v43, %s14971_s0  ;;  %v1537_v43 = vmul.f32 %v9368_v20, %v9339_v6  ;;  %v2329_v44 = vsel %vm1888_vm3, %v2326_v30, %v2328_v1  ;;  %8144 = vmatpush3.msk.msra.mxu1 %vm756_vm0, %v651_v5  ;;  %v650_v30 = vld [vmem:[%s14934_s5 + $0x18] sm:$0xff]  ;;  %v8106_v5 = vpop.f32.mrf.mxu0 }
 0x113   : > { %8145 = vmatprep.subr.mxu1 %v650_v30 }
 0x114   : > { %2526 = vrot.lane.b32.xlu0 %v1601_v14, %s8696_s20  ;;  %v1569_v14 = vmul.f32 %v9303_v31, %v9339_v6  ;;  %8146 = vmatpush3.msra.mxu1 %v650_v30  ;;  %v647_v30 = vld [vmem:[%s14934_s5] sm:$0xff] }
 0x115   : > { %8147 = vmatprep.subr.mxu1 %v649_v10 }
 0x116   : > { %1962 = vrot.lane.b32.xlu1 %v1897_v4, %s8695_s18  ;;  %v1705_v4 = vsel %vm1145_vm4, %v15333_v38, %v1704_v2  ;;  %v9411_v38 = vpop.permute.xlu0 %1349  ;;  %8148 = vmatpush3.msra.mxu1 %v649_v10  ;;  %v2330_v61 = vrot.slane %v1569_v14, 2  ;;  %v856_v2 = vpop.f32.mrf.mxu0 }
 0x117   : > { %15337 = vst [vmem:[#allocation45_spill] sm:$0xff] %v9411_v38  ;;  %8149 = vmatprep.subr.mxu1 %v648_v21  ;;  %v857_v60 = vadd.f32 %v9175_v17, %v856_v2 }
 0x118   : > { %2096 = vrot.lane.b32.xlu0 %v1537_v43, %s14971_s0  ;;  %v9403_v43 = vpop.permute.xlu1 %1353  ;;  %8150 = vmatpush3.msra.mxu1 %v648_v21  ;;  %v2331_v10 = vsel %vm1888_vm3, %v2328_v1, %v2330_v61  ;;  %v15340_v21 = vrot.slane %v9324_v37, 2 }
 0x119   : > { %15334 = vst [vmem:[#allocation43_spill] sm:$0xff] %v9403_v43  ;;  %8151 = vmatprep.subr.mxu1 %v647_v30 }
 0x11a   : > { %2394 = vrot.lane.b32.xlu1 %v2329_v44, %s8698_s23  ;;  %v9409_v44 = vsel %vm1403_vm2, %v15335_v41, %v1415_v36  ;;  %v9433_v59 = vpop.permute.xlu0 %1357  ;;  %8152 = vmatpush3.msra.mxu1 %v647_v30  ;;  %v9448_v30 = vmax.f32 %v857_v60, 0.0 }
 0x11b   : > { %15336 = vst [vmem:[#allocation44_spill] sm:$0xff] %v9409_v44  ;;  %v9417_v62 = vmul.f32 %v9409_v44, %v9339_v6  ;;  %15339 = vst [vmem:[#allocation47_spill] sm:$0xff] %v9433_v59 }
 0x11c   : > { %2624 = vrot.lane.b32.xlu0 %v1705_v4, %s8699_s26  ;;  %v9428_v14 = vpop.permute.xlu1 %1361  ;;  %15342 = vst [vmem:[#allocation49_spill] sm:$0xff] %v9448_v30  ;;  %v9462_v60 = vmul.f32 %v9303_v31, %v9448_v30 }
 0x11d   : > { %15338 = vst [vmem:[#allocation46_spill] sm:$0xff] %v9428_v14  ;;  %v1900_v41 = vrot.slane %v9417_v62, 2  ;;  %v1634_v62 = vmul.f32 %v9238_v34, %v9316_v12 }
 0x11e   : > { %1768 = vrot.lane.b32.xlu1 %v1705_v4, %s8694_s30  ;;  %v9453_v59 = vpop.permute.xlu0 %1365 }
 0x11f   : > { %v1901_v1 = vsel %vm1888_vm3, %v15340_v21, %v1900_v41  ;;  %15344 = vst [vmem:[#allocation50_spill] sm:$0xff] %v9453_v59  ;;  %v2756_v37 = vrot.slane %v1634_v62, 2  ;;  %v1708_v21 = vrot.slane %v9448_v30, 1  ;;  %v9472_v62 = vmul.f32 %v9409_v44, %v9448_v30 }
 0x120   : > { %2199 = vrot.lane.b32.xlu0 %v1705_v4, %s8697_s21  ;;  %v1633_v4 = vmul.f32 %v9221_v24, %v9339_v6  ;;  %v9445_v14 = vpop.permute.xlu1 %1369 }
 0x121   : > { %15341 = vst [vmem:[#allocation48_spill] sm:$0xff] %v9445_v14 }
 0x122   : > { %1770 = vrot.lane.b32.xlu1 %v1707_v0, %s8694_s30  ;;  %v2754_v24 = vrot.slane %v1633_v4, 2  ;;  %v15343_v4 = vrot.slane %v9300_v16, 2  ;;  %v1417_v16 = vrot.slane %v9273_v8, 7 }
 0x124   : > { %2626 = vrot.lane.b32.xlu0 %v1707_v0, %s8699_s26  ;;  %v2755_v2 = vsel %vm1888_vm3, %v15343_v4, %v2754_v24  ;;  %v9466_v4 = vpop.permute.xlu1 %1377  ;;  %v9479_v8 = vsel %vm1403_vm2, %v1415_v36, %v1417_v16 }
 0x125   : > { %15345 = vst [vmem:[#allocation51_spill] sm:$0xff] %v9466_v4  ;;  %15347 = vst [vmem:[#allocation53_spill] sm:$0xff] %v9479_v8 }
 0x126   : > { %2396 = vrot.lane.b32.xlu1 %v2331_v10, %s8698_s23  ;;  %v2332_v10 = vrot.slane %v1570_v57, 2  ;;  %v14981_v57 = vrot.slane %v9290_v15, 7 }
 0x128   : > { %2201 = vrot.lane.b32.xlu0 %v1707_v0, %s8697_s21  ;;  %v2333_v0 = vsel %vm1888_vm3, %v2330_v61, %v2332_v10  ;;  %v1709_v61 = vsel %vm1145_vm4, %v1706_v19, %v1708_v21  ;;  %v2334_v19 = vrot.slane %v9472_v62, 2 }
 0x12a   : > { %1966 = vrot.lane.b32.xlu1 %v1901_v1, %s8695_s18  ;;  %v2757_v1 = vsel %vm1888_vm3, %v2754_v24, %v2756_v37  ;;  %v2758_v24 = vrot.slane %v9462_v60, 2  ;;  %v9494_v60 = vpop.permute.xlu1 %1385  ;;  %v2335_v62 = vsel %vm1888_vm3, %v2332_v10, %v2334_v19 }
 0x12b   : > { %15349 = vst [vmem:[#allocation55_spill] sm:$0xff] %v9494_v60 }
 0x12c   : > { %2819 = vrot.lane.b32.xlu0 %v2755_v2, %s8700_s27  ;;  %v9474_v2 = vpop.permute.xlu0 %1373  ;;  %v2759_v36 = vsel %vm1888_vm3, %v2756_v37, %v2758_v24 }
 0x12d   : > { %15346 = vst [vmem:[#allocation52_spill] sm:$0xff] %v9474_v2 }
 0x12e   : > { %2398 = vrot.lane.b32.xlu1 %v2333_v0, %s8698_s23  ;;  %v9484_v0 = vsel %vm1403_vm2, %v1417_v16, %v14981_v57  ;;  %v862_v16 = vadd.f32 %v8106_v5, %v9175_v17  ;;  %v9499_v57 = vpop.f32.mrf.mxu0  ;;  %v9510_v14 = vpop.permute.xlu1 %1393  ;;  %v1159_v5 = vrot.slane %v9099_v45, 1 }
 0x12f   : > { %15348 = vst [vmem:[#allocation54_spill] sm:$0xff] %v9484_v0  ;;  %v9492_v31 = vmul.f32 %v9484_v0, %v9448_v30  ;;  %15352 = vst [vmem:[#allocation58_spill] sm:$0xff] %v9510_v14 }
 0x130   : > { %2821 = vrot.lane.b32.xlu0 %v2757_v1, %s8700_s27  ;;  %v1507_v1 = vmul.f32 %v9479_v8, %v9316_v12  ;;  %v9501_v34 = vpop.permute.xlu0 %1381  ;;  %v866_v37 = vpop.f32.mrf.mxu0 }
 0x131   : > { %15350 = vst [vmem:[#allocation56_spill] sm:$0xff] %v9501_v34  ;;  %v14985_v2 = vrot.slane %v9492_v31, 2 }
 0x132   : > { %2628 = vrot.lane.b32.xlu1 %v1709_v61, %s8699_s26  ;;  %v1902_v4 = vrot.slane %v1507_v1, 2  ;;  %v9619_v43 = vpop.f32.mrf.mxu0 }
 0x134   : > { %2203 = vrot.lane.b32.xlu0 %v1709_v61, %s8697_s21  ;;  %v1903_v60 = vsel %vm1888_vm3, %v1900_v41, %v1902_v4  ;;  %v1905_v10 = vsel %vm1888_vm3, %v1902_v4, %v14985_v2  ;;  %v9517_v1 = vpop.permute.xlu0 %1389  ;;  %v1603_v41 = vmul.f32 %v9368_v20, %v9448_v30  ;;  %v876_v6 = vpop.f32.mrf.mxu0  ;;  %v15022_v20 = vrot.slane %v9341_v3, 7 }
 0x135   : > { %15353 = vst [vmem:[#allocation59_spill] sm:$0xff] %v9517_v1  ;;  %v1421_v1 = vrot.slane %v9287_v42, 7  ;;  %v15361_v42 = vrot.slane %v9290_v15, 7 }
 0x136   : > { %1772 = vrot.lane.b32.xlu1 %v1709_v61, %s8694_s30  ;;  %v9508_v61 = vmax.f32 %v862_v16, 0.0  ;;  %v867_v16 = vadd.f32 %v9175_v17, %v866_v37 }
 0x137   : > { %v9594_v34 = vsel %vm1403_vm2, %v15361_v42, %v1421_v1 }
 0x138   : > { %2823 = vrot.lane.b32.xlu0 %v2759_v36, %s8700_s27  ;;  %15351 = vst [vmem:[#allocation57_spill] sm:$0xff] %v9508_v61  ;;  %v14986_v36 = vrot.slane %v9105_v48, 1  ;;  %v1604_v45 = vmul.f32 %v9347_v39, %v9508_v61  ;;  %v1710_v2 = vrot.slane %v9508_v61, 1  ;;  %15362 = vst [vmem:[#allocation65_spill] sm:$0xff] %v9594_v34 }
 0x13a   : > { %2400 = vrot.lane.b32.xlu1 %v2335_v62, %s8698_s23  ;;  %v9532_v62 = vpop.permute.xlu1 %1401  ;;  %v9540_v37 = vsel %vm1145_vm4, %v1159_v5, %v14986_v36 }
 0x13b   : > { %15356 = vst [vmem:[#allocation61_spill] sm:$0xff] %v9532_v62  ;;  %15357 = vst [vmem:[#allocation62_spill] sm:$0xff] %v9540_v37  ;;  %v1711_v62 = vsel %vm1145_vm4, %v1708_v21, %v1710_v2 }
 0x13c   : > { %1968 = vrot.lane.b32.xlu0 %v1903_v60, %s8695_s18  ;;  %v15354_v60 = vrot.slane %v9101_v46, 1  ;;  %v9545_v46 = vpop.permute.xlu0 %1397 }
 0x13d   : > { %15359 = vst [vmem:[#allocation64_spill] sm:$0xff] %v9545_v46 }
 0x13e   : > { %1970 = vrot.lane.b32.xlu1 %v1905_v10, %s8695_s18  ;;  %v9530_v4 = vsel %vm1145_vm4, %v15354_v60, %v1159_v5  ;;  %v1540_v60 = vmul.f32 %v9540_v37, %v9508_v61  ;;  %v9553_v14 = vpop.permute.xlu1 %2086 }
 0x13f   : > { %15355 = vst [vmem:[#allocation60_spill] sm:$0xff] %v9530_v4  ;;  %v1539_v10 = vmul.f32 %v9530_v4, %v9448_v30 }
 0x140   : > { %2530 = vrot.lane.b32.xlu0 %v1603_v41, %s8696_s20  ;;  %v9542_v41 = vmax.f32 %v867_v16, 0.0  ;;  %v1636_v16 = vmul.f32 %v9314_v27, %v9508_v61 }
 0x142   : > { %2532 = vrot.lane.b32.xlu1 %v1604_v45, %s8696_s20  ;;  %15358 = vst [vmem:[#allocation63_spill] sm:$0xff] %v9542_v41  ;;  %v14988_v45 = vrot.slane %v9542_v41, 1  ;;  %v2760_v21 = vrot.slane %v1636_v16, 2  ;;  %v9575_v27 = vmul.f32 %v9409_v44, %v9542_v41  ;;  %v15363_v44 = vrot.slane %v9318_v22, 7 }
 0x144   : > { %2100 = vrot.lane.b32.xlu0 %v1539_v10, %s15360_s22  ;;  %v1713_v5 = vsel %vm1145_vm4, %v1710_v2, %v14988_v45  ;;  %v9561_v10 = vpop.permute.xlu0 %8500  ;;  %v2761_v2 = vsel %vm1888_vm3, %v2758_v24, %v2760_v21 }
 0x145   : > { %v8502_v39 = vunpack.i.l.bf16 %v9561_v10 }
 0x146   : > { %2102 = vrot.lane.b32.xlu1 %v1540_v60, %s15360_s22  ;;  %v1572_v60 = vmul.f32 %v9479_v8, %v9508_v61 }
 0x148   : > { %2630 = vrot.lane.b32.xlu0 %v1711_v62, %s8699_s26  ;;  %v9569_v46 = vpop.permute.xlu0 %1954  ;;  %v2336_v45 = vrot.slane %v1572_v60, 2  ;;  %v15000_v60 = vrot.slane %v9575_v27, 2 }
 0x14a   : > { %2632 = vrot.lane.b32.xlu1 %v1713_v5, %s8699_s26  ;;  %v9566_v36 = vpop.permute.xlu1 %1956  ;;  %v2337_v16 = vsel %vm1888_vm3, %v2334_v19, %v2336_v45 }
 0x14c   : > { %2205 = vrot.lane.b32.xlu0 %v1711_v62, %s8697_s21 }
 0x14e   : > { %1774 = vrot.lane.b32.xlu1 %v1711_v62, %s8694_s30  ;;  %v9585_v62 = vmul.f32 %v9484_v0, %v9542_v41 }
 0x150   : > { %v9579_v59 = vpop.permute.xlu1 %2090  ;;  %2825 = vrot.lane.b32.xlu0 %v2761_v2, %s8700_s27  ;;  %v9599_v2 = vsel %vm1403_vm2, %v1421_v1, %v15363_v44  ;;  %v2763_v44 = vsel %vm1888_vm3, %v2760_v21, %v15000_v60  ;;  %v872_v1 = vadd.f32 %v9499_v57, %v9175_v17  ;;  %v15366_v21 = vrot.slane %v9492_v31, 2 }
 0x151   : > { %15364 = vst [vmem:[#allocation66_spill] sm:$0xff] %v9599_v2  ;;  %v9609_v15 = vmul.f32 %v9599_v2, %v9542_v41  ;;  %v15006_v31 = vrot.slane %v9109_v50, 1 }
 0x152   : > { %v9587_v24 = vpop.permute.xlu0 %2088  ;;  %2402 = vrot.lane.b32.xlu1 %v2337_v16, %s8698_s23  ;;  %v1509_v16 = vmul.f32 %v9594_v34, %v9508_v61  ;;  %v15365_v61 = vrot.slane %v9585_v62, 2  ;;  %v9634_v60 = vmax.f32 %v872_v1, 0.0 }
 0x154   : > { %v9601_v19 = vpop.permute.xlu1 %2520  ;;  %2207 = vrot.lane.b32.xlu0 %v1713_v5, %s8697_s21  ;;  %v2339_v12 = vsel %vm1888_vm3, %v2336_v45, %v15365_v61  ;;  %v1906_v58 = vrot.slane %v1509_v16, 2  ;;  %15367 = vst [vmem:[#allocation67_spill] sm:$0xff] %v9634_v60  ;;  %v1163_v61 = vrot.slane %v9103_v47, 1  ;;  %v1606_v47 = vmul.f32 %v9540_v37, %v9634_v60 }
 0x156   : > { %v9611_v42 = vpop.permute.xlu0 %2191  ;;  %1776 = vrot.lane.b32.xlu1 %v1713_v5, %s8694_s30  ;;  %v15003_v5 = vrot.slane %v9609_v15, 2  ;;  %v1907_v57 = vsel %vm1888_vm3, %v15366_v21, %v1906_v58 }
 0x158   : > { %v9621_v30 = vpop.permute.xlu1 %1760  ;;  %2827 = vrot.lane.b32.xlu0 %v2763_v44, %s8700_s27  ;;  %v1909_v45 = vsel %vm1888_vm3, %v1906_v58, %v15003_v5  ;;  %v877_v44 = vadd.f32 %v9175_v17, %v876_v6  ;;  %v15368_v58 = vrot.slane %v9105_v48, 1  ;;  %v9668_v6 = vsel %vm1145_vm4, %v1163_v61, %v15006_v31 }
 0x159   : > { %15370 = vst [vmem:[#allocation69_spill] sm:$0xff] %v9668_v6  ;;  %v1714_v5 = vrot.slane %v9634_v60, 1 }
 0x15a   : > { %v9628_v55 = vpop.permute.xlu0 %1762  ;;  %2404 = vrot.lane.b32.xlu1 %v2339_v12, %s8698_s23  ;;  %v1605_v12 = vmul.f32 %v9530_v4, %v9542_v41  ;;  %v9658_v21 = vsel %vm1145_vm4, %v15368_v58, %v1163_v61  ;;  %v1542_v58 = vmul.f32 %v9668_v6, %v9634_v60  ;;  %v15371_v61 = vrot.slane %v9542_v41, 1 }
 0x15b   : > { %15369 = vst [vmem:[#allocation68_spill] sm:$0xff] %v9658_v21  ;;  %v1638_v4 = vmul.f32 %v9479_v8, %v9634_v60 }
 0x15c   : > { %v9636_v38 = vpop.permute.xlu1 %2193  ;;  %1972 = vrot.lane.b32.xlu0 %v1907_v57, %s8695_s18 }
 0x15e   : > { %v9643_v16 = vpop.permute.xlu0 %2388  ;;  %1974 = vrot.lane.b32.xlu1 %v1909_v45, %s8695_s18  ;;  %v1541_v45 = vmul.f32 %v9658_v21, %v9542_v41  ;;  %v1574_v41 = vmul.f32 %v9594_v34, %v9634_v60 }
 0x160   : > { %v9650_v1 = vpop.permute.xlu1 %2524  ;;  %2534 = vrot.lane.b32.xlu0 %v1605_v12, %s8696_s20  ;;  %v9670_v12 = vmax.f32 %v877_v44, 0.0  ;;  %v1715_v44 = vsel %vm1145_vm4, %v15371_v61, %v1714_v5  ;;  %v2764_v61 = vrot.slane %v1638_v4, 2  ;;  %v2340_v18 = vrot.slane %v1574_v41, 2 }
 0x161   : > { %v2914_v41 = vsel %vm659_vm1, %v9087_v40, %v8502_v39  ;;  %v8503_v39 = vunpack.i.h.bf16 %v9561_v10  ;;  %v882_v40 = vadd.f32 %v9619_v43, %v9175_v17 }
 0x162   : > { %v9660_v57 = vpop.permute.xlu0 %2094  ;;  %2536 = vrot.lane.b32.xlu1 %v1606_v47, %s8696_s20  ;;  %v15012_v47 = vrot.slane %v9670_v12, 1  ;;  %v9710_v56 = vmul.f32 %v9484_v0, %v9670_v12  ;;  %v9736_v0 = vsel %vm1403_vm2, %v1425_v53, %v15022_v20 }
 0x163   : > { %15376 = vst [vmem:[#allocation71_spill] sm:$0xff] %v9736_v0 }
 0x164   : > { %v9673_v48 = vpop.permute.xlu1 %2390  ;;  %2104 = vrot.lane.b32.xlu0 %v1541_v45, %s15360_s22  ;;  %v1717_v45 = vsel %vm1145_vm4, %v1714_v5, %v15012_v47  ;;  %v15372_v47 = vrot.slane %v9575_v27, 2  ;;  %v9720_v27 = vmul.f32 %v9599_v2, %v9670_v12 }
 0x166   : > { %2106 = vrot.lane.b32.xlu1 %v1542_v58, %s15360_s22  ;;  %v9680_v37 = vpop.permute.xlu0 %1958  ;;  %v2765_v8 = vsel %vm1888_vm3, %v15372_v47, %v2764_v61  ;;  %v2948_v47 = vsel %vm2947_vm5, %v2914_v41, %v9569_v46  ;;  %v9747_v41 = vmul.f32 %v9736_v0, %v9670_v12 }
 0x167   : > { %v2982_v10 = vsel %vm2981_vm6, %v2948_v47, %v9553_v14 }
 0x168   : > { %v9685_v31 = vpop.permute.xlu1 %1960  ;;  %2634 = vrot.lane.b32.xlu0 %v1715_v44, %s8699_s26  ;;  %v3016_v20 = vsel %vm3015_vm7, %v2982_v10, %v9611_v42  ;;  %v15031_v10 = vrot.slane %v9747_v41, 2 }
 0x169   : > { %v3050_v14 = vsel %vm3049_vm8, %v3016_v20, %v9643_v16 }
 0x16a   : > { %2636 = vrot.lane.b32.xlu1 %v1717_v45, %s8699_s26  ;;  %v9694_v58 = vpop.permute.xlu0 %2522 }
 0x16c   : > { %v9698_v63 = vpop.permute.xlu1 %2195  ;;  %2209 = vrot.lane.b32.xlu0 %v1715_v44, %s8697_s21 }
 0x16e   : > { %1778 = vrot.lane.b32.xlu1 %v1715_v44, %s8694_s30  ;;  %v9703_v5 = vpop.permute.xlu0 %2092  ;;  %v15373_v44 = vrot.slane %v9585_v62, 2  ;;  %v15374_v62 = vrot.slane %v9318_v22, 7 }
 0x170   : > { %v2623_v4 = vpop.permute.xlu1 %2622  ;;  %2829 = vrot.lane.b32.xlu0 %v2765_v8, %s8700_s27  ;;  %v2341_v13 = vsel %vm1888_vm3, %v15373_v44, %v2340_v18  ;;  %v2766_v8 = vrot.slane %v9710_v56, 2  ;;  %v9731_v44 = vsel %vm1403_vm2, %v15374_v62, %v1425_v53  ;;  %v9750_v53 = vmul.f32 0.0, %v9193_v28 }
 0x171   : > { %15375 = vst [vmem:[#allocation70_spill] sm:$0xff] %v9731_v44  ;;  %v1511_v22 = vmul.f32 %v9731_v44, %v9634_v60  ;;  %v9764_v60 = vpop.f32.mrf.mxu0 }
 0x172   : > { %2406 = vrot.lane.b32.xlu1 %v2341_v13, %s8698_s23  ;;  %v2621_v32 = vpop.permute.xlu0 %2620  ;;  %15377 = vst [vmem:[#allocation72_spill] sm:$0xff] %v9750_v53  ;;  %v2767_v46 = vsel %vm1888_vm3, %v2764_v61, %v2766_v8  ;;  %v2915_v28 = vsel %vm659_vm1, %v9750_v53, %v8503_v39  ;;  %v15378_v61 = vrot.slane %v9720_v27, 2 }
 0x173   : > { %v2949_v42 = vsel %vm2947_vm5, %v2915_v28, %v9566_v36  ;;  %v1910_v47 = vrot.slane %v1511_v22, 2  ;;  %v3084_v28 = vsel %vm3083_vm9, %v3050_v14, %v9601_v19  ;;  %v886_v22 = vpop.f32.mrf.mxu0 }
 0x174   : > { %v9739_v13 = vpop.permute.xlu1 %2197  ;;  %2211 = vrot.lane.b32.xlu0 %v1717_v45, %s8697_s21  ;;  %v2343_v43 = vsel %vm1888_vm3, %v2340_v18, %v15378_v61  ;;  %v2983_v39 = vsel %vm2981_vm6, %v2949_v42, %v9587_v24  ;;  %v15379_v18 = vrot.slane %v9609_v15, 2  ;;  %v3118_v42 = vsel %vm3117_vm11, %v3084_v28, %v2621_v32 }
 0x175   : > { %v3017_v16 = vsel %vm3015_vm7, %v2983_v39, %v9636_v38  ;;  %v1167_v38 = vrot.slane %v9107_v49, 1  ;;  %v1607_v32 = vmul.f32 %v9658_v21, %v9670_v12  ;;  %v887_v49 = vadd.f32 %v9175_v17, %v886_v22 }
 0x176   : > { %1780 = vrot.lane.b32.xlu1 %v1717_v45, %s8694_s30  ;;  %v9755_v62 = vpop.permute.xlu0 %1764  ;;  %v1911_v36 = vsel %vm1888_vm3, %v15379_v18, %v1910_v47  ;;  %v3051_v24 = vsel %vm3049_vm8, %v3017_v16, %v9673_v48 }
 0x177   : > { %v3085_v19 = vsel %vm3083_vm9, %v3051_v24, %v9694_v58 }
 0x178   : > { %v9770_v45 = vpop.permute.xlu1 %1766  ;;  %2831 = vrot.lane.b32.xlu0 %v2767_v46, %s8700_s27  ;;  %v9791_v46 = vmax.f32 %v882_v40, 0.0  ;;  %v1913_v40 = vsel %vm1888_vm3, %v1910_v47, %v15031_v10  ;;  %v3119_v14 = vsel %vm3117_vm11, %v3085_v19, %v2623_v4  ;;  %v15381_v47 = vrot.slane %v9109_v50, 1 }
 0x179   : > { %v9837_v50 = vmax.f32 %v887_v49, 0.0 }
 0x17a   : > { %2408 = vrot.lane.b32.xlu1 %v2343_v43, %s8698_s23  ;;  %v9782_v20 = vpop.permute.xlu0 %2392  ;;  %15380 = vst [vmem:[#allocation73_spill] sm:$0xff] %v9791_v46  ;;  %v15030_v43 = vrot.slane %v9113_v52, 1  ;;  %v1608_v4 = vmul.f32 %v9668_v6, %v9791_v46  ;;  %v9822_v18 = vsel %vm1145_vm4, %v15381_v47, %v1167_v38  ;;  %v1576_v47 = vmul.f32 %v9731_v44, %v9791_v46 }
 0x17b   : > { %15382 = vst [vmem:[#allocation74_spill] sm:$0xff] %v9822_v18  ;;  %v1543_v24 = vmul.f32 %v9822_v18, %v9670_v12  ;;  %v9885_v56 = vmul.f32 %v9736_v0, %v9837_v50 }
 0x17c   : > { %v2816_v61 = vpop.permute.xlu1 %2815  ;;  %1976 = vrot.lane.b32.xlu0 %v1911_v36, %s8695_s18 }
 0x17d   : > { %v3152_v15 = vsel %vm3151_vm10, %v3118_v42, %v2816_v61  ;;  %v9835_v42 = vsel %vm1145_vm4, %v1167_v38, %v15030_v43  ;;  %v1718_v61 = vrot.slane %v9791_v46, 1  ;;  %v15384_v38 = vrot.slane %v9670_v12, 1 }
 0x17e   : > { %1978 = vrot.lane.b32.xlu1 %v1913_v40, %s8695_s18  ;;  %v2818_v48 = vpop.permute.xlu0 %2817  ;;  %v3224_v39 = vrot.slane %v3152_v15, 7  ;;  %15383 = vst [vmem:[#allocation75_spill] sm:$0xff] %v9835_v42  ;;  %v1544_v15 = vmul.f32 %v9835_v42, %v9791_v46  ;;  %v15028_v40 = vrot.slane %v9837_v50, 1  ;;  %v15387_v43 = vrot.slane %v9341_v3, 7 }
 0x17f   : > { %v9811_v58 = vsel %vm3151_vm10, %v3119_v14, %v2818_v48  ;;  %v1719_v48 = vsel %vm1145_vm4, %v15384_v38, %v1718_v61  ;;  %v2344_v38 = vrot.slane %v1576_v47, 2 }
 0x180   : > { %v15029_v16 = vrot.slane %v9811_v58, 7  ;;  %v9814_v28 = vpop.permute.xlu1 %2528  ;;  %2538 = vrot.lane.b32.xlu0 %v1607_v32, %s8696_s20  ;;  %v1721_v49 = vsel %vm1145_vm4, %v1718_v61, %v15028_v40  ;;  %v9873_v40 = vmul.f32 %v9599_v2, %v9837_v50 }
 0x182   : > { %2540 = vrot.lane.b32.xlu1 %v1608_v4, %s8696_s20  ;;  %v9825_v36 = vpop.permute.xlu0 %1964  ;;  %v3226_v22 = vsel %vm1403_vm2, %v3224_v39, %v15029_v16  ;;  %v1640_v39 = vmul.f32 %v9594_v34, %v9791_v46  ;;  %v1429_v16 = vrot.slane %v9332_v33, 7  ;;  %v15040_v47 = vrot.slane %v9873_v40, 2 }
 0x183   : > { %8153 = vmatprep.mubr.msk.f32.mxu1 %vm3289_vm12, %v3226_v22 }
 0x184   : > { %v9841_v19 = vpop.permute.xlu1 %2098  ;;  %2108 = vrot.lane.b32.xlu0 %v1543_v24, %s15360_s22  ;;  %v2768_v24 = vrot.slane %v1640_v39, 2 }
 0x186   : > { %2110 = vrot.lane.b32.xlu1 %v1544_v15, %s15360_s22  ;;  %v9848_v14 = vpop.permute.xlu0 %2526  ;;  %v2769_v61 = vsel %vm1888_vm3, %v2766_v8, %v2768_v24  ;;  %v9888_v8 = vmul.f32 0.0, %v9185_v25  ;;  %v15391_v25 = vrot.slane %v9885_v56, 2 }
 0x188   : > { %v9853_v32 = vpop.permute.xlu1 %1962  ;;  %2638 = vrot.lane.b32.xlu0 %v1719_v48, %s8699_s26  ;;  %15386 = vst [vmem:[#allocation76_spill] sm:$0xff] %v9888_v8  ;;  %v2916_v53 = vsel %vm659_vm1, %v9888_v8, %v9621_v30  ;;  %v2771_v30 = vsel %vm1888_vm3, %v2768_v24, %v15040_v47  ;;  %v892_v8 = vadd.f32 %v9764_v60, %v9175_v17 }
 0x189   : > { %v2347_v24 = vsel %vm1888_vm3, %v2344_v38, %v15391_v25 }
 0x18a   : > { %2640 = vrot.lane.b32.xlu1 %v1721_v49, %s8699_s26  ;;  %v9862_v4 = vpop.permute.xlu0 %2096 }
 0x18c   : > { %v2395_v22 = vpop.permute.xlu1 %2394  ;;  %2213 = vrot.lane.b32.xlu0 %v1719_v48, %s8697_s21 }
 0x18e   : > { %1782 = vrot.lane.b32.xlu1 %v1719_v48, %s8694_s30  ;;  %v2625_v15 = vpop.permute.xlu0 %2624  ;;  %v15385_v48 = vrot.slane %v9720_v27, 2  ;;  %v15389_v27 = vrot.slane %v9362_v29, 7 }
 0x190   : > { %v9877_v10 = vpop.permute.xlu1 %1768  ;;  %2833 = vrot.lane.b32.xlu0 %v2769_v61, %s8700_s27  ;;  %v2345_v39 = vsel %vm1888_vm3, %v15385_v48, %v2344_v38  ;;  %v9897_v61 = vsel %vm1403_vm2, %v15387_v43, %v1429_v16  ;;  %v9902_v48 = vsel %vm1403_vm2, %v1429_v16, %v15389_v27  ;;  %v9950_v38 = vmax.f32 %v892_v8, 0.0 }
 0x191   : > { %15388 = vst [vmem:[#allocation77_spill] sm:$0xff] %v9897_v61  ;;  %15390 = vst [vmem:[#allocation78_spill] sm:$0xff] %v9902_v48  ;;  %v1513_v43 = vmul.f32 %v9897_v61, %v9791_v46  ;;  %v9917_v16 = vmul.f32 %v9902_v48, %v9837_v50 }
 0x192   : > { %2410 = vrot.lane.b32.xlu1 %v2345_v39, %s8698_s23  ;;  %v9891_v33 = vpop.permute.xlu0 %2199  ;;  %v2950_v39 = vsel %vm2947_vm5, %v2916_v53, %v9680_v37  ;;  %v9925_v37 = vpop.f32.mrf.mxu0  ;;  %v1245_v53 = vmul.f32 %v9269_v35, %v9187_v26 }
 0x193   : > { %v2984_v3 = vsel %vm2981_vm6, %v2950_v39, %v9579_v59  ;;  %v1914_v47 = vrot.slane %v1513_v43, 2  ;;  %v1916_v60 = vrot.slane %v9917_v16, 2  ;;  %v15392_v39 = vrot.slane %v9747_v41, 2 }
 0x194   : > { %v9907_v2 = vpop.permute.xlu1 %1770  ;;  %2215 = vrot.lane.b32.xlu0 %v1721_v49, %s8697_s21  ;;  %v2917_v46 = vsel %vm659_vm1, %v1245_v53, %v9628_v55  ;;  %v1173_v53 = vrot.slane %v9117_v54, 1 }
 0x195   : > { %v1915_v25 = vsel %vm1888_vm3, %v15392_v39, %v1914_v47  ;;  %v1917_v41 = vsel %vm1888_vm3, %v1914_v47, %v1916_v60  ;;  %v15395_v39 = vrot.slane %v9811_v58, 7  ;;  %v1722_v58 = vrot.slane %v9950_v38, 1 }
 0x196   : > { %1784 = vrot.lane.b32.xlu1 %v1721_v49, %s8694_s30  ;;  %v2627_v27 = vpop.permute.xlu0 %2626  ;;  %v3018_v49 = vsel %vm3015_vm7, %v2984_v3, %v9698_v63  ;;  %v2951_v63 = vsel %vm2947_vm5, %v2917_v46, %v9685_v31  ;;  %v896_v3 = vpop.f32.mrf.mxu0  ;;  %v1246_v46 = vmul.f32 %v9234_v9, %v9179_v23 }
 0x197   : > { %v3052_v26 = vsel %vm3049_vm8, %v3018_v49, %v9782_v20  ;;  %v2985_v55 = vsel %vm2981_vm6, %v2951_v63, %v9703_v5  ;;  %v1171_v20 = vrot.slane %v9111_v51, 1 }
 0x198   : > { %v2397_v34 = vpop.permute.xlu1 %2396  ;;  %2835 = vrot.lane.b32.xlu0 %v2771_v30, %s8700_s27  ;;  %v3019_v30 = vsel %vm3015_vm7, %v2985_v55, %v9739_v13  ;;  %v3086_v31 = vsel %vm3083_vm9, %v3052_v26, %v9650_v1  ;;  %v1609_v13 = vmul.f32 %v9822_v18, %v9837_v50  ;;  %v897_v1 = vadd.f32 %v9175_v17, %v896_v3 }
 0x199   : > { %v3053_v5 = vsel %vm3049_vm8, %v3019_v30, %v2395_v22  ;;  %v3120_v8 = vsel %vm3117_vm11, %v3086_v31, %v2625_v15  ;;  %v2918_v47 = vsel %vm659_vm1, %v1246_v46, %v9755_v62  ;;  %v1610_v22 = vmul.f32 %v9835_v42, %v9950_v38 }
 0x19a   : > { %2412 = vrot.lane.b32.xlu1 %v2347_v24, %s8698_s23  ;;  %v9943_v59 = vpop.permute.xlu0 %2201  ;;  %v15393_v15 = vrot.slane %v9113_v52, 1  ;;  %v2952_v17 = vsel %vm2947_vm5, %v2918_v47, %v9853_v32  ;;  %v3087_v63 = vsel %vm3083_vm9, %v3053_v5, %v9848_v14  ;;  %v10001_v55 = vsel %vm1145_vm4, %v1171_v20, %v1173_v53 }
 0x19b   : > { %v3121_v62 = vsel %vm3117_vm11, %v3087_v63, %v2627_v27  ;;  %15396 = vst [vmem:[#allocation80_spill] sm:$0xff] %v10001_v55  ;;  %v10003_v32 = vmax.f32 %v897_v1, 0.0  ;;  %v2986_v27 = vsel %vm2981_vm6, %v2952_v17, %v9660_v57 }
 0x19c   : > { %v9954_v43 = vpop.permute.xlu1 %1966  ;;  %1980 = vrot.lane.b32.xlu0 %v1915_v25, %s8695_s18  ;;  %v9985_v26 = vsel %vm1145_vm4, %v15393_v15, %v1171_v20  ;;  %v3020_v20 = vsel %vm3015_vm7, %v2986_v27, %v9891_v33  ;;  %v1578_v15 = vmul.f32 %v9897_v61, %v9950_v38  ;;  %v15042_v27 = vrot.slane %v9384_v11, 7 }
 0x19d   : > { %15394 = vst [vmem:[#allocation79_spill] sm:$0xff] %v9985_v26  ;;  %v1545_v52 = vmul.f32 %v9985_v26, %v9837_v50  ;;  %v15046_v46 = vrot.slane %v10003_v32, 1  ;;  %v3054_v5 = vsel %vm3049_vm8, %v3020_v20, %v2397_v34 }
 0x19e   : > { %1982 = vrot.lane.b32.xlu1 %v1917_v41, %s8695_s18  ;;  %v2820_v51 = vpop.permute.xlu0 %2819  ;;  %v1546_v41 = vmul.f32 %v10001_v55, %v9950_v38  ;;  %v3088_v33 = vsel %vm3083_vm9, %v3054_v5, %v9814_v28 }
 0x19f   : > { %v3154_v49 = vsel %vm3151_vm10, %v3120_v8, %v2820_v51  ;;  %v15397_v51 = vrot.slane %v9837_v50, 1  ;;  %v1725_v34 = vsel %vm1145_vm4, %v1722_v58, %v15046_v46 }
 0x1a0   : > { %v3227_v23 = vrot.slane %v3154_v49, 7  ;;  %v9977_v24 = vpop.permute.xlu1 %2398  ;;  %2542 = vrot.lane.b32.xlu0 %v1609_v13, %s8696_s20  ;;  %v1642_v49 = vmul.f32 %v9731_v44, %v9950_v38 }
 0x1a1   : > { %v1723_v13 = vsel %vm1145_vm4, %v15397_v51, %v1722_v58  ;;  %v1433_v58 = vrot.slane %v9355_v7, 7  ;;  %v15400_v7 = vrot.slane %v9362_v29, 7 }
 0x1a2   : > { %v3228_v25 = vsel %vm1403_vm2, %v15395_v39, %v3227_v23  ;;  %2544 = vrot.lane.b32.xlu1 %v1610_v22, %s8696_s20  ;;  %v2822_v3 = vpop.permute.xlu0 %2821  ;;  %v2772_v63 = vrot.slane %v1642_v49, 2 }
 0x1a3   : > { %v3155_v14 = vsel %vm3151_vm10, %v3121_v62, %v2822_v3  ;;  %8154 = vmatmul.mubr.msk.f32.vlgmr.msra.gmra.mxu1 %vm3289_vm12, %v3228_v25  ;;  %v15398_v25 = vrot.slane %v9873_v40, 2  ;;  %v10070_v40 = vmul.f32 %v9902_v48, %v10003_v32 }
 0x1a4   : > { %v3229_v30 = vrot.slane %v3155_v14, 7  ;;  %v2629_v31 = vpop.permute.xlu1 %2628  ;;  %2112 = vrot.lane.b32.xlu0 %v1545_v52, %s15360_s22  ;;  %v2348_v52 = vrot.slane %v1578_v15, 2  ;;  %v10058_v14 = vmul.f32 %v9736_v0, %v10003_v32  ;;  %v10105_v15 = vld [vmem:[%s14933_s4] ss:$0 sm:$0xff] }
 0x1a5   : > { %v3122_v47 = vsel %vm3117_vm11, %v3088_v33, %v2629_v31  ;;  %v2773_v3 = vsel %vm1888_vm3, %v15398_v25, %v2772_v63 }
 0x1a6   : > { %2114 = vrot.lane.b32.xlu1 %v1546_v41, %s15360_s22  ;;  %v10018_v8 = vpop.permute.xlu0 %2203  ;;  %v3230_v57 = vsel %vm1403_vm2, %v3227_v23, %v3229_v30  ;;  %v15043_v5 = vrot.slane %v10058_v14, 2 }
 0x1a7   : > { %8156 = vmatprep.mubr.msk.f32.mxu1 %vm3289_vm12, %v3230_v57  ;;  %v10077_v57 = vsel %vm1403_vm2, %v15400_v7, %v1433_v58 }
 0x1a8   : > { %v10025_v1 = vpop.permute.xlu1 %1772  ;;  %2642 = vrot.lane.b32.xlu0 %v1723_v13, %s8699_s26  ;;  %15401 = vst [vmem:[#allocation81_spill] sm:$0xff] %v10077_v57  ;;  %v1515_v33 = vmul.f32 %v10077_v57, %v9950_v38 }
 0x1aa   : > { %2644 = vrot.lane.b32.xlu1 %v1725_v34, %s8699_s26  ;;  %v2824_v23 = vpop.permute.xlu0 %2823 }
 0x1ab   : > { %v10038_v22 = vsel %vm3151_vm10, %v3122_v47, %v2824_v23  ;;  %v2775_v47 = vsel %vm1888_vm3, %v2772_v63, %v15043_v5  ;;  %v10100_v23 = vpop.f32.mrf.mxu1 }
 0x1ac   : > { %v3231_v28 = vrot.slane %v10038_v22, 7  ;;  %v10043_v17 = vpop.permute.xlu1 %2400  ;;  %2217 = vrot.lane.b32.xlu0 %v1723_v13, %s8697_s21 }
 0x1ae   : > { %1786 = vrot.lane.b32.xlu1 %v1723_v13, %s8694_s30  ;;  %v10047_v62 = vpop.permute.xlu0 %1968  ;;  %v3232_v39 = vsel %vm1403_vm2, %v3229_v30, %v3231_v28  ;;  %v15399_v30 = vrot.slane %v9885_v56, 2  ;;  %v10082_v56 = vsel %vm1403_vm2, %v1433_v58, %v15042_v27  ;;  %v15044_v13 = vrot.slane %v10070_v40, 2  ;;  %v15403_v58 = vld [vmem:[#allocation34_spill] sm:$0xff]  ;;  %v906_v27 = vpop.f32.mrf.mxu1 }
 0x1af   : > { %8157 = vmatmul.mubr.msk.f32.gmra.mxu1 %vm3289_vm12, %v3232_v39  ;;  %15402 = vst [vmem:[#allocation82_spill] sm:$0xff] %v10082_v56  ;;  %v10092_v29 = vmul.f32 %v10082_v56, %v10003_v32  ;;  %v902_v39 = vadd.f32 %v10105_v15, %v9925_v37 }
 0x1b0   : > { %v10062_v31 = vpop.permute.xlu1 %1970  ;;  %2837 = vrot.lane.b32.xlu0 %v2773_v3, %s8700_s27  ;;  %v2349_v41 = vsel %vm1888_vm3, %v15399_v30, %v2348_v52  ;;  %v1918_v3 = vrot.slane %v1515_v33, 2  ;;  %v15404_v30 = vld [vmem:[#allocation41_spill] sm:$0xff]  ;;  %v15405_v33 = vld [vmem:[#allocation6_spill] sm:$0xff] }
 0x1b1   : > { %v15045_v63 = vrot.slane %v10092_v29, 2  ;;  %v10122_v5 = vmax.f32 %v902_v39, 0.0 }
 0x1b2   : > { %2414 = vrot.lane.b32.xlu1 %v2349_v41, %s8698_s23  ;;  %v2531_v20 = vpop.permute.xlu0 %2530  ;;  %v1247_v41 = vmul.f32 %v15404_v30, %v15403_v58  ;;  %v1919_v37 = vsel %vm1888_vm3, %v1916_v60, %v1918_v3 }
 0x1b3   : > { %v1921_v16 = vsel %vm1888_vm3, %v1918_v3, %v15045_v63 }
 0x1b4   : > { %v10084_v51 = vpop.permute.xlu1 %2532  ;;  %2219 = vrot.lane.b32.xlu0 %v1725_v34, %s8697_s21 }
 0x1b6   : > { %1788 = vrot.lane.b32.xlu1 %v1725_v34, %s8694_s30  ;;  %v10095_v49 = vpop.permute.xlu0 %2100  ;;  %v2351_v34 = vsel %vm1888_vm3, %v2348_v52, %v15044_v13  ;;  %v1175_v13 = vrot.slane %v15405_v33, 1  ;;  %v15408_v33 = vld [vmem:[#allocation40_spill] sm:$0xff] }
 0x1b8   : > { %v10109_v25 = vpop.permute.xlu1 %2102  ;;  %2839 = vrot.lane.b32.xlu0 %v2775_v47, %s8700_s27  ;;  %v2919_v47 = vsel %vm659_vm1, %v1247_v41, %v9770_v45  ;;  %v1611_v41 = vmul.f32 %v9985_v26, %v10003_v32 }
 0x1b9   : > { %v2953_v58 = vsel %vm2947_vm5, %v2919_v47, %v9825_v36  ;;  %v15407_v47 = vld [vmem:[#allocation30_spill] sm:$0xff] }
 0x1ba   : > { %2416 = vrot.lane.b32.xlu1 %v2351_v34, %s8698_s23  ;;  %v2631_v7 = vpop.permute.xlu0 %2630  ;;  %v15406_v34 = vld [vmem:[#allocation8_spill] sm:$0xff]  ;;  %v2987_v39 = vsel %vm2981_vm6, %v2953_v58, %v9862_v4  ;;  %v1248_v3 = vmul.f32 %v15408_v33, %v15407_v47  ;;  %v1612_v4 = vmul.f32 %v10001_v55, %v10122_v5 }
 0x1bb   : > { %v15051_v60 = vrot.slane %v15406_v34, 1  ;;  %v3021_v36 = vsel %vm3015_vm7, %v2987_v39, %v9943_v59 }
 0x1bc   : > { %v2633_v52 = vpop.permute.xlu1 %2632  ;;  %1984 = vrot.lane.b32.xlu0 %v1919_v37, %s8695_s18  ;;  %v907_v37 = vadd.f32 %v10105_v15, %v906_v27  ;;  %v3055_v63 = vsel %vm3049_vm8, %v3021_v36, %v9977_v24  ;;  %v10156_v27 = vsel %vm1145_vm4, %v1173_v53, %v1175_v13  ;;  %v2920_v24 = vsel %vm659_vm1, %v1248_v3, %v9877_v10 }
 0x1bd   : > { %15409 = vst [vmem:[#allocation34_spill] sm:$0xff] %v10156_v27  ;;  %v3089_v59 = vsel %vm3083_vm9, %v3055_v63, %v2531_v20  ;;  %v10162_v58 = vsel %vm1145_vm4, %v1175_v13, %v15051_v60  ;;  %v1547_v54 = vmul.f32 %v10156_v27, %v10003_v32  ;;  %v2954_v20 = vsel %vm2947_vm5, %v2920_v24, %v9954_v43 }
 0x1be   : > { %1986 = vrot.lane.b32.xlu1 %v1921_v16, %s8695_s18  ;;  %v10137_v45 = vpop.permute.xlu0 %2205  ;;  %15410 = vst [vmem:[#allocation6_spill] sm:$0xff] %v10162_v58  ;;  %v3123_v16 = vsel %vm3117_vm11, %v3089_v59, %v2631_v7  ;;  %v10170_v53 = vmax.f32 %v907_v37, 0.0  ;;  %v1726_v13 = vrot.slane %v10122_v5, 1  ;;  %v1548_v10 = vmul.f32 %v10162_v58, %v10122_v5 }
 0x1bf   : > { %v2988_v37 = vsel %vm2981_vm6, %v2954_v20, %v9841_v19 }
 0x1c0   : > { %v10148_v46 = vpop.permute.xlu1 %1774  ;;  %2546 = vrot.lane.b32.xlu0 %v1611_v41, %s8696_s20  ;;  %v15048_v7 = vrot.slane %v10170_v53, 1  ;;  %v3022_v3 = vsel %vm3015_vm7, %v2988_v37, %v10018_v8 }
 0x1c1   : > { %v3056_v19 = vsel %vm3049_vm8, %v3022_v3, %v10043_v17  ;;  %v15413_v3 = vld [vmem:[#allocation42_spill] sm:$0xff] }
 0x1c2   : > { %2548 = vrot.lane.b32.xlu1 %v1612_v4, %s8696_s20  ;;  %v2826_v39 = vpop.permute.xlu0 %2825  ;;  %v15411_v4 = vrot.slane %v10003_v32, 1  ;;  %v3090_v22 = vsel %vm3083_vm9, %v3056_v19, %v10084_v51  ;;  %v1729_v8 = vsel %vm1145_vm4, %v1726_v13, %v15048_v7  ;;  %v15414_v19 = vld [vmem:[#allocation45_spill] sm:$0xff] }
 0x1c3   : > { %v3157_v63 = vsel %vm3151_vm10, %v3123_v16, %v2826_v39  ;;  %v3124_v16 = vsel %vm3117_vm11, %v3090_v22, %v2633_v52  ;;  %v15047_v22 = vrot.slane %v15414_v19, 7 }
 0x1c4   : > { %v3233_v41 = vrot.slane %v3157_v63, 7  ;;  %v10176_v36 = vpop.permute.xlu1 %2402  ;;  %2116 = vrot.lane.b32.xlu0 %v1547_v54, %s15360_s22  ;;  %v1727_v59 = vsel %vm1145_vm4, %v15411_v4, %v1726_v13  ;;  %v1580_v54 = vmul.f32 %v10077_v57, %v10122_v5  ;;  %v1437_v4 = vrot.slane %v15413_v3, 7 }
 0x1c6   : > { %2118 = vrot.lane.b32.xlu1 %v1548_v10, %s15360_s22  ;;  %v10185_v43 = vpop.permute.xlu0 %2207  ;;  %v3234_v47 = vsel %vm1403_vm2, %v3231_v28, %v3233_v41  ;;  %v1644_v28 = vmul.f32 %v9897_v61, %v10122_v5  ;;  %v15412_v10 = vrot.slane %v10058_v14, 2  ;;  %v15421_v61 = vrot.slane %v10092_v29, 2 }
 0x1c7   : > { %8159 = vmatprep.mubr.msk.f32.mxu1 %vm3289_vm12, %v3234_v47  ;;  %v2352_v47 = vrot.slane %v1580_v54, 2  ;;  %v15416_v54 = vrot.slane %v9384_v11, 7 }
 0x1c8   : > { %v10198_v24 = vpop.permute.xlu1 %1776  ;;  %2646 = vrot.lane.b32.xlu0 %v1727_v59, %s8699_s26  ;;  %v2776_v63 = vrot.slane %v1644_v28, 2 }
 0x1ca   : > { %2648 = vrot.lane.b32.xlu1 %v1729_v8, %s8699_s26  ;;  %v2828_v39 = vpop.permute.xlu0 %2827  ;;  %v2777_v37 = vsel %vm1888_vm3, %v15412_v10, %v2776_v63 }
 0x1cb   : > { %v10211_v17 = vsel %vm3151_vm10, %v3124_v16, %v2828_v39  ;;  %v10244_v39 = vmul.f32 %v10082_v56, %v10170_v53 }
 0x1cc   : > { %v15050_v51 = vrot.slane %v10211_v17, 7  ;;  %v10216_v20 = vpop.permute.xlu1 %2404  ;;  %2221 = vrot.lane.b32.xlu0 %v1727_v59, %s8697_s21 }
 0x1ce   : > { %1790 = vrot.lane.b32.xlu1 %v1727_v59, %s8694_s30  ;;  %v10220_v13 = vpop.permute.xlu0 %1972  ;;  %v3236_v52 = vsel %vm1403_vm2, %v3233_v41, %v15050_v51  ;;  %v15415_v59 = vrot.slane %v10070_v40, 2  ;;  %v10239_v41 = vmul.f32 %v9902_v48, %v10170_v53  ;;  %v10254_v40 = vsel %vm1403_vm2, %v1437_v4, %v15047_v22  ;;  %v10275_v22 = vpop.f32.mrf.mxu1  ;;  %v15420_v51 = vld [vmem:[#allocation60_spill] sm:$0xff] }
 0x1cf   : > { %8160 = vmatmul.mubr.msk.f32.gmra.mxu1 %vm3289_vm12, %v3236_v52  ;;  %v10249_v52 = vsel %vm1403_vm2, %v15416_v54, %v1437_v4  ;;  %15418 = vst [vmem:[#allocation30_spill] sm:$0xff] %v10254_v40  ;;  %v15061_v4 = vrot.slane %v10244_v39, 2  ;;  %v912_v54 = vadd.f32 %v10105_v15, %v10100_v23 }
 0x1d0   : > { %v10231_v28 = vpop.permute.xlu1 %1974  ;;  %2841 = vrot.lane.b32.xlu0 %v2777_v37, %s8700_s27  ;;  %v2353_v16 = vsel %vm1888_vm3, %v15415_v59, %v2352_v47  ;;  %15417 = vst [vmem:[#allocation8_spill] sm:$0xff] %v10249_v52  ;;  %v15049_v37 = vrot.slane %v10239_v41, 2  ;;  %v1517_v3 = vmul.f32 %v10249_v52, %v10122_v5 }
 0x1d1   : > { %v10290_v44 = vmax.f32 %v912_v54, 0.0 }
 0x1d2   : > { %2418 = vrot.lane.b32.xlu1 %v2353_v16, %s8698_s23  ;;  %v2535_v14 = vpop.permute.xlu0 %2534  ;;  %v2779_v59 = vsel %vm1888_vm3, %v2776_v63, %v15049_v37  ;;  %v10271_v16 = vmul.f32 %v10254_v40, %v10170_v53  ;;  %v1922_v63 = vrot.slane %v1517_v3, 2  ;;  %v15419_v37 = vld [vmem:[#allocation39_spill] sm:$0xff] }
 0x1d3   : > { %v1249_v60 = vmul.f32 %v15420_v51, %v15419_v37  ;;  %v15422_v3 = vld [vmem:[#allocation7_spill] sm:$0xff] }
 0x1d4   : > { %v10256_v10 = vpop.permute.xlu1 %2536  ;;  %2223 = vrot.lane.b32.xlu0 %v1729_v8, %s8697_s21  ;;  %v1923_v23 = vsel %vm1888_vm3, %v15421_v61, %v1922_v63  ;;  %v15060_v0 = vrot.slane %v10271_v16, 2  ;;  %v1179_v37 = vrot.slane %v15422_v3, 1 }
 0x1d5   : > { %v2921_v30 = vsel %vm659_vm1, %v1249_v60, %v9907_v2  ;;  %v1613_v2 = vmul.f32 %v10156_v27, %v10170_v53  ;;  %v15423_v60 = vld [vmem:[#allocation10_spill] sm:$0xff] }
 0x1d6   : > { %1792 = vrot.lane.b32.xlu1 %v1729_v8, %s8694_s30  ;;  %v10263_v11 = vpop.permute.xlu0 %2104  ;;  %v2355_v8 = vsel %vm1888_vm3, %v2352_v47, %v15061_v4  ;;  %v1925_v61 = vsel %vm1888_vm3, %v1922_v63, %v15060_v0  ;;  %v15426_v0 = vld [vmem:[#allocation38_spill] sm:$0xff] }
 0x1d7   : > { %v15427_v4 = vld [vmem:[#allocation62_spill] sm:$0xff] }
 0x1d8   : > { %v10277_v7 = vpop.permute.xlu1 %2106  ;;  %2843 = vrot.lane.b32.xlu0 %v2779_v59, %s8700_s27  ;;  %v916_v59 = vpop.f32.mrf.mxu1 }
 0x1d9   : > { %v917_v3 = vadd.f32 %v10105_v15, %v916_v59 }
 0x1da   : > { %2420 = vrot.lane.b32.xlu1 %v2355_v8, %s8698_s23  ;;  %v2635_v48 = vpop.permute.xlu0 %2634  ;;  %v2955_v8 = vsel %vm2947_vm5, %v2921_v30, %v10047_v62 }
 0x1db   : > { %v2989_v29 = vsel %vm2981_vm6, %v2955_v8, %v10095_v49  ;;  %v1614_v49 = vmul.f32 %v10162_v58, %v10290_v44  ;;  %v15424_v8 = vrot.slane %v15406_v34, 1 }
 0x1dc   : > { %v2637_v47 = vpop.permute.xlu1 %2636  ;;  %1988 = vrot.lane.b32.xlu0 %v1923_v23, %s8695_s18  ;;  %v15065_v23 = vrot.slane %v15423_v60, 1  ;;  %v3023_v62 = vsel %vm3015_vm7, %v2989_v29, %v10137_v45  ;;  %v1250_v45 = vmul.f32 %v15427_v4, %v15426_v0  ;;  %v15439_v4 = vld [vmem:[#allocation49_spill] sm:$0xff] }
 0x1dd   : > { %v3057_v30 = vsel %vm3049_vm8, %v3023_v62, %v10176_v36  ;;  %v10336_v62 = vmax.f32 %v917_v3, 0.0  ;;  %v1251_v33 = vmul.f32 %v9658_v21, %v15439_v4  ;;  %v15457_v21 = vld [vmem:[#allocation63_spill] sm:$0xff] }
 0x1de   : > { %1990 = vrot.lane.b32.xlu1 %v1925_v61, %s8695_s18  ;;  %v10304_v54 = vpop.permute.xlu0 %2209  ;;  %v10322_v61 = vsel %vm1145_vm4, %v15424_v8, %v1179_v37  ;;  %v3091_v59 = vsel %vm3083_vm9, %v3057_v30, %v2535_v14  ;;  %v10334_v34 = vsel %vm1145_vm4, %v1179_v37, %v15065_v23  ;;  %v1730_v30 = vrot.slane %v10290_v44, 1 }
 0x1df   : > { %15425 = vst [vmem:[#allocation42_spill] sm:$0xff] %v10322_v61  ;;  %v3125_v29 = vsel %vm3117_vm11, %v3091_v59, %v2635_v48  ;;  %15428 = vst [vmem:[#allocation45_spill] sm:$0xff] %v10334_v34  ;;  %v2922_v0 = vsel %vm659_vm1, %v1250_v45, %v10025_v1  ;;  %v1550_v8 = vmul.f32 %v10334_v34, %v10290_v44  ;;  %v15062_v3 = vrot.slane %v10336_v62, 1 }
 0x1e0   : > { %v10314_v63 = vpop.permute.xlu1 %1778  ;;  %2550 = vrot.lane.b32.xlu0 %v1613_v2, %s8696_s20  ;;  %v1549_v2 = vmul.f32 %v10322_v61, %v10170_v53  ;;  %15429 = vst [vmem:[#allocation39_spill] sm:$0xff] %v10336_v62  ;;  %v2956_v37 = vsel %vm2947_vm5, %v2922_v0, %v10062_v31  ;;  %v15430_v1 = vrot.slane %v10211_v17, 7  ;;  %v15431_v31 = vrot.slane %v10170_v53, 1 }
 0x1e1   : > { %v2990_v59 = vsel %vm2981_vm6, %v2956_v37, %v10109_v25  ;;  %v1646_v25 = vmul.f32 %v10077_v57, %v10290_v44  ;;  %v922_v23 = vadd.f32 %v10105_v15, %v10275_v22  ;;  %v15440_v22 = vrot.slane %v10271_v16, 2 }
 0x1e2   : > { %2552 = vrot.lane.b32.xlu1 %v1614_v49, %s8696_s20  ;;  %v2830_v36 = vpop.permute.xlu0 %2829 }
 0x1e3   : > { %v3159_v14 = vsel %vm3151_vm10, %v3125_v29, %v2830_v36  ;;  %v3024_v36 = vsel %vm3015_vm7, %v2990_v59, %v10185_v43  ;;  %v1733_v43 = vsel %vm1145_vm4, %v1730_v30, %v15062_v3 }
 0x1e4   : > { %v3237_v48 = vrot.slane %v3159_v14, 7  ;;  %v10342_v49 = vpop.permute.xlu1 %2406  ;;  %2120 = vrot.lane.b32.xlu0 %v1549_v2, %s15360_s22  ;;  %v1731_v2 = vsel %vm1145_vm4, %v15431_v31, %v1730_v30  ;;  %v3058_v14 = vsel %vm3049_vm8, %v3024_v36, %v10216_v20 }
 0x1e5   : > { %v3092_v17 = vsel %vm3083_vm9, %v3058_v14, %v10256_v10  ;;  %v15433_v14 = vld [vmem:[#allocation47_spill] sm:$0xff] }
 0x1e6   : > { %2122 = vrot.lane.b32.xlu1 %v1550_v8, %s15360_s22  ;;  %v10353_v29 = vpop.permute.xlu0 %2211  ;;  %v3238_v45 = vsel %vm1403_vm2, %v15430_v1, %v3237_v48  ;;  %v1582_v8 = vmul.f32 %v10249_v52, %v10290_v44  ;;  %v3126_v37 = vsel %vm3117_vm11, %v3092_v17, %v2637_v47  ;;  %v2780_v1 = vrot.slane %v1646_v25, 2 }
 0x1e7   : > { %8162 = vmatprep.mubr.msk.f32.mxu1 %vm3289_vm12, %v3238_v45  ;;  %v15432_v45 = vld [vmem:[#allocation43_spill] sm:$0xff]  ;;  %v15064_v3 = vrot.slane %v15433_v14, 7  ;;  %v15434_v25 = vrot.slane %v10239_v41, 2  ;;  %v10416_v41 = vmul.f32 %v10254_v40, %v10336_v62 }
 0x1e8   : > { %v10368_v0 = vpop.permute.xlu1 %1780  ;;  %2650 = vrot.lane.b32.xlu0 %v1731_v2, %s8699_s26  ;;  %v1441_v36 = vrot.slane %v15432_v45, 7  ;;  %v2356_v30 = vrot.slane %v1582_v8, 2  ;;  %v15435_v8 = vrot.slane %v15414_v19, 7 }
 0x1ea   : > { %2652 = vrot.lane.b32.xlu1 %v1733_v43, %s8699_s26  ;;  %v2832_v59 = vpop.permute.xlu0 %2831 }
 0x1eb   : > { %v10381_v20 = vsel %vm3151_vm10, %v3126_v37, %v2832_v59  ;;  %v2781_v37 = vsel %vm1888_vm3, %v15434_v25, %v2780_v1  ;;  %v10401_v59 = vmul.f32 %v10082_v56, %v10336_v62  ;;  %v10421_v25 = vsel %vm1403_vm2, %v1441_v36, %v15064_v3  ;;  %v10443_v56 = vpop.f32.mrf.mxu1 }
 0x1ec   : > { %v15063_v10 = vrot.slane %v10381_v20, 7  ;;  %v10385_v31 = vpop.permute.xlu1 %2408  ;;  %2225 = vrot.lane.b32.xlu0 %v1731_v2, %s8697_s21  ;;  %15438 = vst [vmem:[#allocation10_spill] sm:$0xff] %v10421_v25 }
 0x1ed   : > { %v926_v35 = vpop.f32.mrf.mxu1 }
 0x1ee   : > { %1794 = vrot.lane.b32.xlu1 %v1731_v2, %s8694_s30  ;;  %v10390_v47 = vpop.permute.xlu0 %1976  ;;  %v3240_v17 = vsel %vm1403_vm2, %v3237_v48, %v15063_v10  ;;  %v10406_v2 = vsel %vm1403_vm2, %v15435_v8, %v1441_v36  ;;  %v15437_v48 = vrot.slane %v10244_v39, 2  ;;  %v15070_v8 = vrot.slane %v10401_v59, 2 }
 0x1ef   : > { %8163 = vmatmul.mubr.msk.f32.gmra.mxu1 %vm3289_vm12, %v3240_v17  ;;  %15436 = vst [vmem:[#allocation7_spill] sm:$0xff] %v10406_v2  ;;  %v10433_v10 = vmul.f32 %v10421_v25, %v10336_v62 }
 0x1f0   : > { %v10408_v45 = vpop.permute.xlu1 %1978  ;;  %2845 = vrot.lane.b32.xlu0 %v2781_v37, %s8700_s27  ;;  %v2357_v17 = vsel %vm1888_vm3, %v15437_v48, %v2356_v30  ;;  %v1519_v37 = vmul.f32 %v10406_v2, %v10290_v44  ;;  %v15075_v48 = vrot.slane %v10416_v41, 2 }
 0x1f1   : > { %v15080_v51 = vrot.slane %v10433_v10, 2 }
 0x1f2   : > { %2422 = vrot.lane.b32.xlu1 %v2357_v17, %s8698_s23  ;;  %v2539_v19 = vpop.permute.xlu0 %2538  ;;  %v2783_v17 = vsel %vm1888_vm3, %v2780_v1, %v15070_v8  ;;  %v1926_v3 = vrot.slane %v1519_v37, 2  ;;  %v10458_v8 = vmax.f32 %v922_v23, 0.0 }
 0x1f4   : > { %v10427_v39 = vpop.permute.xlu1 %2540  ;;  %2227 = vrot.lane.b32.xlu0 %v1733_v43, %s8697_s21  ;;  %v1927_v37 = vsel %vm1888_vm3, %v15440_v22, %v1926_v3  ;;  %15441 = vst [vmem:[#allocation38_spill] sm:$0xff] %v10458_v8  ;;  %v1929_v16 = vsel %vm1888_vm3, %v1926_v3, %v15080_v51  ;;  %v10611_v51 = vpop.f32.mrf.mxu1 }
 0x1f6   : > { %1796 = vrot.lane.b32.xlu1 %v1733_v43, %s8694_s30  ;;  %v10436_v36 = vpop.permute.xlu0 %2108  ;;  %v2359_v43 = vsel %vm1888_vm3, %v2356_v30, %v15075_v48  ;;  %v15442_v30 = vld [vmem:[#allocation9_spill] sm:$0xff] }
 0x1f7   : > { %v1183_v48 = vrot.slane %v15442_v30, 1  ;;  %v15444_v30 = vrot.slane %v15423_v60, 1 }
 0x1f8   : > { %v10445_v57 = vpop.permute.xlu1 %2110  ;;  %2847 = vrot.lane.b32.xlu0 %v2783_v17, %s8700_s27  ;;  %v2923_v17 = vsel %vm659_vm1, %v1251_v33, %v10148_v46  ;;  %v1615_v46 = vmul.f32 %v10322_v61, %v10336_v62  ;;  %v15443_v33 = vld [vmem:[#allocation12_spill] sm:$0xff] }
 0x1f9   : > { %v2957_v4 = vsel %vm2947_vm5, %v2923_v17, %v10220_v13  ;;  %v15079_v22 = vrot.slane %v15443_v33, 1 }
 0x1fa   : > { %2424 = vrot.lane.b32.xlu1 %v2359_v43, %s8698_s23  ;;  %v2639_v1 = vpop.permute.xlu0 %2638  ;;  %v2991_v23 = vsel %vm2981_vm6, %v2957_v4, %v10263_v11  ;;  %v1616_v11 = vmul.f32 %v10334_v34, %v10458_v8  ;;  %v10490_v4 = vsel %vm1145_vm4, %v15444_v30, %v1183_v48 }
 0x1fb   : > { %v3025_v13 = vsel %vm3015_vm7, %v2991_v23, %v10304_v54  ;;  %15445 = vst [vmem:[#allocation43_spill] sm:$0xff] %v10490_v4  ;;  %v10502_v60 = vsel %vm1145_vm4, %v1183_v48, %v15079_v22  ;;  %v932_v22 = vadd.f32 %v10105_v15, %v10443_v56  ;;  %v15458_v56 = vrot.slane %v10433_v10, 2 }
 0x1fc   : > { %v2641_v9 = vpop.permute.xlu1 %2640  ;;  %1992 = vrot.lane.b32.xlu0 %v1927_v37, %s8695_s18  ;;  %v927_v37 = vadd.f32 %v10105_v15, %v926_v35  ;;  %v3059_v3 = vsel %vm3049_vm8, %v3025_v13, %v10342_v49  ;;  %15447 = vst [vmem:[#allocation47_spill] sm:$0xff] %v10502_v60 }
 0x1fd   : > { %v3093_v35 = vsel %vm3083_vm9, %v3059_v3, %v2539_v19  ;;  %v1734_v3 = vrot.slane %v10458_v8, 1 }
 0x1fe   : > { %1994 = vrot.lane.b32.xlu1 %v1929_v16, %s8695_s18  ;;  %v10472_v43 = vpop.permute.xlu0 %2213  ;;  %v15446_v16 = vld [vmem:[#allocation57_spill] sm:$0xff]  ;;  %v3127_v23 = vsel %vm3117_vm11, %v3093_v35, %v2639_v1  ;;  %v10504_v13 = vmax.f32 %v927_v37, 0.0  ;;  %v1552_v35 = vmul.f32 %v10502_v60, %v10458_v8 }
 0x1ff   : > { %v1252_v54 = vmul.f32 %v9668_v6, %v15446_v16  ;;  %v1253_v6 = vmul.f32 %v9822_v18, %v15457_v21 }
 0x200   : > { %v10482_v17 = vpop.permute.xlu1 %1782  ;;  %2554 = vrot.lane.b32.xlu0 %v1615_v46, %s8696_s20  ;;  %v1551_v46 = vmul.f32 %v10490_v4, %v10336_v62  ;;  %v15076_v37 = vrot.slane %v10504_v13, 1 }
 0x201   : > { %v2924_v1 = vsel %vm659_vm1, %v1252_v54, %v10198_v24  ;;  %v15448_v24 = vrot.slane %v10381_v20, 7 }
 0x202   : > { %2556 = vrot.lane.b32.xlu1 %v1616_v11, %s8696_s20  ;;  %v2834_v49 = vpop.permute.xlu0 %2833  ;;  %v2958_v48 = vsel %vm2947_vm5, %v2924_v1, %v10231_v28  ;;  %v15449_v28 = vrot.slane %v10336_v62, 1 }
 0x203   : > { %v3161_v19 = vsel %vm3151_vm10, %v3127_v23, %v2834_v49  ;;  %v2992_v16 = vsel %vm2981_vm6, %v2958_v48, %v10277_v7  ;;  %v1648_v7 = vmul.f32 %v10249_v52, %v10458_v8 }
 0x204   : > { %v3241_v30 = vrot.slane %v3161_v19, 7  ;;  %v10510_v11 = vpop.permute.xlu1 %2410  ;;  %2124 = vrot.lane.b32.xlu0 %v1551_v46, %s15360_s22  ;;  %v3026_v49 = vsel %vm3015_vm7, %v2992_v16, %v10353_v29  ;;  %v1735_v46 = vsel %vm1145_vm4, %v15449_v28, %v1734_v3  ;;  %v1737_v29 = vsel %vm1145_vm4, %v1734_v3, %v15076_v37 }
 0x205   : > { %v3060_v19 = vsel %vm3049_vm8, %v3026_v49, %v10385_v31 }
 0x206   : > { %2126 = vrot.lane.b32.xlu1 %v1552_v35, %s15360_s22  ;;  %v10521_v23 = vpop.permute.xlu0 %2215  ;;  %v3242_v54 = vsel %vm1403_vm2, %v15448_v24, %v3241_v30  ;;  %v3094_v20 = vsel %vm3083_vm9, %v3060_v19, %v10427_v39  ;;  %v1584_v35 = vmul.f32 %v10406_v2, %v10458_v8  ;;  %v2784_v24 = vrot.slane %v1648_v7, 2  ;;  %v15451_v19 = vld [vmem:[#allocation50_spill] sm:$0xff] }
 0x207   : > { %8165 = vmatprep.mubr.msk.f32.mxu1 %vm3289_vm12, %v3242_v54  ;;  %v3128_v48 = vsel %vm3117_vm11, %v3094_v20, %v2641_v9  ;;  %v15450_v54 = vld [vmem:[#allocation46_spill] sm:$0xff]  ;;  %v15078_v37 = vrot.slane %v15451_v19, 7  ;;  %v15452_v7 = vrot.slane %v10401_v59, 2  ;;  %v10584_v59 = vmul.f32 %v10421_v25, %v10504_v13 }
 0x208   : > { %v10536_v1 = vpop.permute.xlu1 %1784  ;;  %2654 = vrot.lane.b32.xlu0 %v1735_v46, %s8699_s26  ;;  %v1445_v49 = vrot.slane %v15450_v54, 7  ;;  %v2360_v3 = vrot.slane %v1584_v35, 2  ;;  %v15453_v35 = vrot.slane %v15433_v14, 7 }
 0x20a   : > { %2656 = vrot.lane.b32.xlu1 %v1737_v29, %s8699_s26  ;;  %v2836_v16 = vpop.permute.xlu0 %2835 }
 0x20b   : > { %v10549_v31 = vsel %vm3151_vm10, %v3128_v48, %v2836_v16  ;;  %v2785_v48 = vsel %vm1888_vm3, %v15452_v7, %v2784_v24  ;;  %v10569_v16 = vmul.f32 %v10254_v40, %v10504_v13  ;;  %v10589_v7 = vsel %vm1403_vm2, %v1445_v49, %v15078_v37 }
 0x20c   : > { %v15077_v39 = vrot.slane %v10549_v31, 7  ;;  %v10553_v28 = vpop.permute.xlu1 %2412  ;;  %2229 = vrot.lane.b32.xlu0 %v1735_v46, %s8697_s21  ;;  %15456 = vst [vmem:[#allocation9_spill] sm:$0xff] %v10589_v7 }
 0x20e   : > { %1798 = vrot.lane.b32.xlu1 %v1735_v46, %s8694_s30  ;;  %v10558_v9 = vpop.permute.xlu0 %1980  ;;  %v3244_v20 = vsel %vm1403_vm2, %v3241_v30, %v15077_v39  ;;  %v10574_v46 = vsel %vm1403_vm2, %v15453_v35, %v1445_v49  ;;  %v15455_v30 = vrot.slane %v10416_v41, 2  ;;  %v15089_v35 = vrot.slane %v10569_v16, 2 }
 0x20f   : > { %8166 = vmatmul.mubr.msk.f32.gmra.mxu1 %vm3289_vm12, %v3244_v20  ;;  %15454 = vst [vmem:[#allocation49_spill] sm:$0xff] %v10574_v46  ;;  %v10601_v39 = vmul.f32 %v10589_v7, %v10504_v13 }
 0x210   : > { %v10576_v54 = vpop.permute.xlu1 %1982  ;;  %2849 = vrot.lane.b32.xlu0 %v2785_v48, %s8700_s27  ;;  %v2361_v20 = vsel %vm1888_vm3, %v15455_v30, %v2360_v3  ;;  %v1521_v48 = vmul.f32 %v10574_v46, %v10458_v8  ;;  %v15092_v30 = vrot.slane %v10584_v59, 2  ;;  %v936_v8 = vpop.f32.mrf.mxu1 }
 0x211   : > { %v15097_v52 = vrot.slane %v10601_v39, 2 }
 0x212   : > { %2426 = vrot.lane.b32.xlu1 %v2361_v20, %s8698_s23  ;;  %v2543_v14 = vpop.permute.xlu0 %2542  ;;  %v2787_v20 = vsel %vm1888_vm3, %v2784_v24, %v15089_v35  ;;  %v1930_v37 = vrot.slane %v1521_v48, 2  ;;  %v10626_v35 = vmax.f32 %v932_v22, 0.0 }
 0x214   : > { %v10595_v41 = vpop.permute.xlu1 %2544  ;;  %2231 = vrot.lane.b32.xlu0 %v1737_v29, %s8697_s21  ;;  %v1931_v48 = vsel %vm1888_vm3, %v15458_v56, %v1930_v37  ;;  %15459 = vst [vmem:[#allocation12_spill] sm:$0xff] %v10626_v35  ;;  %v1933_v10 = vsel %vm1888_vm3, %v1930_v37, %v15097_v52  ;;  %v10779_v52 = vpop.f32.mrf.mxu1 }
 0x216   : > { %1800 = vrot.lane.b32.xlu1 %v1737_v29, %s8694_s30  ;;  %v10604_v49 = vpop.permute.xlu0 %2112  ;;  %v2363_v29 = vsel %vm1888_vm3, %v2360_v3, %v15092_v30  ;;  %v15460_v3 = vld [vmem:[#allocation11_spill] sm:$0xff]  ;;  %v946_v18 = vpop.f32.mrf.mxu1 }
 0x217   : > { %v1187_v30 = vrot.slane %v15460_v3, 1  ;;  %v15462_v3 = vrot.slane %v15443_v33, 1 }
 0x218   : > { %v10613_v40 = vpop.permute.xlu1 %2114  ;;  %2851 = vrot.lane.b32.xlu0 %v2787_v20, %s8700_s27  ;;  %v2925_v20 = vsel %vm659_vm1, %v1253_v6, %v10314_v63  ;;  %v1617_v6 = vmul.f32 %v10490_v4, %v10504_v13  ;;  %v15461_v63 = vld [vmem:[#allocation14_spill] sm:$0xff] }
 0x219   : > { %v2959_v21 = vsel %vm2947_vm5, %v2925_v20, %v10390_v47  ;;  %v15096_v56 = vrot.slane %v15461_v63, 1 }
 0x21a   : > { %2428 = vrot.lane.b32.xlu1 %v2363_v29, %s8698_s23  ;;  %v2643_v24 = vpop.permute.xlu0 %2642  ;;  %v2993_v22 = vsel %vm2981_vm6, %v2959_v21, %v10436_v36  ;;  %v1618_v36 = vmul.f32 %v10502_v60, %v10626_v35  ;;  %v10658_v21 = vsel %vm1145_vm4, %v15462_v3, %v1187_v30 }
 0x21b   : > { %v3027_v47 = vsel %vm3015_vm7, %v2993_v22, %v10472_v43  ;;  %15463 = vst [vmem:[#allocation57_spill] sm:$0xff] %v10658_v21  ;;  %v10670_v33 = vsel %vm1145_vm4, %v1187_v30, %v15096_v56  ;;  %v942_v56 = vadd.f32 %v10105_v15, %v10611_v51  ;;  %v15475_v51 = vrot.slane %v10601_v39, 2 }
 0x21c   : > { %v2645_v62 = vpop.permute.xlu1 %2644  ;;  %1996 = vrot.lane.b32.xlu0 %v1931_v48, %s8695_s18  ;;  %v937_v48 = vadd.f32 %v10105_v15, %v936_v8  ;;  %v3061_v37 = vsel %vm3049_vm8, %v3027_v47, %v10510_v11  ;;  %15465 = vst [vmem:[#allocation46_spill] sm:$0xff] %v10670_v33 }
 0x21d   : > { %v3095_v8 = vsel %vm3083_vm9, %v3061_v37, %v2543_v14  ;;  %v1738_v37 = vrot.slane %v10626_v35, 1 }
 0x21e   : > { %1998 = vrot.lane.b32.xlu1 %v1933_v10, %s8695_s18  ;;  %v10640_v29 = vpop.permute.xlu0 %2217  ;;  %v15464_v10 = vld [vmem:[#allocation67_spill] sm:$0xff]  ;;  %v3129_v22 = vsel %vm3117_vm11, %v3095_v8, %v2643_v24  ;;  %v10672_v47 = vmax.f32 %v937_v48, 0.0  ;;  %v1554_v8 = vmul.f32 %v10670_v33, %v10626_v35 }
 0x21f   : > { %v1254_v43 = vmul.f32 %v9835_v42, %v15464_v10  ;;  %v1255_v42 = vmul.f32 %v9985_v26, %v9670_v12 }
 0x220   : > { %v10650_v20 = vpop.permute.xlu1 %1786  ;;  %2558 = vrot.lane.b32.xlu0 %v1617_v6, %s8696_s20  ;;  %v1553_v6 = vmul.f32 %v10658_v21, %v10504_v13  ;;  %v15093_v48 = vrot.slane %v10672_v47, 1 }
 0x221   : > { %v2926_v24 = vsel %vm659_vm1, %v1254_v43, %v10368_v0  ;;  %v15466_v0 = vrot.slane %v10549_v31, 7 }
 0x222   : > { %2560 = vrot.lane.b32.xlu1 %v1618_v36, %s8696_s20  ;;  %v2838_v11 = vpop.permute.xlu0 %2837  ;;  %v2960_v30 = vsel %vm2947_vm5, %v2926_v24, %v10408_v45  ;;  %v15467_v45 = vrot.slane %v10504_v13, 1 }
 0x223   : > { %v3163_v14 = vsel %vm3151_vm10, %v3129_v22, %v2838_v11  ;;  %v2994_v10 = vsel %vm2981_vm6, %v2960_v30, %v10445_v57  ;;  %v1650_v57 = vmul.f32 %v10406_v2, %v10626_v35 }
 0x224   : > { %v3245_v3 = vrot.slane %v3163_v14, 7  ;;  %v10678_v36 = vpop.permute.xlu1 %2414  ;;  %2128 = vrot.lane.b32.xlu0 %v1553_v6, %s15360_s22  ;;  %v3028_v11 = vsel %vm3015_vm7, %v2994_v10, %v10521_v23  ;;  %v1739_v6 = vsel %vm1145_vm4, %v15467_v45, %v1738_v37  ;;  %v1741_v23 = vsel %vm1145_vm4, %v1738_v37, %v15093_v48 }
 0x225   : > { %v3062_v14 = vsel %vm3049_vm8, %v3028_v11, %v10553_v28 }
 0x226   : > { %2130 = vrot.lane.b32.xlu1 %v1554_v8, %s15360_s22  ;;  %v10689_v22 = vpop.permute.xlu0 %2219  ;;  %v3246_v43 = vsel %vm1403_vm2, %v15466_v0, %v3245_v3  ;;  %v3096_v31 = vsel %vm3083_vm9, %v3062_v14, %v10595_v41  ;;  %v1586_v8 = vmul.f32 %v10574_v46, %v10626_v35  ;;  %v2788_v0 = vrot.slane %v1650_v57, 2  ;;  %v15469_v14 = vld [vmem:[#allocation52_spill] sm:$0xff] }
 0x227   : > { %8168 = vmatprep.mubr.msk.f32.mxu1 %vm3289_vm12, %v3246_v43  ;;  %v3130_v30 = vsel %vm3117_vm11, %v3096_v31, %v2645_v62  ;;  %v15468_v43 = vld [vmem:[#allocation48_spill] sm:$0xff]  ;;  %v15095_v48 = vrot.slane %v15469_v14, 7  ;;  %v15470_v57 = vrot.slane %v10569_v16, 2  ;;  %v10752_v16 = vmul.f32 %v10589_v7, %v10672_v47 }
 0x228   : > { %v10704_v24 = vpop.permute.xlu1 %1788  ;;  %2658 = vrot.lane.b32.xlu0 %v1739_v6, %s8699_s26  ;;  %v1449_v11 = vrot.slane %v15468_v43, 7  ;;  %v2364_v37 = vrot.slane %v1586_v8, 2  ;;  %v15471_v8 = vrot.slane %v15451_v19, 7 }
 0x22a   : > { %2660 = vrot.lane.b32.xlu1 %v1741_v23, %s8699_s26  ;;  %v2840_v10 = vpop.permute.xlu0 %2839 }
 0x22b   : > { %v10717_v28 = vsel %vm3151_vm10, %v3130_v30, %v2840_v10  ;;  %v2789_v30 = vsel %vm1888_vm3, %v15470_v57, %v2788_v0  ;;  %v10737_v10 = vmul.f32 %v10421_v25, %v10672_v47  ;;  %v10757_v57 = vsel %vm1403_vm2, %v1449_v11, %v15095_v48 }
 0x22c   : > { %v15094_v41 = vrot.slane %v10717_v28, 7  ;;  %v10721_v45 = vpop.permute.xlu1 %2416  ;;  %2233 = vrot.lane.b32.xlu0 %v1739_v6, %s8697_s21  ;;  %15474 = vst [vmem:[#allocation63_spill] sm:$0xff] %v10757_v57 }
 0x22e   : > { %1802 = vrot.lane.b32.xlu1 %v1739_v6, %s8694_s30  ;;  %v10726_v62 = vpop.permute.xlu0 %1984  ;;  %v3248_v31 = vsel %vm1403_vm2, %v3245_v3, %v15094_v41  ;;  %v10742_v6 = vsel %vm1403_vm2, %v15471_v8, %v1449_v11  ;;  %v15473_v3 = vrot.slane %v10584_v59, 2  ;;  %v15104_v8 = vrot.slane %v10737_v10, 2 }
 0x22f   : > { %8169 = vmatmul.mubr.msk.f32.gmra.mxu1 %vm3289_vm12, %v3248_v31  ;;  %15472 = vst [vmem:[#allocation50_spill] sm:$0xff] %v10742_v6  ;;  %v10769_v41 = vmul.f32 %v10757_v57, %v10672_v47 }
 0x230   : > { %v10744_v43 = vpop.permute.xlu1 %1986  ;;  %2853 = vrot.lane.b32.xlu0 %v2789_v30, %s8700_s27  ;;  %v2365_v31 = vsel %vm1888_vm3, %v15473_v3, %v2364_v37  ;;  %v1523_v30 = vmul.f32 %v10742_v6, %v10626_v35  ;;  %v15108_v3 = vrot.slane %v10752_v16, 2 }
 0x231   : > { %v15113_v2 = vrot.slane %v10769_v41, 2 }
 0x232   : > { %2430 = vrot.lane.b32.xlu1 %v2365_v31, %s8698_s23  ;;  %v2547_v19 = vpop.permute.xlu0 %2546  ;;  %v2791_v31 = vsel %vm1888_vm3, %v2788_v0, %v15104_v8  ;;  %v1934_v48 = vrot.slane %v1523_v30, 2  ;;  %v10794_v8 = vmax.f32 %v942_v56, 0.0 }
 0x234   : > { %v10763_v59 = vpop.permute.xlu1 %2548  ;;  %2235 = vrot.lane.b32.xlu0 %v1741_v23, %s8697_s21  ;;  %v1935_v30 = vsel %vm1888_vm3, %v15475_v51, %v1934_v48  ;;  %15476 = vst [vmem:[#allocation11_spill] sm:$0xff] %v10794_v8  ;;  %v1937_v39 = vsel %vm1888_vm3, %v1934_v48, %v15113_v2  ;;  %v10947_v2 = vpop.f32.mrf.mxu1 }
 0x236   : > { %1804 = vrot.lane.b32.xlu1 %v1741_v23, %s8694_s30  ;;  %v10772_v11 = vpop.permute.xlu0 %2116  ;;  %v2367_v23 = vsel %vm1888_vm3, %v2364_v37, %v15108_v3  ;;  %v15477_v37 = vld [vmem:[#allocation13_spill] sm:$0xff]  ;;  %v956_v26 = vpop.f32.mrf.mxu1 }
 0x237   : > { %v1191_v3 = vrot.slane %v15477_v37, 1  ;;  %v15479_v37 = vrot.slane %v15461_v63, 1 }
 0x238   : > { %v10781_v25 = vpop.permute.xlu1 %2118  ;;  %2855 = vrot.lane.b32.xlu0 %v2791_v31, %s8700_s27  ;;  %v2927_v31 = vsel %vm659_vm1, %v1255_v42, %v10482_v17  ;;  %v1619_v42 = vmul.f32 %v10658_v21, %v10672_v47  ;;  %v15478_v17 = vld [vmem:[#allocation16_spill] sm:$0xff] }
 0x239   : > { %v2961_v12 = vsel %vm2947_vm5, %v2927_v31, %v10558_v9  ;;  %v15112_v51 = vrot.slane %v15478_v17, 1 }
 0x23a   : > { %2432 = vrot.lane.b32.xlu1 %v2367_v23, %s8698_s23  ;;  %v2647_v0 = vpop.permute.xlu0 %2646  ;;  %v2995_v56 = vsel %vm2981_vm6, %v2961_v12, %v10604_v49  ;;  %v1620_v49 = vmul.f32 %v10670_v33, %v10794_v8  ;;  %v10826_v12 = vsel %vm1145_vm4, %v15479_v37, %v1191_v3 }
 0x23b   : > { %v3029_v9 = vsel %vm3015_vm7, %v2995_v56, %v10640_v29  ;;  %15480 = vst [vmem:[#allocation14_spill] sm:$0xff] %v10826_v12  ;;  %v10838_v63 = vsel %vm1145_vm4, %v1191_v3, %v15112_v51  ;;  %v952_v51 = vadd.f32 %v10105_v15, %v10779_v52  ;;  %v15492_v52 = vrot.slane %v10769_v41, 2 }
 0x23c   : > { %v2649_v35 = vpop.permute.xlu1 %2648  ;;  %2000 = vrot.lane.b32.xlu0 %v1935_v30, %s8695_s18  ;;  %v947_v30 = vadd.f32 %v10105_v15, %v946_v18  ;;  %v3063_v48 = vsel %vm3049_vm8, %v3029_v9, %v10678_v36  ;;  %15482 = vst [vmem:[#allocation67_spill] sm:$0xff] %v10838_v63 }
 0x23d   : > { %v3097_v18 = vsel %vm3083_vm9, %v3063_v48, %v2547_v19  ;;  %v1742_v48 = vrot.slane %v10794_v8, 1 }
 0x23e   : > { %2002 = vrot.lane.b32.xlu1 %v1937_v39, %s8695_s18  ;;  %v10808_v23 = vpop.permute.xlu0 %2221  ;;  %v15481_v39 = vld [vmem:[#allocation73_spill] sm:$0xff]  ;;  %v3131_v56 = vsel %vm3117_vm11, %v3097_v18, %v2647_v0  ;;  %v10840_v9 = vmax.f32 %v947_v30, 0.0  ;;  %v1556_v18 = vmul.f32 %v10838_v63, %v10794_v8 }
 0x23f   : > { %v1256_v29 = vmul.f32 %v10001_v55, %v15481_v39  ;;  %v1257_v55 = vmul.f32 %v10156_v27, %v9837_v50 }
 0x240   : > { %v10818_v31 = vpop.permute.xlu1 %1790  ;;  %2562 = vrot.lane.b32.xlu0 %v1619_v42, %s8696_s20  ;;  %v1555_v42 = vmul.f32 %v10826_v12, %v10672_v47  ;;  %v15109_v30 = vrot.slane %v10840_v9, 1 }
 0x241   : > { %v2928_v0 = vsel %vm659_vm1, %v1256_v29, %v10536_v1  ;;  %v15483_v1 = vrot.slane %v10717_v28, 7 }
 0x242   : > { %2564 = vrot.lane.b32.xlu1 %v1620_v49, %s8696_s20  ;;  %v2842_v36 = vpop.permute.xlu0 %2841  ;;  %v2962_v3 = vsel %vm2947_vm5, %v2928_v0, %v10576_v54  ;;  %v15484_v54 = vrot.slane %v10672_v47, 1 }
 0x243   : > { %v3165_v19 = vsel %vm3151_vm10, %v3131_v56, %v2842_v36  ;;  %v2996_v39 = vsel %vm2981_vm6, %v2962_v3, %v10613_v40  ;;  %v1652_v40 = vmul.f32 %v10574_v46, %v10794_v8 }
 0x244   : > { %v3249_v37 = vrot.slane %v3165_v19, 7  ;;  %v10846_v49 = vpop.permute.xlu1 %2418  ;;  %2132 = vrot.lane.b32.xlu0 %v1555_v42, %s15360_s22  ;;  %v3030_v36 = vsel %vm3015_vm7, %v2996_v39, %v10689_v22  ;;  %v1743_v42 = vsel %vm1145_vm4, %v15484_v54, %v1742_v48  ;;  %v1745_v22 = vsel %vm1145_vm4, %v1742_v48, %v15109_v30 }
 0x245   : > { %v3064_v19 = vsel %vm3049_vm8, %v3030_v36, %v10721_v45 }
 0x246   : > { %2134 = vrot.lane.b32.xlu1 %v1556_v18, %s15360_s22  ;;  %v10857_v56 = vpop.permute.xlu0 %2223  ;;  %v3250_v29 = vsel %vm1403_vm2, %v15483_v1, %v3249_v37  ;;  %v3098_v28 = vsel %vm3083_vm9, %v3064_v19, %v10763_v59  ;;  %v1588_v18 = vmul.f32 %v10742_v6, %v10794_v8  ;;  %v2792_v1 = vrot.slane %v1652_v40, 2  ;;  %v15486_v19 = vld [vmem:[#allocation56_spill] sm:$0xff] }
 0x247   : > { %8171 = vmatprep.mubr.msk.f32.mxu1 %vm3289_vm12, %v3250_v29  ;;  %v3132_v3 = vsel %vm3117_vm11, %v3098_v28, %v2649_v35  ;;  %v15485_v29 = vld [vmem:[#allocation51_spill] sm:$0xff]  ;;  %v15111_v30 = vrot.slane %v15486_v19, 7  ;;  %v15487_v40 = vrot.slane %v10737_v10, 2  ;;  %v10920_v10 = vmul.f32 %v10757_v57, %v10840_v9 }
 0x248   : > { %v10872_v0 = vpop.permute.xlu1 %1792  ;;  %2662 = vrot.lane.b32.xlu0 %v1743_v42, %s8699_s26  ;;  %v1453_v36 = vrot.slane %v15485_v29, 7  ;;  %v2368_v48 = vrot.slane %v1588_v18, 2  ;;  %v15488_v18 = vrot.slane %v15469_v14, 7 }
 0x24a   : > { %2664 = vrot.lane.b32.xlu1 %v1745_v22, %s8699_s26  ;;  %v2844_v39 = vpop.permute.xlu0 %2843 }
 0x24b   : > { %v10885_v45 = vsel %vm3151_vm10, %v3132_v3, %v2844_v39  ;;  %v2793_v3 = vsel %vm1888_vm3, %v15487_v40, %v2792_v1  ;;  %v10905_v39 = vmul.f32 %v10589_v7, %v10840_v9  ;;  %v10925_v40 = vsel %vm1403_vm2, %v1453_v36, %v15111_v30 }
 0x24c   : > { %v15110_v59 = vrot.slane %v10885_v45, 7  ;;  %v10889_v54 = vpop.permute.xlu1 %2420  ;;  %2237 = vrot.lane.b32.xlu0 %v1743_v42, %s8697_s21  ;;  %15491 = vst [vmem:[#allocation52_spill] sm:$0xff] %v10925_v40 }
 0x24e   : > { %1806 = vrot.lane.b32.xlu1 %v1743_v42, %s8694_s30  ;;  %v10894_v35 = vpop.permute.xlu0 %1988  ;;  %v3252_v28 = vsel %vm1403_vm2, %v3249_v37, %v15110_v59  ;;  %v10910_v42 = vsel %vm1403_vm2, %v15488_v18, %v1453_v36  ;;  %v15490_v37 = vrot.slane %v10752_v16, 2  ;;  %v15120_v18 = vrot.slane %v10905_v39, 2 }
 0x24f   : > { %8172 = vmatmul.mubr.msk.f32.gmra.mxu1 %vm3289_vm12, %v3252_v28  ;;  %15489 = vst [vmem:[#allocation48_spill] sm:$0xff] %v10910_v42  ;;  %v10937_v59 = vmul.f32 %v10925_v40, %v10840_v9 }
 0x250   : > { %v10912_v29 = vpop.permute.xlu1 %1990  ;;  %2857 = vrot.lane.b32.xlu0 %v2793_v3, %s8700_s27  ;;  %v2369_v28 = vsel %vm1888_vm3, %v15490_v37, %v2368_v48  ;;  %v1525_v3 = vmul.f32 %v10910_v42, %v10794_v8  ;;  %v15124_v37 = vrot.slane %v10920_v10, 2 }
 0x251   : > { %v15129_v46 = vrot.slane %v10937_v59, 2 }
 0x252   : > { %2434 = vrot.lane.b32.xlu1 %v2369_v28, %s8698_s23  ;;  %v2551_v14 = vpop.permute.xlu0 %2550  ;;  %v2795_v28 = vsel %vm1888_vm3, %v2792_v1, %v15120_v18  ;;  %v1938_v30 = vrot.slane %v1525_v3, 2  ;;  %v10962_v18 = vmax.f32 %v952_v51, 0.0 }
 0x254   : > { %v10931_v16 = vpop.permute.xlu1 %2552  ;;  %2239 = vrot.lane.b32.xlu0 %v1745_v22, %s8697_s21  ;;  %v1939_v3 = vsel %vm1888_vm3, %v15492_v52, %v1938_v30  ;;  %v1941_v41 = vsel %vm1888_vm3, %v1938_v30, %v15129_v46 }
 0x256   : > { %1808 = vrot.lane.b32.xlu1 %v1745_v22, %s8694_s30  ;;  %v10940_v36 = vpop.permute.xlu0 %2120  ;;  %v2371_v22 = vsel %vm1888_vm3, %v2368_v48, %v15124_v37  ;;  %v15493_v48 = vld [vmem:[#allocation15_spill] sm:$0xff] }
 0x257   : > { %v1195_v37 = vrot.slane %v15493_v48, 1  ;;  %v15495_v48 = vrot.slane %v15478_v17, 1 }
 0x258   : > { %v10949_v7 = vpop.permute.xlu1 %2122  ;;  %2859 = vrot.lane.b32.xlu0 %v2795_v28, %s8700_s27  ;;  %v2929_v28 = vsel %vm659_vm1, %v1257_v55, %v10650_v20  ;;  %v1621_v55 = vmul.f32 %v10826_v12, %v10840_v9  ;;  %v15494_v20 = vld [vmem:[#allocation18_spill] sm:$0xff] }
 0x259   : > { %v2963_v50 = vsel %vm2947_vm5, %v2929_v28, %v10726_v62  ;;  %v15128_v52 = vrot.slane %v15494_v20, 1 }
 0x25a   : > { %2436 = vrot.lane.b32.xlu1 %v2371_v22, %s8698_s23  ;;  %v2651_v1 = vpop.permute.xlu0 %2650  ;;  %v2997_v51 = vsel %vm2981_vm6, %v2963_v50, %v10772_v11  ;;  %v1622_v11 = vmul.f32 %v10838_v63, %v10962_v18  ;;  %v10994_v50 = vsel %vm1145_vm4, %v15495_v48, %v1195_v37 }
 0x25b   : > { %v3031_v62 = vsel %vm3015_vm7, %v2997_v51, %v10808_v23  ;;  %15496 = vst [vmem:[#allocation13_spill] sm:$0xff] %v10994_v50  ;;  %v11006_v17 = vsel %vm1145_vm4, %v1195_v37, %v15128_v52  ;;  %v11120_v52 = vpop.f32.mrf.mxu1 }
 0x25c   : > { %v2653_v8 = vpop.permute.xlu1 %2652  ;;  %2004 = vrot.lane.b32.xlu0 %v1939_v3, %s8695_s18  ;;  %v957_v3 = vadd.f32 %v10105_v15, %v956_v26  ;;  %v3065_v30 = vsel %vm3049_vm8, %v3031_v62, %v10846_v49  ;;  %v1258_v15 = vmul.f32 %v10162_v58, %v9950_v38  ;;  %15497 = vst [vmem:[#allocation16_spill] sm:$0xff] %v11006_v17 }
 0x25d   : > { %v3099_v26 = vsel %vm3083_vm9, %v3065_v30, %v2551_v14  ;;  %v1558_v30 = vmul.f32 %v11006_v17, %v10962_v18  ;;  %v966_v58 = vpop.f32.mrf.mxu1 }
 0x25e   : > { %2006 = vrot.lane.b32.xlu1 %v1941_v41, %s8695_s18  ;;  %v10976_v22 = vpop.permute.xlu0 %2225  ;;  %v3133_v23 = vsel %vm3117_vm11, %v3099_v26, %v2651_v1  ;;  %v1557_v41 = vmul.f32 %v10994_v50, %v10840_v9  ;;  %v11008_v51 = vmax.f32 %v957_v3, 0.0  ;;  %v2930_v38 = vsel %vm659_vm1, %v1258_v15, %v10704_v24 }
 0x25f   : > { %v2964_v37 = vsel %vm2947_vm5, %v2930_v38, %v10744_v43  ;;  %v15498_v24 = vrot.slane %v10885_v45, 7  ;;  %v15499_v43 = vrot.slane %v10840_v9, 1 }
 0x260   : > { %v10986_v28 = vpop.permute.xlu1 %1794  ;;  %2566 = vrot.lane.b32.xlu0 %v1621_v55, %s8696_s20  ;;  %v1746_v55 = vrot.slane %v10962_v18, 1  ;;  %v15126_v3 = vrot.slane %v11008_v51, 1 }
 0x262   : > { %2568 = vrot.lane.b32.xlu1 %v1622_v11, %s8696_s20  ;;  %v2846_v49 = vpop.permute.xlu0 %2845  ;;  %v2998_v11 = vsel %vm2981_vm6, %v2964_v37, %v10781_v25  ;;  %v1654_v25 = vmul.f32 %v10742_v6, %v10962_v18 }
 0x263   : > { %v3167_v14 = vsel %vm3151_vm10, %v3133_v23, %v2846_v49  ;;  %v3032_v15 = vsel %vm3015_vm7, %v2998_v11, %v10857_v56  ;;  %v1747_v23 = vsel %vm1145_vm4, %v15499_v43, %v1746_v55  ;;  %v1749_v56 = vsel %vm1145_vm4, %v1746_v55, %v15126_v3  ;;  %v15500_v11 = vld [vmem:[#allocation55_spill] sm:$0xff]  ;;  %v11116_v3 = vld [vmem:[%s14933_s4] ss:$0 sm:$0xff] }
 0x264   : > { %v3253_v1 = vrot.slane %v3167_v14, 7  ;;  %v11014_v62 = vpop.permute.xlu1 %2422  ;;  %2136 = vrot.lane.b32.xlu0 %v1557_v41, %s15360_s22  ;;  %v3066_v49 = vsel %vm3049_vm8, %v3032_v15, %v10889_v54  ;;  %v1590_v14 = vmul.f32 %v10910_v42, %v10962_v18  ;;  %v2796_v37 = vrot.slane %v1654_v25, 2  ;;  %v15501_v15 = vld [vmem:[#allocation59_spill] sm:$0xff] }
 0x265   : > { %v3100_v45 = vsel %vm3083_vm9, %v3066_v49, %v10931_v16  ;;  %v15125_v43 = vrot.slane %v15501_v15, 7  ;;  %v15502_v25 = vrot.slane %v10905_v39, 2  ;;  %v11088_v39 = vmul.f32 %v10925_v40, %v11008_v51 }
 0x266   : > { %2138 = vrot.lane.b32.xlu1 %v1558_v30, %s15360_s22  ;;  %v11025_v48 = vpop.permute.xlu0 %2227  ;;  %v3254_v26 = vsel %vm1403_vm2, %v15498_v24, %v3253_v1  ;;  %v3134_v38 = vsel %vm3117_vm11, %v3100_v45, %v2653_v8  ;;  %v1457_v24 = vrot.slane %v15500_v11, 7  ;;  %v2372_v55 = vrot.slane %v1590_v14, 2 }
 0x267   : > { %8174 = vmatprep.mubr.msk.f32.mxu1 %vm3289_vm12, %v3254_v26  ;;  %v2797_v45 = vsel %vm1888_vm3, %v15502_v25, %v2796_v37  ;;  %v15503_v14 = vrot.slane %v15486_v19, 7 }
 0x268   : > { %v11040_v41 = vpop.permute.xlu1 %1796  ;;  %2666 = vrot.lane.b32.xlu0 %v1747_v23, %s8699_s26 }
 0x26a   : > { %2668 = vrot.lane.b32.xlu1 %v1749_v56, %s8699_s26  ;;  %v2848_v30 = vpop.permute.xlu0 %2847 }
 0x26b   : > { %v11053_v54 = vsel %vm3151_vm10, %v3134_v38, %v2848_v30  ;;  %v11073_v38 = vmul.f32 %v10757_v57, %v11008_v51 }
 0x26c   : > { %v15127_v16 = vrot.slane %v11053_v54, 7  ;;  %v11057_v26 = vpop.permute.xlu1 %2424  ;;  %2241 = vrot.lane.b32.xlu0 %v1747_v23, %s8697_s21 }
 0x26d   : > { %v15130_v25 = vrot.slane %v11073_v38, 2 }
 0x26e   : > { %1810 = vrot.lane.b32.xlu1 %v1747_v23, %s8694_s30  ;;  %v11062_v8 = vpop.permute.xlu0 %1992  ;;  %v3256_v49 = vsel %vm1403_vm2, %v3253_v1, %v15127_v16  ;;  %v11078_v23 = vsel %vm1403_vm2, %v15503_v14, %v1457_v24  ;;  %v15505_v1 = vrot.slane %v10920_v10, 2  ;;  %v15139_v14 = vrot.slane %v11088_v39, 2 }
 0x26f   : > { %8175 = vmatmul.mubr.msk.f32.gmra.mxu1 %vm3289_vm12, %v3256_v49  ;;  %15504 = vst [vmem:[#allocation73_spill] sm:$0xff] %v11078_v23  ;;  %v11093_v49 = vsel %vm1403_vm2, %v1457_v24, %v15125_v43  ;;  %v962_v16 = vadd.f32 %v11116_v3, %v10947_v2  ;;  %v15507_v2 = vrot.slane %v10937_v59, 2 }
 0x270   : > { %v11080_v30 = vpop.permute.xlu1 %1994  ;;  %2861 = vrot.lane.b32.xlu0 %v2797_v45, %s8700_s27  ;;  %v2373_v11 = vsel %vm1888_vm3, %v15505_v1, %v2372_v55  ;;  %15506 = vst [vmem:[#allocation51_spill] sm:$0xff] %v11093_v49  ;;  %v1527_v45 = vmul.f32 %v11078_v23, %v10962_v18  ;;  %v11105_v1 = vmul.f32 %v11093_v49, %v11008_v51 }
 0x271   : > { %v11135_v6 = vmax.f32 %v962_v16, 0.0 }
 0x272   : > { %2438 = vrot.lane.b32.xlu1 %v2373_v11, %s8698_s23  ;;  %v2555_v19 = vpop.permute.xlu0 %2554  ;;  %v2799_v11 = vsel %vm1888_vm3, %v2796_v37, %v15130_v25  ;;  %v1942_v43 = vrot.slane %v1527_v45, 2  ;;  %v15144_v37 = vrot.slane %v11105_v1, 2  ;;  %v1259_v45 = vmul.f32 %v10322_v61, %v10003_v32 }
 0x274   : > { %v11099_v10 = vpop.permute.xlu1 %2556  ;;  %2243 = vrot.lane.b32.xlu0 %v1749_v56, %s8697_s21  ;;  %v1943_v57 = vsel %vm1888_vm3, %v15507_v2, %v1942_v43  ;;  %v1945_v59 = vsel %vm1888_vm3, %v1942_v43, %v15144_v37  ;;  %v967_v2 = vadd.f32 %v11116_v3, %v966_v58 }
 0x276   : > { %1812 = vrot.lane.b32.xlu1 %v1749_v56, %s8694_s30  ;;  %v11108_v24 = vpop.permute.xlu0 %2124  ;;  %v2375_v56 = vsel %vm1888_vm3, %v2372_v55, %v15139_v14  ;;  %v15508_v55 = vld [vmem:[#allocation17_spill] sm:$0xff] }
 0x277   : > { %v1199_v14 = vrot.slane %v15508_v55, 1  ;;  %v15510_v55 = vrot.slane %v15494_v20, 1 }
 0x278   : > { %v11122_v46 = vpop.permute.xlu1 %2126  ;;  %2863 = vrot.lane.b32.xlu0 %v2799_v11, %s8700_s27  ;;  %v2931_v11 = vsel %vm659_vm1, %v1259_v45, %v10818_v31  ;;  %v1623_v31 = vmul.f32 %v10994_v50, %v11008_v51 }
 0x279   : > { %v2965_v32 = vsel %vm2947_vm5, %v2931_v11, %v10894_v35 }
 0x27a   : > { %2440 = vrot.lane.b32.xlu1 %v2375_v56, %s8698_s23  ;;  %v2655_v25 = vpop.permute.xlu0 %2654  ;;  %v2999_v16 = vsel %vm2981_vm6, %v2965_v32, %v10940_v36  ;;  %v1624_v36 = vmul.f32 %v11006_v17, %v11135_v6  ;;  %v11167_v32 = vsel %vm1145_vm4, %v15510_v55, %v1199_v14 }
 0x27b   : > { %v3033_v35 = vsel %vm3015_vm7, %v2999_v16, %v10976_v22  ;;  %15511 = vst [vmem:[#allocation56_spill] sm:$0xff] %v11167_v32  ;;  %v1260_v22 = vmul.f32 %v10334_v34, %v10122_v5  ;;  %v1559_v16 = vmul.f32 %v11167_v32, %v11008_v51 }
 0x27c   : > { %v2657_v27 = vpop.permute.xlu1 %2656  ;;  %2008 = vrot.lane.b32.xlu0 %v1943_v57, %s8695_s18  ;;  %v15509_v57 = vld [vmem:[#allocation20_spill] sm:$0xff]  ;;  %v3067_v43 = vsel %vm3049_vm8, %v3033_v35, %v11014_v62  ;;  %v1750_v35 = vrot.slane %v11135_v6, 1 }
 0x27d   : > { %v15143_v45 = vrot.slane %v15509_v57, 1  ;;  %v3101_v58 = vsel %vm3083_vm9, %v3067_v43, %v2555_v19  ;;  %v2932_v5 = vsel %vm659_vm1, %v1260_v22, %v10872_v0  ;;  %v15513_v0 = vrot.slane %v11053_v54, 7 }
 0x27e   : > { %2010 = vrot.lane.b32.xlu1 %v1945_v59, %s8695_s18  ;;  %v11149_v56 = vpop.permute.xlu0 %2229  ;;  %v3135_v59 = vsel %vm3117_vm11, %v3101_v58, %v2655_v25 }
 0x27f   : > { %v11179_v20 = vsel %vm1145_vm4, %v1199_v14, %v15143_v45  ;;  %v2966_v14 = vsel %vm2947_vm5, %v2932_v5, %v10912_v29  ;;  %v15514_v29 = vrot.slane %v11008_v51, 1  ;;  %v1592_v5 = vmul.f32 %v11078_v23, %v11135_v6  ;;  %v11288_v45 = vpop.f32.mrf.mxu1 }
 0x280   : > { %v11159_v11 = vpop.permute.xlu1 %1798  ;;  %2570 = vrot.lane.b32.xlu0 %v1623_v31, %s8696_s20  ;;  %15512 = vst [vmem:[#allocation15_spill] sm:$0xff] %v11179_v20  ;;  %v11181_v31 = vmax.f32 %v967_v2, 0.0  ;;  %v3000_v55 = vsel %vm2981_vm6, %v2966_v14, %v10949_v7  ;;  %v1656_v7 = vmul.f32 %v10910_v42, %v11135_v6  ;;  %v1261_v42 = vmul.f32 %v10490_v4, %v10170_v53 }
 0x281   : > { %v976_v34 = vpop.f32.mrf.mxu1 }
 0x282   : > { %2572 = vrot.lane.b32.xlu1 %v1624_v36, %s8696_s20  ;;  %v2850_v62 = vpop.permute.xlu0 %2849  ;;  %v1560_v36 = vmul.f32 %v11179_v20, %v11135_v6  ;;  %v15140_v2 = vrot.slane %v11181_v31, 1 }
 0x283   : > { %v3169_v19 = vsel %vm3151_vm10, %v3135_v59, %v2850_v62  ;;  %v3034_v59 = vsel %vm3015_vm7, %v3000_v55, %v11025_v48  ;;  %v1751_v62 = vsel %vm1145_vm4, %v15514_v29, %v1750_v35  ;;  %v2800_v55 = vrot.slane %v1656_v7, 2  ;;  %v15516_v29 = vld [vmem:[#allocation64_spill] sm:$0xff] }
 0x284   : > { %v3257_v25 = vrot.slane %v3169_v19, 7  ;;  %v11187_v43 = vpop.permute.xlu1 %2426  ;;  %2140 = vrot.lane.b32.xlu0 %v1559_v16, %s15360_s22  ;;  %v3068_v16 = vsel %vm3049_vm8, %v3034_v59, %v11057_v26  ;;  %v1753_v48 = vsel %vm1145_vm4, %v1750_v35, %v15140_v2  ;;  %v2376_v35 = vrot.slane %v1592_v5, 2 }
 0x285   : > { %v3102_v54 = vsel %vm3083_vm9, %v3068_v16, %v11099_v10  ;;  %v15141_v16 = vrot.slane %v15516_v29, 7  ;;  %v15517_v7 = vrot.slane %v11073_v38, 2  ;;  %v15518_v5 = vrot.slane %v15501_v15, 7 }
 0x286   : > { %2142 = vrot.lane.b32.xlu1 %v1560_v36, %s15360_s22  ;;  %v11198_v58 = vpop.permute.xlu0 %2231  ;;  %v3258_v22 = vsel %vm1403_vm2, %v15513_v0, %v3257_v25  ;;  %v3136_v36 = vsel %vm3117_vm11, %v3102_v54, %v2657_v27  ;;  %v15515_v0 = vld [vmem:[#allocation58_spill] sm:$0xff]  ;;  %v11261_v38 = vmul.f32 %v11093_v49, %v11181_v31 }
 0x287   : > { %8177 = vmatprep.mubr.msk.f32.mxu1 %vm3289_vm12, %v3258_v22  ;;  %v1461_v22 = vrot.slane %v15515_v0, 7 }
 0x288   : > { %v11213_v19 = vpop.permute.xlu1 %1800  ;;  %2670 = vrot.lane.b32.xlu0 %v1751_v62, %s8699_s26 }
 0x28a   : > { %2672 = vrot.lane.b32.xlu1 %v1753_v48, %s8699_s26  ;;  %v2852_v14 = vpop.permute.xlu0 %2851 }
 0x28b   : > { %v11226_v26 = vsel %vm3151_vm10, %v3136_v36, %v2852_v14  ;;  %v2801_v36 = vsel %vm1888_vm3, %v15517_v7, %v2800_v55  ;;  %v11246_v14 = vmul.f32 %v10925_v40, %v11181_v31  ;;  %v11266_v7 = vsel %vm1403_vm2, %v1461_v22, %v15141_v16 }
 0x28c   : > { %v15142_v10 = vrot.slane %v11226_v26, 7  ;;  %v11230_v59 = vpop.permute.xlu1 %2428  ;;  %2245 = vrot.lane.b32.xlu0 %v1751_v62, %s8697_s21  ;;  %15521 = vst [vmem:[#allocation55_spill] sm:$0xff] %v11266_v7  ;;  %v11278_v2 = vmul.f32 %v11266_v7, %v11181_v31 }
 0x28e   : > { %1814 = vrot.lane.b32.xlu1 %v1751_v62, %s8694_s30  ;;  %v11235_v27 = vpop.permute.xlu0 %1996  ;;  %v3260_v54 = vsel %vm1403_vm2, %v3257_v25, %v15142_v10  ;;  %v11251_v62 = vsel %vm1403_vm2, %v15518_v5, %v1461_v22  ;;  %v15520_v25 = vrot.slane %v11088_v39, 2  ;;  %v15149_v5 = vrot.slane %v11246_v14, 2 }
 0x28f   : > { %8178 = vmatmul.mubr.msk.f32.gmra.mxu1 %vm3289_vm12, %v3260_v54  ;;  %15519 = vst [vmem:[#allocation18_spill] sm:$0xff] %v11251_v62  ;;  %v972_v10 = vadd.f32 %v11116_v3, %v11120_v52  ;;  %v15158_v40 = vrot.slane %v11278_v2, 2  ;;  %v15522_v52 = vrot.slane %v11105_v1, 2 }
 0x290   : > { %v11253_v0 = vpop.permute.xlu1 %1998  ;;  %2865 = vrot.lane.b32.xlu0 %v2801_v36, %s8700_s27  ;;  %v2377_v54 = vsel %vm1888_vm3, %v15520_v25, %v2376_v35  ;;  %v1529_v36 = vmul.f32 %v11251_v62, %v11135_v6  ;;  %v15154_v25 = vrot.slane %v11261_v38, 2 }
 0x292   : > { %2442 = vrot.lane.b32.xlu1 %v2377_v54, %s8698_s23  ;;  %v2559_v15 = vpop.permute.xlu0 %2558  ;;  %v2803_v54 = vsel %vm1888_vm3, %v2800_v55, %v15149_v5  ;;  %v1946_v16 = vrot.slane %v1529_v36, 2  ;;  %v11303_v5 = vmax.f32 %v972_v10, 0.0 }
 0x294   : > { %v11272_v39 = vpop.permute.xlu1 %2560  ;;  %2247 = vrot.lane.b32.xlu0 %v1753_v48, %s8697_s21  ;;  %v1947_v36 = vsel %vm1888_vm3, %v15522_v52, %v1946_v16  ;;  %v1949_v1 = vsel %vm1888_vm3, %v1946_v16, %v15158_v40 }
 0x296   : > { %1816 = vrot.lane.b32.xlu1 %v1753_v48, %s8694_s30  ;;  %v11281_v22 = vpop.permute.xlu0 %2128  ;;  %v2379_v48 = vsel %vm1888_vm3, %v2376_v35, %v15154_v25  ;;  %v15523_v35 = vld [vmem:[#allocation19_spill] sm:$0xff] }
 0x297   : > { %v1203_v25 = vrot.slane %v15523_v35, 1  ;;  %v15525_v35 = vrot.slane %v15509_v57, 1 }
 0x298   : > { %v11290_v37 = vpop.permute.xlu1 %2130  ;;  %2867 = vrot.lane.b32.xlu0 %v2803_v54, %s8700_s27  ;;  %v2933_v54 = vsel %vm659_vm1, %v1261_v42, %v10986_v28  ;;  %v1625_v42 = vmul.f32 %v11167_v32, %v11181_v31  ;;  %v15524_v28 = vld [vmem:[#allocation22_spill] sm:$0xff] }
 0x299   : > { %v2967_v53 = vsel %vm2947_vm5, %v2933_v54, %v11062_v8  ;;  %v15157_v52 = vrot.slane %v15524_v28, 1 }
 0x29a   : > { %2444 = vrot.lane.b32.xlu1 %v2379_v48, %s8698_s23  ;;  %v2659_v55 = vpop.permute.xlu0 %2658  ;;  %v3001_v10 = vsel %vm2981_vm6, %v2967_v53, %v11108_v24  ;;  %v1626_v24 = vmul.f32 %v11179_v20, %v11303_v5  ;;  %v11335_v53 = vsel %vm1145_vm4, %v15525_v35, %v1203_v25 }
 0x29b   : > { %v3035_v8 = vsel %vm3015_vm7, %v3001_v10, %v11149_v56  ;;  %15526 = vst [vmem:[#allocation59_spill] sm:$0xff] %v11335_v53  ;;  %v1262_v56 = vmul.f32 %v10502_v60, %v10290_v44  ;;  %v1561_v10 = vmul.f32 %v11335_v53, %v11181_v31  ;;  %v11347_v57 = vsel %vm1145_vm4, %v1203_v25, %v15157_v52 }
 0x29c   : > { %v2661_v61 = vpop.permute.xlu1 %2660  ;;  %2012 = vrot.lane.b32.xlu0 %v1947_v36, %s8695_s18  ;;  %v977_v36 = vadd.f32 %v11116_v3, %v976_v34  ;;  %v3069_v16 = vsel %vm3049_vm8, %v3035_v8, %v11187_v43  ;;  %15527 = vst [vmem:[#allocation17_spill] sm:$0xff] %v11347_v57  ;;  %v1754_v8 = vrot.slane %v11303_v5, 1 }
 0x29d   : > { %v3103_v34 = vsel %vm3083_vm9, %v3069_v16, %v2559_v15  ;;  %v2934_v44 = vsel %vm659_vm1, %v1262_v56, %v11040_v41  ;;  %v15528_v41 = vrot.slane %v11226_v26, 7 }
 0x29e   : > { %2014 = vrot.lane.b32.xlu1 %v1949_v1, %s8695_s18  ;;  %v11317_v48 = vpop.permute.xlu0 %2233  ;;  %v3137_v1 = vsel %vm3117_vm11, %v3103_v34, %v2659_v55  ;;  %v2968_v25 = vsel %vm2947_vm5, %v2934_v44, %v11080_v30  ;;  %v15529_v30 = vrot.slane %v11181_v31, 1  ;;  %v1594_v44 = vmul.f32 %v11251_v62, %v11303_v5 }
 0x29f   : > { %v3002_v35 = vsel %vm2981_vm6, %v2968_v25, %v11122_v46  ;;  %v1658_v46 = vmul.f32 %v11078_v23, %v11303_v5 }
 0x2a0   : > { %v11327_v54 = vpop.permute.xlu1 %1802  ;;  %2574 = vrot.lane.b32.xlu0 %v1625_v42, %s8696_s20  ;;  %v11349_v42 = vmax.f32 %v977_v36, 0.0 }
 0x2a2   : > { %2576 = vrot.lane.b32.xlu1 %v1626_v24, %s8696_s20  ;;  %v2854_v43 = vpop.permute.xlu0 %2853  ;;  %v1562_v24 = vmul.f32 %v11347_v57, %v11303_v5  ;;  %v15155_v36 = vrot.slane %v11349_v42, 1 }
 0x2a3   : > { %v3171_v15 = vsel %vm3151_vm10, %v3137_v1, %v2854_v43  ;;  %v3036_v1 = vsel %vm3015_vm7, %v3002_v35, %v11198_v58  ;;  %v1755_v43 = vsel %vm1145_vm4, %v15529_v30, %v1754_v8  ;;  %v2804_v35 = vrot.slane %v1658_v46, 2 }
 0x2a4   : > { %v3261_v55 = vrot.slane %v3171_v15, 7  ;;  %v11355_v16 = vpop.permute.xlu1 %2430  ;;  %2144 = vrot.lane.b32.xlu0 %v1561_v10, %s15360_s22  ;;  %v3070_v10 = vsel %vm3049_vm8, %v3036_v1, %v11230_v59  ;;  %v2188_v58 = vsel %vm1145_vm4, %v1754_v8, %v15155_v36  ;;  %v2380_v30 = vrot.slane %v1594_v44, 2 }
 0x2a5   : > { %v3104_v26 = vsel %vm3083_vm9, %v3070_v10, %v11272_v39  ;;  %v15532_v46 = vrot.slane %v11246_v14, 2  ;;  %v15533_v44 = vrot.slane %v15516_v29, 7 }
 0x2a6   : > { %2146 = vrot.lane.b32.xlu1 %v1562_v24, %s15360_s22  ;;  %v11366_v34 = vpop.permute.xlu0 %2235  ;;  %v3262_v56 = vsel %vm1403_vm2, %v15528_v41, %v3261_v55  ;;  %v3138_v24 = vsel %vm3117_vm11, %v3104_v26, %v2661_v61  ;;  %v15530_v41 = vld [vmem:[#allocation61_spill] sm:$0xff] }
 0x2a7   : > { %8180 = vmatprep.mubr.msk.f32.mxu1 %vm3289_vm12, %v3262_v56  ;;  %v11397_v56 = vrot.slane %v15530_v41, 7  ;;  %v2805_v26 = vsel %vm1888_vm3, %v15532_v46, %v2804_v35  ;;  %v11431_v41 = vmul.f32 %v11266_v7, %v11349_v42 }
 0x2a8   : > { %v11381_v15 = vpop.permute.xlu1 %1804  ;;  %2674 = vrot.lane.b32.xlu0 %v1755_v43, %s8699_s26 }
 0x2a9   : > { %15531 = vst [vmem:[#allocation20_spill] sm:$0xff] %v11397_v56 }
 0x2aa   : > { %2676 = vrot.lane.b32.xlu1 %v2188_v58, %s8699_s26  ;;  %v2856_v25 = vpop.permute.xlu0 %2855 }
 0x2ab   : > { %v11394_v59 = vsel %vm3151_vm10, %v3138_v24, %v2856_v25  ;;  %v11415_v24 = vmul.f32 %v11093_v49, %v11349_v42 }
 0x2ac   : > { %v15156_v39 = vrot.slane %v11394_v59, 7  ;;  %v11400_v1 = vpop.permute.xlu1 %2432  ;;  %2249 = vrot.lane.b32.xlu0 %v1755_v43, %s8697_s21 }
 0x2ad   : > { %v15163_v29 = vrot.slane %v11415_v24, 2 }
 0x2ae   : > { %1818 = vrot.lane.b32.xlu1 %v1755_v43, %s8694_s30  ;;  %v11404_v61 = vpop.permute.xlu0 %2000  ;;  %v3264_v10 = vsel %vm1403_vm2, %v3261_v55, %v15156_v39  ;;  %v11421_v43 = vsel %vm1403_vm2, %v15533_v44, %v11397_v56  ;;  %v15535_v55 = vrot.slane %v11261_v38, 2  ;;  %v2382_v38 = vrot.slane %v11431_v41, 2 }
 0x2af   : > { %8181 = vmatmul.mubr.msk.f32.gmra.mxu1 %vm3289_vm12, %v3264_v10  ;;  %15534 = vst [vmem:[#allocation58_spill] sm:$0xff] %v11421_v43  ;;  %v1531_v46 = vmul.f32 %v11421_v43, %v11303_v5  ;;  %v982_v39 = vadd.f32 %v11116_v3, %v11288_v45 }
 0x2b0   : > { %v11423_v25 = vpop.permute.xlu1 %2002  ;;  %2869 = vrot.lane.b32.xlu0 %v2805_v26, %s8700_s27  ;;  %v2381_v14 = vsel %vm1888_vm3, %v15535_v55, %v2380_v30  ;;  %v1532_v26 = vmul.f32 %v11397_v56, %v11349_v42 }
 0x2b1   : > { %v1950_v36 = vrot.slane %v1531_v46, 2  ;;  %v1016_v3 = vmax.f32 %v982_v39, 0.0 }
 0x2b2   : > { %2446 = vrot.lane.b32.xlu1 %v2381_v14, %s8698_s23  ;;  %v2563_v10 = vpop.permute.xlu0 %2562  ;;  %v2807_v14 = vsel %vm1888_vm3, %v2804_v35, %v15163_v29  ;;  %v1952_v40 = vrot.slane %v1532_v26, 2  ;;  %v15537_v35 = vrot.slane %v11278_v2, 2  ;;  %v15538_v29 = vld [vmem:[#allocation21_spill] sm:$0xff] }
 0x2b4   : > { %v11437_v44 = vpop.permute.xlu1 %2564  ;;  %2251 = vrot.lane.b32.xlu0 %v2188_v58, %s8697_s21  ;;  %v2383_v58 = vsel %vm1888_vm3, %v2380_v30, %v2382_v38  ;;  %v1951_v46 = vsel %vm1888_vm3, %v15537_v35, %v1950_v36  ;;  %v11467_v30 = vrot.slane %v15538_v29, 1  ;;  %v15542_v35 = vld [vmem:[#allocation38_spill] sm:$0xff] }
 0x2b6   : > { %1820 = vrot.lane.b32.xlu1 %v1754_v8, %s8694_s30  ;;  %v11444_v55 = vpop.permute.xlu0 %2132  ;;  %v15536_v8 = vld [vmem:[#allocation39_spill] sm:$0xff]  ;;  %15539 = vst [vmem:[#allocation64_spill] sm:$0xff] %v11467_v30 }
 0x2b7   : > { %v1263_v49 = vmul.f32 %v10658_v21, %v15536_v8  ;;  %v15629_v21 = vld [vmem:[#allocation72_spill] sm:$0xff] }
 0x2b8   : > { %v11451_v52 = vpop.permute.xlu1 %2134  ;;  %2871 = vrot.lane.b32.xlu0 %v2807_v14, %s8700_s27 }
 0x2b9   : > { %v2935_v45 = vsel %vm659_vm1, %v1263_v49, %v11159_v11  ;;  %v1627_v49 = vmul.f32 %v11335_v53, %v11349_v42 }
 0x2ba   : > { %2448 = vrot.lane.b32.xlu1 %v2383_v58, %s8698_s23  ;;  %v2663_v23 = vpop.permute.xlu0 %2662  ;;  %v2969_v26 = vsel %vm2947_vm5, %v2935_v45, %v11235_v27  ;;  %v1953_v58 = vsel %vm1888_vm3, %v1950_v36, %v1952_v40  ;;  %v1628_v40 = vmul.f32 %v11347_v57, %v1016_v3  ;;  %v15540_v27 = vrot.slane %v15524_v28, 1 }
 0x2bb   : > { %v3003_v2 = vsel %vm2981_vm6, %v2969_v26, %v11281_v22 }
 0x2bc   : > { %v2665_v14 = vpop.permute.xlu1 %2664  ;;  %2016 = vrot.lane.b32.xlu0 %v1951_v46, %s8695_s18  ;;  %v3037_v11 = vsel %vm3015_vm7, %v3003_v2, %v11317_v48  ;;  %v11491_v22 = vsel %vm1145_vm4, %v15540_v27, %v11467_v30  ;;  %v3774_v48 = vld [vmem:[%s14936_s7] sm:$0xff]  ;;  %v15543_v27 = vrot.slane %v11394_v59, 7 }
 0x2bd   : > { %v3071_v29 = vsel %vm3049_vm8, %v3037_v11, %v11355_v16  ;;  %15541 = vst [vmem:[#allocation19_spill] sm:$0xff] %v11491_v22  ;;  %v1264_v16 = vmul.f32 %v10670_v33, %v15542_v35  ;;  %v1563_v28 = vmul.f32 %v11491_v22, %v11349_v42  ;;  %8201 = vmatprep.subr.mxu0 %v3774_v48 }
 0x2be   : > { %2018 = vrot.lane.b32.xlu1 %v1953_v58, %s8695_s18  ;;  %v11475_v39 = vpop.permute.xlu0 %2237  ;;  %v3105_v36 = vsel %vm3083_vm9, %v3071_v29, %v2563_v10  ;;  %v2189_v58 = vrot.slane %v1016_v3, 1  ;;  %8202 = vmatpush3.msra.mxu0 %v3774_v48  ;;  %v15544_v48 = vrot.slane %v11349_v42, 1  ;;  %v1660_v35 = vmul.f32 %v11251_v62, %v1016_v3 }
 0x2bf   : > { %v3139_v46 = vsel %vm3117_vm11, %v3105_v36, %v2663_v23  ;;  %v2936_v10 = vsel %vm659_vm1, %v1264_v16, %v11213_v19  ;;  %v1564_v23 = vmul.f32 %v11467_v30, %v1016_v3 }
 0x2c0   : > { %v11483_v8 = vpop.permute.xlu1 %1806  ;;  %2578 = vrot.lane.b32.xlu0 %v1627_v49, %s8696_s20  ;;  %v2970_v11 = vsel %vm2947_vm5, %v2936_v10, %v11253_v0  ;;  %v2190_v0 = vsel %vm1145_vm4, %v15544_v48, %v2189_v58  ;;  %v1596_v10 = vmul.f32 %v11421_v43, %v1016_v3  ;;  %v15547_v3 = vrot.slane %v11415_v24, 2 }
 0x2c1   : > { %v3004_v29 = vsel %vm2981_vm6, %v2970_v11, %v11290_v37  ;;  %v1597_v48 = vmul.f32 0.0, %v11397_v56 }
 0x2c2   : > { %2580 = vrot.lane.b32.xlu1 %v1628_v40, %s8696_s20  ;;  %v2858_v45 = vpop.permute.xlu0 %2857  ;;  %v3038_v36 = vsel %vm3015_vm7, %v3004_v29, %v11366_v34 }
 0x2c3   : > { %v3173_v26 = vsel %vm3151_vm10, %v3139_v46, %v2858_v45  ;;  %v3072_v37 = vsel %vm3049_vm8, %v3038_v36, %v11400_v1  ;;  %v15545_v46 = vld [vmem:[#allocation2_spill] sm:$0xff]  ;;  %v1661_v45 = vmul.f32 0.0, %v11266_v7  ;;  %v2808_v1 = vrot.slane %v1660_v35, 2 }
 0x2c4   : > { %v3265_v2 = vrot.slane %v3173_v26, 7  ;;  %v11506_v49 = vpop.permute.xlu1 %2434  ;;  %2148 = vrot.lane.b32.xlu0 %v1563_v28, %s15360_s22  ;;  %v3106_v59 = vsel %vm3083_vm9, %v3072_v37, %v11437_v44  ;;  %v2619_v34 = vsel %vm1145_vm4, %v2189_v58, %v15545_v46  ;;  %v2384_v36 = vrot.slane %v1596_v10, 2 }
 0x2c5   : > { %v3140_v42 = vsel %vm3117_vm11, %v3106_v59, %v2665_v14  ;;  %v11547_v44 = vrot.slane %v1661_v45, 2  ;;  %v11569_v37 = vrot.slane %v1597_v48, 2 }
 0x2c6   : > { %2150 = vrot.lane.b32.xlu1 %v1564_v23, %s15360_s22  ;;  %v11515_v40 = vpop.permute.xlu0 %2239  ;;  %v3266_v19 = vsel %vm1403_vm2, %v15543_v27, %v3265_v2  ;;  %v8155_v27 = vpop.f32.mrf.mxu1  ;;  %v2385_v24 = vsel %vm1888_vm3, %v2382_v38, %v2384_v36  ;;  %s15183_s22 = smov 64  }
 0x2c7   : > { %8183 = vmatprep.mubr.msk.f32.mxu1 %vm3289_vm12, %v3266_v19  ;;  %15546 = vst [vmem:[#allocation22_spill] sm:$0xff] %v11547_v44  ;;  %v2809_v19 = vsel %vm1888_vm3, %v15547_v3, %v2808_v1  ;;  %15548 = vst [vmem:[#allocation61_spill] sm:$0xff] %v11569_v37  ;;  %v2387_v41 = vsel %vm1888_vm3, %v2384_v36, %v11569_v37  ;;  %v1265_v3 = vmul.f32 %v10826_v12, %v10504_v13 }
 0x2c8   : > { %v11529_v16 = vpop.permute.xlu1 %1808  ;;  %2678 = vrot.lane.b32.xlu0 %v2190_v0, %s8699_s26  ;;  %v3423_v35 = vpop.f32.mrf.mxu1  ;;  %v11597_v36 = vmul.f32 0.0, %v11467_v30 }
 0x2ca   : > { %2680 = vrot.lane.b32.xlu1 %v2619_v34, %s8699_s26  ;;  %v2860_v28 = vpop.permute.xlu0 %2859  ;;  %v11575_v34 = vmul.f32 0.0, %v11491_v22  ;;  %v8158_v45 = vpop.f32.mrf.mxu1  ;;  %15551 = vst [vmem:[#allocation21_spill] sm:$0xff] %v11597_v36 }
 0x2cb   : > { %v11540_v26 = vsel %vm3151_vm10, %v3140_v42, %v2860_v28  ;;  %v1662_v42 = vmul.f32 0.0, %v11421_v43 }
 0x2cc   : > { %v15164_v23 = vrot.slane %v11540_v26, 7  ;;  %v11544_v11 = vpop.permute.xlu1 %2436  ;;  %2253 = vrot.lane.b32.xlu0 %v2190_v0, %s8697_s21  ;;  %15549 = vst [vmem:[#allocation39_spill] sm:$0xff] %v11575_v34  ;;  %v3433_v10 = vpop.f32.mrf.mxu1 }
 0x2ce   : > { %2255 = vrot.lane.b32.xlu1 %v2189_v58, %s8697_s21  ;;  %v11550_v14 = vpop.permute.xlu0 %2004  ;;  %v3268_v29 = vsel %vm1403_vm2, %v3265_v2, %v15164_v23  ;;  %v2811_v58 = vsel %vm1888_vm3, %v2808_v1, %v11547_v44  ;;  %v11590_v1 = vld [vmem:[%s14935_s6] ss:$0 sm:$0xff] }
 0x2cf   : > { %8184 = vmatmul.mubr.msk.f32.gmra.mxu1 %vm3289_vm12, %v3268_v29  ;;  %v2812_v29 = vrot.slane %v1662_v42, 2 }
 0x2d0   : > { %v11560_v0 = vpop.permute.xlu1 %2006  ;;  %2873 = vrot.lane.b32.xlu0 %v2809_v19, %s8700_s27  ;;  %v15550_v19 = vld [vmem:[#allocation4_spill] sm:$0xff] }
 0x2d1   : > { %v11608_v42 = vsel %vm1888_vm3, %v2812_v29, %v11569_v37 }
 0x2d2   : > { %2875 = vrot.lane.b32.xlu1 %v2811_v58, %s8700_s27  ;;  %v2567_v2 = vpop.permute.xlu0 %2566  ;;  %v8161_v58 = vpop.f32.mrf.mxu1  ;;  %15552 = vst [vmem:[#allocation38_spill] sm:$0xff] %v11608_v42 }
 0x2d4   : > { %v11571_v59 = vpop.permute.xlu1 %2568  ;;  %2450 = vrot.lane.b32.xlu0 %v2385_v24, %s8698_s23  ;;  %v3429_v24 = vadd.f32 %v8155_v27, %v11590_v1  ;;  %v3443_v27 = vpop.f32.mrf.mxu1 }
 0x2d6   : > { %2582 = vrot.lane.b32.xlu1 %v11575_v34, %s8696_s20  ;;  %v11580_v28 = vpop.permute.xlu0 %2136  ;;  %v3424_v34 = vadd.f32 %v11590_v1, %v3423_v35 }
 0x2d8   : > { %v11584_v38 = vpop.permute.xlu1 %2138  ;;  %2452 = vrot.lane.b32.xlu0 %v2387_v41, %s8698_s23  ;;  %v2937_v41 = vsel %vm659_vm1, %v1265_v3, %v11327_v54  ;;  %v3582_v37 = vmax.f32 %v3424_v34, 0.0 }
 0x2d9   : > { %v2971_v13 = vsel %vm2947_vm5, %v2937_v41, %v11404_v61  ;;  %v11621_v61 = vsel %vm1888_vm3, %v11547_v44, %v2812_v29  ;;  %v3583_v41 = vmax.f32 %v3429_v24, 0.0  ;;  %v3449_v44 = vadd.f32 %v8161_v58, %v11590_v1 }
 0x2da   : > { %8505 = vrot.lane.b32.xlu1 %v15550_v19, %s8699_s26  ;;  %v2667_v48 = vpop.permute.xlu0 %2666  ;;  %v3005_v56 = vsel %vm2981_vm6, %v2971_v13, %v11444_v55  ;;  %15553 = vst [vmem:[#allocation83_spill] sm:$0xff] %v11621_v61  ;;  %v8164_v13 = vpop.f32.mrf.mxu1 }
 0x2db   : > { %v3039_v3 = vsel %vm3015_vm7, %v3005_v56, %v11475_v39  ;;  %v3434_v56 = vadd.f32 %v11590_v1, %v3433_v10  ;;  %v15554_v39 = vld [vmem:[#allocation12_spill] sm:$0xff] }
 0x2dc   : > { %v2669_v23 = vpop.permute.xlu1 %2668  ;;  %2584 = vrot.lane.b32.xlu0 %v11597_v36, %s8696_s20  ;;  %v3439_v36 = vadd.f32 %v8158_v45, %v11590_v1  ;;  %v3073_v35 = vsel %vm3049_vm8, %v3039_v3, %v11506_v49  ;;  %v1266_v29 = vmul.f32 %v10838_v63, %v15554_v39 }
 0x2de   : > { %2879 = vrot.lane.b32.xlu1 %v11608_v42, %s8700_s27  ;;  %v11615_v54 = vpop.permute.xlu0 %2241  ;;  %v3107_v42 = vsel %vm3083_vm9, %v3073_v35, %v2567_v2  ;;  %v3585_v3 = vmax.f32 %v3439_v36, 0.0 }
 0x2df   : > { %v3141_v24 = vsel %vm3117_vm11, %v3107_v42, %v2667_v48  ;;  %v3453_v48 = vpop.f32.mrf.mxu1  ;;  %v3584_v42 = vmax.f32 %v3434_v56, 0.0 }
 0x2e0   : > { %v11626_v55 = vpop.permute.xlu1 %1810  ;;  %2877 = vrot.lane.b32.xlu0 %v11621_v61, %s8700_s27  ;;  %v2938_v61 = vsel %vm659_vm1, %v1266_v29, %v11381_v15  ;;  %v15555_v15 = vrot.slane %v11540_v26, 7  ;;  %v3454_v29 = vadd.f32 %v11590_v1, %v3453_v48 }
 0x2e1   : > { %v2972_v10 = vsel %vm2947_vm5, %v2938_v61, %v11423_v25  ;;  %v8167_v39 = vpop.f32.mrf.mxu1  ;;  %v3587_v25 = vmax.f32 %v3449_v44, 0.0 }
 0x2e2   : > { %3648 = vrot.lane.b32.xlu1 %v3583_v41, %s8694_s30  ;;  %v2862_v45 = vpop.permute.xlu0 %2861  ;;  %v3444_v41 = vadd.f32 %v11590_v1, %v3443_v27  ;;  %v3006_v36 = vsel %vm2981_vm6, %v2972_v10, %v11451_v52  ;;  %v3459_v27 = vadd.f32 %v8164_v13, %v11590_v1  ;;  %v3588_v10 = vmax.f32 %v3454_v29, 0.0 }
 0x2e3   : > { %v3175_v49 = vsel %vm3151_vm10, %v3141_v24, %v2862_v45  ;;  %v3463_v44 = vpop.f32.mrf.mxu1  ;;  %v1267_v29 = vmul.f32 %v10994_v50, %v10672_v47 }
 0x2e4   : > { %v3269_v2 = vrot.slane %v3175_v49, 7  ;;  %v11640_v34 = vpop.permute.xlu1 %2438  ;;  %3646 = vrot.lane.b32.xlu0 %v3582_v37, %s8694_s30  ;;  %v3040_v37 = vsel %vm3015_vm7, %v3006_v36, %v11515_v40  ;;  %v3586_v56 = vmax.f32 %v3444_v41, 0.0  ;;  %v3589_v45 = vmax.f32 %v3459_v27, 0.0 }
 0x2e5   : > { %v3074_v52 = vsel %vm3049_vm8, %v3040_v37, %v11544_v11  ;;  %v3469_v11 = vadd.f32 %v8167_v39, %v11590_v1 }
 0x2e6   : > { %v11648_v35 = vpop.permute.xlu0 %2243  ;;  %3652 = vrot.lane.b32.xlu1 %v3585_v3, %s8694_s30  ;;  %v3270_v58 = vsel %vm1403_vm2, %v15555_v15, %v3269_v2  ;;  %v3108_v26 = vsel %vm3083_vm9, %v3074_v52, %v11571_v59  ;;  %v3464_v59 = vadd.f32 %v11590_v1, %v3463_v44 }
 0x2e7   : > { %8186 = vmatprep.mubr.msk.f32.mxu1 %vm3289_vm12, %v3270_v58  ;;  %v3142_v40 = vsel %vm3117_vm11, %v3108_v26, %v2669_v23  ;;  %v3591_v41 = vmax.f32 %v3469_v11, 0.0 }
 0x2e8   : > { %v11660_v61 = vpop.permute.xlu1 %1812  ;;  %3650 = vrot.lane.b32.xlu0 %v3584_v42, %s8694_s30  ;;  %v3590_v37 = vmax.f32 %v3464_v59, 0.0 }
 0x2ea   : > { %v2864_v24 = vpop.permute.xlu0 %2863  ;;  %3656 = vrot.lane.b32.xlu1 %v3587_v25, %s8694_s30 }
 0x2eb   : > { %v3176_v13 = vsel %vm3151_vm10, %v3142_v40, %v2864_v24  ;;  %v2939_v24 = vsel %vm659_vm1, %v1267_v29, %v11483_v8 }
 0x2ec   : > { %v3271_v49 = vrot.slane %v3176_v13, 7  ;;  %v2441_v3 = vpop.permute.xlu1 %2440  ;;  %3654 = vrot.lane.b32.xlu0 %v3586_v56, %s8694_s30  ;;  %v2973_v13 = vsel %vm2947_vm5, %v2939_v24, %v11550_v14 }
 0x2ee   : > { %v11672_v42 = vpop.permute.xlu0 %2008  ;;  %3660 = vrot.lane.b32.xlu1 %v3589_v45, %s8694_s30  ;;  %v3272_v23 = vsel %vm1403_vm2, %v3269_v2, %v3271_v49  ;;  %v3007_v45 = vsel %vm2981_vm6, %v2973_v13, %v11580_v28 }
 0x2ef   : > { %v8170_v48 = vpop.f32.mrf.mxu1  ;;  %8187 = vmatmul.mubr.msk.f32.gmra.mxu1 %vm3289_vm12, %v3272_v23 }
 0x2f0   : > { %v3479_v36 = vadd.f32 %v8170_v48, %v11590_v1  ;;  %v11678_v15 = vpop.permute.xlu1 %2010  ;;  %3658 = vrot.lane.b32.xlu0 %v3588_v10, %s8694_s30  ;;  %v3041_v10 = vsel %vm3015_vm7, %v3007_v45, %v11615_v54  ;;  %v15556_v48 = vld [vmem:[#allocation11_spill] sm:$0xff] }
 0x2f1   : > { %v3473_v58 = vpop.f32.mrf.mxu1  ;;  %v3075_v59 = vsel %vm3049_vm8, %v3041_v10, %v11640_v34  ;;  %v1268_v8 = vmul.f32 %v11006_v17, %v15556_v48 }
 0x2f2   : > { %v3474_v39 = vadd.f32 %v11590_v1, %v3473_v58  ;;  %v2571_v25 = vpop.permute.xlu0 %2570  ;;  %3664 = vrot.lane.b32.xlu1 %v3591_v41, %s8694_s30  ;;  %v3593_v27 = vmax.f32 %v3479_v36, 0.0 }
 0x2f3   : > { %v3109_v47 = vsel %vm3083_vm9, %v3075_v59, %v2571_v25  ;;  %v2940_v28 = vsel %vm659_vm1, %v1268_v8, %v11529_v16 }
 0x2f4   : > { %v2573_v52 = vpop.permute.xlu1 %2572  ;;  %3662 = vrot.lane.b32.xlu0 %v3590_v37, %s8694_s30  ;;  %v3592_v2 = vmax.f32 %v3474_v39, 0.0  ;;  %v2974_v34 = vsel %vm2947_vm5, %v2940_v28, %v11560_v0 }
 0x2f5   : > { %v3008_v37 = vsel %vm2981_vm6, %v2974_v34, %v11584_v38 }
 0x2f6   : > { %v2141_v26 = vpop.permute.xlu0 %2140  ;;  %3668 = vrot.lane.b32.xlu1 %v3593_v27, %s8694_s30  ;;  %v3042_v27 = vsel %vm3015_vm7, %v3008_v37, %v11648_v35 }
 0x2f8   : > { %v11685_v56 = vpop.permute.xlu1 %2142  ;;  %3666 = vrot.lane.b32.xlu0 %v3592_v2, %s8694_s30  ;;  %v3076_v2 = vsel %vm3049_vm8, %v3042_v27, %v2441_v3 }
 0x2f9   : > { %v3110_v16 = vsel %vm3083_vm9, %v3076_v2, %v2573_v52 }
 0x2fa   : > { %v2671_v40 = vpop.permute.xlu0 %2670 }
 0x2fb   : > { %v3143_v41 = vsel %vm3117_vm11, %v3109_v47, %v2671_v40 }
 0x2fc   : > { %v2673_v44 = vpop.permute.xlu1 %2672 }
 0x2fd   : > { %v3144_v40 = vsel %vm3117_vm11, %v3110_v16, %v2673_v44 }
 0x2fe   : > { %v2246_v11 = vpop.permute.xlu0 %2245 }
 0x300   : > { %v11700_v23 = vpop.permute.xlu1 %1814 }
 0x302   : > { %v2866_v14 = vpop.permute.xlu0 %2865 }
 0x303   : > { %v3177_v36 = vsel %vm3151_vm10, %v3143_v41, %v2866_v14 }
 0x304   : > { %v3273_v58 = vrot.slane %v3177_v36, 7  ;;  %v2443_v54 = vpop.permute.xlu1 %2442  ;;  %v1269_v36 = vmul.f32 %v11167_v32, %v10840_v9  ;;  %v1270_v9 = vmul.f32 %v11179_v20, %v10962_v18 }
 0x306   : > { %v2248_v39 = vpop.permute.xlu0 %2247  ;;  %v3274_v25 = vsel %vm1403_vm2, %v3271_v49, %v3273_v58 }
 0x307   : > { %8189 = vmatprep.mubr.msk.f32.mxu1 %vm3289_vm12, %v3274_v25 }
 0x308   : > { %v11718_v29 = vpop.permute.xlu1 %1816 }
 0x30a   : > { %v2868_v0 = vpop.permute.xlu0 %2867 }
 0x30b   : > { %v3178_v24 = vsel %vm3151_vm10, %v3144_v40, %v2868_v0 }
 0x30c   : > { %v3275_v38 = vrot.slane %v3178_v24, 7  ;;  %v2445_v13 = vpop.permute.xlu1 %2444 }
 0x30e   : > { %v11723_v45 = vpop.permute.xlu0 %2012  ;;  %v3276_v49 = vsel %vm1403_vm2, %v3273_v58, %v3275_v38  ;;  %v2941_v58 = vsel %vm659_vm1, %v1269_v36, %v11626_v55 }
 0x30f   : > { %v8173_v35 = vpop.f32.mrf.mxu1  ;;  %8190 = vmatmul.mubr.msk.f32.gmra.mxu1 %vm3289_vm12, %v3276_v49  ;;  %v2975_v37 = vsel %vm2947_vm5, %v2941_v58, %v11672_v42  ;;  %v2942_v42 = vsel %vm659_vm1, %v1270_v9, %v11660_v61 }
 0x310   : > { %v3489_v3 = vadd.f32 %v8173_v35, %v11590_v1  ;;  %v11728_v10 = vpop.permute.xlu1 %2014  ;;  %v3009_v25 = vsel %vm2981_vm6, %v2975_v37, %v2141_v26 }
 0x311   : > { %v3483_v59 = vpop.f32.mrf.mxu1  ;;  %v3043_v2 = vsel %vm3015_vm7, %v3009_v25, %v2246_v11  ;;  %v2976_v11 = vsel %vm2947_vm5, %v2942_v42, %v11678_v15  ;;  %v1272_v42 = vmul.f32 %v11347_v57, %v11135_v6 }
 0x312   : > { %v3595_v52 = vmax.f32 %v3489_v3, 0.0  ;;  %v3484_v44 = vadd.f32 %v11590_v1, %v3483_v59  ;;  %v2575_v47 = vpop.permute.xlu0 %2574  ;;  %v3077_v16 = vsel %vm3049_vm8, %v3043_v2, %v2443_v54  ;;  %v3010_v54 = vsel %vm2981_vm6, %v2976_v11, %v11685_v56 }
 0x313   : > { %v3111_v0 = vsel %vm3083_vm9, %v3077_v16, %v2575_v47  ;;  %v3044_v18 = vsel %vm3015_vm7, %v3010_v54, %v2248_v39  ;;  %v2944_v54 = vsel %vm659_vm1, %v1272_v42, %v11718_v29 }
 0x314   : > { %v3594_v48 = vmax.f32 %v3484_v44, 0.0  ;;  %v2577_v8 = vpop.permute.xlu1 %2576  ;;  %3672 = vrot.lane.b32.xlu1 %v3595_v52, %s8694_s30  ;;  %v3078_v52 = vsel %vm3049_vm8, %v3044_v18, %v2445_v13 }
 0x315   : > { %v3112_v61 = vsel %vm3083_vm9, %v3078_v52, %v2577_v8 }
 0x316   : > { %v2145_v41 = vpop.permute.xlu0 %2144  ;;  %3670 = vrot.lane.b32.xlu0 %v3594_v48, %s8694_s30 }
 0x318   : > { %v2147_v14 = vpop.permute.xlu1 %2146 }
 0x31a   : > { %v2675_v28 = vpop.permute.xlu0 %2674 }
 0x31b   : > { %v3145_v55 = vsel %vm3117_vm11, %v3111_v0, %v2675_v28 }
 0x31c   : > { %v2677_v34 = vpop.permute.xlu1 %2676 }
 0x31d   : > { %v3146_v47 = vsel %vm3117_vm11, %v3112_v61, %v2677_v34 }
 0x31e   : > { %v2250_v27 = vpop.permute.xlu0 %2249 }
 0x320   : > { %v11742_v40 = vpop.permute.xlu1 %1818 }
 0x322   : > { %v2870_v24 = vpop.permute.xlu0 %2869 }
 0x323   : > { %v3179_v49 = vsel %vm3151_vm10, %v3145_v55, %v2870_v24  ;;  %v1271_v55 = vmul.f32 %v11335_v53, %v11008_v51  ;;  %v2978_v51 = vsel %vm2947_vm5, %v2944_v54, %v11728_v10 }
 0x324   : > { %v3277_v26 = vrot.slane %v3179_v49, 7  ;;  %v2447_v35 = vpop.permute.xlu1 %2446 }
 0x325   : > { %v2943_v49 = vsel %vm659_vm1, %v1271_v55, %v11700_v23  ;;  %v3012_v23 = vsel %vm2981_vm6, %v2978_v51, %v2147_v14 }
 0x326   : > { %v2252_v3 = vpop.permute.xlu0 %2251  ;;  %v3278_v59 = vsel %vm1403_vm2, %v3275_v38, %v3277_v26  ;;  %v2977_v11 = vsel %vm2947_vm5, %v2943_v49, %v11723_v45 }
 0x327   : > { %8192 = vmatprep.mubr.msk.f32.mxu1 %vm3289_vm12, %v3278_v59  ;;  %v3011_v59 = vsel %vm2981_vm6, %v2977_v11, %v2145_v41 }
 0x328   : > { %v1821_v44 = vpop.permute.xlu1 %1820  ;;  %v3045_v52 = vsel %vm3015_vm7, %v3011_v59, %v2250_v27 }
 0x329   : > { %v3079_v61 = vsel %vm3049_vm8, %v3045_v52, %v2447_v35 }
 0x32a   : > { %v2872_v48 = vpop.permute.xlu0 %2871 }
 0x32b   : > { %v3180_v15 = vsel %vm3151_vm10, %v3146_v47, %v2872_v48  ;;  %v3046_v47 = vsel %vm3015_vm7, %v3012_v23, %v2252_v3 }
 0x32c   : > { %v3279_v36 = vrot.slane %v3180_v15, 7  ;;  %v2449_v28 = vpop.permute.xlu1 %2448 }
 0x32d   : > { %v3080_v48 = vsel %vm3049_vm8, %v3046_v47, %v2449_v28  ;;  %v1273_v28 = vmul.f32 %v11491_v22, %v11181_v31  ;;  %v15625_v22 = vld [vmem:[#allocation66_spill] sm:$0xff] }
 0x32e   : > { %v2017_v56 = vpop.permute.xlu0 %2016  ;;  %v3280_v58 = vsel %vm1403_vm2, %v3277_v26, %v3279_v36 }
 0x32f   : > { %v8176_v38 = vpop.f32.mrf.mxu1  ;;  %8193 = vmatmul.mubr.msk.f32.gmra.mxu1 %vm3289_vm12, %v3280_v58 }
 0x330   : > { %v3499_v39 = vadd.f32 %v8176_v38, %v11590_v1  ;;  %v2019_v37 = vpop.permute.xlu1 %2018 }
 0x331   : > { %v3493_v13 = vpop.f32.mrf.mxu1 }
 0x332   : > { %v3597_v25 = vmax.f32 %v3499_v39, 0.0  ;;  %v3494_v8 = vadd.f32 %v11590_v1, %v3493_v13  ;;  %v2579_v2 = vpop.permute.xlu0 %2578  ;;  %v1274_v13 = vmul.f32 %v11467_v30, %v11303_v5 }
 0x333   : > { %v3113_v45 = vsel %vm3083_vm9, %v3079_v61, %v2579_v2  ;;  %v2945_v2 = vsel %vm659_vm1, %v1273_v28, %v11742_v40 }
 0x334   : > { %v3596_v34 = vmax.f32 %v3494_v8, 0.0  ;;  %v2581_v16 = vpop.permute.xlu1 %2580  ;;  %3676 = vrot.lane.b32.xlu1 %v3597_v25, %s8694_s30 }
 0x335   : > { %v3114_v15 = vsel %vm3083_vm9, %v3080_v48, %v2581_v16 }
 0x336   : > { %v2149_v0 = vpop.permute.xlu0 %2148  ;;  %3674 = vrot.lane.b32.xlu0 %v3596_v34, %s8694_s30  ;;  %v2946_v34 = vsel %vm659_vm1, %v1274_v13, %v1821_v44  ;;  %v8651_v13 = vld [vmem:[%s8830_s29 + $0x10] sm:$0xff] }
 0x337   : > { %v2980_v55 = vsel %vm2947_vm5, %v2946_v34, %v2019_v37 }
 0x338   : > { %v2151_v9 = vpop.permute.xlu1 %2150 }
 0x33a   : > { %v2679_v24 = vpop.permute.xlu0 %2678 }
 0x33b   : > { %v3147_v29 = vsel %vm3117_vm11, %v3113_v45, %v2679_v24  ;;  %v3014_v24 = vsel %vm2981_vm6, %v2980_v55, %v2151_v9 }
 0x33c   : > { %v2681_v26 = vpop.permute.xlu1 %2680 }
 0x33d   : > { %v3148_v27 = vsel %vm3117_vm11, %v3114_v15, %v2681_v26 }
 0x33e   : > { %v2254_v18 = vpop.permute.xlu0 %2253 }
 0x340   : > { %v2256_v6 = vpop.permute.xlu1 %2255 }
 0x341   : > { %v3048_v42 = vsel %vm3015_vm7, %v3014_v24, %v2256_v6 }
 0x342   : > { %v2874_v41 = vpop.permute.xlu0 %2873 }
 0x343   : > { %v3181_v10 = vsel %vm3151_vm10, %v3147_v29, %v2874_v41 }
 0x344   : > { %v3281_v58 = vrot.slane %v3181_v10, 7  ;;  %v2876_v14 = vpop.permute.xlu1 %2875 }
 0x345   : > { %v3182_v35 = vsel %vm3151_vm10, %v3148_v27, %v2876_v14  ;;  %v8649_v14 = vld [vmem:[%s8830_s29] sm:$0xff] }
 0x346   : > { %v3283_v38 = vrot.slane %v3182_v35, 7  ;;  %v2451_v39 = vpop.permute.xlu0 %2450  ;;  %v3282_v3 = vsel %vm1403_vm2, %v3279_v36, %v3281_v58  ;;  %v2979_v36 = vsel %vm2947_vm5, %v2945_v2, %v2017_v56 }
 0x347   : > { %8195 = vmatprep.mubr.msk.f32.mxu1 %vm3289_vm12, %v3282_v3  ;;  %v3013_v31 = vsel %vm2981_vm6, %v2979_v36, %v2149_v0  ;;  %v8653_v36 = vld [vmem:[%s8830_s29 + $0x20] sm:$0xff] }
 0x348   : > { %v2583_v25 = vpop.permute.xlu1 %2582  ;;  %v3284_v8 = vsel %vm1403_vm2, %v3281_v58, %v3283_v38  ;;  %v3047_v49 = vsel %vm3015_vm7, %v3013_v31, %v2254_v18  ;;  %v8654_v31 = vld [vmem:[%s8830_s29 + $0x28] sm:$0xff] }
 0x349   : > { %8196 = vmatmul.mubr.msk.f32.gmra.mxu1 %vm3289_vm12, %v3284_v8  ;;  %v3081_v11 = vsel %vm3049_vm8, %v3047_v49, %v2451_v39  ;;  %v8650_v39 = vld [vmem:[%s8830_s29 + $0x8] sm:$0xff]  ;;  %v8652_v8 = vld [vmem:[%s8830_s29 + $0x18] sm:$0xff] }
 0x34a   : > { %v2453_v16 = vpop.permute.xlu0 %2452  ;;  %v3115_v51 = vsel %vm3083_vm9, %v3081_v11, %v2583_v25  ;;  %v8656_v11 = vld [vmem:[%s8830_s29 + $0x38] sm:$0xff] }
 0x34b   : > { %v3082_v40 = vsel %vm3049_vm8, %v3048_v42, %v2453_v16  ;;  %v8655_v42 = vld [vmem:[%s8830_s29 + $0x30] sm:$0xff]  ;;  %vm5934_vm8 = vcmask 588800  }
 0x34c   : > { %v8506_v5 = vpop.permute.xlu1 %8505 }
 0x34d   : > { %v8508_v26 = vunpack.i.h.bf16 %v8506_v5  ;;  %v8507_v44 = vunpack.i.l.bf16 %v8506_v5 }
 0x34e   : > { %v2585_v54 = vpop.permute.xlu0 %2584 }
 0x34f   : > { %v3116_v56 = vsel %vm3083_vm9, %v3082_v40, %v2585_v54  ;;  %v8179_v59 = vpop.f32.mrf.mxu1  ;;  %v3149_v6 = vsel %vm3117_vm11, %v3115_v51, %v8507_v44 }
 0x350   : > { %v3509_v37 = vadd.f32 %v8179_v59, %v11590_v1  ;;  %v2880_v0 = vpop.permute.xlu1 %2879  ;;  %v3150_v9 = vsel %vm3117_vm11, %v3116_v56, %v8508_v26  ;;  %v8657_v56 = vld [vmem:[%s8830_s29 + $0x40] sm:$0xff] }
 0x351   : > { %v3184_v18 = vsel %vm3151_vm10, %v3150_v9, %v2880_v0  ;;  %v3503_v52 = vpop.f32.mrf.mxu1 }
 0x352   : > { %v3599_v23 = vmax.f32 %v3509_v37, 0.0  ;;  %v3504_v61 = vadd.f32 %v11590_v1, %v3503_v52  ;;  %v2878_v47 = vpop.permute.xlu0 %2877  ;;  %v3287_v48 = vrot.slane %v3184_v18, 7  ;;  %v8658_v37 = vld [vmem:[%s8830_s29 + $0x48] sm:$0xff]  ;;  %v8659_v18 = vld [vmem:[%s8830_s29 + $0x50] sm:$0xff] }
 0x353   : > { %v3183_v45 = vsel %vm3151_vm10, %v3149_v6, %v2878_v47 }
 0x354   : > { %v3598_v29 = vmax.f32 %v3504_v61, 0.0  ;;  %v3285_v41 = vrot.slane %v3183_v45, 7  ;;  %v3649_v15 = vpop.permute.xlu1 %3648  ;;  %3680 = vrot.lane.b32.xlu1 %v3599_v23, %s8694_s30  ;;  %v8660_v23 = vld [vmem:[%s8830_s29 + $0x58] sm:$0xff] }
 0x355   : > { %v11830_v3 = vsel %vm659_vm1, %v8650_v39, %v3649_v15 }
 0x356   : > { %v3647_v10 = vpop.permute.xlu0 %3646  ;;  %3678 = vrot.lane.b32.xlu0 %v3598_v29, %s8694_s30  ;;  %v3286_v27 = vsel %vm1403_vm2, %v3283_v38, %v3285_v41  ;;  %v3288_v58 = vsel %vm1403_vm2, %v3285_v41, %v3287_v48  ;;  %15558 = vst [vmem:[#allocation11_spill] sm:$0xff] %v11830_v3 }
 0x357   : > { %v11825_v35 = vsel %vm659_vm1, %v8649_v14, %v3647_v10  ;;  %8198 = vmatprep.mubr.msk.f32.mxu1 %vm3289_vm12, %v3286_v27  ;;  %v8661_v27 = vld [vmem:[%s8830_s29 + $0x60] sm:$0xff]  ;;  %v8662_v14 = vld [vmem:[%s8830_s29 + $0x68] sm:$0xff] }
 0x358   : > { %15557 = vst [vmem:[#allocation12_spill] sm:$0xff] %v11825_v35  ;;  %8199 = vmatmul.mubr.msk.f32.gmra.mxu1 %vm3289_vm12, %v3288_v58  ;;  %8203 = vmatprep.mubr.msk.f32.mxu0 %vm2947_vm5, %v11825_v35  ;;  %v3653_v38 = vpop.permute.xlu1 %3652 }
 0x359   : > { %8204 = vmatmul.mubr.msk.f32.vlgmr.msra.gmra.mxu0 %vm2947_vm5, %v11830_v3  ;;  %v11843_v2 = vsel %vm659_vm1, %v8652_v8, %v3653_v38 }
 0x35a   : > { %v3651_v28 = vpop.permute.xlu0 %3650  ;;  %15560 = vst [vmem:[#allocation85_spill] sm:$0xff] %v11843_v2 }
 0x35b   : > { %v11839_v25 = vsel %vm659_vm1, %v8651_v13, %v3651_v28 }
 0x35c   : > { %15559 = vst [vmem:[#allocation84_spill] sm:$0xff] %v11839_v25  ;;  %v3657_v34 = vpop.permute.xlu1 %3656  ;;  %8206 = vmatprep.mubr.msk.f32.mxu0 %vm2947_vm5, %v11839_v25 }
 0x35d   : > { %8207 = vmatmul.mubr.msk.f32.gmra.mxu0 %vm2947_vm5, %v11843_v2  ;;  %v11855_v24 = vsel %vm659_vm1, %v8654_v31, %v3657_v34 }
 0x35e   : > { %v3655_v16 = vpop.permute.xlu0 %3654  ;;  %15562 = vst [vmem:[#allocation87_spill] sm:$0xff] %v11855_v24 }
 0x35f   : > { %v11851_v55 = vsel %vm659_vm1, %v8653_v36, %v3655_v16 }
 0x360   : > { %15561 = vst [vmem:[#allocation86_spill] sm:$0xff] %v11851_v55  ;;  %v3661_v5 = vpop.permute.xlu1 %3660  ;;  %8209 = vmatprep.mubr.msk.f32.mxu0 %vm2947_vm5, %v11851_v55  ;;  %v15621_v55 = vld [vmem:[#allocation65_spill] sm:$0xff] }
 0x361   : > { %8210 = vmatmul.mubr.msk.f32.gmra.mxu0 %vm2947_vm5, %v11855_v24  ;;  %v11867_v40 = vsel %vm659_vm1, %v8656_v11, %v3661_v5  ;;  %v8663_v5 = vld [vmem:[%s8830_s29 + $0x70] sm:$0xff] }
 0x362   : > { %v3659_v49 = vpop.permute.xlu0 %3658  ;;  %15564 = vst [vmem:[#allocation89_spill] sm:$0xff] %v11867_v40 }
 0x363   : > { %v11863_v26 = vsel %vm659_vm1, %v8655_v42, %v3659_v49  ;;  %v8664_v42 = vld [vmem:[%s8830_s29 + $0x78] sm:$0xff] }
 0x364   : > { %15563 = vst [vmem:[#allocation88_spill] sm:$0xff] %v11863_v26  ;;  %v3665_v44 = vpop.permute.xlu1 %3664  ;;  %8212 = vmatprep.mubr.msk.f32.mxu0 %vm2947_vm5, %v11863_v26 }
 0x365   : > { %8213 = vmatmul.mubr.msk.f32.gmra.mxu0 %vm2947_vm5, %v11867_v40  ;;  %v11879_v0 = vsel %vm659_vm1, %v8658_v37, %v3665_v44 }
 0x366   : > { %v3663_v54 = vpop.permute.xlu0 %3662  ;;  %15566 = vst [vmem:[#allocation91_spill] sm:$0xff] %v11879_v0 }
 0x367   : > { %v11875_v59 = vsel %vm659_vm1, %v8657_v56, %v3663_v54 }
 0x368   : > { %15565 = vst [vmem:[#allocation90_spill] sm:$0xff] %v11875_v59  ;;  %8215 = vmatprep.mubr.msk.f32.mxu0 %vm2947_vm5, %v11875_v59  ;;  %v3669_v9 = vpop.permute.xlu1 %3668  ;;  %v15618_v59 = vld [vmem:[#allocation69_spill] sm:$0xff] }
 0x369   : > { %8216 = vmatmul.mubr.msk.f32.gmra.mxu0 %vm2947_vm5, %v11879_v0  ;;  %v11891_v61 = vsel %vm659_vm1, %v8660_v23, %v3669_v9 }
 0x36a   : > { %v3667_v51 = vpop.permute.xlu0 %3666  ;;  %15568 = vst [vmem:[#allocation93_spill] sm:$0xff] %v11891_v61 }
 0x36b   : > { %v11887_v52 = vsel %vm659_vm1, %v8659_v18, %v3667_v51 }
 0x36c   : > { %15567 = vst [vmem:[#allocation92_spill] sm:$0xff] %v11887_v52  ;;  %8218 = vmatprep.mubr.msk.f32.mxu0 %vm2947_vm5, %v11887_v52 }
 0x36d   : > { %8219 = vmatmul.mubr.msk.f32.gmra.mxu0 %vm2947_vm5, %v11891_v61 }
 0x36f   : > { %v8182_v6 = vpop.f32.mrf.mxu1 }
 0x370   : > { %v3519_v47 = vadd.f32 %v8182_v6, %v11590_v1  ;;  %v8665_v6 = vld [vmem:[%s8830_s29 + $0x80] sm:$0xff] }
 0x371   : > { %v3513_v45 = vpop.f32.mrf.mxu1 }
 0x372   : > { %v3601_v48 = vmax.f32 %v3519_v47, 0.0  ;;  %v3514_v29 = vadd.f32 %v11590_v1, %v3513_v45  ;;  %v8666_v45 = vld [vmem:[%s8830_s29 + $0x88] sm:$0xff] }
 0x374   : > { %v3600_v41 = vmax.f32 %v3514_v29, 0.0  ;;  %3684 = vrot.lane.b32.xlu1 %v3601_v48, %s8694_s30 }
 0x376   : > { %3682 = vrot.lane.b32.xlu0 %v3600_v41, %s8694_s30 }
 0x386   : > { %v3673_v15 = vpop.permute.xlu1 %3672 }
 0x387   : > { %v11907_v39 = vsel %vm659_vm1, %v8662_v14, %v3673_v15 }
 0x388   : > { %v3671_v10 = vpop.permute.xlu0 %3670  ;;  %15570 = vst [vmem:[#allocation95_spill] sm:$0xff] %v11907_v39 }
 0x389   : > { %v11903_v58 = vsel %vm659_vm1, %v8661_v27, %v3671_v10 }
 0x38a   : > { %15569 = vst [vmem:[#allocation94_spill] sm:$0xff] %v11903_v58  ;;  %8221 = vmatprep.mubr.msk.f32.mxu0 %vm2947_vm5, %v11903_v58 }
 0x38b   : > { %8222 = vmatmul.mubr.msk.f32.gmra.mxu0 %vm2947_vm5, %v11907_v39 }
 0x38f   : > { %v8185_v38 = vpop.f32.mrf.mxu1 }
 0x390   : > { %v3529_v28 = vadd.f32 %v8185_v38, %v11590_v1 }
 0x391   : > { %v3523_v13 = vpop.f32.mrf.mxu1 }
 0x392   : > { %v3603_v8 = vmax.f32 %v3529_v28, 0.0  ;;  %v3524_v34 = vadd.f32 %v11590_v1, %v3523_v13  ;;  %v8667_v13 = vld [vmem:[%s8830_s29 + $0x90] sm:$0xff] }
 0x394   : > { %v3602_v16 = vmax.f32 %v3524_v34, 0.0  ;;  %3688 = vrot.lane.b32.xlu1 %v3603_v8, %s8694_s30  ;;  %v8668_v34 = vld [vmem:[%s8830_s29 + $0x98] sm:$0xff] }
 0x396   : > { %3686 = vrot.lane.b32.xlu0 %v3602_v16, %s8694_s30 }
 0x3a6   : > { %v3677_v36 = vpop.permute.xlu1 %3676 }
 0x3a7   : > { %v11923_v11 = vsel %vm659_vm1, %v8664_v42, %v3677_v36 }
 0x3a8   : > { %v3675_v31 = vpop.permute.xlu0 %3674  ;;  %15572 = vst [vmem:[#allocation97_spill] sm:$0xff] %v11923_v11 }
 0x3a9   : > { %v11919_v49 = vsel %vm659_vm1, %v8663_v5, %v3675_v31 }
 0x3aa   : > { %15571 = vst [vmem:[#allocation96_spill] sm:$0xff] %v11919_v49  ;;  %8224 = vmatprep.mubr.msk.f32.mxu0 %vm2947_vm5, %v11919_v49 }
 0x3ab   : > { %8225 = vmatmul.mubr.msk.f32.gmra.mxu0 %vm2947_vm5, %v11923_v11 }
 0x3af   : > { %v8188_v44 = vpop.f32.mrf.mxu1 }
 0x3b0   : > { %v3539_v54 = vadd.f32 %v8188_v44, %v11590_v1 }
 0x3b1   : > { %v3533_v56 = vpop.f32.mrf.mxu1 }
 0x3b2   : > { %v3605_v37 = vmax.f32 %v3539_v54, 0.0  ;;  %v3534_v9 = vadd.f32 %v11590_v1, %v3533_v56 }
 0x3b4   : > { %v3604_v51 = vmax.f32 %v3534_v9, 0.0  ;;  %3692 = vrot.lane.b32.xlu1 %v3605_v37, %s8694_s30  ;;  %v8669_v9 = vld [vmem:[%s8830_s29 + $0xa0] sm:$0xff] }
 0x3b6   : > { %3690 = vrot.lane.b32.xlu0 %v3604_v51, %s8694_s30 }
 0x3c6   : > { %v3681_v18 = vpop.permute.xlu1 %3680 }
 0x3c7   : > { %v11939_v48 = vsel %vm659_vm1, %v8666_v45, %v3681_v18 }
 0x3c8   : > { %v3679_v23 = vpop.permute.xlu0 %3678  ;;  %15574 = vst [vmem:[#allocation99_spill] sm:$0xff] %v11939_v48 }
 0x3c9   : > { %v11935_v47 = vsel %vm659_vm1, %v8665_v6, %v3679_v23  ;;  %v8670_v23 = vld [vmem:[%s8830_s29 + $0xa8] sm:$0xff] }
 0x3ca   : > { %15573 = vst [vmem:[#allocation98_spill] sm:$0xff] %v11935_v47  ;;  %8227 = vmatprep.mubr.msk.f32.mxu0 %vm2947_vm5, %v11935_v47 }
 0x3cb   : > { %8228 = vmatmul.mubr.msk.f32.gmra.mxu0 %vm2947_vm5, %v11939_v48  ;;  %v15598_v48 = vld [vmem:[#allocation40_spill] sm:$0xff] }
 0x3cf   : > { %v8191_v29 = vpop.f32.mrf.mxu1 }
 0x3d0   : > { %v3549_v41 = vadd.f32 %v8191_v29, %v11590_v1 }
 0x3d1   : > { %v3543_v15 = vpop.f32.mrf.mxu1 }
 0x3d2   : > { %v3607_v10 = vmax.f32 %v3549_v41, 0.0  ;;  %v3544_v27 = vadd.f32 %v11590_v1, %v3543_v15 }
 0x3d4   : > { %v3606_v14 = vmax.f32 %v3544_v27, 0.0  ;;  %3696 = vrot.lane.b32.xlu1 %v3607_v10, %s8694_s30 }
 0x3d6   : > { %3694 = vrot.lane.b32.xlu0 %v3606_v14, %s8694_s30 }
 0x3e6   : > { %v3685_v38 = vpop.permute.xlu1 %3684 }
 0x3e7   : > { %v11955_v16 = vsel %vm659_vm1, %v8668_v34, %v3685_v38 }
 0x3e8   : > { %v3683_v28 = vpop.permute.xlu0 %3682  ;;  %15576 = vst [vmem:[#allocation101_spill] sm:$0xff] %v11955_v16 }
 0x3e9   : > { %v11951_v8 = vsel %vm659_vm1, %v8667_v13, %v3683_v28 }
 0x3ea   : > { %15575 = vst [vmem:[#allocation100_spill] sm:$0xff] %v11951_v8  ;;  %8230 = vmatprep.mubr.msk.f32.mxu0 %vm2947_vm5, %v11951_v8 }
 0x3eb   : > { %8231 = vmatmul.mubr.msk.f32.gmra.mxu0 %vm2947_vm5, %v11955_v16  ;;  %v15596_v16 = vld [vmem:[#allocation36_spill] sm:$0xff] }
 0x3ef   : > { %v8194_v36 = vpop.f32.mrf.mxu1 }
 0x3f0   : > { %v3559_v31 = vadd.f32 %v8194_v36, %v11590_v1  ;;  %v11986_v36 = vld [vmem:[%s14937_s8] ss:$0 sm:$0xff] }
 0x3f1   : > { %v3553_v5 = vpop.f32.mrf.mxu1 }
 0x3f2   : > { %v3609_v42 = vmax.f32 %v3559_v31, 0.0  ;;  %v3554_v44 = vadd.f32 %v11590_v1, %v3553_v5 }
 0x3f4   : > { %v3608_v54 = vmax.f32 %v3554_v44, 0.0  ;;  %3700 = vrot.lane.b32.xlu1 %v3609_v42, %s8694_s30 }
 0x3f6   : > { %3698 = vrot.lane.b32.xlu0 %v3608_v54, %s8694_s30  ;;  %v15579_v54 = vld [vmem:[#allocation27_spill] sm:$0xff] }
 0x406   : > { %v3689_v56 = vpop.permute.xlu1 %3688 }
 0x407   : > { %v11971_v6 = vsel %vm659_vm1, %v8670_v23, %v3689_v56  ;;  %v15582_v23 = vld [vmem:[#allocation28_spill] sm:$0xff] }
 0x408   : > { %v3687_v37 = vpop.permute.xlu0 %3686  ;;  %15578 = vst [vmem:[#allocation103_spill] sm:$0xff] %v11971_v6 }
 0x409   : > { %v11967_v51 = vsel %vm659_vm1, %v8669_v9, %v3687_v37  ;;  %v8197_v18 = vpop.f32.mrf.mxu1  ;;  %v15580_v37 = vld [vmem:[#allocation5_spill] sm:$0xff] }
 0x40a   : > { %15577 = vst [vmem:[#allocation102_spill] sm:$0xff] %v11967_v51  ;;  %v3569_v45 = vadd.f32 %v8197_v18, %v11590_v1  ;;  %8233 = vmatprep.mubr.msk.f32.mxu0 %vm2947_vm5, %v11967_v51  ;;  %v15581_v18 = vld [vmem:[#allocation25_spill] sm:$0xff] }
 0x40b   : > { %v3563_v29 = vpop.f32.mrf.mxu1  ;;  %8234 = vmatmul.mubr.msk.f32.gmra.mxu0 %vm2947_vm5, %v11971_v6 }
 0x40c   : > { %v3611_v41 = vmax.f32 %v3569_v45, 0.0  ;;  %v3564_v15 = vadd.f32 %v11590_v1, %v3563_v29 }
 0x40e   : > { %v3610_v10 = vmax.f32 %v3564_v15, 0.0  ;;  %3704 = vrot.lane.b32.xlu1 %v3611_v41, %s8694_s30  ;;  %v8671_v41 = vld [vmem:[%s8830_s29 + $0xb0] sm:$0xff] }
 0x410   : > { %3702 = vrot.lane.b32.xlu0 %v3610_v10, %s8694_s30  ;;  %v15584_v10 = vld [vmem:[#allocation29_spill] sm:$0xff] }
 0x418   : > { %v8200_v27 = vpop.f32.mrf.mxu1 }
 0x419   : > { %v3579_v14 = vadd.f32 %v8200_v27, %v11590_v1  ;;  %v8205_v38 = vpop.f32.mrf.mxu0 }
 0x41a   : > { %v3573_v28 = vpop.f32.mrf.mxu1  ;;  %v3960_v42 = vadd.f32 %v8205_v38, %v11986_v36 }
 0x41b   : > { %v3613_v13 = vmax.f32 %v3579_v14, 0.0  ;;  %v3574_v34 = vadd.f32 %v11590_v1, %v3573_v28  ;;  %v3954_v5 = vpop.f32.mrf.mxu0  ;;  %v8672_v14 = vld [vmem:[%s8830_s29 + $0xb8] sm:$0xff]  ;;  %v15586_v28 = vld [vmem:[#allocation3_spill] sm:$0xff] }
 0x41c   : > { %v3955_v44 = vadd.f32 %v11986_v36, %v3954_v5  ;;  %v11994_v1 = vmax.f32 %v3960_v42, 0.0 }
 0x41d   : > { %v3612_v31 = vmax.f32 %v3574_v34, 0.0  ;;  %3708 = vrot.lane.b32.xlu1 %v3613_v13, %s8694_s30  ;;  %v8208_v34 = vpop.f32.mrf.mxu0 }
 0x41e   : > { %v11998_v56 = vmax.f32 %v3955_v44, 0.0  ;;  %v4207_v45 = vmul.f32 %v11994_v1, %v15582_v23  ;;  %v4270_v13 = vmul.f32 %v11994_v1, %v15586_v28  ;;  %v3970_v5 = vadd.f32 %v8208_v34, %v11986_v36  ;;  %v15589_v28 = vld [vmem:[#allocation31_spill] sm:$0xff] }
 0x41f   : > { %3706 = vrot.lane.b32.xlu0 %v3612_v31, %s8694_s30  ;;  %s8701_s30 = smov 48   ;;  %v4363_v44 = vrot.slane %v11994_v1, 1 }
 0x420   : > { %v4206_v27 = vmul.f32 %v11998_v56, %v15584_v10  ;;  %v4361_v31 = vrot.slane %v11998_v56, 1 }
 0x421   : > { %4615 = vrot.lane.b32.xlu1 %v15579_v54, %s8697_s21  ;;  %v15587_v54 = vld [vmem:[#allocation23_spill] sm:$0xff] }
 0x422   : > { %v4362_v42 = vsel %vm1145_vm4, %v15545_v46, %v4361_v31 }
 0x423   : > { %8510 = vrot.lane.b32.xlu0 %v15550_v19, %s8695_s18 }
 0x425   : > { %4744 = vrot.lane.b32.xlu1 %v15580_v37, %s8696_s20 }
 0x426   : > { %v3693_v9 = vpop.permute.xlu1 %3692 }
 0x427   : > { %4613 = vrot.lane.b32.xlu0 %v15581_v18, %s8697_s21  ;;  %v12015_v38 = vsel %vm659_vm1, %v8672_v14, %v3693_v9  ;;  %v4238_v9 = vmul.f32 %v11998_v56, %v15587_v54  ;;  %v4364_v18 = vsel %vm1145_vm4, %v4361_v31, %v4363_v44 }
 0x428   : > { %v3691_v29 = vpop.permute.xlu0 %3690  ;;  %15585 = vst [vmem:[#allocation5_spill] sm:$0xff] %v12015_v38 }
 0x429   : > { %v12008_v15 = vsel %vm659_vm1, %v8671_v41, %v3691_v29  ;;  %4748 = vrot.lane.b32.xlu1 %v4207_v45, %s8696_s20  ;;  %v12035_v45 = vmax.f32 %v3970_v5, 0.0  ;;  %v3964_v29 = vpop.f32.mrf.mxu0  ;;  %v4980_v41 = vrot.slane %v4238_v9, 2  ;;  %v15590_v5 = vld [vmem:[#allocation32_spill] sm:$0xff] }
 0x42a   : > { %15583 = vst [vmem:[#allocation27_spill] sm:$0xff] %v12008_v15  ;;  %8236 = vmatprep.mubr.msk.f32.mxu0 %vm2947_vm5, %v12008_v15 }
 0x42b   : > { %4746 = vrot.lane.b32.xlu0 %v4206_v27, %s8696_s20  ;;  %8237 = vmatmul.mubr.msk.f32.gmra.mxu0 %vm2947_vm5, %v12015_v38  ;;  %v15588_v27 = vld [vmem:[#allocation24_spill] sm:$0xff]  ;;  %v4272_v34 = vmul.f32 %v12035_v45, %v15582_v23  ;;  %v15591_v38 = vld [vmem:[#allocation33_spill] sm:$0xff]  ;;  %v15592_v23 = vld [vmem:[#allocation26_spill] sm:$0xff] }
 0x42c   : > { %v4239_v14 = vmul.f32 %v11994_v1, %v15588_v27  ;;  %v12052_v15 = vmul.f32 %v11994_v1, %v15591_v38 }
 0x42d   : > { %5174 = vrot.lane.b32.xlu1 %v4270_v13, %s8701_s30  ;;  %v4175_v13 = vmul.f32 %v11998_v56, %v15589_v28 }
 0x42e   : > { %v4981_v9 = vrot.slane %v4239_v14, 2 }
 0x42f   : > { %4849 = vrot.lane.b32.xlu0 %v4361_v31, %s8700_s27  ;;  %v3965_v31 = vadd.f32 %v11986_v36, %v3964_v29 }
 0x430   : > { %v4982_v51 = vsel %vm1888_vm3, %v4980_v41, %v4981_v9 }
 0x431   : > { %4425 = vrot.lane.b32.xlu1 %v4362_v42, %s8695_s18  ;;  %v4209_v42 = vmul.f32 %v12035_v45, %v15590_v5  ;;  %v12055_v6 = vmax.f32 %v3965_v31, 0.0  ;;  %v15593_v31 = vld [vmem:[#allocation35_spill] sm:$0xff] }
 0x433   : > { %4427 = vrot.lane.b32.xlu0 %v4364_v18, %s8695_s18 }
 0x435   : > { %4851 = vrot.lane.b32.xlu1 %v4364_v18, %s8700_s27  ;;  %v4551_v18 = vrot.slane %v4175_v13, 2  ;;  %v4365_v13 = vrot.slane %v12055_v6, 1 }
 0x437   : > { %5044 = vrot.lane.b32.xlu0 %v4980_v41, %s8702_s19  ;;  %v4552_v29 = vsel %vm1888_vm3, %v15592_v23, %v4551_v18  ;;  %v4366_v41 = vsel %vm1145_vm4, %v4363_v44, %v4365_v13  ;;  %v15177_v23 = vrot.slane %v12035_v45, 1  ;;  %v8674_v44 = vld [vmem:[%s8830_s29 + $0xc8] sm:$0xff] }
 0x439   : > { %5178 = vrot.lane.b32.xlu1 %v4272_v34, %s8701_s30  ;;  %v15176_v34 = vrot.slane %v12052_v15, 2 }
 0x43b   : > { %4752 = vrot.lane.b32.xlu0 %v4209_v42, %s8696_s20  ;;  %v4554_v14 = vsel %vm1888_vm3, %v4551_v18, %v15176_v34  ;;  %v4208_v42 = vmul.f32 %v12055_v6, %v15593_v31 }
 0x43d   : > { %5046 = vrot.lane.b32.xlu1 %v4982_v51, %s8702_s19  ;;  %v4271_v51 = vmul.f32 %v12055_v6, %v15584_v10  ;;  %v8673_v10 = vld [vmem:[%s8830_s29 + $0xc0] sm:$0xff] }
 0x43f   : > { %4617 = vrot.lane.b32.xlu0 %v4552_v29, %s8697_s21 }
 0x441   : > { %4619 = vrot.lane.b32.xlu1 %v4554_v14, %s8697_s21  ;;  %v4368_v14 = vsel %vm1145_vm4, %v4365_v13, %v15177_v23  ;;  %v4301_v23 = vmul.f32 %v12055_v6, %v15587_v54 }
 0x443   : > { %5176 = vrot.lane.b32.xlu0 %v4271_v51, %s8701_s30 }
 0x445   : > { %4853 = vrot.lane.b32.xlu1 %v4366_v41, %s8700_s27 }
 0x446   : > { %v3697_v18 = vpop.permute.xlu1 %3696 }
 0x447   : > { %4750 = vrot.lane.b32.xlu0 %v4208_v42, %s8696_s20  ;;  %v12087_v34 = vsel %vm659_vm1, %v8674_v44, %v3697_v18  ;;  %v4240_v42 = vmul.f32 %v12055_v6, %v15589_v28  ;;  %v12103_v44 = vmul.f32 %v12035_v45, %v15588_v27 }
 0x448   : > { %v3695_v29 = vpop.permute.xlu0 %3694  ;;  %15595 = vst [vmem:[#allocation28_spill] sm:$0xff] %v12087_v34 }
 0x449   : > { %v12082_v51 = vsel %vm659_vm1, %v8673_v10, %v3695_v29  ;;  %5276 = vrot.lane.b32.xlu1 %v4368_v14, %s8703_s1  ;;  %v8211_v29 = vpop.f32.mrf.mxu0  ;;  %v4983_v10 = vrot.slane %v4240_v42, 2  ;;  %v4177_v42 = vmul.f32 %v12055_v6, %v15596_v16  ;;  %v15186_v54 = vrot.slane %v12103_v44, 2 }
 0x44a   : > { %15594 = vst [vmem:[#allocation25_spill] sm:$0xff] %v12082_v51  ;;  %8239 = vmatprep.mubr.msk.f32.mxu0 %vm2947_vm5, %v12082_v51  ;;  %v3980_v18 = vadd.f32 %v8211_v29, %v11986_v36  ;;  %v5403_v51 = vrot.slane %v4301_v23, 2 }
 0x44b   : > { %5274 = vrot.lane.b32.xlu0 %v4365_v13, %s8703_s1  ;;  %8240 = vmatmul.mubr.msk.f32.gmra.mxu0 %vm2947_vm5, %v12087_v34  ;;  %v3974_v13 = vpop.f32.mrf.mxu0  ;;  %v4984_v34 = vsel %vm1888_vm3, %v4981_v9, %v4983_v10  ;;  %v4555_v23 = vrot.slane %v4177_v42, 2  ;;  %v3784_v42 = vld [vmem:[%s14938_s9 + $0x40] sm:$0xff] }
 0x44c   : > { %v12109_v8 = vmax.f32 %v3980_v18, 0.0  ;;  %v3975_v27 = vadd.f32 %v11986_v36, %v3974_v13  ;;  %v5405_v9 = vsel %vm1888_vm3, %v5403_v51, %v15186_v54  ;;  %8251 = vmatprep.subr.mxu1 %v3784_v42  ;;  %v15600_v54 = vld [vmem:[#allocation41_spill] sm:$0xff] }
 0x44d   : > { %4855 = vrot.lane.b32.xlu1 %v4368_v14, %s8700_s27  ;;  %8252 = vmatpush3.msra.mxu1 %v3784_v42 }
 0x44e   : > { %v12126_v18 = vmax.f32 %v3975_v27, 0.0  ;;  %v4371_v49 = vrot.slane %v12109_v8, 1 }
 0x44f   : > { %4429 = vrot.lane.b32.xlu0 %v4366_v41, %s8695_s18  ;;  %v15597_v41 = vld [vmem:[#allocation37_spill] sm:$0xff] }
 0x450   : > { %v12115_v29 = vmul.f32 %v12035_v45, %v15597_v41  ;;  %v4273_v27 = vmul.f32 %v12126_v18, %v15593_v31  ;;  %v4210_v42 = vmul.f32 %v12126_v18, %v15600_v54 }
 0x451   : > { %4431 = vrot.lane.b32.xlu1 %v4368_v14, %s8695_s18 }
 0x452   : > { %v15185_v14 = vrot.slane %v12115_v29, 2 }
 0x453   : > { %5048 = vrot.lane.b32.xlu0 %v4984_v34, %s8702_s19  ;;  %v4274_v34 = vmul.f32 %v12109_v8, %v15590_v5 }
 0x454   : > { %v4558_v13 = vsel %vm1888_vm3, %v4555_v23, %v15185_v14  ;;  %v3782_v14 = vld [vmem:[%s14938_s9 + $0x30] sm:$0xff] }
 0x455   : > { %5463 = vrot.lane.b32.xlu1 %v5403_v51, %s15183_s22  ;;  %v4211_v51 = vmul.f32 %v12109_v8, %v15598_v48 }
 0x457   : > { %5465 = vrot.lane.b32.xlu0 %v5405_v9, %s15183_s22  ;;  %v12143_v9 = vmul.f32 %v12035_v45, %v15591_v38  ;;  %s15608_s22 = smov 64  }
 0x459   : > { %5182 = vrot.lane.b32.xlu1 %v4274_v34, %s8701_s30  ;;  %v3783_v34 = vld [vmem:[%s14938_s9 + $0x38] sm:$0xff]  ;;  %v4985_v47 = vrot.slane %v12143_v9, 2 }
 0x45a   : > { %8253 = vmatprep.subr.mxu1 %v3783_v34 }
 0x45b   : > { %4623 = vrot.lane.b32.xlu0 %v4558_v13, %s8697_s21  ;;  %v15599_v13 = vrot.slane %v12052_v15, 2  ;;  %8254 = vmatpush3.msra.mxu1 %v3783_v34  ;;  %v3781_v15 = vld [vmem:[%s14938_s9 + $0x28] sm:$0xff]  ;;  %v8214_v34 = vpop.f32.mrf.mxu0 }
 0x45c   : > { %8255 = vmatprep.subr.mxu1 %v3782_v14 }
 0x45d   : > { %4756 = vrot.lane.b32.xlu1 %v4211_v51, %s8696_s20  ;;  %v4556_v51 = vsel %vm1888_vm3, %v15599_v13, %v4555_v23  ;;  %8256 = vmatpush3.msra.mxu1 %v3782_v14  ;;  %v3780_v23 = vld [vmem:[%s14938_s9 + $0x20] sm:$0xff]  ;;  %v4986_v13 = vsel %vm1888_vm3, %v4983_v10, %v4985_v47  ;;  %v15601_v14 = vrot.slane %v12035_v45, 1  ;;  %v3778_v10 = vld [vmem:[%s14938_s9 + $0x10] sm:$0xff] }
 0x45e   : > { %8257 = vmatprep.subr.mxu1 %v3781_v15 }
 0x45f   : > { %5180 = vrot.lane.b32.xlu0 %v4273_v27, %s8701_s30  ;;  %v4369_v27 = vrot.slane %v12126_v18, 1  ;;  %8258 = vmatpush3.msra.mxu1 %v3781_v15 }
 0x460   : > { %8259 = vmatprep.subr.mxu1 %v3780_v23 }
 0x461   : > { %4621 = vrot.lane.b32.xlu1 %v4556_v51, %s8697_s21  ;;  %v4370_v9 = vsel %vm1145_vm4, %v15601_v14, %v4369_v27  ;;  %8260 = vmatpush3.msra.mxu1 %v3780_v23  ;;  %v3779_v51 = vld [vmem:[%s14938_s9 + $0x18] sm:$0xff] }
 0x462   : > { %8261 = vmatprep.subr.mxu1 %v3779_v51  ;;  %v8676_v23 = vld [vmem:[%s8830_s29 + $0xd8] sm:$0xff] }
 0x463   : > { %4754 = vrot.lane.b32.xlu0 %v4210_v42, %s8696_s20  ;;  %v3990_v42 = vadd.f32 %v8214_v34, %v11986_v36  ;;  %8262 = vmatpush3.msra.mxu1 %v3779_v51  ;;  %v4372_v51 = vsel %vm1145_vm4, %v4369_v27, %v4371_v49  ;;  %v4242_v27 = vmul.f32 %v12126_v18, %v15596_v16 }
 0x464   : > { %8263 = vmatprep.subr.mxu1 %v3778_v10 }
 0x465   : > { %5050 = vrot.lane.b32.xlu1 %v4986_v13, %s8702_s19  ;;  %v8675_v13 = vld [vmem:[%s8830_s29 + $0xd0] sm:$0xff]  ;;  %8264 = vmatpush3.msra.mxu1 %v3778_v10  ;;  %v12192_v39 = vmax.f32 %v3990_v42, 0.0  ;;  %v3776_v42 = vld [vmem:[%s14938_s9] sm:$0xff] }
 0x466   : > { %v3701_v11 = vpop.permute.xlu1 %3700 }
 0x467   : > { %5278 = vrot.lane.b32.xlu0 %v4370_v9, %s8703_s1  ;;  %v12187_v34 = vsel %vm659_vm1, %v8676_v23, %v3701_v11  ;;  %15604 = vst [vmem:[#allocation23_spill] sm:$0xff] %v12192_v39  ;;  %v3777_v11 = vld [vmem:[%s14938_s9 + $0x8] sm:$0xff]  ;;  %v3984_v23 = vpop.f32.mrf.mxu0 }
 0x468   : > { %v3699_v15 = vpop.permute.xlu0 %3698  ;;  %15603 = vst [vmem:[#allocation3_spill] sm:$0xff] %v12187_v34  ;;  %8265 = vmatprep.subr.mxu1 %v3777_v11 }
 0x469   : > { %v12182_v14 = vsel %vm659_vm1, %v8675_v13, %v3699_v15  ;;  %4433 = vrot.lane.b32.xlu1 %v4370_v9, %s8695_s18  ;;  %v4303_v15 = vmul.f32 %v12126_v18, %v15589_v28  ;;  %8266 = vmatpush3.msra.mxu1 %v3777_v11  ;;  %v15605_v28 = vld [vmem:[#allocation62_spill] sm:$0xff]  ;;  %v15606_v11 = vld [vmem:[#allocation44_spill] sm:$0xff] }
 0x46a   : > { %15602 = vst [vmem:[#allocation29_spill] sm:$0xff] %v12182_v14  ;;  %8242 = vmatprep.mubr.msk.f32.mxu0 %vm2947_vm5, %v12182_v14  ;;  %8267 = vmatprep.subr.mxu1 %v3776_v42  ;;  %v4213_v13 = vmul.f32 %v12192_v39, %v15605_v28  ;;  %v12218_v14 = vmul.f32 %v12109_v8, %v15591_v38  ;;  %v15609_v38 = vld [vmem:[#allocation53_spill] sm:$0xff] }
 0x46b   : > { %4857 = vrot.lane.b32.xlu0 %v4370_v9, %s8700_s27  ;;  %8243 = vmatmul.mubr.msk.f32.gmra.mxu0 %vm2947_vm5, %v12187_v34  ;;  %v4276_v9 = vmul.f32 %v12192_v39, %v15598_v48  ;;  %v5406_v10 = vrot.slane %v4303_v15, 2  ;;  %v4987_v34 = vrot.slane %v4242_v27, 2  ;;  %v4179_v58 = vmul.f32 %v12126_v18, %v15606_v11 }
 0x46c   : > { %8268 = vmatpush3.msra.mxu1 %v3776_v42  ;;  %v15196_v27 = vrot.slane %v12218_v14, 2  ;;  %v12232_v52 = vmul.f32 %v12109_v8, %v15609_v38 }
 0x46d   : > { %4435 = vrot.lane.b32.xlu1 %v4372_v51, %s8695_s18  ;;  %v4988_v42 = vsel %vm1888_vm3, %v4985_v47, %v4987_v34  ;;  %v4559_v61 = vrot.slane %v4179_v58, 2  ;;  %v15611_v58 = vrot.slane %v12115_v29, 2 }
 0x46f   : > { %5280 = vrot.lane.b32.xlu0 %v4372_v51, %s8703_s1 }
 0x471   : > { %5186 = vrot.lane.b32.xlu1 %v4276_v9, %s8701_s30  ;;  %v15607_v9 = vrot.slane %v12103_v44, 2  ;;  %v5409_v44 = vsel %vm1888_vm3, %v5406_v10, %v15196_v27 }
 0x473   : > { %4859 = vrot.lane.b32.xlu0 %v4372_v51, %s8700_s27  ;;  %v5407_v15 = vsel %vm1888_vm3, %v15607_v9, %v5406_v10  ;;  %v3985_v51 = vadd.f32 %v11986_v36, %v3984_v23  ;;  %v4560_v23 = vsel %vm1888_vm3, %v15611_v58, %v4559_v61  ;;  %v15197_v9 = vrot.slane %v12232_v52, 2 }
 0x475   : > { %4760 = vrot.lane.b32.xlu1 %v4213_v13, %s8696_s20  ;;  %v12240_v13 = vmul.f32 %v12109_v8, %v15597_v41  ;;  %v12243_v47 = vmax.f32 %v3985_v51, 0.0  ;;  %v4562_v10 = vsel %vm1888_vm3, %v4559_v61, %v15197_v9  ;;  %v8217_v61 = vpop.f32.mrf.mxu0 }
 0x477   : > { %5467 = vrot.lane.b32.xlu0 %v5407_v15, %s15608_s22  ;;  %15610 = vst [vmem:[#allocation24_spill] sm:$0xff] %v12243_v47  ;;  %v4989_v15 = vrot.slane %v12240_v13, 2  ;;  %v8678_v13 = vld [vmem:[%s8830_s29 + $0xe8] sm:$0xff]  ;;  %v3994_v40 = vpop.f32.mrf.mxu0 }
 0x478   : > { %v3995_v26 = vadd.f32 %v11986_v36, %v3994_v40  ;;  %v4245_v40 = vmul.f32 %v12192_v39, %v15609_v38 }
 0x479   : > { %5052 = vrot.lane.b32.xlu1 %v4988_v42, %s8702_s19  ;;  %v4990_v51 = vsel %vm1888_vm3, %v4987_v34, %v4989_v15  ;;  %v4373_v42 = vrot.slane %v12243_v47, 1  ;;  %v12373_v35 = vpop.f32.mrf.mxu0 }
 0x47a   : > { %v4993_v25 = vrot.slane %v4245_v40, 2  ;;  %v4010_v60 = vadd.f32 %v12373_v35, %v11986_v36 }
 0x47b   : > { %5469 = vrot.lane.b32.xlu0 %v5409_v44, %s15608_s22  ;;  %v4275_v44 = vmul.f32 %v12243_v47, %v15600_v54  ;;  %v4374_v34 = vsel %vm1145_vm4, %v4371_v49, %v4373_v42  ;;  %v4004_v43 = vpop.f32.mrf.mxu0 }
 0x47d   : > { %4625 = vrot.lane.b32.xlu1 %v4560_v23, %s8697_s21  ;;  %v8677_v23 = vld [vmem:[%s8830_s29 + $0xe0] sm:$0xff]  ;;  %v12454_v33 = vpop.f32.mrf.mxu0 }
 0x47f   : > { %4627 = vrot.lane.b32.xlu0 %v4562_v10, %s8697_s21 }
 0x480   : > { %v3705_v29 = vpop.permute.xlu1 %3704 }
 0x481   : > { %5054 = vrot.lane.b32.xlu1 %v4990_v51, %s8702_s19  ;;  %v12267_v10 = vsel %vm659_vm1, %v8678_v13, %v3705_v29  ;;  %v15614_v51 = vld [vmem:[#allocation60_spill] sm:$0xff]  ;;  %v4375_v29 = vrot.slane %v12192_v39, 1  ;;  %v4305_v13 = vmul.f32 %v12243_v47, %v15596_v16 }
 0x482   : > { %v3703_v58 = vpop.permute.xlu0 %3702  ;;  %15613 = vst [vmem:[#allocation32_spill] sm:$0xff] %v12267_v10 }
 0x483   : > { %v12262_v27 = vsel %vm659_vm1, %v8677_v23, %v3703_v58  ;;  %5184 = vrot.lane.b32.xlu0 %v4275_v44, %s8701_s30  ;;  %v4212_v58 = vmul.f32 %v12243_v47, %v15614_v51  ;;  %v4000_v44 = vadd.f32 %v8217_v61, %v11986_v36  ;;  %v4376_v49 = vsel %vm1145_vm4, %v4373_v42, %v4375_v29 }
 0x484   : > { %15612 = vst [vmem:[#allocation31_spill] sm:$0xff] %v12262_v27  ;;  %8245 = vmatprep.mubr.msk.f32.mxu0 %vm2947_vm5, %v12262_v27  ;;  %v8680_v27 = vld [vmem:[%s8830_s29 + $0xf8] sm:$0xff] }
 0x485   : > { %5282 = vrot.lane.b32.xlu1 %v4374_v34, %s8703_s1  ;;  %8246 = vmatmul.mubr.msk.f32.gmra.mxu0 %vm2947_vm5, %v12267_v10  ;;  %v12281_v23 = vmax.f32 %v4000_v44, 0.0  ;;  %v5410_v10 = vrot.slane %v4305_v13, 2  ;;  %v12313_v13 = vmul.f32 %v12192_v39, %v15597_v41 }
 0x487   : > { %4758 = vrot.lane.b32.xlu0 %v4212_v58, %s8696_s20  ;;  %15615 = vst [vmem:[#allocation33_spill] sm:$0xff] %v12281_v23  ;;  %v4278_v61 = vmul.f32 %v12281_v23, %v15605_v28  ;;  %v4244_v58 = vmul.f32 %v12243_v47, %v15606_v11  ;;  %v4247_v32 = vmul.f32 %v12281_v23, %v15621_v55 }
 0x489   : > { %4437 = vrot.lane.b32.xlu1 %v4374_v34, %s8695_s18  ;;  %v4997_v50 = vrot.slane %v4247_v32, 2 }
 0x48b   : > { %4861 = vrot.lane.b32.xlu0 %v4374_v34, %s8700_s27  ;;  %v8679_v34 = vld [vmem:[%s8830_s29 + $0xf0] sm:$0xff] }
 0x48d   : > { %4439 = vrot.lane.b32.xlu1 %v4376_v49, %s8695_s18 }
 0x48f   : > { %v3709_v9 = vpop.permute.xlu1 %3708  ;;  %5284 = vrot.lane.b32.xlu0 %v4376_v49, %s8703_s1 }
 0x490   : > { %v12300_v16 = vsel %vm659_vm1, %v8680_v27, %v3709_v9  ;;  %v15619_v27 = vld [vmem:[#allocation54_spill] sm:$0xff] }
 0x491   : > { %5190 = vrot.lane.b32.xlu1 %v4278_v61, %s8701_s30  ;;  %v3707_v44 = vpop.permute.xlu0 %3706  ;;  %15617 = vst [vmem:[#allocation35_spill] sm:$0xff] %v12300_v16  ;;  %v4215_v61 = vmul.f32 %v12281_v23, %v15618_v59  ;;  %v4181_v9 = vmul.f32 %v12243_v47, %v15619_v27 }
 0x492   : > { %v12296_v42 = vsel %vm659_vm1, %v8679_v34, %v3707_v44  ;;  %v4991_v44 = vrot.slane %v4244_v58, 2  ;;  %v15620_v34 = vrot.slane %v12218_v14, 2  ;;  %v5412_v58 = vrot.slane %v12313_v13, 2 }
 0x493   : > { %15616 = vst [vmem:[#allocation26_spill] sm:$0xff] %v12296_v42  ;;  %v12302_v0 = vpop.permute.xlu1 %4615  ;;  %4863 = vrot.lane.b32.xlu0 %v4376_v49, %s8700_s27  ;;  %8248 = vmatprep.mubr.msk.f32.mxu0 %vm2947_vm5, %v12296_v42  ;;  %vm5762_vm1 = vcmask 457728  }
 0x494   : > { %8249 = vmatmul.mubr.msk.f32.gmra.mxu0 %vm2947_vm5, %v12300_v16  ;;  %v5411_v42 = vsel %vm1888_vm3, %v15620_v34, %v5410_v10  ;;  %v4992_v41 = vsel %vm1888_vm3, %v4989_v15, %v4991_v44  ;;  %v4563_v16 = vrot.slane %v4181_v9, 2  ;;  %v5413_v14 = vsel %vm1888_vm3, %v5410_v10, %v5412_v58 }
 0x495   : > { %4764 = vrot.lane.b32.xlu1 %v4215_v61, %s8696_s20  ;;  %v12318_v49 = vpop.permute.xlu0 %8510  ;;  %v4182_v61 = vmul.f32 %v12192_v39, %v15621_v55  ;;  %v12340_v15 = vmax.f32 %v3995_v26, 0.0 }
 0x496   : > { %v8512_v63 = vunpack.i.l.bf16 %v12318_v49 }
 0x497   : > { %v12324_v24 = vpop.permute.xlu1 %4744  ;;  %5471 = vrot.lane.b32.xlu0 %v5411_v42, %s15608_s22  ;;  %15622 = vst [vmem:[#allocation36_spill] sm:$0xff] %v12340_v15  ;;  %v15623_v42 = vrot.slane %v12232_v52, 2  ;;  %v4565_v9 = vrot.slane %v4182_v61, 2  ;;  %v4377_v26 = vrot.slane %v12340_v15, 1  ;;  %v4277_v61 = vmul.f32 %v12340_v15, %v15614_v51 }
 0x498   : > { %v4307_v53 = vmul.f32 %v12340_v15, %v15606_v11 }
 0x499   : > { %5056 = vrot.lane.b32.xlu1 %v4992_v41, %s8702_s19  ;;  %v12332_v2 = vpop.permute.xlu0 %4613  ;;  %v4564_v13 = vsel %vm1888_vm3, %v15623_v42, %v4563_v16  ;;  %v4566_v10 = vsel %vm1888_vm3, %v4563_v16, %v4565_v9  ;;  %v4378_v16 = vsel %vm1145_vm4, %v4375_v29, %v4377_v26  ;;  %v4379_v29 = vrot.slane %v12281_v23, 1 }
 0x49a   : > { %v5414_v20 = vrot.slane %v4307_v53, 2 }
 0x49b   : > { %v12337_v34 = vpop.permute.xlu1 %4748  ;;  %5473 = vrot.lane.b32.xlu0 %v5413_v14, %s15608_s22  ;;  %v4994_v14 = vsel %vm1888_vm3, %v4991_v44, %v4993_v25  ;;  %v15624_v44 = vld [vmem:[#allocation68_spill] sm:$0xff]  ;;  %v4380_v46 = vsel %vm1145_vm4, %v4377_v26, %v4379_v29 }
 0x49c   : > { %v5415_v53 = vsel %vm1888_vm3, %v5412_v58, %v5414_v20  ;;  %v5562_v58 = vsel %vm2947_vm5, %v15580_v37, %v8512_v63 }
 0x49d   : > { %4629 = vrot.lane.b32.xlu1 %v4564_v13, %s8697_s21  ;;  %v12346_v41 = vpop.permute.xlu0 %4746  ;;  %v4214_v13 = vmul.f32 %v12340_v15, %v15624_v44 }
 0x49f   : > { %v12349_v3 = vpop.permute.xlu1 %5174  ;;  %4631 = vrot.lane.b32.xlu0 %v4566_v10, %s8697_s21 }
 0x4a1   : > { %5058 = vrot.lane.b32.xlu1 %v4994_v14, %s8702_s19  ;;  %v12355_v52 = vpop.permute.xlu0 %4849  ;;  %v4246_v14 = vmul.f32 %v12340_v15, %v15619_v27 }
 0x4a3   : > { %v12359_v42 = vpop.permute.xlu1 %4425  ;;  %5188 = vrot.lane.b32.xlu0 %v4277_v61, %s8701_s30  ;;  %v4995_v30 = vrot.slane %v4246_v14, 2 }
 0x4a5   : > { %5286 = vrot.lane.b32.xlu1 %v4378_v16, %s8703_s1  ;;  %v12364_v40 = vpop.permute.xlu0 %4427  ;;  %v4996_v26 = vsel %vm1888_vm3, %v4993_v25, %v4995_v30  ;;  %v4308_v25 = vmul.f32 %v12281_v23, %v15609_v38 }
 0x4a7   : > { %v12368_v10 = vpop.permute.xlu1 %4851  ;;  %4762 = vrot.lane.b32.xlu0 %v4214_v13, %s8696_s20  ;;  %v12385_v13 = vmul.f32 %v12340_v15, %v15625_v22 }
 0x4a9   : > { %4441 = vrot.lane.b32.xlu1 %v4378_v16, %s8695_s18  ;;  %v12376_v61 = vpop.permute.xlu0 %5044  ;;  %v15240_v14 = vrot.slane %v12385_v13, 2 }
 0x4ab   : > { %v12379_v19 = vpop.permute.xlu1 %5178  ;;  %4865 = vrot.lane.b32.xlu0 %v4378_v16, %s8700_s27  ;;  %v4005_v16 = vadd.f32 %v11986_v36, %v4004_v43  ;;  %v4568_v43 = vsel %vm1888_vm3, %v4565_v9, %v15240_v14 }
 0x4ad   : > { %4443 = vrot.lane.b32.xlu1 %v4380_v46, %s8695_s18  ;;  %v12388_v57 = vpop.permute.xlu0 %4752  ;;  %v12406_v11 = vmax.f32 %v4005_v16, 0.0  ;;  %v5416_v16 = vrot.slane %v4308_v25, 2 }
 0x4af   : > { %v12392_v7 = vpop.permute.xlu1 %5046  ;;  %5288 = vrot.lane.b32.xlu0 %v4380_v46, %s8703_s1  ;;  %15626 = vst [vmem:[#allocation37_spill] sm:$0xff] %v12406_v11  ;;  %v15241_v9 = vrot.slane %v12406_v11, 1  ;;  %v12427_v32 = vmul.f32 %v12406_v11, %v15619_v27  ;;  %v12437_v25 = vmul.f32 %v12406_v11, %v15625_v22 }
 0x4b1   : > { %5060 = vrot.lane.b32.xlu1 %v4996_v26, %s8702_s19  ;;  %v12399_v62 = vpop.permute.xlu0 %4617 }
 0x4b3   : > { %v12403_v17 = vpop.permute.xlu1 %4619  ;;  %4867 = vrot.lane.b32.xlu0 %v4380_v46, %s8700_s27  ;;  %v4998_v46 = vsel %vm1888_vm3, %v4995_v30, %v4997_v50  ;;  %v4382_v30 = vsel %vm1145_vm4, %v4379_v29, %v15241_v9  ;;  %v15628_v9 = vld [vmem:[#allocation71_spill] sm:$0xff] }
 0x4b5   : > { %4633 = vrot.lane.b32.xlu1 %v4568_v43, %s8697_s21  ;;  %v5177_v26 = vpop.permute.xlu0 %5176  ;;  %v5417_v43 = vsel %vm1888_vm3, %v5414_v20, %v5416_v16  ;;  %v8513_v20 = vunpack.i.h.bf16 %v12318_v49  ;;  %v12452_v49 = vmul.f32 %v12406_v11, %v15628_v9 }
 0x4b7   : > { %v12416_v12 = vpop.permute.xlu1 %4853  ;;  %5475 = vrot.lane.b32.xlu0 %v5415_v53, %s15608_s22  ;;  %v5595_v53 = vsel %vm3015_vm7, %v5562_v58, %v12332_v2  ;;  %v5563_v2 = vsel %vm2947_vm5, %v15629_v21, %v8513_v20 }
 0x4b8   : > { %v5628_v58 = vsel %vm3083_vm9, %v5595_v53, %v12324_v24  ;;  %v5596_v24 = vsel %vm3015_vm7, %v5563_v2, %v12302_v0 }
 0x4b9   : > { %5062 = vrot.lane.b32.xlu1 %v4998_v46, %s8702_s19  ;;  %v12422_v38 = vpop.permute.xlu0 %4750  ;;  %v15627_v46 = vld [vmem:[#allocation70_spill] sm:$0xff]  ;;  %v5661_v29 = vsel %vm3151_vm10, %v5628_v58, %v12355_v52  ;;  %v15631_v52 = vrot.slane %v12437_v25, 2  ;;  %v5629_v35 = vsel %vm3083_vm9, %v5596_v24, %v12346_v41 }
 0x4ba   : > { %v5695_v21 = vsel %vm5694_vm13, %v5661_v29, %v12376_v61 }
 0x4bb   : > { %v5277_v14 = vpop.permute.xlu1 %5276  ;;  %5477 = vrot.lane.b32.xlu0 %v5417_v43, %s15608_s22  ;;  %v4184_v43 = vmul.f32 %v12281_v23, %v15627_v46  ;;  %v15630_v23 = vrot.slane %v12427_v32, 2  ;;  %v5729_v0 = vsel %vm5728_vm14, %v5695_v21, %v12349_v3 }
 0x4bd   : > { %5290 = vrot.lane.b32.xlu1 %v4382_v30, %s8703_s1  ;;  %v5275_v27 = vpop.permute.xlu0 %5274  ;;  %v5419_v15 = vsel %vm1888_vm3, %v5416_v16, %v15630_v23  ;;  %v4569_v53 = vrot.slane %v4184_v43, 2  ;;  %v15252_v23 = vrot.slane %v12452_v49, 2  ;;  %v4014_v16 = vpop.f32.mrf.mxu0  ;;  %v12493_v43 = vmax.f32 %v4010_v60, 0.0 }
 0x4be   : > { %v5763_v2 = vsel %vm5762_vm1, %v5729_v0, %v5275_v27  ;;  %v4279_v27 = vmul.f32 %v12406_v11, %v15624_v44 }
 0x4bf   : > { %v12444_v37 = vpop.permute.xlu1 %4855  ;;  %4869 = vrot.lane.b32.xlu0 %v4382_v30, %s8700_s27  ;;  %15633 = vst [vmem:[#allocation40_spill] sm:$0xff] %v12493_v43 }
 0x4c1   : > { %4445 = vrot.lane.b32.xlu1 %v4382_v30, %s8695_s18  ;;  %v12461_v63 = vpop.permute.xlu0 %4429  ;;  %v5000_v30 = vsel %vm1888_vm3, %v4997_v50, %v15631_v52  ;;  %v15632_v50 = vrot.slane %v12385_v13, 2  ;;  %v4572_v13 = vsel %vm1888_vm3, %v4569_v53, %v15252_v23 }
 0x4c3   : > { %v12472_v20 = vpop.permute.xlu1 %4431  ;;  %5479 = vrot.lane.b32.xlu0 %v5419_v15, %s15608_s22  ;;  %v5662_v15 = vsel %vm3151_vm10, %v5629_v35, %v12368_v10  ;;  %v4570_v29 = vsel %vm1888_vm3, %v15632_v50, %v4569_v53  ;;  %v4015_v10 = vadd.f32 %v11986_v36, %v4014_v16  ;;  %v4280_v53 = vmul.f32 %v12493_v43, %v15618_v59 }
 0x4c4   : > { %v5696_v41 = vsel %vm5694_vm13, %v5662_v15, %v12392_v7  ;;  %v15634_v15 = vld [vmem:[#allocation74_spill] sm:$0xff] }
 0x4c5   : > { %5064 = vrot.lane.b32.xlu1 %v5000_v30, %s8702_s19  ;;  %v12484_v61 = vpop.permute.xlu0 %5048  ;;  %v5730_v24 = vsel %vm5728_vm14, %v5696_v41, %v5177_v26  ;;  %v4216_v0 = vmul.f32 %v12406_v11, %v15634_v15 }
 0x4c6   : > { %v5764_v60 = vsel %vm5762_vm1, %v5730_v24, %v5277_v14  ;;  %v12518_v14 = vmax.f32 %v4015_v10, 0.0  ;;  %v15636_v24 = vrot.slane %v12406_v11, 1  ;;  %v15641_v11 = vld [vmem:[#allocation78_spill] sm:$0xff] }
 0x4c7   : > { %v5464_v58 = vpop.permute.xlu1 %5463  ;;  %4635 = vrot.lane.b32.xlu0 %v4570_v29, %s8697_s21  ;;  %v15635_v29 = vld [vmem:[#allocation75_spill] sm:$0xff] }
 0x4c8   : > { %v5797_v3 = vsel %vm5796_vm15, %v5763_v2, %v5464_v58  ;;  %v4217_v41 = vmul.f32 %v12493_v43, %v15635_v29  ;;  %v4383_v2 = vrot.slane %v12493_v43, 1  ;;  %v15250_v58 = vrot.slane %v12518_v14, 1 }
 0x4c9   : > { %4637 = vrot.lane.b32.xlu1 %v4572_v13, %s8697_s21  ;;  %v5466_v7 = vpop.permute.xlu0 %5465  ;;  %v5869_v52 = vrot.slane %v5797_v3, 7  ;;  %v12591_v4 = vmul.f32 %v12518_v14, %v15641_v11 }
 0x4ca   : > { %v12510_v21 = vsel %vm5796_vm15, %v5764_v60, %v5466_v7  ;;  %v4384_v3 = vsel %vm1145_vm4, %v15636_v24, %v4383_v2  ;;  %v4386_v60 = vsel %vm1145_vm4, %v4383_v2, %v15250_v58  ;;  %v4310_v7 = vmul.f32 %v12493_v43, %v15621_v55 }
 0x4cb   : > { %v15251_v26 = vrot.slane %v12510_v21, 7  ;;  %v12513_v30 = vpop.permute.xlu1 %5182  ;;  %5192 = vrot.lane.b32.xlu0 %v4279_v27, %s8701_s30  ;;  %v12562_v55 = vmul.f32 %v12518_v14, %v15625_v22  ;;  %v15639_v22 = vld [vmem:[#allocation76_spill] sm:$0xff] }
 0x4cd   : > { %5194 = vrot.lane.b32.xlu1 %v4280_v53, %s8701_s30  ;;  %v12521_v16 = vpop.permute.xlu0 %4623  ;;  %v5871_v35 = vsel %vm1403_vm2, %v5869_v52, %v15251_v26  ;;  %v4249_v52 = vmul.f32 %v12493_v43, %v15627_v46  ;;  %v15638_v26 = vrot.slane %v12437_v25, 2 }
 0x4ce   : > { %8269 = vmatprep.mubr.msk.f32.mxu1 %vm5934_vm8, %v5871_v35  ;;  %v5420_v35 = vrot.slane %v4310_v7, 2 }
 0x4cf   : > { %v12529_v50 = vpop.permute.xlu1 %4756  ;;  %4766 = vrot.lane.b32.xlu0 %v4216_v0, %s8696_s20  ;;  %v5001_v24 = vrot.slane %v4249_v52, 2  ;;  %v12593_v52 = vpop.f32.mrf.mxu0 }
 0x4d1   : > { %4768 = vrot.lane.b32.xlu1 %v4217_v41, %s8696_s20  ;;  %v12537_v10 = vpop.permute.xlu0 %5180  ;;  %v15637_v41 = vrot.slane %v12427_v32, 2  ;;  %v5002_v7 = vsel %vm1888_vm3, %v15638_v26, %v5001_v24  ;;  %v4024_v47 = vpop.f32.mrf.mxu0 }
 0x4d3   : > { %v12542_v13 = vpop.permute.xlu1 %4621  ;;  %5292 = vrot.lane.b32.xlu0 %v4384_v3, %s8703_s1  ;;  %v5421_v2 = vsel %vm1888_vm3, %v15637_v41, %v5420_v35  ;;  %v5564_v41 = vsel %vm2947_vm5, %v15639_v22, %v12359_v42  ;;  %v15642_v22 = vrot.slane %v12562_v55, 2 }
 0x4d4   : > { %v5597_v25 = vsel %vm3015_vm7, %v5564_v41, %v12399_v62  ;;  %v4020_v62 = vadd.f32 %v12454_v33, %v11986_v36  ;;  %v4145_v41 = vmul.f32 %v11998_v56, %v15593_v31  ;;  %v15263_v33 = vrot.slane %v12591_v4, 2 }
 0x4d5   : > { %5294 = vrot.lane.b32.xlu1 %v4386_v60, %s8703_s1  ;;  %v12551_v27 = vpop.permute.xlu0 %4754  ;;  %v5423_v39 = vsel %vm1888_vm3, %v5420_v35, %v15642_v22  ;;  %v5630_v26 = vsel %vm3083_vm9, %v5597_v25, %v12337_v34  ;;  %v15644_v34 = vrot.slane %v12452_v49, 2 }
 0x4d6   : > { %v5565_v56 = vsel %vm2947_vm5, %v4145_v41, %v12364_v40 }
 0x4d7   : > { %v5051_v53 = vpop.permute.xlu1 %5050  ;;  %4871 = vrot.lane.b32.xlu0 %v4384_v3, %s8700_s27 }
 0x4d9   : > { %4447 = vrot.lane.b32.xlu1 %v4384_v3, %s8695_s18  ;;  %v5279_v0 = vpop.permute.xlu0 %5278  ;;  %v12572_v3 = vmul.f32 %v12518_v14, %v15628_v9 }
 0x4db   : > { %v12564_v58 = vpop.permute.xlu1 %4433  ;;  %5481 = vrot.lane.b32.xlu0 %v5421_v2, %s15608_s22  ;;  %v15640_v2 = vld [vmem:[#allocation77_spill] sm:$0xff]  ;;  %v15643_v59 = vrot.slane %v12572_v3, 2 }
 0x4dd   : > { %5066 = vrot.lane.b32.xlu1 %v5002_v7, %s8702_s19  ;;  %v12575_v32 = vpop.permute.xlu0 %4857  ;;  %v4186_v7 = vmul.f32 %v12493_v43, %v15640_v2  ;;  %v5004_v35 = vsel %vm1888_vm3, %v5001_v24, %v15643_v59  ;;  %v12626_v24 = vmax.f32 %v4020_v62, 0.0 }
 0x4df   : > { %v12581_v23 = vpop.permute.xlu1 %4435  ;;  %4873 = vrot.lane.b32.xlu0 %v4386_v60, %s8700_s27  ;;  %v4573_v22 = vrot.slane %v4186_v7, 2 }
 0x4e1   : > { %4449 = vrot.lane.b32.xlu1 %v4386_v60, %s8695_s18  ;;  %v5281_v42 = vpop.permute.xlu0 %5280  ;;  %v5663_v60 = vsel %vm3151_vm10, %v5630_v26, %v12416_v12  ;;  %v5598_v12 = vsel %vm3015_vm7, %v5565_v56, %v12403_v17  ;;  %v4574_v59 = vsel %vm1888_vm3, %v15644_v34, %v4573_v22  ;;  %v4576_v49 = vsel %vm1888_vm3, %v4573_v22, %v15263_v33 }
 0x4e2   : > { %v5697_v31 = vsel %vm5694_vm13, %v5663_v60, %v12484_v61  ;;  %v5631_v25 = vsel %vm3083_vm9, %v5598_v12, %v12422_v38  ;;  %v4025_v61 = vadd.f32 %v11986_v36, %v4024_v47  ;;  %v4281_v36 = vmul.f32 %v12518_v14, %v15634_v15 }
 0x4e3   : > { %v12605_v43 = vpop.permute.xlu1 %5186  ;;  %5483 = vrot.lane.b32.xlu0 %v5423_v39, %s15608_s22  ;;  %v5664_v26 = vsel %vm3151_vm10, %v5631_v25, %v12444_v37  ;;  %v5731_v17 = vsel %vm5728_vm14, %v5697_v31, %v12379_v19  ;;  %v4282_v19 = vmul.f32 %v12626_v24, %v15635_v29  ;;  %v15646_v31 = vld [vmem:[#allocation79_spill] sm:$0xff]  ;;  %v4387_v25 = vrot.slane %v12626_v24, 1 }
 0x4e4   : > { %v5698_v7 = vsel %vm5694_vm13, %v5664_v26, %v5051_v53  ;;  %v5765_v38 = vsel %vm5762_vm1, %v5731_v17, %v5279_v0  ;;  %v12652_v60 = vmax.f32 %v4025_v61, 0.0  ;;  %v4218_v12 = vmul.f32 %v12518_v14, %v15646_v31 }
 0x4e5   : > { %5068 = vrot.lane.b32.xlu1 %v5004_v35, %s8702_s19  ;;  %v12619_v39 = vpop.permute.xlu0 %4859  ;;  %v5732_v53 = vsel %vm5728_vm14, %v5698_v7, %v12537_v10  ;;  %v15645_v35 = vrot.slane %v12510_v21, 7  ;;  %v15647_v21 = vld [vmem:[#allocation80_spill] sm:$0xff] }
 0x4e6   : > { %v5766_v0 = vsel %vm5762_vm1, %v5732_v53, %v5281_v42  ;;  %v4219_v42 = vmul.f32 %v12626_v24, %v15647_v21  ;;  %v15260_v61 = vrot.slane %v12652_v60, 1 }
 0x4e7   : > { %v12630_v40 = vpop.permute.xlu1 %4760  ;;  %4639 = vrot.lane.b32.xlu0 %v4574_v59, %s8697_s21 }
 0x4e9   : > { %4641 = vrot.lane.b32.xlu1 %v4576_v49, %s8697_s21  ;;  %v5468_v62 = vpop.permute.xlu0 %5467  ;;  %v15648_v49 = vrot.slane %v12518_v14, 1 }
 0x4ea   : > { %v5799_v47 = vsel %vm5796_vm15, %v5765_v38, %v5468_v62  ;;  %v4390_v62 = vsel %vm1145_vm4, %v4387_v25, %v15260_v61 }
 0x4eb   : > { %v5872_v37 = vrot.slane %v5799_v47, 7  ;;  %v12647_v41 = vpop.permute.xlu1 %5052  ;;  %5196 = vrot.lane.b32.xlu0 %v4281_v36, %s8701_s30  ;;  %v4388_v7 = vsel %vm1145_vm4, %v15648_v49, %v4387_v25  ;;  %v4312_v36 = vmul.f32 %v12626_v24, %v15627_v46 }
 0x4ed   : > { %v5873_v22 = vsel %vm1403_vm2, %v15645_v35, %v5872_v37  ;;  %5198 = vrot.lane.b32.xlu1 %v4282_v19, %s8701_s30  ;;  %v5470_v56 = vpop.permute.xlu0 %5469  ;;  %v5424_v53 = vrot.slane %v4312_v36, 2  ;;  %v15649_v35 = vrot.slane %v12562_v55, 2  ;;  %v4146_v55 = vmul.f32 %v11994_v1, %v15590_v5  ;;  %v15652_v5 = vld [vmem:[#allocation82_spill] sm:$0xff] }
 0x4ee   : > { %v12664_v34 = vsel %vm5796_vm15, %v5766_v0, %v5470_v56  ;;  %8270 = vmatmul.mubr.msk.f32.vlgmr.msra.gmra.mxu1 %vm5934_vm8, %v5873_v22  ;;  %v12705_v56 = vmul.f32 %v12652_v60, %v15628_v9 }
 0x4ef   : > { %v15262_v59 = vrot.slane %v12664_v34, 7  ;;  %v12668_v10 = vpop.permute.xlu1 %4625  ;;  %4770 = vrot.lane.b32.xlu0 %v4218_v12, %s8696_s20  ;;  %v5425_v22 = vsel %vm1888_vm3, %v15649_v35, %v5424_v53  ;;  %v15651_v35 = vld [vmem:[#allocation81_spill] sm:$0xff] }
 0x4f0   : > { %v15261_v9 = vrot.slane %v12705_v56, 2  ;;  %v4188_v1 = vmul.f32 %v12626_v24, %v15651_v35 }
 0x4f1   : > { %4772 = vrot.lane.b32.xlu1 %v4219_v42, %s8696_s20  ;;  %v12676_v26 = vpop.permute.xlu0 %4627  ;;  %v5875_v17 = vsel %vm1403_vm2, %v5872_v37, %v15262_v59  ;;  %v4251_v37 = vmul.f32 %v12626_v24, %v15640_v2  ;;  %v15650_v42 = vrot.slane %v12572_v3, 2 }
 0x4f2   : > { %8272 = vmatprep.mubr.msk.f32.mxu1 %vm5934_vm8, %v5875_v17  ;;  %v12715_v17 = vmul.f32 %v12652_v60, %v15641_v11  ;;  %v4577_v59 = vrot.slane %v4188_v1, 2 }
 0x4f3   : > { %v5055_v38 = vpop.permute.xlu1 %5054  ;;  %5296 = vrot.lane.b32.xlu0 %v4388_v7, %s8703_s1  ;;  %v5005_v46 = vrot.slane %v4251_v37, 2 }
 0x4f4   : > { %v5007_v37 = vrot.slane %v12715_v17, 2 }
 0x4f5   : > { %5298 = vrot.lane.b32.xlu1 %v4390_v62, %s8703_s1  ;;  %v12692_v47 = vpop.permute.xlu0 %5184  ;;  %v5006_v25 = vsel %vm1888_vm3, %v15650_v42, %v5005_v46  ;;  %v12737_v42 = vpop.f32.mrf.mxu0 }
 0x4f7   : > { %v5283_v19 = vpop.permute.xlu1 %5282  ;;  %4875 = vrot.lane.b32.xlu0 %v4388_v7, %s8700_s27  ;;  %v4034_v33 = vpop.f32.mrf.mxu0 }
 0x4f9   : > { %4451 = vrot.lane.b32.xlu1 %v4388_v7, %s8695_s18  ;;  %v12698_v0 = vpop.permute.xlu0 %4758  ;;  %v5566_v7 = vsel %vm2947_vm5, %v4146_v55, %v12461_v63 }
 0x4fa   : > { %v5599_v3 = vsel %vm3015_vm7, %v5566_v7, %v12542_v13  ;;  %v12746_v13 = vld [vmem:[%s14937_s8] ss:$0 sm:$0xff]  ;;  %v4147_v7 = vmul.f32 %v12055_v6, %v15600_v54 }
 0x4fb   : > { %v12707_v12 = vpop.permute.xlu1 %4437  ;;  %5485 = vrot.lane.b32.xlu0 %v5425_v22, %s15608_s22  ;;  %v12735_v22 = vmul.f32 %v12652_v60, %v15652_v5  ;;  %v4030_v55 = vadd.f32 %v12746_v13, %v12593_v52  ;;  %v5632_v61 = vsel %vm3083_vm9, %v5599_v3, %v12388_v57 }
 0x4fc   : > { %v5567_v6 = vsel %vm2947_vm5, %v4147_v7, %v12472_v20 }
 0x4fd   : > { %5070 = vrot.lane.b32.xlu1 %v5006_v25, %s8702_s19  ;;  %v12720_v49 = vpop.permute.xlu0 %4861  ;;  %v5427_v25 = vsel %vm1888_vm3, %v5424_v53, %v15261_v9  ;;  %v5665_v53 = vsel %vm3151_vm10, %v5632_v61, %v12575_v32  ;;  %v5008_v9 = vsel %vm1888_vm3, %v5005_v46, %v5007_v37  ;;  %v15266_v52 = vrot.slane %v12735_v22, 2 }
 0x4fe   : > { %v5699_v57 = vsel %vm5694_vm13, %v5665_v53, %v12647_v41  ;;  %v5600_v32 = vsel %vm3015_vm7, %v5567_v6, %v12521_v16  ;;  %v15653_v61 = vrot.slane %v12591_v4, 2  ;;  %v12775_v3 = vmax.f32 %v4030_v55, 0.0 }
 0x4ff   : > { %v12725_v36 = vpop.permute.xlu1 %4439  ;;  %4877 = vrot.lane.b32.xlu0 %v4390_v62, %s8700_s27  ;;  %v5633_v1 = vsel %vm3083_vm9, %v5600_v32, %v12551_v27  ;;  %v4035_v41 = vadd.f32 %v12746_v13, %v4034_v33  ;;  %v5733_v16 = vsel %vm5728_vm14, %v5699_v57, %v12513_v30  ;;  %v4580_v4 = vsel %vm1888_vm3, %v4577_v59, %v15266_v52 }
 0x500   : > { %v4578_v46 = vsel %vm1888_vm3, %v15653_v61, %v4577_v59  ;;  %v5767_v27 = vsel %vm5762_vm1, %v5733_v16, %v5283_v19  ;;  %v4283_v33 = vmul.f32 %v12652_v60, %v15646_v31  ;;  %v4284_v30 = vmul.f32 %v12775_v3, %v15647_v21  ;;  %v15655_v61 = vld [vmem:[#allocation34_spill] sm:$0xff] }
 0x501   : > { %4453 = vrot.lane.b32.xlu1 %v4390_v62, %s8695_s18  ;;  %v5285_v63 = vpop.permute.xlu0 %5284  ;;  %v12801_v59 = vmax.f32 %v4035_v41, 0.0  ;;  %v15654_v57 = vrot.slane %v12664_v34, 7  ;;  %v4391_v34 = vrot.slane %v12775_v3, 1 }
 0x503   : > { %v12754_v62 = vpop.permute.xlu1 %5190  ;;  %5487 = vrot.lane.b32.xlu0 %v5427_v25, %s15608_s22  ;;  %v15264_v16 = vrot.slane %v12801_v59, 1 }
 0x505   : > { %5072 = vrot.lane.b32.xlu1 %v5008_v9, %s8702_s19  ;;  %v12768_v54 = vpop.permute.xlu0 %4863  ;;  %v5666_v9 = vsel %vm3151_vm10, %v5633_v1, %v12619_v39 }
 0x506   : > { %v5700_v25 = vsel %vm5694_vm13, %v5666_v9, %v5055_v38 }
 0x507   : > { %v12779_v20 = vpop.permute.xlu1 %4764  ;;  %4643 = vrot.lane.b32.xlu0 %v4578_v46, %s8697_s21  ;;  %v5734_v38 = vsel %vm5728_vm14, %v5700_v25, %v12692_v47  ;;  %v4220_v46 = vmul.f32 %v12652_v60, %v15655_v61 }
 0x508   : > { %v5768_v19 = vsel %vm5762_vm1, %v5734_v38, %v5285_v63  ;;  %v15656_v63 = vld [vmem:[#allocation6_spill] sm:$0xff] }
 0x509   : > { %4645 = vrot.lane.b32.xlu1 %v4580_v4, %s8697_s21  ;;  %v5472_v55 = vpop.permute.xlu0 %5471  ;;  %v4221_v9 = vmul.f32 %v12775_v3, %v15656_v63 }
 0x50a   : > { %v5801_v7 = vsel %vm5796_vm15, %v5767_v27, %v5472_v55  ;;  %v15657_v27 = vrot.slane %v12652_v60, 1 }
 0x50b   : > { %v5876_v39 = vrot.slane %v5801_v7, 7  ;;  %v12796_v53 = vpop.permute.xlu1 %5056  ;;  %5200 = vrot.lane.b32.xlu0 %v4283_v33, %s8701_s30  ;;  %v4394_v7 = vsel %vm1145_vm4, %v4391_v34, %v15264_v16 }
 0x50c   : > { %v4392_v55 = vsel %vm1145_vm4, %v15657_v27, %v4391_v34  ;;  %v12864_v27 = vmul.f32 %v12801_v59, %v15652_v5 }
 0x50d   : > { %5202 = vrot.lane.b32.xlu1 %v4284_v30, %s8701_s30  ;;  %v5474_v6 = vpop.permute.xlu0 %5473  ;;  %v5877_v32 = vsel %vm1403_vm2, %v15654_v57, %v5876_v39  ;;  %v4314_v30 = vmul.f32 %v12775_v3, %v15640_v2 }
 0x50e   : > { %v12813_v1 = vsel %vm5796_vm15, %v5768_v19, %v5474_v6  ;;  %8273 = vmatmul.mubr.msk.f32.gmra.mxu1 %vm5934_vm8, %v5877_v32  ;;  %v15658_v32 = vrot.slane %v12705_v56, 2  ;;  %v4148_v56 = vmul.f32 %v12035_v45, %v15598_v48  ;;  %v15660_v45 = vld [vmem:[#allocation30_spill] sm:$0xff] }
 0x50f   : > { %v15265_v41 = vrot.slane %v12813_v1, 7  ;;  %v12817_v47 = vpop.permute.xlu1 %4629  ;;  %4774 = vrot.lane.b32.xlu0 %v4220_v46, %s8696_s20  ;;  %v5428_v6 = vrot.slane %v4314_v30, 2 }
 0x510   : > { %v5568_v30 = vsel %vm2947_vm5, %v4148_v56, %v12564_v58 }
 0x511   : > { %4776 = vrot.lane.b32.xlu1 %v4221_v9, %s8696_s20  ;;  %v12825_v4 = vpop.permute.xlu0 %4631  ;;  %v5879_v25 = vsel %vm1403_vm2, %v5876_v39, %v15265_v41  ;;  %v4253_v39 = vmul.f32 %v12775_v3, %v15651_v35  ;;  %v5429_v46 = vsel %vm1888_vm3, %v15658_v32, %v5428_v6  ;;  %v12854_v9 = vmul.f32 %v12801_v59, %v15641_v11  ;;  %v15659_v32 = vld [vmem:[#allocation8_spill] sm:$0xff] }
 0x512   : > { %8275 = vmatprep.mubr.msk.f32.mxu1 %vm5934_vm8, %v5879_v25  ;;  %v5601_v17 = vsel %vm3015_vm7, %v5568_v30, %v12668_v10  ;;  %v4190_v48 = vmul.f32 %v12775_v3, %v15659_v32  ;;  %v4040_v10 = vadd.f32 %v12746_v13, %v12737_v42  ;;  %v4149_v30 = vmul.f32 %v12126_v18, %v15614_v51 }
 0x513   : > { %v5059_v33 = vpop.permute.xlu1 %5058  ;;  %5300 = vrot.lane.b32.xlu0 %v4392_v55, %s8703_s1  ;;  %v5009_v2 = vrot.slane %v4253_v39, 2  ;;  %v15267_v11 = vrot.slane %v12854_v9, 2  ;;  %v5634_v16 = vsel %vm3083_vm9, %v5601_v17, %v12529_v50 }
 0x514   : > { %v5569_v18 = vsel %vm2947_vm5, %v4149_v30, %v12581_v23  ;;  %v12917_v17 = vmax.f32 %v4040_v10, 0.0 }
 0x515   : > { %5302 = vrot.lane.b32.xlu1 %v4394_v7, %s8703_s1  ;;  %v12841_v38 = vpop.permute.xlu0 %5188  ;;  %v5010_v25 = vsel %vm1888_vm3, %v5007_v37, %v5009_v2  ;;  %v5011_v37 = vrot.slane %v12864_v27, 2  ;;  %v5431_v56 = vsel %vm1888_vm3, %v5428_v6, %v15267_v11  ;;  %v4581_v6 = vrot.slane %v4190_v48, 2 }
 0x517   : > { %v5287_v19 = vpop.permute.xlu1 %5286  ;;  %4879 = vrot.lane.b32.xlu0 %v4392_v55, %s8700_s27  ;;  %v5012_v52 = vsel %vm1888_vm3, %v5009_v2, %v5011_v37 }
 0x519   : > { %4455 = vrot.lane.b32.xlu1 %v4392_v55, %s8695_s18  ;;  %v12847_v57 = vpop.permute.xlu0 %4762 }
 0x51b   : > { %v12856_v34 = vpop.permute.xlu1 %4441  ;;  %5489 = vrot.lane.b32.xlu0 %v5429_v46, %s15608_s22  ;;  %v12884_v46 = vmul.f32 %v12801_v59, %v15660_v45 }
 0x51d   : > { %5074 = vrot.lane.b32.xlu1 %v5010_v25, %s8702_s19  ;;  %v12869_v55 = vpop.permute.xlu0 %4865  ;;  %v12886_v25 = vpop.f32.mrf.mxu0  ;;  %v4583_v11 = vrot.slane %v12884_v46, 2 }
 0x51f   : > { %v12874_v39 = vpop.permute.xlu1 %4443  ;;  %4881 = vrot.lane.b32.xlu0 %v4394_v7, %s8700_s27  ;;  %v4044_v42 = vpop.f32.mrf.mxu0 }
 0x521   : > { %4457 = vrot.lane.b32.xlu1 %v4394_v7, %s8695_s18  ;;  %v5289_v58 = vpop.permute.xlu0 %5288  ;;  %v5667_v7 = vsel %vm3151_vm10, %v5634_v16, %v12720_v49  ;;  %v5602_v49 = vsel %vm3015_vm7, %v5569_v18, %v12676_v26  ;;  %v15661_v16 = vrot.slane %v12735_v22, 2  ;;  %v4584_v22 = vsel %vm1888_vm3, %v4581_v6, %v4583_v11 }
 0x522   : > { %v5701_v51 = vsel %vm5694_vm13, %v5667_v7, %v12796_v53  ;;  %v5635_v48 = vsel %vm3083_vm9, %v5602_v49, %v12698_v0 }
 0x523   : > { %v5061_v41 = vpop.permute.xlu1 %5060  ;;  %5491 = vrot.lane.b32.xlu0 %v5431_v56, %s15608_s22  ;;  %v4582_v2 = vsel %vm1888_vm3, %v15661_v16, %v4581_v6  ;;  %v5668_v53 = vsel %vm3151_vm10, %v5635_v48, %v12768_v54  ;;  %v5735_v26 = vsel %vm5728_vm14, %v5701_v51, %v12605_v43  ;;  %v4150_v56 = vmul.f32 %v12109_v8, %v15605_v28  ;;  %v15663_v16 = vld [vmem:[#allocation42_spill] sm:$0xff] }
 0x524   : > { %v5702_v0 = vsel %vm5694_vm13, %v5668_v53, %v5059_v33  ;;  %v5769_v10 = vsel %vm5762_vm1, %v5735_v26, %v5287_v19  ;;  %v4285_v54 = vmul.f32 %v12801_v59, %v15655_v61  ;;  %v4286_v8 = vmul.f32 %v12917_v17, %v15656_v63 }
 0x525   : > { %5076 = vrot.lane.b32.xlu1 %v5012_v52, %s8702_s19  ;;  %v12910_v50 = vpop.permute.xlu0 %4867  ;;  %v4045_v52 = vadd.f32 %v12746_v13, %v4044_v42  ;;  %v5570_v43 = vsel %vm2947_vm5, %v4150_v56, %v12707_v12  ;;  %v5736_v19 = vsel %vm5728_vm14, %v5702_v0, %v12841_v38  ;;  %v15662_v51 = vrot.slane %v12813_v1, 7 }
 0x526   : > { %v5603_v33 = vsel %vm3015_vm7, %v5570_v43, %v12817_v47  ;;  %v5770_v18 = vsel %vm5762_vm1, %v5736_v19, %v5289_v58  ;;  %v15664_v58 = vld [vmem:[#allocation45_spill] sm:$0xff]  ;;  %v4395_v26 = vrot.slane %v12917_v17, 1 }
 0x527   : > { %v12921_v23 = vpop.permute.xlu1 %4633  ;;  %4647 = vrot.lane.b32.xlu0 %v4582_v2, %s8697_s21  ;;  %v12947_v28 = vmax.f32 %v4045_v52, 0.0  ;;  %v4222_v2 = vmul.f32 %v12801_v59, %v15663_v16  ;;  %v5636_v47 = vsel %vm3083_vm9, %v5603_v33, %v12630_v40  ;;  %v4223_v53 = vmul.f32 %v12917_v17, %v15664_v58 }
 0x528   : > { %v5669_v1 = vsel %vm3151_vm10, %v5636_v47, %v12869_v55  ;;  %v4255_v33 = vmul.f32 %v12917_v17, %v15659_v32 }
 0x529   : > { %4649 = vrot.lane.b32.xlu1 %v4584_v22, %s8697_s21  ;;  %v5476_v30 = vpop.permute.xlu0 %5475  ;;  %v4397_v22 = vrot.slane %v12947_v28, 1  ;;  %v5703_v56 = vsel %vm5694_vm13, %v5669_v1, %v5061_v41 }
 0x52a   : > { %v5803_v7 = vsel %vm5796_vm15, %v5769_v10, %v5476_v30  ;;  %v15665_v10 = vrot.slane %v12801_v59, 1  ;;  %v5737_v55 = vsel %vm5728_vm14, %v5703_v56, %v12754_v62  ;;  %v15668_v56 = vld [vmem:[#allocation10_spill] sm:$0xff] }
 0x52b   : > { %v5880_v42 = vrot.slane %v5803_v7, 7  ;;  %v12942_v6 = vpop.permute.xlu1 %5062  ;;  %5204 = vrot.lane.b32.xlu0 %v4285_v54, %s8701_s30  ;;  %v4398_v41 = vsel %vm1145_vm4, %v4395_v26, %v4397_v22  ;;  %v4316_v7 = vmul.f32 %v12917_v17, %v15651_v35 }
 0x52c   : > { %v4396_v30 = vsel %vm1145_vm4, %v15665_v10, %v4395_v26  ;;  %v15667_v26 = vld [vmem:[#allocation7_spill] sm:$0xff] }
 0x52d   : > { %5206 = vrot.lane.b32.xlu1 %v4286_v8, %s8701_s30  ;;  %v5478_v12 = vpop.permute.xlu0 %5477  ;;  %v5881_v49 = vsel %vm1403_vm2, %v15662_v51, %v5880_v42  ;;  %v15666_v51 = vrot.slane %v12854_v9, 2  ;;  %v4192_v27 = vmul.f32 %v12917_v17, %v15667_v26 }
 0x52e   : > { %v5804_v48 = vsel %vm5796_vm15, %v5770_v18, %v5478_v12  ;;  %8276 = vmatmul.mubr.msk.f32.gmra.mxu1 %vm5934_vm8, %v5881_v49  ;;  %v5432_v18 = vrot.slane %v4316_v7, 2 }
 0x52f   : > { %v5882_v38 = vrot.slane %v5804_v48, 7  ;;  %v5291_v52 = vpop.permute.xlu1 %5290  ;;  %4778 = vrot.lane.b32.xlu0 %v4222_v2, %s8696_s20  ;;  %v5013_v2 = vrot.slane %v4255_v33, 2  ;;  %v13013_v48 = vmul.f32 %v12947_v28, %v15652_v5 }
 0x530   : > { %v5771_v43 = vsel %vm5762_vm1, %v5737_v55, %v5291_v52  ;;  %v5433_v49 = vsel %vm1888_vm3, %v15666_v51, %v5432_v18  ;;  %v4050_v55 = vadd.f32 %v12746_v13, %v12886_v25 }
 0x531   : > { %4780 = vrot.lane.b32.xlu1 %v4223_v53, %s8696_s20  ;;  %v12973_v0 = vpop.permute.xlu0 %4869  ;;  %v5883_v40 = vsel %vm1403_vm2, %v5880_v42, %v5882_v38  ;;  %v5014_v52 = vsel %vm1888_vm3, %v5011_v37, %v5013_v2  ;;  %v5434_v53 = vrot.slane %v13013_v48, 2  ;;  %v13035_v37 = vmul.f32 %v12947_v28, %v15668_v56 }
 0x532   : > { %8278 = vmatprep.mubr.msk.f32.mxu1 %vm5934_vm8, %v5883_v40  ;;  %v13037_v40 = vpop.f32.mrf.mxu0 }
 0x533   : > { %v12980_v54 = vpop.permute.xlu1 %4445  ;;  %5304 = vrot.lane.b32.xlu0 %v4396_v30, %s8703_s1 }
 0x534   : > { %v4054_v33 = vpop.f32.mrf.mxu0 }
 0x535   : > { %5306 = vrot.lane.b32.xlu1 %v4398_v41, %s8703_s1  ;;  %v5480_v42 = vpop.permute.xlu0 %5479 }
 0x536   : > { %v12993_v8 = vsel %vm5796_vm15, %v5771_v43, %v5480_v42  ;;  %v4585_v42 = vrot.slane %v4192_v27, 2  ;;  %v4055_v27 = vadd.f32 %v12746_v13, %v4054_v33  ;;  %v15671_v33 = vld [vmem:[#allocation23_spill] sm:$0xff] }
 0x537   : > { %v5884_v62 = vrot.slane %v12993_v8, 7  ;;  %v12998_v19 = vpop.permute.xlu1 %5064  ;;  %4883 = vrot.lane.b32.xlu0 %v4396_v30, %s8700_s27 }
 0x538   : > { %v4586_v25 = vsel %vm1888_vm3, %v4583_v11, %v4585_v42 }
 0x539   : > { %4459 = vrot.lane.b32.xlu1 %v4396_v30, %s8695_s18  ;;  %v13002_v35 = vpop.permute.xlu0 %4635  ;;  %v5885_v12 = vsel %vm1403_vm2, %v5882_v38, %v5884_v62  ;;  %v13023_v38 = vmul.f32 %v12947_v28, %v15660_v45  ;;  %v5435_v30 = vsel %vm1888_vm3, %v5432_v18, %v5434_v53 }
 0x53a   : > { %8279 = vmatmul.mubr.msk.f32.gmra.mxu1 %vm5934_vm8, %v5885_v12  ;;  %v15669_v12 = vld [vmem:[#allocation24_spill] sm:$0xff] }
 0x53b   : > { %v13015_v47 = vpop.permute.xlu1 %4637  ;;  %5493 = vrot.lane.b32.xlu0 %v5433_v49, %s15608_s22  ;;  %v5015_v5 = vrot.slane %v13023_v38, 2  ;;  %v4151_v51 = vmul.f32 %v15669_v12, %v15624_v44  ;;  %v13060_v49 = vmax.f32 %v4050_v55, 0.0 }
 0x53d   : > { %5078 = vrot.lane.b32.xlu1 %v5014_v52, %s8702_s19  ;;  %v5193_v9 = vpop.permute.xlu0 %5192  ;;  %v5016_v43 = vsel %vm1888_vm3, %v5013_v2, %v5015_v5  ;;  %v5571_v52 = vsel %vm2947_vm5, %v4151_v51, %v12725_v36  ;;  %v4287_v36 = vmul.f32 %v12947_v28, %v15663_v16  ;;  %v13089_v51 = vmax.f32 %v4055_v27, 0.0 }
 0x53e   : > { %v5604_v44 = vsel %vm3015_vm7, %v5571_v52, %v12825_v4 }
 0x53f   : > { %v13027_v1 = vpop.permute.xlu1 %5194  ;;  %4885 = vrot.lane.b32.xlu0 %v4398_v41, %s8700_s27  ;;  %v5637_v11 = vsel %vm3083_vm9, %v5604_v44, %v12847_v57  ;;  %v4288_v57 = vmul.f32 %v13060_v49, %v15664_v58 }
 0x540   : > { %v5670_v55 = vsel %vm3151_vm10, %v5637_v11, %v12910_v50 }
 0x541   : > { %4461 = vrot.lane.b32.xlu1 %v4398_v41, %s8695_s18  ;;  %v13040_v10 = vpop.permute.xlu0 %4766  ;;  %v4587_v41 = vrot.slane %v13035_v37, 2  ;;  %v5704_v12 = vsel %vm5694_vm13, %v5670_v55, %v12942_v6  ;;  %v15672_v6 = vld [vmem:[#allocation43_spill] sm:$0xff] }
 0x543   : > { %v13047_v7 = vpop.permute.xlu1 %4768  ;;  %5495 = vrot.lane.b32.xlu0 %v5435_v30, %s15608_s22  ;;  %v4588_v30 = vsel %vm1888_vm3, %v4585_v42, %v4587_v41 }
 0x545   : > { %5080 = vrot.lane.b32.xlu1 %v5016_v43, %s8702_s19  ;;  %v5293_v18 = vpop.permute.xlu0 %5292  ;;  %v15670_v43 = vld [vmem:[#allocation69_spill] sm:$0xff] }
 0x546   : > { %v4152_v4 = vmul.f32 %v15671_v33, %v15670_v43  ;;  %v15268_v43 = vrot.slane %v13089_v51, 1 }
 0x547   : > { %v5295_v2 = vpop.permute.xlu1 %5294  ;;  %4651 = vrot.lane.b32.xlu0 %v4586_v25, %s8697_s21  ;;  %v5738_v25 = vsel %vm5728_vm14, %v5704_v12, %v5193_v9  ;;  %v15673_v9 = vld [vmem:[#allocation47_spill] sm:$0xff] }
 0x548   : > { %v5572_v50 = vsel %vm2947_vm5, %v4152_v4, %v12856_v34  ;;  %v5772_v52 = vsel %vm5762_vm1, %v5738_v25, %v5293_v18  ;;  %v4225_v34 = vmul.f32 %v13060_v49, %v15673_v9  ;;  %v4399_v18 = vrot.slane %v13060_v49, 1 }
 0x549   : > { %4653 = vrot.lane.b32.xlu1 %v4588_v30, %s8697_s21  ;;  %v13074_v46 = vpop.permute.xlu0 %4871  ;;  %v4224_v30 = vmul.f32 %v12947_v28, %v15672_v6  ;;  %v5605_v11 = vsel %vm3015_vm7, %v5572_v50, %v12921_v23 }
 0x54a   : > { %v5638_v33 = vsel %vm3083_vm9, %v5605_v11, %v12779_v20 }
 0x54b   : > { %v13084_v42 = vpop.permute.xlu1 %4447  ;;  %5208 = vrot.lane.b32.xlu0 %v4287_v36, %s8701_s30  ;;  %v5671_v12 = vsel %vm3151_vm10, %v5638_v33, %v12973_v0  ;;  %v4402_v0 = vsel %vm1145_vm4, %v4399_v18, %v15268_v43 }
 0x54c   : > { %v5705_v20 = vsel %vm5694_vm13, %v5671_v12, %v12998_v19  ;;  %v15674_v12 = vld [vmem:[#allocation49_spill] sm:$0xff] }
 0x54d   : > { %5210 = vrot.lane.b32.xlu1 %v4288_v57, %s8701_s30  ;;  %v5482_v44 = vpop.permute.xlu0 %5481  ;;  %v4400_v57 = vsel %vm1145_vm4, %v4397_v22, %v4399_v18  ;;  %v5739_v8 = vsel %vm5728_vm14, %v5705_v20, %v13027_v1  ;;  %v4194_v38 = vmul.f32 %v13060_v49, %v15674_v12  ;;  %v13181_v20 = vpop.f32.mrf.mxu0 }
 0x54e   : > { %v5806_v36 = vsel %vm5796_vm15, %v5772_v52, %v5482_v44  ;;  %v5773_v50 = vsel %vm5762_vm1, %v5739_v8, %v5295_v2  ;;  %v4257_v52 = vmul.f32 %v13060_v49, %v15667_v26 }
 0x54f   : > { %v5886_v27 = vrot.slane %v5806_v36, 7  ;;  %v13101_v55 = vpop.permute.xlu1 %5066  ;;  %4782 = vrot.lane.b32.xlu0 %v4224_v30, %s8696_s20 }
 0x550   : > { %v5017_v36 = vrot.slane %v4257_v52, 2 }
 0x551   : > { %4784 = vrot.lane.b32.xlu1 %v4225_v34, %s8696_s20  ;;  %v13111_v23 = vpop.permute.xlu0 %4873  ;;  %v5887_v4 = vsel %vm1403_vm2, %v5884_v62, %v5886_v27  ;;  %v4318_v62 = vmul.f32 %v13060_v49, %v15659_v32  ;;  %v13157_v34 = vmul.f32 %v13089_v51, %v15660_v45 }
 0x552   : > { %8281 = vmatprep.mubr.msk.f32.mxu1 %vm5934_vm8, %v5887_v4  ;;  %v5018_v33 = vsel %vm1888_vm3, %v5015_v5, %v5017_v36 }
 0x553   : > { %v13124_v25 = vpop.permute.xlu1 %4449  ;;  %5308 = vrot.lane.b32.xlu0 %v4400_v57, %s8703_s1  ;;  %v5436_v30 = vrot.slane %v4318_v62, 2 }
 0x555   : > { %5310 = vrot.lane.b32.xlu1 %v4402_v0, %s8703_s1  ;;  %v5484_v22 = vpop.permute.xlu0 %5483  ;;  %v5437_v11 = vsel %vm1888_vm3, %v5434_v53, %v5436_v30  ;;  %v15269_v53 = vrot.slane %v13157_v34, 2 }
 0x556   : > { %v13137_v19 = vsel %vm5796_vm15, %v5773_v50, %v5484_v22  ;;  %v4060_v50 = vadd.f32 %v12746_v13, %v13037_v40 }
 0x557   : > { %v5888_v1 = vrot.slane %v13137_v19, 7  ;;  %v13142_v44 = vpop.permute.xlu1 %5068  ;;  %4887 = vrot.lane.b32.xlu0 %v4400_v57, %s8700_s27  ;;  %v5439_v62 = vsel %vm1888_vm3, %v5436_v30, %v15269_v53 }
 0x558   : > { %v13204_v53 = vmax.f32 %v4060_v50, 0.0 }
 0x559   : > { %4463 = vrot.lane.b32.xlu1 %v4400_v57, %s8695_s18  ;;  %v13146_v32 = vpop.permute.xlu0 %4639  ;;  %v5889_v2 = vsel %vm1403_vm2, %v5886_v27, %v5888_v1  ;;  %v13167_v27 = vmul.f32 %v13089_v51, %v15668_v56  ;;  %v15675_v57 = vld [vmem:[#allocation9_spill] sm:$0xff] }
 0x55a   : > { %8282 = vmatmul.mubr.msk.f32.gmra.mxu1 %vm5934_vm8, %v5889_v2  ;;  %v13179_v5 = vmul.f32 %v13089_v51, %v15675_v57  ;;  %v4589_v2 = vrot.slane %v4194_v38, 2  ;;  %15677 = vst [vmem:[#allocation41_spill] sm:$0xff] %v13204_v53 }
 0x55b   : > { %v13159_v18 = vpop.permute.xlu1 %4641  ;;  %5497 = vrot.lane.b32.xlu0 %v5437_v11, %s15608_s22  ;;  %v5019_v45 = vrot.slane %v13167_v27, 2  ;;  %v4064_v11 = vpop.f32.mrf.mxu0 }
 0x55c   : > { %v4590_v40 = vsel %vm1888_vm3, %v4587_v41, %v4589_v2  ;;  %v4065_v38 = vadd.f32 %v12746_v13, %v4064_v11 }
 0x55d   : > { %5082 = vrot.lane.b32.xlu1 %v5018_v33, %s8702_s19  ;;  %v5197_v48 = vpop.permute.xlu0 %5196  ;;  %v5020_v52 = vsel %vm1888_vm3, %v5017_v36, %v5019_v45  ;;  %v15676_v33 = vld [vmem:[#allocation36_spill] sm:$0xff] }
 0x55e   : > { %v4153_v43 = vmul.f32 %v15676_v33, %v15634_v15  ;;  %v15678_v33 = vld [vmem:[#allocation33_spill] sm:$0xff] }
 0x55f   : > { %v13171_v4 = vpop.permute.xlu1 %5198  ;;  %4889 = vrot.lane.b32.xlu0 %v4402_v0, %s8700_s27 }
 0x561   : > { %4465 = vrot.lane.b32.xlu1 %v4402_v0, %s8695_s18  ;;  %v13184_v8 = vpop.permute.xlu0 %4770  ;;  %v15272_v0 = vrot.slane %v13179_v5, 2 }
 0x563   : > { %v13191_v22 = vpop.permute.xlu1 %4772  ;;  %5499 = vrot.lane.b32.xlu0 %v5439_v62, %s15608_s22  ;;  %v5573_v62 = vsel %vm2947_vm5, %v4153_v43, %v12874_v39  ;;  %v4289_v39 = vmul.f32 %v13089_v51, %v15672_v6 }
 0x564   : > { %v5606_v15 = vsel %vm3015_vm7, %v5573_v62, %v13002_v35 }
 0x565   : > { %5084 = vrot.lane.b32.xlu1 %v5020_v52, %s8702_s19  ;;  %v5297_v30 = vpop.permute.xlu0 %5296  ;;  %v4592_v52 = vsel %vm1888_vm3, %v4589_v2, %v15272_v0  ;;  %v5639_v37 = vsel %vm3083_vm9, %v5606_v15, %v13040_v10  ;;  %v4290_v10 = vmul.f32 %v13204_v53, %v15673_v9  ;;  %v13231_v2 = vmax.f32 %v4065_v38, 0.0 }
 0x566   : > { %v5672_v43 = vsel %vm3151_vm10, %v5639_v37, %v13074_v46 }
 0x567   : > { %v5299_v36 = vpop.permute.xlu1 %5298  ;;  %4655 = vrot.lane.b32.xlu0 %v4590_v40, %s8697_s21  ;;  %v5706_v35 = vsel %vm5694_vm13, %v5672_v43, %v13101_v55  ;;  %v4154_v40 = vmul.f32 %v15678_v33, %v15635_v29  ;;  %v15679_v55 = vld [vmem:[#allocation57_spill] sm:$0xff]  ;;  %v4403_v43 = vrot.slane %v13204_v53, 1 }
 0x568   : > { %v5740_v11 = vsel %vm5728_vm14, %v5706_v35, %v5197_v48  ;;  %v4226_v15 = vmul.f32 %v13089_v51, %v15679_v55  ;;  %v15680_v48 = vld [vmem:[#allocation46_spill] sm:$0xff]  ;;  %v15270_v35 = vrot.slane %v13231_v2, 1 }
 0x569   : > { %4657 = vrot.lane.b32.xlu1 %v4592_v52, %s8697_s21  ;;  %v13218_v41 = vpop.permute.xlu0 %4875  ;;  %v5774_v62 = vsel %vm5762_vm1, %v5740_v11, %v5297_v30  ;;  %v5574_v37 = vsel %vm2947_vm5, %v4154_v40, %v12980_v54  ;;  %v4227_v29 = vmul.f32 %v13204_v53, %v15680_v48 }
 0x56a   : > { %v5607_v30 = vsel %vm3015_vm7, %v5574_v37, %v13015_v47  ;;  %v15681_v47 = vrot.slane %v13089_v51, 1 }
 0x56b   : > { %v13226_v50 = vpop.permute.xlu1 %4451  ;;  %5212 = vrot.lane.b32.xlu0 %v4289_v39, %s8701_s30 }
 0x56c   : > { %v4404_v40 = vsel %vm1145_vm4, %v15681_v47, %v4403_v43 }
 0x56d   : > { %5214 = vrot.lane.b32.xlu1 %v4290_v10, %s8701_s30  ;;  %v5486_v46 = vpop.permute.xlu0 %5485  ;;  %v5640_v10 = vsel %vm3083_vm9, %v5607_v30, %v13047_v7  ;;  %v15682_v30 = vrot.slane %v13157_v34, 2 }
 0x56e   : > { %v5808_v52 = vsel %vm5796_vm15, %v5774_v62, %v5486_v46  ;;  %v5673_v33 = vsel %vm3151_vm10, %v5640_v10, %v13111_v23  ;;  %v4406_v23 = vsel %vm1145_vm4, %v4403_v43, %v15270_v35 }
 0x56f   : > { %v5890_v38 = vrot.slane %v5808_v52, 7  ;;  %v13243_v39 = vpop.permute.xlu1 %5070  ;;  %4786 = vrot.lane.b32.xlu0 %v4226_v15, %s8696_s20  ;;  %v5707_v7 = vsel %vm5694_vm13, %v5673_v33, %v13142_v44  ;;  %v4259_v52 = vmul.f32 %v13204_v53, %v15674_v12 }
 0x570   : > { %v5741_v19 = vsel %vm5728_vm14, %v5707_v7, %v13171_v4 }
 0x571   : > { %4788 = vrot.lane.b32.xlu1 %v4227_v29, %s8696_s20  ;;  %v13255_v54 = vpop.permute.xlu0 %4877  ;;  %v5891_v11 = vsel %vm1403_vm2, %v5888_v1, %v5890_v38  ;;  %v4320_v1 = vmul.f32 %v13204_v53, %v15667_v26  ;;  %v5775_v46 = vsel %vm5762_vm1, %v5741_v19, %v5299_v36  ;;  %v5021_v10 = vrot.slane %v4259_v52, 2  ;;  %v15683_v19 = vld [vmem:[#allocation50_spill] sm:$0xff] }
 0x572   : > { %8284 = vmatprep.mubr.msk.f32.mxu1 %vm5934_vm8, %v5891_v11  ;;  %v13301_v11 = vmul.f32 %v13231_v2, %v15668_v56  ;;  %v4196_v27 = vmul.f32 %v13204_v53, %v15683_v19 }
 0x573   : > { %v13268_v62 = vpop.permute.xlu1 %4453  ;;  %5312 = vrot.lane.b32.xlu0 %v4404_v40, %s8703_s1  ;;  %v5440_v29 = vrot.slane %v4320_v1, 2  ;;  %v5022_v47 = vsel %vm1888_vm3, %v5019_v45, %v5021_v10  ;;  %v15684_v1 = vld [vmem:[#allocation63_spill] sm:$0xff] }
 0x574   : > { %v13323_v45 = vmul.f32 %v13231_v2, %v15684_v1 }
 0x575   : > { %5314 = vrot.lane.b32.xlu1 %v4406_v23, %s8703_s1  ;;  %v5488_v15 = vpop.permute.xlu0 %5487  ;;  %v5441_v43 = vsel %vm1888_vm3, %v15682_v30, %v5440_v29 }
 0x576   : > { %v13281_v44 = vsel %vm5796_vm15, %v5775_v46, %v5488_v15  ;;  %v13325_v46 = vpop.f32.mrf.mxu0 }
 0x577   : > { %v15271_v4 = vrot.slane %v13281_v44, 7  ;;  %v13286_v37 = vpop.permute.xlu1 %5072  ;;  %4891 = vrot.lane.b32.xlu0 %v4404_v40, %s8700_s27 }
 0x578   : > { %v4074_v35 = vpop.f32.mrf.mxu0 }
 0x579   : > { %4467 = vrot.lane.b32.xlu1 %v4404_v40, %s8695_s18  ;;  %v13290_v26 = vpop.permute.xlu0 %4643  ;;  %v5893_v36 = vsel %vm1403_vm2, %v5890_v38, %v15271_v4  ;;  %v13311_v38 = vmul.f32 %v13231_v2, %v15675_v57  ;;  %v15273_v40 = vrot.slane %v13301_v11, 2  ;;  %v15685_v4 = vld [vmem:[#allocation37_spill] sm:$0xff] }
 0x57a   : > { %8285 = vmatmul.mubr.msk.f32.gmra.mxu1 %vm5934_vm8, %v5893_v36  ;;  %v4070_v36 = vadd.f32 %v12746_v13, %v13181_v20  ;;  %v4155_v0 = vmul.f32 %v15685_v4, %v15646_v31  ;;  %v15686_v20 = vrot.slane %v13179_v5, 2 }
 0x57b   : > { %v13303_v33 = vpop.permute.xlu1 %4645  ;;  %5501 = vrot.lane.b32.xlu0 %v5441_v43, %s15608_s22  ;;  %v5023_v56 = vrot.slane %v13311_v38, 2  ;;  %v5443_v52 = vsel %vm1888_vm3, %v5440_v29, %v15273_v40 }
 0x57c   : > { %v13348_v53 = vmax.f32 %v4070_v36, 0.0 }
 0x57d   : > { %5086 = vrot.lane.b32.xlu1 %v5022_v47, %s8702_s19  ;;  %v5201_v34 = vpop.permute.xlu0 %5200  ;;  %v5024_v43 = vsel %vm1888_vm3, %v5021_v10, %v5023_v56  ;;  %v4593_v47 = vrot.slane %v4196_v27, 2  ;;  %v4075_v27 = vadd.f32 %v12746_v13, %v4074_v35 }
 0x57e   : > { %15687 = vst [vmem:[#allocation62_spill] sm:$0xff] %v13348_v53 }
 0x57f   : > { %v13315_v7 = vpop.permute.xlu1 %5202  ;;  %4893 = vrot.lane.b32.xlu0 %v4406_v23, %s8700_s27  ;;  %v4594_v40 = vsel %vm1888_vm3, %v15686_v20, %v4593_v47 }
 0x581   : > { %4469 = vrot.lane.b32.xlu1 %v4406_v23, %s8695_s18  ;;  %v13328_v15 = vpop.permute.xlu0 %4774  ;;  %v15277_v23 = vrot.slane %v13323_v45, 2 }
 0x583   : > { %v13335_v30 = vpop.permute.xlu1 %4776  ;;  %5503 = vrot.lane.b32.xlu0 %v5443_v52, %s15608_s22  ;;  %v5575_v52 = vsel %vm2947_vm5, %v4155_v0, %v13084_v42  ;;  %v4596_v4 = vsel %vm1888_vm3, %v4593_v47, %v15277_v23  ;;  %v4291_v42 = vmul.f32 %v13231_v2, %v15679_v55  ;;  %v15688_v47 = vld [vmem:[#allocation40_spill] sm:$0xff]  ;;  %v4157_v23 = vmul.f32 %v12518_v14, %v15655_v61 }
 0x584   : > { %v5608_v31 = vsel %vm3015_vm7, %v5575_v52, %v13146_v32  ;;  %v4156_v20 = vmul.f32 %v15688_v47, %v15647_v21 }
 0x585   : > { %5088 = vrot.lane.b32.xlu1 %v5024_v43, %s8702_s19  ;;  %v5301_v29 = vpop.permute.xlu0 %5300  ;;  %v5641_v5 = vsel %vm3083_vm9, %v5608_v31, %v13184_v8  ;;  %v4292_v8 = vmul.f32 %v13348_v53, %v15680_v48 }
 0x586   : > { %v5674_v0 = vsel %vm3151_vm10, %v5641_v5, %v13218_v41  ;;  %v5576_v5 = vsel %vm2947_vm5, %v4156_v20, %v13124_v25 }
 0x587   : > { %v5303_v10 = vpop.permute.xlu1 %5302  ;;  %4659 = vrot.lane.b32.xlu0 %v4594_v40, %s8697_s21  ;;  %v5708_v32 = vsel %vm5694_vm13, %v5674_v0, %v13243_v39  ;;  %v13375_v40 = vmax.f32 %v4075_v27, 0.0  ;;  %v15689_v39 = vld [vmem:[#allocation14_spill] sm:$0xff]  ;;  %v4407_v0 = vrot.slane %v13348_v53, 1 }
 0x588   : > { %v5742_v43 = vsel %vm5728_vm14, %v5708_v32, %v5201_v34  ;;  %v4228_v31 = vmul.f32 %v13231_v2, %v15689_v39  ;;  %v15690_v34 = vld [vmem:[#allocation67_spill] sm:$0xff] }
 0x589   : > { %4661 = vrot.lane.b32.xlu1 %v4596_v4, %s8697_s21  ;;  %v13362_v36 = vpop.permute.xlu0 %4879  ;;  %v5776_v52 = vsel %vm5762_vm1, %v5742_v43, %v5301_v29  ;;  %v4229_v21 = vmul.f32 %v13348_v53, %v15690_v34  ;;  %v5609_v29 = vsel %vm3015_vm7, %v5576_v5, %v13159_v18  ;;  %v15275_v32 = vrot.slane %v13375_v40, 1 }
 0x58a   : > { %v15691_v43 = vrot.slane %v13281_v44, 7  ;;  %v15692_v18 = vrot.slane %v13231_v2, 1 }
 0x58b   : > { %v13370_v35 = vpop.permute.xlu1 %4455  ;;  %5216 = vrot.lane.b32.xlu0 %v4291_v42, %s8701_s30 }
 0x58d   : > { %5218 = vrot.lane.b32.xlu1 %v4292_v8, %s8701_s30  ;;  %v5490_v41 = vpop.permute.xlu0 %5489  ;;  %v5642_v8 = vsel %vm3083_vm9, %v5609_v29, %v13191_v22 }
 0x58e   : > { %v5810_v4 = vsel %vm5796_vm15, %v5776_v52, %v5490_v41  ;;  %v5675_v20 = vsel %vm3151_vm10, %v5642_v8, %v13255_v54  ;;  %v4408_v52 = vsel %vm1145_vm4, %v15692_v18, %v4407_v0  ;;  %v4410_v54 = vsel %vm1145_vm4, %v4407_v0, %v15275_v32 }
 0x58f   : > { %v5894_v27 = vrot.slane %v5810_v4, 7  ;;  %v13387_v42 = vpop.permute.xlu1 %5074  ;;  %4790 = vrot.lane.b32.xlu0 %v4228_v31, %s8696_s20  ;;  %v5709_v22 = vsel %vm5694_vm13, %v5675_v20, %v13286_v37  ;;  %v4322_v31 = vmul.f32 %v13348_v53, %v15674_v12  ;;  %v15693_v8 = vrot.slane %v13301_v11, 2 }
 0x590   : > { %v5743_v44 = vsel %vm5728_vm14, %v5709_v22, %v13315_v7  ;;  %v13445_v20 = vmul.f32 %v13375_v40, %v15675_v57 }
 0x591   : > { %4792 = vrot.lane.b32.xlu1 %v4229_v21, %s8696_s20  ;;  %v13399_v25 = vpop.permute.xlu0 %4881  ;;  %v5895_v47 = vsel %vm1403_vm2, %v15691_v43, %v5894_v27  ;;  %v5777_v4 = vsel %vm5762_vm1, %v5743_v44, %v5303_v10  ;;  %v4261_v21 = vmul.f32 %v13348_v53, %v15683_v19  ;;  %v5444_v0 = vrot.slane %v4322_v31, 2  ;;  %v15694_v31 = vld [vmem:[#allocation48_spill] sm:$0xff] }
 0x592   : > { %8287 = vmatprep.mubr.msk.f32.mxu1 %vm5934_vm8, %v5895_v47  ;;  %v15278_v22 = vrot.slane %v13445_v20, 2  ;;  %v4198_v38 = vmul.f32 %v13348_v53, %v15694_v31 }
 0x593   : > { %v13412_v41 = vpop.permute.xlu1 %4457  ;;  %5316 = vrot.lane.b32.xlu0 %v4408_v52, %s8703_s1  ;;  %v5445_v43 = vsel %vm1888_vm3, %v15693_v8, %v5444_v0  ;;  %v5025_v47 = vrot.slane %v4261_v21, 2  ;;  %v4080_v8 = vadd.f32 %v12746_v13, %v13325_v46  ;;  %v15696_v46 = vrot.slane %v13323_v45, 2 }
 0x594   : > { %v4597_v32 = vrot.slane %v4198_v38, 2 }
 0x595   : > { %5318 = vrot.lane.b32.xlu1 %v4410_v54, %s8703_s1  ;;  %v5492_v5 = vpop.permute.xlu0 %5491  ;;  %v13492_v53 = vmax.f32 %v4080_v8, 0.0 }
 0x596   : > { %v13425_v37 = vsel %vm5796_vm15, %v5777_v4, %v5492_v5  ;;  %v15695_v4 = vld [vmem:[#allocation52_spill] sm:$0xff]  ;;  %v13469_v5 = vpop.f32.mrf.mxu0 }
 0x597   : > { %v15276_v7 = vrot.slane %v13425_v37, 7  ;;  %v13430_v29 = vpop.permute.xlu1 %5076  ;;  %4895 = vrot.lane.b32.xlu0 %v4408_v52, %s8700_s27 }
 0x599   : > { %4471 = vrot.lane.b32.xlu1 %v4408_v52, %s8695_s18  ;;  %v13434_v12 = vpop.permute.xlu0 %4647  ;;  %v5897_v10 = vsel %vm1403_vm2, %v5894_v27, %v15276_v7  ;;  %v5026_v52 = vsel %vm1888_vm3, %v5023_v56, %v5025_v47  ;;  %v13455_v27 = vmul.f32 %v13375_v40, %v15684_v1  ;;  %v13467_v56 = vmul.f32 %v13375_v40, %v15695_v4  ;;  %v4084_v7 = vpop.f32.mrf.mxu0 }
 0x59a   : > { %8288 = vmatmul.mubr.msk.f32.gmra.mxu1 %vm5934_vm8, %v5897_v10  ;;  %v5447_v10 = vsel %vm1888_vm3, %v5444_v0, %v15278_v22  ;;  %v4598_v22 = vsel %vm1888_vm3, %v15696_v46, %v4597_v32  ;;  %v4085_v38 = vadd.f32 %v12746_v13, %v4084_v7 }
 0x59b   : > { %v13447_v18 = vpop.permute.xlu1 %4649  ;;  %5505 = vrot.lane.b32.xlu0 %v5445_v43, %s15608_s22  ;;  %v5027_v57 = vrot.slane %v13455_v27, 2 }
 0x59d   : > { %5090 = vrot.lane.b32.xlu1 %v5026_v52, %s8702_s19  ;;  %v5205_v11 = vpop.permute.xlu0 %5204  ;;  %v5028_v52 = vsel %vm1888_vm3, %v5025_v47, %v5027_v57 }
 0x59f   : > { %v13459_v44 = vpop.permute.xlu1 %5206  ;;  %4897 = vrot.lane.b32.xlu0 %v4410_v54, %s8700_s27 }
 0x5a1   : > { %4473 = vrot.lane.b32.xlu1 %v4410_v54, %s8695_s18  ;;  %v13472_v21 = vpop.permute.xlu0 %4778  ;;  %v4599_v54 = vrot.slane %v13467_v56, 2 }
 0x5a3   : > { %v13479_v43 = vpop.permute.xlu1 %4780  ;;  %5507 = vrot.lane.b32.xlu0 %v5447_v10, %s15608_s22  ;;  %v5577_v10 = vsel %vm2947_vm5, %v4157_v23, %v13226_v50  ;;  %v4600_v61 = vsel %vm1888_vm3, %v4597_v32, %v4599_v54  ;;  %v4293_v50 = vmul.f32 %v13375_v40, %v15689_v39  ;;  %v13519_v32 = vmax.f32 %v4085_v38, 0.0 }
 0x5a4   : > { %v5610_v14 = vsel %vm3015_vm7, %v5577_v10, %v13290_v26 }
 0x5a5   : > { %5092 = vrot.lane.b32.xlu1 %v5028_v52, %s8702_s19  ;;  %v5305_v0 = vpop.permute.xlu0 %5304  ;;  %v5643_v45 = vsel %vm3083_vm9, %v5610_v14, %v13328_v15  ;;  %v4294_v15 = vmul.f32 %v13492_v53, %v15690_v34 }
 0x5a6   : > { %v5676_v13 = vsel %vm3151_vm10, %v5643_v45, %v13362_v36  ;;  %v15281_v45 = vrot.slane %v13519_v32, 1 }
 0x5a7   : > { %v5307_v47 = vpop.permute.xlu1 %5306  ;;  %4663 = vrot.lane.b32.xlu0 %v4598_v22, %s8697_s21  ;;  %v5710_v26 = vsel %vm5694_vm13, %v5676_v13, %v13387_v42  ;;  %v4158_v22 = vmul.f32 %v12626_v24, %v15656_v63  ;;  %v15697_v42 = vld [vmem:[#allocation13_spill] sm:$0xff]  ;;  %v15699_v13 = vrot.slane %v13425_v37, 7 }
 0x5a8   : > { %v5744_v7 = vsel %vm5728_vm14, %v5710_v26, %v5205_v11  ;;  %v4230_v46 = vmul.f32 %v13375_v40, %v15697_v42  ;;  %v15698_v11 = vld [vmem:[#allocation16_spill] sm:$0xff] }
 0x5a9   : > { %4665 = vrot.lane.b32.xlu1 %v4600_v61, %s8697_s21  ;;  %v13506_v8 = vpop.permute.xlu0 %4883  ;;  %v5778_v52 = vsel %vm5762_vm1, %v5744_v7, %v5305_v0  ;;  %v5578_v14 = vsel %vm2947_vm5, %v4158_v22, %v13268_v62  ;;  %v4231_v24 = vmul.f32 %v13492_v53, %v15698_v11  ;;  %v4411_v0 = vrot.slane %v13492_v53, 1 }
 0x5aa   : > { %v5611_v63 = vsel %vm3015_vm7, %v5578_v14, %v13303_v33  ;;  %v15700_v33 = vrot.slane %v13375_v40, 1 }
 0x5ab   : > { %v13514_v23 = vpop.permute.xlu1 %4459  ;;  %5220 = vrot.lane.b32.xlu0 %v4293_v50, %s8701_s30  ;;  %v5644_v50 = vsel %vm3083_vm9, %v5611_v63, %v13335_v30  ;;  %v15701_v63 = vrot.slane %v13445_v20, 2 }
 0x5ac   : > { %v4412_v7 = vsel %vm1145_vm4, %v15700_v33, %v4411_v0 }
 0x5ad   : > { %5222 = vrot.lane.b32.xlu1 %v4294_v15, %s8701_s30  ;;  %v5494_v36 = vpop.permute.xlu0 %5493  ;;  %v5677_v15 = vsel %vm3151_vm10, %v5644_v50, %v13399_v25  ;;  %v4414_v25 = vsel %vm1145_vm4, %v4411_v0, %v15281_v45 }
 0x5ae   : > { %v5812_v10 = vsel %vm5796_vm15, %v5778_v52, %v5494_v36  ;;  %v5711_v30 = vsel %vm5694_vm13, %v5677_v15, %v13430_v29  ;;  %v4324_v52 = vmul.f32 %v13492_v53, %v15683_v19 }
 0x5af   : > { %v5898_v38 = vrot.slane %v5812_v10, 7  ;;  %v13531_v61 = vpop.permute.xlu1 %5078  ;;  %4794 = vrot.lane.b32.xlu0 %v4230_v46, %s8696_s20  ;;  %v5745_v37 = vsel %vm5728_vm14, %v5711_v30, %v13459_v44  ;;  %v4263_v10 = vmul.f32 %v13492_v53, %v15694_v31  ;;  %v15702_v30 = vld [vmem:[#allocation73_spill] sm:$0xff] }
 0x5b0   : > { %v5779_v36 = vsel %vm5762_vm1, %v5745_v37, %v5307_v47  ;;  %v4200_v27 = vmul.f32 %v13492_v53, %v15702_v30  ;;  %v15703_v37 = vld [vmem:[#allocation51_spill] sm:$0xff] }
 0x5b1   : > { %4796 = vrot.lane.b32.xlu1 %v4231_v24, %s8696_s20  ;;  %v13543_v62 = vpop.permute.xlu0 %4885  ;;  %v5899_v26 = vsel %vm1403_vm2, %v15699_v13, %v5898_v38  ;;  %v5448_v24 = vrot.slane %v4324_v52, 2  ;;  %v5029_v50 = vrot.slane %v4263_v10, 2  ;;  %v13589_v13 = vmul.f32 %v13519_v32, %v15684_v1  ;;  %v13613_v52 = vpop.f32.mrf.mxu0  ;;  %v13624_v10 = vld [vmem:[%s14937_s8] ss:$0 sm:$0xff] }
 0x5b2   : > { %8290 = vmatprep.mubr.msk.f32.mxu1 %vm5934_vm8, %v5899_v26 }
 0x5b3   : > { %v13556_v22 = vpop.permute.xlu1 %4461  ;;  %5320 = vrot.lane.b32.xlu0 %v4412_v7, %s8703_s1  ;;  %v5449_v0 = vsel %vm1888_vm3, %v15701_v63, %v5448_v24  ;;  %v5030_v15 = vsel %vm1888_vm3, %v5027_v57, %v5029_v50  ;;  %v15280_v33 = vrot.slane %v13589_v13, 2  ;;  %v13611_v57 = vmul.f32 %v13519_v32, %v15703_v37 }
 0x5b5   : > { %5322 = vrot.lane.b32.xlu1 %v4414_v25, %s8703_s1  ;;  %v5496_v46 = vpop.permute.xlu0 %5495 }
 0x5b6   : > { %v13569_v29 = vsel %vm5796_vm15, %v5779_v36, %v5496_v46  ;;  %v5451_v46 = vsel %vm1888_vm3, %v5448_v24, %v15280_v33  ;;  %v4094_v24 = vpop.f32.mrf.mxu0  ;;  %v4159_v33 = vmul.f32 %v12652_v60, %v15663_v16 }
 0x5b7   : > { %v15282_v44 = vrot.slane %v13569_v29, 7  ;;  %v13574_v14 = vpop.permute.xlu1 %5080  ;;  %4899 = vrot.lane.b32.xlu0 %v4412_v7, %s8700_s27 }
 0x5b9   : > { %4475 = vrot.lane.b32.xlu1 %v4412_v7, %s8695_s18  ;;  %v13578_v19 = vpop.permute.xlu0 %4651  ;;  %v5901_v47 = vsel %vm1403_vm2, %v5898_v38, %v15282_v44  ;;  %v13599_v38 = vmul.f32 %v13519_v32, %v15695_v4 }
 0x5ba   : > { %8291 = vmatmul.mubr.msk.f32.gmra.mxu1 %vm5934_vm8, %v5901_v47  ;;  %v4090_v47 = vadd.f32 %v13624_v10, %v13469_v5 }
 0x5bb   : > { %v13591_v26 = vpop.permute.xlu1 %4653  ;;  %5509 = vrot.lane.b32.xlu0 %v5449_v0, %s15608_s22  ;;  %v5031_v1 = vrot.slane %v13599_v38, 2  ;;  %v4601_v0 = vrot.slane %v4200_v27, 2  ;;  %v4095_v27 = vadd.f32 %v13624_v10, %v4094_v24  ;;  %v4160_v24 = vmul.f32 %v12775_v3, %v15664_v58 }
 0x5bc   : > { %v13641_v44 = vmax.f32 %v4090_v47, 0.0 }
 0x5bd   : > { %5094 = vrot.lane.b32.xlu1 %v5030_v15, %s8702_s19  ;;  %v5209_v20 = vpop.permute.xlu0 %5208  ;;  %v4603_v15 = vrot.slane %v13611_v57, 2  ;;  %v4602_v5 = vsel %vm1888_vm3, %v4599_v54, %v4601_v0 }
 0x5bf   : > { %v13603_v7 = vpop.permute.xlu1 %5210  ;;  %4901 = vrot.lane.b32.xlu0 %v4414_v25, %s8700_s27  ;;  %v4604_v16 = vsel %vm1888_vm3, %v4601_v0, %v4603_v15 }
 0x5c1   : > { %4477 = vrot.lane.b32.xlu1 %v4414_v25, %s8695_s18  ;;  %v13616_v36 = vpop.permute.xlu0 %4782  ;;  %v5032_v25 = vsel %vm1888_vm3, %v5029_v50, %v5031_v1 }
 0x5c3   : > { %v13628_v63 = vpop.permute.xlu1 %4784  ;;  %5511 = vrot.lane.b32.xlu0 %v5451_v46, %s15608_s22  ;;  %v5579_v46 = vsel %vm2947_vm5, %v4159_v33, %v13370_v35  ;;  %v4295_v35 = vmul.f32 %v13519_v32, %v15697_v42 }
 0x5c4   : > { %v5612_v60 = vsel %vm3015_vm7, %v5579_v46, %v13434_v12 }
 0x5c5   : > { %5096 = vrot.lane.b32.xlu1 %v5032_v25, %s8702_s19  ;;  %v5309_v45 = vpop.permute.xlu0 %5308  ;;  %v5645_v56 = vsel %vm3083_vm9, %v5612_v60, %v13472_v21  ;;  %v4296_v21 = vmul.f32 %v13641_v44, %v15698_v11  ;;  %v13668_v25 = vmax.f32 %v4095_v27, 0.0 }
 0x5c6   : > { %v5678_v33 = vsel %vm3151_vm10, %v5645_v56, %v13506_v8 }
 0x5c7   : > { %v5311_v50 = vpop.permute.xlu1 %5310  ;;  %4667 = vrot.lane.b32.xlu0 %v4602_v5, %s8697_s21  ;;  %v5712_v12 = vsel %vm5694_vm13, %v5678_v33, %v13531_v61  ;;  %v15704_v61 = vld [vmem:[#allocation56_spill] sm:$0xff] }
 0x5c8   : > { %v5746_v0 = vsel %vm5728_vm14, %v5712_v12, %v5209_v20  ;;  %v4232_v46 = vmul.f32 %v13519_v32, %v15704_v61  ;;  %v15705_v20 = vld [vmem:[#allocation15_spill] sm:$0xff]  ;;  %v15706_v12 = vrot.slane %v13569_v29, 7 }
 0x5c9   : > { %4669 = vrot.lane.b32.xlu1 %v4604_v16, %s8697_s21  ;;  %v13655_v54 = vpop.permute.xlu0 %4887  ;;  %v5780_v5 = vsel %vm5762_vm1, %v5746_v0, %v5309_v45  ;;  %v5580_v16 = vsel %vm2947_vm5, %v4160_v24, %v13412_v41  ;;  %v4233_v3 = vmul.f32 %v13641_v44, %v15705_v20  ;;  %v4415_v45 = vrot.slane %v13641_v44, 1 }
 0x5ca   : > { %v5613_v58 = vsel %vm3015_vm7, %v5580_v16, %v13447_v18  ;;  %v15707_v18 = vrot.slane %v13519_v32, 1  ;;  %v4265_v16 = vmul.f32 %v13641_v44, %v15702_v30 }
 0x5cb   : > { %v13663_v47 = vpop.permute.xlu1 %4463  ;;  %5224 = vrot.lane.b32.xlu0 %v4295_v35, %s8701_s30  ;;  %v15283_v35 = vrot.slane %v13668_v25, 1  ;;  %v5646_v33 = vsel %vm3083_vm9, %v5613_v58, %v13479_v43 }
 0x5cc   : > { %v5679_v0 = vsel %vm3151_vm10, %v5646_v33, %v13543_v62  ;;  %v4416_v24 = vsel %vm1145_vm4, %v15707_v18, %v4415_v45 }
 0x5cd   : > { %5226 = vrot.lane.b32.xlu1 %v4296_v21, %s8701_s30  ;;  %v5498_v8 = vpop.permute.xlu0 %5497  ;;  %v5713_v43 = vsel %vm5694_vm13, %v5679_v0, %v13574_v14  ;;  %v4418_v62 = vsel %vm1145_vm4, %v4415_v45, %v15283_v35  ;;  %v15708_v45 = vrot.slane %v13589_v13, 2 }
 0x5ce   : > { %v5814_v60 = vsel %vm5796_vm15, %v5780_v5, %v5498_v8  ;;  %v5747_v29 = vsel %vm5728_vm14, %v5713_v43, %v13603_v7  ;;  %v4326_v8 = vmul.f32 %v13641_v44, %v15694_v31 }
 0x5cf   : > { %v5902_v27 = vrot.slane %v5814_v60, 7  ;;  %v13680_v56 = vpop.permute.xlu1 %5082  ;;  %4798 = vrot.lane.b32.xlu0 %v4232_v46, %s8696_s20  ;;  %v5781_v46 = vsel %vm5762_vm1, %v5747_v29, %v5311_v50  ;;  %v15709_v29 = vld [vmem:[#allocation18_spill] sm:$0xff] }
 0x5d0   : > { %v5452_v58 = vrot.slane %v4326_v8, 2  ;;  %v4202_v38 = vmul.f32 %v13641_v44, %v15709_v29  ;;  %v15710_v8 = vld [vmem:[#allocation55_spill] sm:$0xff] }
 0x5d1   : > { %4800 = vrot.lane.b32.xlu1 %v4233_v3, %s8696_s20  ;;  %v13692_v41 = vpop.permute.xlu0 %4889  ;;  %v5903_v21 = vsel %vm1403_vm2, %v15706_v12, %v5902_v27  ;;  %v5033_v12 = vrot.slane %v4265_v16, 2 }
 0x5d2   : > { %8293 = vmatprep.mubr.msk.f32.mxu1 %vm5934_vm8, %v5903_v21  ;;  %v5453_v33 = vsel %vm1888_vm3, %v15708_v45, %v5452_v58  ;;  %v13738_v21 = vmul.f32 %v13668_v25, %v15695_v4 }
 0x5d3   : > { %v13705_v5 = vpop.permute.xlu1 %4465  ;;  %5324 = vrot.lane.b32.xlu0 %v4416_v24, %s8703_s1  ;;  %v5034_v18 = vsel %vm1888_vm3, %v5031_v1, %v5033_v12  ;;  %v13760_v1 = vmul.f32 %v13668_v25, %v15710_v8 }
 0x5d5   : > { %5326 = vrot.lane.b32.xlu1 %v4418_v62, %s8703_s1  ;;  %v5500_v60 = vpop.permute.xlu0 %5499 }
 0x5d6   : > { %v13718_v14 = vsel %vm5796_vm15, %v5781_v46, %v5500_v60  ;;  %v13762_v46 = vpop.f32.mrf.mxu0 }
 0x5d7   : > { %v15284_v7 = vrot.slane %v13718_v14, 7  ;;  %v13723_v3 = vpop.permute.xlu1 %5084  ;;  %4903 = vrot.lane.b32.xlu0 %v4416_v24, %s8700_s27 }
 0x5d8   : > { %v4104_v35 = vpop.f32.mrf.mxu0 }
 0x5d9   : > { %4479 = vrot.lane.b32.xlu1 %v4416_v24, %s8695_s18  ;;  %v13727_v31 = vpop.permute.xlu0 %4655  ;;  %v5905_v50 = vsel %vm1403_vm2, %v5902_v27, %v15284_v7  ;;  %v13748_v27 = vmul.f32 %v13668_v25, %v15703_v37  ;;  %v15285_v24 = vrot.slane %v13738_v21, 2  ;;  %v4161_v7 = vmul.f32 %v12801_v59, %v15672_v6 }
 0x5da   : > { %8294 = vmatmul.mubr.msk.f32.gmra.mxu1 %vm5934_vm8, %v5905_v50  ;;  %v4100_v50 = vadd.f32 %v13624_v10, %v13613_v52 }
 0x5db   : > { %v13740_v0 = vpop.permute.xlu1 %4657  ;;  %5513 = vrot.lane.b32.xlu0 %v5453_v33, %s15608_s22  ;;  %v5035_v4 = vrot.slane %v13748_v27, 2  ;;  %v5455_v16 = vsel %vm1888_vm3, %v5452_v58, %v15285_v24  ;;  %v15717_v27 = vld [vmem:[#allocation20_spill] sm:$0xff] }
 0x5dc   : > { %v13785_v24 = vmax.f32 %v4100_v50, 0.0 }
 0x5dd   : > { %5098 = vrot.lane.b32.xlu1 %v5034_v18, %s8702_s19  ;;  %v5213_v13 = vpop.permute.xlu0 %5212  ;;  %v5036_v33 = vsel %vm1888_vm3, %v5033_v12, %v5035_v4  ;;  %v4605_v18 = vrot.slane %v4202_v38, 2  ;;  %v4105_v38 = vadd.f32 %v13624_v10, %v4104_v35 }
 0x5df   : > { %v13752_v43 = vpop.permute.xlu1 %5214  ;;  %4905 = vrot.lane.b32.xlu0 %v4418_v62, %s8700_s27  ;;  %v4606_v52 = vsel %vm1888_vm3, %v4603_v15, %v4605_v18  ;;  %v13812_v50 = vmax.f32 %v4105_v38, 0.0 }
 0x5e1   : > { %4481 = vrot.lane.b32.xlu1 %v4418_v62, %s8695_s18  ;;  %v13765_v60 = vpop.permute.xlu0 %4786  ;;  %v4607_v62 = vrot.slane %v13760_v1, 2 }
 0x5e3   : > { %v13772_v45 = vpop.permute.xlu1 %4788  ;;  %5515 = vrot.lane.b32.xlu0 %v5455_v16, %s15608_s22  ;;  %v5581_v16 = vsel %vm2947_vm5, %v4161_v7, %v13514_v23  ;;  %v4608_v6 = vsel %vm1888_vm3, %v4605_v18, %v4607_v62  ;;  %v4297_v23 = vmul.f32 %v13668_v25, %v15704_v61  ;;  %v4162_v18 = vmul.f32 %v12917_v17, %v15673_v9 }
 0x5e4   : > { %v5614_v59 = vsel %vm3015_vm7, %v5581_v16, %v13578_v19 }
 0x5e5   : > { %5100 = vrot.lane.b32.xlu1 %v5036_v33, %s8702_s19  ;;  %v5313_v58 = vpop.permute.xlu0 %5312  ;;  %v5647_v57 = vsel %vm3083_vm9, %v5614_v59, %v13616_v36  ;;  %v4298_v36 = vmul.f32 %v13785_v24, %v15705_v20 }
 0x5e6   : > { %v5680_v35 = vsel %vm3151_vm10, %v5647_v57, %v13655_v54 }
 0x5e7   : > { %v5315_v12 = vpop.permute.xlu1 %5314  ;;  %4671 = vrot.lane.b32.xlu0 %v4606_v52, %s8697_s21  ;;  %v5714_v19 = vsel %vm5694_vm13, %v5680_v35, %v13680_v56  ;;  %v15711_v56 = vld [vmem:[#allocation59_spill] sm:$0xff] }
 0x5e8   : > { %v5748_v33 = vsel %vm5728_vm14, %v5714_v19, %v5213_v13  ;;  %v4234_v16 = vmul.f32 %v13668_v25, %v15711_v56  ;;  %v15712_v13 = vld [vmem:[#allocation17_spill] sm:$0xff]  ;;  %v15713_v19 = vrot.slane %v13718_v14, 7  ;;  %v4299_v1 = vmul.f32 %v13812_v50, %v15711_v56 }
 0x5e9   : > { %4673 = vrot.lane.b32.xlu1 %v4608_v6, %s8697_s21  ;;  %v13799_v15 = vpop.permute.xlu0 %4891  ;;  %v5782_v52 = vsel %vm5762_vm1, %v5748_v33, %v5313_v58  ;;  %v5582_v6 = vsel %vm2947_vm5, %v4162_v18, %v13556_v22  ;;  %v4235_v17 = vmul.f32 %v13785_v24, %v15712_v13  ;;  %v4419_v58 = vrot.slane %v13785_v24, 1 }
 0x5ea   : > { %v5615_v9 = vsel %vm3015_vm7, %v5582_v6, %v13591_v26  ;;  %v15714_v26 = vrot.slane %v13668_v25, 1  ;;  %v4267_v6 = vmul.f32 %v13785_v24, %v15709_v29 }
 0x5eb   : > { %v13807_v7 = vpop.permute.xlu1 %4467  ;;  %5228 = vrot.lane.b32.xlu0 %v4297_v23, %s8701_s30  ;;  %v4845_v23 = vrot.slane %v13812_v50, 1  ;;  %v5648_v35 = vsel %vm3083_vm9, %v5615_v9, %v13628_v63 }
 0x5ec   : > { %v5681_v33 = vsel %vm3151_vm10, %v5648_v35, %v13692_v41  ;;  %v4420_v18 = vsel %vm1145_vm4, %v15714_v26, %v4419_v58  ;;  %v15715_v35 = vrot.slane %v13738_v21, 2 }
 0x5ed   : > { %5230 = vrot.lane.b32.xlu1 %v4298_v36, %s8701_s30  ;;  %v5502_v54 = vpop.permute.xlu0 %5501  ;;  %v5715_v63 = vsel %vm5694_vm13, %v5681_v33, %v13723_v3  ;;  %v4846_v41 = vsel %vm1145_vm4, %v4419_v58, %v4845_v23  ;;  %v13882_v33 = vmul.f32 %v13812_v50, %v15703_v37 }
 0x5ee   : > { %v5816_v59 = vsel %vm5796_vm15, %v5782_v52, %v5502_v54  ;;  %v5749_v14 = vsel %vm5728_vm14, %v5715_v63, %v13752_v43  ;;  %v4328_v54 = vmul.f32 %v13785_v24, %v15702_v30 }
 0x5ef   : > { %v5906_v38 = vrot.slane %v5816_v59, 7  ;;  %v13824_v57 = vpop.permute.xlu1 %5086  ;;  %4802 = vrot.lane.b32.xlu0 %v4234_v16, %s8696_s20  ;;  %v5783_v16 = vsel %vm5762_vm1, %v5749_v14, %v5315_v12  ;;  %v5458_v63 = vrot.slane %v13882_v33, 2 }
 0x5f0   : > { %v5456_v9 = vrot.slane %v4328_v54, 2  ;;  %v15716_v54 = vld [vmem:[#allocation58_spill] sm:$0xff] }
 0x5f1   : > { %4804 = vrot.lane.b32.xlu1 %v4235_v17, %s8696_s20  ;;  %v13836_v22 = vpop.permute.xlu0 %4893  ;;  %v5907_v36 = vsel %vm1403_vm2, %v15713_v19, %v5906_v38 }
 0x5f2   : > { %8296 = vmatprep.mubr.msk.f32.mxu1 %vm5934_vm8, %v5907_v36  ;;  %v5457_v19 = vsel %vm1888_vm3, %v15715_v35, %v5456_v9  ;;  %v5037_v36 = vrot.slane %v4267_v6, 2  ;;  %v4110_v6 = vadd.f32 %v13624_v10, %v13762_v46 }
 0x5f3   : > { %v13849_v52 = vpop.permute.xlu1 %4469  ;;  %5328 = vrot.lane.b32.xlu0 %v4420_v18, %s8703_s1 }
 0x5f4   : > { %v4144_v46 = vmax.f32 %v4110_v6, 0.0 }
 0x5f5   : > { %5330 = vrot.lane.b32.xlu1 %v4846_v41, %s8703_s1  ;;  %v5504_v59 = vpop.permute.xlu0 %5503 }
 0x5f6   : > { %v13862_v3 = vsel %vm5796_vm15, %v5783_v16, %v5504_v59  ;;  %v4204_v16 = vmul.f32 %v13785_v24, %v15716_v54  ;;  %v5459_v59 = vsel %vm1888_vm3, %v5456_v9, %v5458_v63 }
 0x5f7   : > { %v5908_v43 = vrot.slane %v13862_v3, 7  ;;  %v13867_v17 = vpop.permute.xlu1 %5088  ;;  %4907 = vrot.lane.b32.xlu0 %v4420_v18, %s8700_s27 }
 0x5f8   : > { %v4609_v35 = vrot.slane %v4204_v16, 2 }
 0x5f9   : > { %4483 = vrot.lane.b32.xlu1 %v4420_v18, %s8695_s18  ;;  %v13871_v30 = vpop.permute.xlu0 %4659  ;;  %v5909_v12 = vsel %vm1403_vm2, %v5906_v38, %v5908_v43  ;;  %v5038_v18 = vsel %vm1888_vm3, %v5035_v4, %v5037_v36  ;;  %v13892_v38 = vmul.f32 %v13812_v50, %v15710_v8  ;;  %v4205_v4 = vmul.f32 %v13812_v50, %v15717_v27 }
 0x5fa   : > { %8297 = vmatmul.mubr.msk.f32.gmra.mxu1 %vm5934_vm8, %v5909_v12  ;;  %v4610_v10 = vsel %vm1888_vm3, %v4607_v62, %v4609_v35 }
 0x5fb   : > { %v13884_v26 = vpop.permute.xlu1 %4661  ;;  %5517 = vrot.lane.b32.xlu0 %v5457_v19, %s15608_s22  ;;  %v5039_v37 = vrot.slane %v13892_v38, 2  ;;  %v4611_v19 = vrot.slane %v4205_v4, 2 }
 0x5fd   : > { %5102 = vrot.lane.b32.xlu1 %v5038_v18, %s8702_s19  ;;  %v5217_v21 = vpop.permute.xlu0 %5216  ;;  %v5040_v12 = vsel %vm1888_vm3, %v5037_v36, %v5039_v37  ;;  %v4612_v16 = vsel %vm1888_vm3, %v4609_v35, %v4611_v19 }
 0x5ff   : > { %v5219_v14 = vpop.permute.xlu1 %5218  ;;  %4909 = vrot.lane.b32.xlu0 %v4846_v41, %s8700_s27 }
 0x601   : > { %4485 = vrot.lane.b32.xlu1 %v4419_v58, %s8695_s18  ;;  %v13903_v8 = vpop.permute.xlu0 %4790  ;;  %v4163_v58 = vmul.f32 %v12947_v28, %v15679_v55 }
 0x603   : > { %v13910_v41 = vpop.permute.xlu1 %4792  ;;  %5519 = vrot.lane.b32.xlu0 %v5459_v59, %s15608_s22  ;;  %v5583_v9 = vsel %vm2947_vm5, %v4163_v58, %v13663_v47  ;;  %v4164_v59 = vmul.f32 %v13060_v49, %v15680_v48 }
 0x604   : > { %v5616_v36 = vsel %vm3015_vm7, %v5583_v9, %v13727_v31  ;;  %v4300_v31 = vmul.f32 %v4144_v46, %v15712_v13 }
 0x605   : > { %5104 = vrot.lane.b32.xlu1 %v5040_v12, %s8702_s19  ;;  %v5317_v18 = vpop.permute.xlu0 %5316  ;;  %v5649_v28 = vsel %vm3083_vm9, %v5616_v36, %v13765_v60  ;;  %v5584_v19 = vsel %vm2947_vm5, %v4164_v59, %v13705_v5 }
 0x606   : > { %v5682_v47 = vsel %vm3151_vm10, %v5649_v28, %v13799_v15  ;;  %v15718_v15 = vld [vmem:[#allocation19_spill] sm:$0xff]  ;;  %v5617_v48 = vsel %vm3015_vm7, %v5584_v19, %v13740_v0 }
 0x607   : > { %v5319_v27 = vpop.permute.xlu1 %5318  ;;  %4675 = vrot.lane.b32.xlu0 %v4610_v10, %s8697_s21  ;;  %v5716_v62 = vsel %vm5694_vm13, %v5682_v47, %v13824_v57  ;;  %v4236_v35 = vmul.f32 %v13812_v50, %v15718_v15  ;;  %v5650_v9 = vsel %vm3083_vm9, %v5617_v48, %v13772_v45 }
 0x608   : > { %v5750_v60 = vsel %vm5728_vm14, %v5716_v62, %v5217_v21  ;;  %v15719_v21 = vld [vmem:[#allocation64_spill] sm:$0xff] }
 0x609   : > { %4677 = vrot.lane.b32.xlu1 %v4612_v16, %s8697_s21  ;;  %v13931_v55 = vpop.permute.xlu0 %4895  ;;  %v5784_v6 = vsel %vm5762_vm1, %v5750_v60, %v5317_v18  ;;  %v4237_v49 = vmul.f32 %v4144_v46, %v15719_v21  ;;  %v4847_v18 = vrot.slane %v4144_v46, 1  ;;  %v5683_v16 = vsel %vm3151_vm10, %v5650_v9, %v13836_v22  ;;  %v8271_v60 = vpop.f32.mrf.mxu1  ;;  %s15763_s21 = sshll.u32 %s15766_s25, 8 }
 0x60a   : > { %v5717_v45 = vsel %vm5694_vm13, %v5683_v16, %v13867_v17  ;;  %v4330_v22 = vmul.f32 %v4144_v46, %v15709_v29  ;;  %v14037_v16 = vld [vmem:[%s14939_s10] ss:$0 sm:$0xff] }
 0x60b   : > { %v13939_v4 = vpop.permute.xlu1 %4471  ;;  %5232 = vrot.lane.b32.xlu0 %v4299_v1, %s8701_s30  ;;  %v4848_v0 = vsel %vm1145_vm4, %v4845_v23, %v4847_v18  ;;  %v5751_v3 = vsel %vm5728_vm14, %v5717_v45, %v5219_v14  ;;  %v15720_v1 = vld [vmem:[#allocation2_spill] sm:$0xff] }
 0x60c   : > { %v5785_v47 = vsel %vm5762_vm1, %v5751_v3, %v5319_v27  ;;  %v5460_v14 = vrot.slane %v4330_v22, 2  ;;  %v6419_v45 = vld [vmem:[%s14942_s13] sm:$0xff]  ;;  %v4165_v3 = vmul.f32 %v13089_v51, %v15689_v39 }
 0x60d   : > { %5234 = vrot.lane.b32.xlu1 %v4300_v31, %s8701_s30  ;;  %v5506_v12 = vpop.permute.xlu0 %5505  ;;  %v4269_v31 = vmul.f32 %v4144_v46, %v15716_v54  ;;  %v15721_v54 = vld [vmem:[#allocation22_spill] sm:$0xff] }
 0x60e   : > { %v5818_v57 = vsel %vm5796_vm15, %v5784_v6, %v5506_v12  ;;  %v5461_v59 = vsel %vm1888_vm3, %v5458_v63, %v5460_v14  ;;  %v5462_v46 = vsel %vm1888_vm3, %v5460_v14, %v15721_v54  ;;  %v6417_v63 = vld [vmem:[%s14940_s11 + $0x8] sm:$0xf] }
 0x60f   : > { %v5910_v58 = vrot.slane %v5818_v57, 7  ;;  %v13953_v10 = vpop.permute.xlu1 %5090  ;;  %4806 = vrot.lane.b32.xlu0 %v4236_v35, %s8696_s20  ;;  %v5041_v12 = vrot.slane %v4269_v31, 2  ;;  %v6065_v57 = vpop.f32.mrf.mxu1  ;;  %8317 = vmatprep.subr.msk.mxu0 %vm756_vm0, %v6417_v63  ;;  %v15725_v31 = vld [vmem:[#allocation21_spill] sm:$0xff] }
 0x610   : > { %8318 = vmatpush3.msk.msra.mxu0 %vm756_vm0, %v6417_v63  ;;  %v6066_v39 = vadd.f32 %v14037_v16, %v6065_v57  ;;  %v15727_v57 = vld [vmem:[#allocation83_spill] sm:$0xff] }
 0x611   : > { %4808 = vrot.lane.b32.xlu1 %v4237_v49, %s8696_s20  ;;  %v13962_v36 = vpop.permute.xlu0 %4897  ;;  %v5911_v5 = vsel %vm1403_vm2, %v5908_v43, %v5910_v58  ;;  %v5273_v43 = vsel %vm1145_vm4, %v4847_v18, %v15720_v1  ;;  %v5042_v19 = vsel %vm1888_vm3, %v5039_v37, %v5041_v12  ;;  %v8274_v33 = vpop.f32.mrf.mxu1  ;;  %v15722_v49 = vld [vmem:[#allocation39_spill] sm:$0xff]  ;;  %v6416_v37 = vld [vmem:[%s14940_s11] sm:$0xff]  ;;  %v15724_v1 = vld [vmem:[#allocation4_spill] sm:$0xff] }
 0x612   : > { %8299 = vmatprep.mubr.msk.f32.mxu1 %vm5934_vm8, %v5911_v5  ;;  %8319 = vmatprep.subr.mxu0 %v6416_v37  ;;  %v6420_v5 = vld [vmem:[%s14942_s13 + $0x8] sm:$0xf] }
 0x613   : > { %v13975_v28 = vpop.permute.xlu1 %4473  ;;  %5332 = vrot.lane.b32.xlu0 %v4848_v0, %s8703_s1  ;;  %8320 = vmatpush3.msra.mxu0 %v6416_v37 }
 0x614   : > { %8369 = vmatprep.subr.msk.mxu1 %vm756_vm0, %v6420_v5 }
 0x615   : > { %5334 = vrot.lane.b32.xlu1 %v5273_v43, %s8703_s1  ;;  %v5508_v50 = vpop.permute.xlu0 %5507  ;;  %8370 = vmatpush3.msk.msra.mxu1 %vm756_vm0, %v6420_v5 }
 0x616   : > { %v13985_v23 = vsel %vm5796_vm15, %v5785_v47, %v5508_v50  ;;  %8371 = vmatprep.subr.mxu1 %v6419_v45  ;;  %v6071_v47 = vadd.f32 %v8271_v60, %v14037_v16  ;;  %v5585_v50 = vsel %vm2947_vm5, %v4165_v3, %v13807_v7 }
 0x617   : > { %v5912_v17 = vrot.slane %v13985_v23, 7  ;;  %v13988_v62 = vpop.permute.xlu1 %5092  ;;  %4911 = vrot.lane.b32.xlu0 %v4848_v0, %s8700_s27  ;;  %v6075_v0 = vpop.f32.mrf.mxu1  ;;  %8372 = vmatpush3.msra.mxu1 %v6419_v45  ;;  %v5618_v51 = vsel %vm3015_vm7, %v5585_v50, %v13871_v30 }
 0x619   : > { %4913 = vrot.lane.b32.xlu1 %v4847_v18, %s8700_s27  ;;  %v13993_v29 = vpop.permute.xlu0 %4663  ;;  %v5913_v27 = vsel %vm1403_vm2, %v5910_v58, %v5912_v17  ;;  %v15723_v18 = vld [vmem:[#allocation61_spill] sm:$0xff]  ;;  %v8277_v22 = vpop.f32.mrf.mxu1 }
 0x61a   : > { %8300 = vmatmul.mubr.msk.f32.gmra.mxu1 %vm5934_vm8, %v5913_v27  ;;  %v5043_v38 = vsel %vm1888_vm3, %v5041_v12, %v15723_v18  ;;  %v5651_v27 = vsel %vm3083_vm9, %v5618_v51, %v13903_v8  ;;  %v6081_v12 = vadd.f32 %v8274_v33, %v14037_v16  ;;  %v6076_v18 = vadd.f32 %v14037_v16, %v6075_v0 }
 0x61b   : > { %v14002_v6 = vpop.permute.xlu1 %4665  ;;  %5521 = vrot.lane.b32.xlu0 %v5461_v59, %s15608_s22  ;;  %v15726_v59 = vld [vmem:[#allocation38_spill] sm:$0xff]  ;;  %v6085_v54 = vpop.f32.mrf.mxu1  ;;  %v5684_v7 = vsel %vm3151_vm10, %v5651_v27, %v13931_v55  ;;  %v6091_v45 = vadd.f32 %v8277_v22, %v14037_v16 }
 0x61c   : > { %v5718_v30 = vsel %vm5694_vm13, %v5684_v7, %v13953_v10  ;;  %v6227_v5 = vmax.f32 %v6081_v12, 0.0 }
 0x61d   : > { %5523 = vrot.lane.b32.xlu1 %v5462_v46, %s15608_s22  ;;  %v5221_v35 = vpop.permute.xlu0 %5220  ;;  %v6225_v46 = vmax.f32 %v6071_v47, 0.0  ;;  %v8280_v8 = vpop.f32.mrf.mxu1  ;;  %v6086_v47 = vadd.f32 %v14037_v16, %v6085_v54 }
 0x61e   : > { %v5752_v63 = vsel %vm5728_vm14, %v5718_v30, %v5221_v35 }
 0x61f   : > { %v14011_v58 = vpop.permute.xlu1 %5222  ;;  %5106 = vrot.lane.b32.xlu0 %v5042_v19, %s8702_s19  ;;  %v6095_v0 = vpop.f32.mrf.mxu1 }
 0x621   : > { %5236 = vrot.lane.b32.xlu1 %v15722_v49, %s8701_s30  ;;  %v14019_v48 = vpop.permute.xlu0 %4794  ;;  %v6224_v49 = vmax.f32 %v6066_v39, 0.0  ;;  %v8283_v51 = vpop.f32.mrf.mxu1  ;;  %v6101_v39 = vadd.f32 %v8280_v8, %v14037_v16 }
 0x623   : > { %v14028_v9 = vpop.permute.xlu1 %4796  ;;  %5108 = vrot.lane.b32.xlu0 %v5043_v38, %s8702_s19  ;;  %v15728_v38 = vld [vmem:[#allocation41_spill] sm:$0xff]  ;;  %v6105_v7 = vpop.f32.mrf.mxu1  ;;  %v6231_v12 = vmax.f32 %v6101_v39, 0.0  ;;  %s14740_s19 = scalar_lea.vmem %s14946_s17, %s15763_s21 }
 0x624   : > { %v4166_v55 = vmul.f32 %v15728_v38, %v15690_v34 }
 0x625   : > { %8515 = vrot.lane.b32.xlu1 %v15724_v1, %s8703_s1  ;;  %v5321_v43 = vpop.permute.xlu0 %5320 }
 0x626   : > { %v5786_v37 = vsel %vm5762_vm1, %v5752_v63, %v5321_v43  ;;  %v5586_v3 = vsel %vm2947_vm5, %v4166_v55, %v13849_v52  ;;  %v6226_v43 = vmax.f32 %v6076_v18, 0.0 }
 0x627   : > { %v5323_v14 = vpop.permute.xlu1 %5322  ;;  %5238 = vrot.lane.b32.xlu0 %v15725_v31, %s8701_s30  ;;  %v5619_v34 = vsel %vm3015_vm7, %v5586_v3, %v13884_v26  ;;  %v6229_v26 = vmax.f32 %v6091_v45, 0.0 }
 0x628   : > { %v5652_v50 = vsel %vm3083_vm9, %v5619_v34, %v13910_v41 }
 0x629   : > { %5527 = vrot.lane.b32.xlu1 %v15726_v59, %s15608_s22  ;;  %v14060_v60 = vpop.permute.xlu0 %4899  ;;  %v5685_v22 = vsel %vm3151_vm10, %v5652_v50, %v13962_v36  ;;  %v6096_v59 = vadd.f32 %v14037_v16, %v6095_v0 }
 0x62a   : > { %v5719_v41 = vsel %vm5694_vm13, %v5685_v22, %v13988_v62  ;;  %v6111_v62 = vadd.f32 %v8283_v51, %v14037_v16 }
 0x62b   : > { %v14067_v19 = vpop.permute.xlu1 %4475  ;;  %5525 = vrot.lane.b32.xlu0 %v15727_v57, %s15608_s22  ;;  %v5753_v23 = vsel %vm5728_vm14, %v5719_v41, %v14011_v58  ;;  %v6230_v8 = vmax.f32 %v6096_v59, 0.0  ;;  %v6106_v58 = vadd.f32 %v14037_v16, %v6105_v7 }
 0x62c   : > { %v5787_v36 = vsel %vm5762_vm1, %v5753_v23, %v5323_v14  ;;  %v6233_v18 = vmax.f32 %v6111_v62, 0.0 }
 0x62d   : > { %v5510_v33 = vpop.permute.xlu0 %5509  ;;  %6290 = vrot.lane.b32.xlu1 %v6225_v46, %s8695_s18 }
 0x62e   : > { %v5820_v10 = vsel %vm5796_vm15, %v5786_v37, %v5510_v33  ;;  %v6232_v33 = vmax.f32 %v6106_v58, 0.0 }
 0x62f   : > { %v5914_v35 = vrot.slane %v5820_v10, 7  ;;  %v14081_v1 = vpop.permute.xlu1 %5094  ;;  %6288 = vrot.lane.b32.xlu0 %v6224_v49, %s8695_s18 }
 0x631   : > { %v14089_v31 = vpop.permute.xlu0 %4901  ;;  %6294 = vrot.lane.b32.xlu1 %v6227_v5, %s8695_s18  ;;  %v5915_v52 = vsel %vm1403_vm2, %v5912_v17, %v5914_v35  ;;  %v6228_v17 = vmax.f32 %v6086_v47, 0.0 }
 0x632   : > { %8302 = vmatprep.mubr.msk.f32.mxu1 %vm5934_vm8, %v5915_v52 }
 0x633   : > { %v14101_v27 = vpop.permute.xlu1 %4477  ;;  %6292 = vrot.lane.b32.xlu0 %v6226_v43, %s8695_s18  ;;  %v4167_v43 = vmul.f32 %v13231_v2, %v15697_v42  ;;  %v15729_v42 = vld [vmem:[#allocation62_spill] sm:$0xff] }
 0x635   : > { %v5512_v54 = vpop.permute.xlu0 %5511  ;;  %6298 = vrot.lane.b32.xlu1 %v6229_v26, %s8695_s18  ;;  %v5587_v50 = vsel %vm2947_vm5, %v4167_v43, %v13939_v4  ;;  %v4168_v4 = vmul.f32 %v15729_v42, %v15698_v11  ;;  %v4169_v43 = vmul.f32 %v13375_v40, %v15704_v61  ;;  %v4170_v40 = vmul.f32 %v13492_v53, %v15705_v20 }
 0x636   : > { %v5821_v46 = vsel %vm5796_vm15, %v5787_v36, %v5512_v54  ;;  %v5620_v22 = vsel %vm3015_vm7, %v5587_v50, %v13993_v29 }
 0x637   : > { %v5916_v30 = vrot.slane %v5821_v46, 7  ;;  %v5097_v57 = vpop.permute.xlu1 %5096  ;;  %6296 = vrot.lane.b32.xlu0 %v6228_v17, %s8695_s18  ;;  %v5653_v51 = vsel %vm3083_vm9, %v5620_v22, %v14019_v48  ;;  %v5588_v48 = vsel %vm2947_vm5, %v4168_v4, %v13975_v28  ;;  %v5589_v50 = vsel %vm2947_vm5, %v4169_v43, %v14067_v19 }
 0x638   : > { %v5686_v39 = vsel %vm3151_vm10, %v5653_v51, %v14060_v60 }
 0x639   : > { %v14113_v63 = vpop.permute.xlu0 %4667  ;;  %6302 = vrot.lane.b32.xlu1 %v6231_v12, %s8695_s18  ;;  %v5917_v14 = vsel %vm1403_vm2, %v5914_v35, %v5916_v30  ;;  %v5720_v41 = vsel %vm5694_vm13, %v5686_v39, %v14081_v1  ;;  %v5621_v1 = vsel %vm3015_vm7, %v5588_v48, %v14002_v6 }
 0x63a   : > { %v8286_v49 = vpop.f32.mrf.mxu1  ;;  %8303 = vmatmul.mubr.msk.f32.gmra.mxu1 %vm5934_vm8, %v5917_v14  ;;  %v5654_v54 = vsel %vm3083_vm9, %v5621_v1, %v14028_v9  ;;  %v5622_v22 = vsel %vm3015_vm7, %v5589_v50, %v14113_v63  ;;  %v5590_v63 = vsel %vm2947_vm5, %v4170_v40, %v14101_v27 }
 0x63b   : > { %v6121_v38 = vadd.f32 %v8286_v49, %v14037_v16  ;;  %v14119_v55 = vpop.permute.xlu1 %4669  ;;  %6300 = vrot.lane.b32.xlu0 %v6230_v8, %s8695_s18  ;;  %v5687_v11 = vsel %vm3151_vm10, %v5654_v54, %v14089_v31 }
 0x63c   : > { %v6115_v37 = vpop.f32.mrf.mxu1  ;;  %v5721_v12 = vsel %vm5694_vm13, %v5687_v11, %v5097_v57 }
 0x63d   : > { %v6116_v10 = vadd.f32 %v14037_v16, %v6115_v37  ;;  %v5225_v5 = vpop.permute.xlu0 %5224  ;;  %6306 = vrot.lane.b32.xlu1 %v6233_v18, %s8695_s18  ;;  %v6235_v45 = vmax.f32 %v6121_v38, 0.0 }
 0x63e   : > { %v5754_v2 = vsel %vm5728_vm14, %v5720_v41, %v5225_v5 }
 0x63f   : > { %v5227_v3 = vpop.permute.xlu1 %5226  ;;  %6304 = vrot.lane.b32.xlu0 %v6232_v33, %s8695_s18  ;;  %v6234_v35 = vmax.f32 %v6116_v10, 0.0 }
 0x640   : > { %v5755_v28 = vsel %vm5728_vm14, %v5721_v12, %v5227_v3 }
 0x641   : > { %v4799_v34 = vpop.permute.xlu0 %4798  ;;  %6310 = vrot.lane.b32.xlu1 %v6235_v45, %s8695_s18 }
 0x642   : > { %v5655_v51 = vsel %vm3083_vm9, %v5622_v22, %v4799_v34 }
 0x643   : > { %v14126_v0 = vpop.permute.xlu1 %4800  ;;  %6308 = vrot.lane.b32.xlu0 %v6234_v35, %s8695_s18 }
 0x645   : > { %v5325_v47 = vpop.permute.xlu0 %5324 }
 0x646   : > { %v5788_v17 = vsel %vm5762_vm1, %v5754_v2, %v5325_v47 }
 0x647   : > { %v5327_v52 = vpop.permute.xlu1 %5326 }
 0x648   : > { %v5789_v8 = vsel %vm5762_vm1, %v5755_v28, %v5327_v52 }
 0x649   : > { %v4904_v26 = vpop.permute.xlu0 %4903 }
 0x64a   : > { %v5688_v41 = vsel %vm3151_vm10, %v5655_v51, %v4904_v26  ;;  %v5623_v26 = vsel %vm3015_vm7, %v5590_v63, %v14119_v55  ;;  %v4174_v63 = vmul.f32 %v13785_v24, %v15719_v21 }
 0x64b   : > { %v14141_v23 = vpop.permute.xlu1 %4479 }
 0x64d   : > { %v5514_v29 = vpop.permute.xlu0 %5513 }
 0x64e   : > { %v5822_v59 = vsel %vm5796_vm15, %v5788_v17, %v5514_v29 }
 0x64f   : > { %v5918_v36 = vrot.slane %v5822_v59, 7  ;;  %v5099_v60 = vpop.permute.xlu1 %5098  ;;  %v5656_v59 = vsel %vm3083_vm9, %v5623_v26, %v14126_v0 }
 0x650   : > { %v5722_v2 = vsel %vm5694_vm13, %v5688_v41, %v5099_v60 }
 0x651   : > { %v4906_v7 = vpop.permute.xlu0 %4905  ;;  %v5919_v46 = vsel %vm1403_vm2, %v5916_v30, %v5918_v36 }
 0x652   : > { %8305 = vmatprep.mubr.msk.f32.mxu1 %vm5934_vm8, %v5919_v46  ;;  %v5689_v53 = vsel %vm3151_vm10, %v5656_v59, %v4906_v7 }
 0x653   : > { %v14159_v62 = vpop.permute.xlu1 %4481 }
 0x655   : > { %v5516_v6 = vpop.permute.xlu0 %5515 }
 0x656   : > { %v5823_v58 = vsel %vm5796_vm15, %v5789_v8, %v5516_v6 }
 0x657   : > { %v5920_v9 = vrot.slane %v5823_v58, 7  ;;  %v5101_v14 = vpop.permute.xlu1 %5100 }
 0x658   : > { %v5723_v20 = vsel %vm5694_vm13, %v5689_v53, %v5101_v14 }
 0x659   : > { %v14164_v49 = vpop.permute.xlu0 %4671  ;;  %v5921_v30 = vsel %vm1403_vm2, %v5918_v36, %v5920_v9 }
 0x65a   : > { %v8289_v31 = vpop.f32.mrf.mxu1  ;;  %8306 = vmatmul.mubr.msk.f32.gmra.mxu1 %vm5934_vm8, %v5921_v30 }
 0x65b   : > { %v6131_v57 = vadd.f32 %v8289_v31, %v14037_v16  ;;  %v14169_v18 = vpop.permute.xlu1 %4673 }
 0x65c   : > { %v6125_v38 = vpop.f32.mrf.mxu1 }
 0x65d   : > { %v6237_v37 = vmax.f32 %v6131_v57, 0.0  ;;  %v6126_v33 = vadd.f32 %v14037_v16, %v6125_v38  ;;  %v5229_v10 = vpop.permute.xlu0 %5228 }
 0x65e   : > { %v5756_v4 = vsel %vm5728_vm14, %v5722_v2, %v5229_v10 }
 0x65f   : > { %v6236_v5 = vmax.f32 %v6126_v33, 0.0  ;;  %v5231_v45 = vpop.permute.xlu1 %5230  ;;  %6314 = vrot.lane.b32.xlu1 %v6237_v37, %s8695_s18  ;;  %v4171_v37 = vmul.f32 %v13519_v32, %v15711_v56 }
 0x660   : > { %v5757_v27 = vsel %vm5728_vm14, %v5723_v20, %v5231_v45 }
 0x661   : > { %v4803_v3 = vpop.permute.xlu0 %4802  ;;  %6312 = vrot.lane.b32.xlu0 %v6236_v5, %s8695_s18  ;;  %v5591_v10 = vsel %vm2947_vm5, %v4171_v37, %v14141_v23  ;;  %v4172_v5 = vmul.f32 %v13641_v44, %v15712_v13 }
 0x662   : > { %v5624_v43 = vsel %vm3015_vm7, %v5591_v10, %v14164_v49 }
 0x663   : > { %v4805_v35 = vpop.permute.xlu1 %4804  ;;  %v5657_v50 = vsel %vm3083_vm9, %v5624_v43, %v4803_v3 }
 0x665   : > { %v5329_v47 = vpop.permute.xlu0 %5328 }
 0x666   : > { %v5790_v61 = vsel %vm5762_vm1, %v5756_v4, %v5329_v47  ;;  %v5592_v47 = vsel %vm2947_vm5, %v4172_v5, %v14159_v62 }
 0x667   : > { %v5331_v52 = vpop.permute.xlu1 %5330  ;;  %v5625_v32 = vsel %vm3015_vm7, %v5592_v47, %v14169_v18  ;;  %v15731_v47 = vld [vmem:[#allocation11_spill] sm:$0xff] }
 0x668   : > { %v5791_v1 = vsel %vm5762_vm1, %v5757_v27, %v5331_v52  ;;  %v5658_v23 = vsel %vm3083_vm9, %v5625_v32, %v4805_v35 }
 0x669   : > { %v4908_v39 = vpop.permute.xlu0 %4907 }
 0x66a   : > { %v5690_v56 = vsel %vm3151_vm10, %v5657_v50, %v4908_v39 }
 0x66b   : > { %v14183_v42 = vpop.permute.xlu1 %4483 }
 0x66d   : > { %v5518_v19 = vpop.permute.xlu0 %5517 }
 0x66e   : > { %v5824_v17 = vsel %vm5796_vm15, %v5790_v61, %v5518_v19 }
 0x66f   : > { %v5922_v34 = vrot.slane %v5824_v17, 7  ;;  %v5103_v29 = vpop.permute.xlu1 %5102  ;;  %v4173_v17 = vmul.f32 %v13668_v25, %v15718_v15 }
 0x670   : > { %v5724_v22 = vsel %vm5694_vm13, %v5690_v56, %v5103_v29  ;;  %v15732_v56 = vld [vmem:[#allocation84_spill] sm:$0xff] }
 0x671   : > { %v4910_v48 = vpop.permute.xlu0 %4909  ;;  %v5923_v36 = vsel %vm1403_vm2, %v5920_v9, %v5922_v34  ;;  %v5593_v26 = vsel %vm2947_vm5, %v4173_v17, %v14183_v42  ;;  %v15738_v17 = vld [vmem:[#allocation90_spill] sm:$0xff] }
 0x672   : > { %8308 = vmatprep.mubr.msk.f32.mxu1 %vm5934_vm8, %v5923_v36  ;;  %v5691_v13 = vsel %vm3151_vm10, %v5658_v23, %v4910_v48 }
 0x673   : > { %v4486_v60 = vpop.permute.xlu1 %4485 }
 0x674   : > { %v5594_v59 = vsel %vm2947_vm5, %v4174_v63, %v4486_v60 }
 0x675   : > { %v5520_v54 = vpop.permute.xlu0 %5519 }
 0x676   : > { %v5825_v55 = vsel %vm5796_vm15, %v5791_v1, %v5520_v54 }
 0x677   : > { %v5924_v46 = vrot.slane %v5825_v55, 7  ;;  %v5105_v11 = vpop.permute.xlu1 %5104 }
 0x678   : > { %v5725_v51 = vsel %vm5694_vm13, %v5691_v13, %v5105_v11 }
 0x679   : > { %v4676_v0 = vpop.permute.xlu0 %4675  ;;  %v5925_v12 = vsel %vm1403_vm2, %v5922_v34, %v5924_v46 }
 0x67a   : > { %v8292_v28 = vpop.f32.mrf.mxu1  ;;  %8309 = vmatmul.mubr.msk.f32.gmra.mxu1 %vm5934_vm8, %v5925_v12  ;;  %v5626_v36 = vsel %vm3015_vm7, %v5593_v26, %v4676_v0 }
 0x67b   : > { %v6141_v7 = vadd.f32 %v8292_v28, %v14037_v16  ;;  %v4678_v8 = vpop.permute.xlu1 %4677 }
 0x67c   : > { %v6135_v6 = vpop.f32.mrf.mxu1  ;;  %v5627_v53 = vsel %vm3015_vm7, %v5594_v59, %v4678_v8 }
 0x67d   : > { %v6239_v58 = vmax.f32 %v6141_v7, 0.0  ;;  %v6136_v9 = vadd.f32 %v14037_v16, %v6135_v6  ;;  %v5233_v14 = vpop.permute.xlu0 %5232 }
 0x67e   : > { %v5758_v49 = vsel %vm5728_vm14, %v5724_v22, %v5233_v14  ;;  %v15733_v22 = vld [vmem:[#allocation85_spill] sm:$0xff] }
 0x67f   : > { %v6238_v30 = vmax.f32 %v6136_v9, 0.0  ;;  %v5235_v31 = vpop.permute.xlu1 %5234  ;;  %6318 = vrot.lane.b32.xlu1 %v6239_v58, %s8695_s18 }
 0x680   : > { %v5759_v41 = vsel %vm5728_vm14, %v5725_v51, %v5235_v31  ;;  %v15734_v51 = vld [vmem:[#allocation86_spill] sm:$0xff] }
 0x681   : > { %v4807_v57 = vpop.permute.xlu0 %4806  ;;  %6316 = vrot.lane.b32.xlu0 %v6238_v30, %s8695_s18 }
 0x682   : > { %v5659_v25 = vsel %vm3083_vm9, %v5626_v36, %v4807_v57 }
 0x683   : > { %v4809_v38 = vpop.permute.xlu1 %4808 }
 0x684   : > { %v5660_v15 = vsel %vm3083_vm9, %v5627_v53, %v4809_v38  ;;  %v15741_v53 = vld [vmem:[#allocation93_spill] sm:$0xff] }
 0x685   : > { %v5333_v33 = vpop.permute.xlu0 %5332 }
 0x686   : > { %v5792_v62 = vsel %vm5762_vm1, %v5758_v49, %v5333_v33 }
 0x687   : > { %v5335_v45 = vpop.permute.xlu1 %5334 }
 0x688   : > { %v5793_v39 = vsel %vm5762_vm1, %v5759_v41, %v5335_v45  ;;  %v15730_v45 = vld [vmem:[#allocation12_spill] sm:$0xff] }
 0x689   : > { %v4912_v52 = vpop.permute.xlu0 %4911 }
 0x68a   : > { %v5692_v21 = vsel %vm3151_vm10, %v5659_v25, %v4912_v52 }
 0x68b   : > { %v4914_v44 = vpop.permute.xlu1 %4913 }
 0x68c   : > { %v5693_v20 = vsel %vm3151_vm10, %v5660_v15, %v4914_v44 }
 0x68d   : > { %v5522_v3 = vpop.permute.xlu0 %5521 }
 0x68e   : > { %v5826_v18 = vsel %vm5796_vm15, %v5792_v62, %v5522_v3  ;;  %v15735_v3 = vld [vmem:[#allocation87_spill] sm:$0xff] }
 0x68f   : > { %v5926_v2 = vrot.slane %v5826_v18, 7  ;;  %v5524_v35 = vpop.permute.xlu1 %5523 }
 0x690   : > { %v5827_v4 = vsel %vm5796_vm15, %v5793_v39, %v5524_v35 }
 0x691   : > { %v5928_v40 = vrot.slane %v5827_v4, 7  ;;  %v5107_v61 = vpop.permute.xlu0 %5106  ;;  %v5927_v19 = vsel %vm1403_vm2, %v5924_v46, %v5926_v2  ;;  %v15737_v4 = vld [vmem:[#allocation89_spill] sm:$0xff] }
 0x692   : > { %8311 = vmatprep.mubr.msk.f32.mxu1 %vm5934_vm8, %v5927_v19  ;;  %v5726_v1 = vsel %vm5694_vm13, %v5692_v21, %v5107_v61 }
 0x693   : > { %v5237_v34 = vpop.permute.xlu1 %5236  ;;  %v5929_v29 = vsel %vm1403_vm2, %v5926_v2, %v5928_v40  ;;  %v15736_v2 = vld [vmem:[#allocation88_spill] sm:$0xff] }
 0x694   : > { %8312 = vmatmul.mubr.msk.f32.gmra.mxu1 %vm5934_vm8, %v5929_v29  ;;  %v5760_v28 = vsel %vm5728_vm14, %v5726_v1, %v5237_v34  ;;  %v15739_v34 = vld [vmem:[#allocation91_spill] sm:$0xff] }
 0x695   : > { %v5109_v48 = vpop.permute.xlu0 %5108 }
 0x696   : > { %v5727_v42 = vsel %vm5694_vm13, %v5693_v20, %v5109_v48  ;;  %v15740_v48 = vld [vmem:[#allocation92_spill] sm:$0xff] }
 0x697   : > { %v8516_v24 = vpop.permute.xlu1 %8515 }
 0x698   : > { %v8518_v27 = vunpack.i.h.bf16 %v8516_v24  ;;  %v8517_v60 = vunpack.i.l.bf16 %v8516_v24 }
 0x699   : > { %v5239_v54 = vpop.permute.xlu0 %5238 }
 0x69a   : > { %v5761_v55 = vsel %vm5728_vm14, %v5727_v42, %v5239_v54  ;;  %v8295_v46 = vpop.f32.mrf.mxu1  ;;  %v5794_v9 = vsel %vm5762_vm1, %v5760_v28, %v8517_v60  ;;  %v15742_v54 = vld [vmem:[#allocation94_spill] sm:$0xff] }
 0x69b   : > { %v6151_v11 = vadd.f32 %v8295_v46, %v14037_v16  ;;  %v5528_v0 = vpop.permute.xlu1 %5527  ;;  %v5795_v12 = vsel %vm5762_vm1, %v5761_v55, %v8518_v27  ;;  %v15743_v46 = vld [vmem:[#allocation95_spill] sm:$0xff] }
 0x69c   : > { %v5829_v7 = vsel %vm5796_vm15, %v5795_v12, %v5528_v0  ;;  %v6145_v8 = vpop.f32.mrf.mxu1 }
 0x69d   : > { %v6241_v6 = vmax.f32 %v6151_v11, 0.0  ;;  %v6146_v58 = vadd.f32 %v14037_v16, %v6145_v8  ;;  %v5526_v14 = vpop.permute.xlu0 %5525  ;;  %v5932_v31 = vrot.slane %v5829_v7, 7 }
 0x69e   : > { %v5828_v30 = vsel %vm5796_vm15, %v5794_v9, %v5526_v14  ;;  %v15744_v14 = vld [vmem:[#allocation96_spill] sm:$0xff] }
 0x69f   : > { %v6240_v57 = vmax.f32 %v6146_v58, 0.0  ;;  %v5930_v38 = vrot.slane %v5828_v30, 7  ;;  %v6291_v37 = vpop.permute.xlu1 %6290  ;;  %6322 = vrot.lane.b32.xlu1 %v6241_v6, %s8695_s18 }
 0x6a0   : > { %v14271_v50 = vsel %vm2947_vm5, %v15731_v47, %v6291_v37 }
 0x6a1   : > { %6320 = vrot.lane.b32.xlu0 %v6240_v57, %s8695_s18  ;;  %v6289_v33 = vpop.permute.xlu0 %6288  ;;  %v5931_v10 = vsel %vm1403_vm2, %v5928_v40, %v5930_v38  ;;  %v5933_v5 = vsel %vm1403_vm2, %v5930_v38, %v5932_v31  ;;  %v15745_v31 = vld [vmem:[#allocation97_spill] sm:$0xff] }
 0x6a2   : > { %v14266_v43 = vsel %vm2947_vm5, %v15730_v45, %v6289_v33  ;;  %8314 = vmatprep.mubr.msk.f32.mxu1 %vm5934_vm8, %v5931_v10 }
 0x6a3   : > { %8315 = vmatmul.mubr.msk.f32.gmra.mxu1 %vm5934_vm8, %v5933_v5  ;;  %v6295_v52 = vpop.permute.xlu1 %6294  ;;  %8321 = vmatprep.mubr.msk.f32.mxu0 %vm2981_vm6, %v14266_v43 }
 0x6a4   : > { %8322 = vmatmul.mubr.msk.f32.vlgmr.msra.gmra.mxu0 %vm2981_vm6, %v14271_v50  ;;  %8373 = vmatprep.mubr.msk.f32.mxu1 %vm2981_vm6, %v14266_v43  ;;  %v14286_v44 = vsel %vm2947_vm5, %v15733_v22, %v6295_v52  ;;  %v15747_v22 = vld [vmem:[#allocation99_spill] sm:$0xff] }
 0x6a5   : > { %v6293_v32 = vpop.permute.xlu0 %6292 }
 0x6a6   : > { %v14282_v23 = vsel %vm2947_vm5, %v15732_v56, %v6293_v32  ;;  %v15746_v32 = vld [vmem:[#allocation98_spill] sm:$0xff] }
 0x6a7   : > { %v6299_v13 = vpop.permute.xlu1 %6298  ;;  %8324 = vmatprep.mubr.msk.f32.mxu0 %vm2981_vm6, %v14282_v23  ;;  %8374 = vmatmul.mubr.msk.f32.vlgmr.msra.gmra.mxu1 %vm2981_vm6, %v14271_v50 }
 0x6a8   : > { %8325 = vmatmul.mubr.msk.f32.gmra.mxu0 %vm2981_vm6, %v14286_v44  ;;  %8376 = vmatprep.mubr.msk.f32.mxu1 %vm2981_vm6, %v14282_v23  ;;  %v14302_v41 = vsel %vm2947_vm5, %v15735_v3, %v6299_v13 }
 0x6a9   : > { %v6297_v49 = vpop.permute.xlu0 %6296 }
 0x6aa   : > { %v14298_v62 = vsel %vm2947_vm5, %v15734_v51, %v6297_v49  ;;  %v6423_v49 = vld [vmem:[%s14944_s15 + $0x8] sm:$0xf] }
 0x6ab   : > { %v6303_v18 = vpop.permute.xlu1 %6302  ;;  %8327 = vmatprep.mubr.msk.f32.mxu0 %vm2981_vm6, %v14298_v62  ;;  %8377 = vmatmul.mubr.msk.f32.gmra.mxu1 %vm2981_vm6, %v14286_v44 }
 0x6ac   : > { %8328 = vmatmul.mubr.msk.f32.gmra.mxu0 %vm2981_vm6, %v14302_v41  ;;  %8379 = vmatprep.mubr.msk.f32.mxu1 %vm2981_vm6, %v14298_v62  ;;  %v14318_v40 = vsel %vm2947_vm5, %v15737_v4, %v6303_v18 }
 0x6ad   : > { %v6301_v39 = vpop.permute.xlu0 %6300  ;;  %8421 = vmatprep.subr.msk.mxu0 %vm756_vm0, %v6423_v49 }
 0x6ae   : > { %v14314_v35 = vsel %vm2947_vm5, %v15736_v2, %v6301_v39  ;;  %8422 = vmatpush3.msk.msra.mxu0 %vm756_vm0, %v6423_v49  ;;  %v15754_v49 = vld [vmem:[#allocation25_spill] sm:$0xff] }
 0x6af   : > { %v6307_v61 = vpop.permute.xlu1 %6306  ;;  %8330 = vmatprep.mubr.msk.f32.mxu0 %vm2981_vm6, %v14314_v35  ;;  %8380 = vmatmul.mubr.msk.f32.gmra.mxu1 %vm2981_vm6, %v14302_v41 }
 0x6b0   : > { %8331 = vmatmul.mubr.msk.f32.gmra.mxu0 %vm2981_vm6, %v14318_v40  ;;  %8382 = vmatprep.mubr.msk.f32.mxu1 %vm2981_vm6, %v14314_v35  ;;  %v14334_v29 = vsel %vm2947_vm5, %v15739_v34, %v6307_v61 }
 0x6b1   : > { %v6305_v19 = vpop.permute.xlu0 %6304 }
 0x6b2   : > { %v14330_v63 = vsel %vm2947_vm5, %v15738_v17, %v6305_v19  ;;  %v15748_v17 = vld [vmem:[#allocation100_spill] sm:$0xff] }
 0x6b3   : > { %8333 = vmatprep.mubr.msk.f32.mxu0 %vm2981_vm6, %v14330_v63  ;;  %8383 = vmatmul.mubr.msk.f32.gmra.mxu1 %vm2981_vm6, %v14318_v40  ;;  %v6311_v26 = vpop.permute.xlu1 %6310 }
 0x6b4   : > { %8334 = vmatmul.mubr.msk.f32.gmra.mxu0 %vm2981_vm6, %v14334_v29  ;;  %8385 = vmatprep.mubr.msk.f32.mxu1 %vm2981_vm6, %v14330_v63  ;;  %v14350_v25 = vsel %vm2947_vm5, %v15741_v53, %v6311_v26  ;;  %v15749_v26 = vld [vmem:[#allocation101_spill] sm:$0xff] }
 0x6b5   : > { %v6309_v59 = vpop.permute.xlu0 %6308 }
 0x6b6   : > { %v14346_v36 = vsel %vm2947_vm5, %v15740_v48, %v6309_v59  ;;  %v6422_v48 = vld [vmem:[%s14944_s15] sm:$0xff] }
 0x6b7   : > { %8336 = vmatprep.mubr.msk.f32.mxu0 %vm2981_vm6, %v14346_v36  ;;  %8386 = vmatmul.mubr.msk.f32.gmra.mxu1 %vm2981_vm6, %v14334_v29 }
 0x6b8   : > { %8337 = vmatmul.mubr.msk.f32.gmra.mxu0 %vm2981_vm6, %v14350_v25  ;;  %8388 = vmatprep.mubr.msk.f32.mxu1 %vm2981_vm6, %v14346_v36 }
 0x6b9   : > { %8423 = vmatprep.subr.mxu0 %v6422_v48 }
 0x6ba   : > { %v8298_v15 = vpop.f32.mrf.mxu1  ;;  %8424 = vmatpush3.msra.mxu0 %v6422_v48 }
 0x6bb   : > { %v6161_v24 = vadd.f32 %v8298_v15, %v14037_v16  ;;  %8389 = vmatmul.mubr.msk.f32.gmra.mxu1 %vm2981_vm6, %v14350_v25 }
 0x6bc   : > { %v6155_v21 = vpop.f32.mrf.mxu1 }
 0x6bd   : > { %v6243_v20 = vmax.f32 %v6161_v24, 0.0  ;;  %v6156_v27 = vadd.f32 %v14037_v16, %v6155_v21 }
 0x6bf   : > { %v6242_v1 = vmax.f32 %v6156_v27, 0.0  ;;  %6326 = vrot.lane.b32.xlu1 %v6243_v20, %s8695_s18 }
 0x6c1   : > { %6324 = vrot.lane.b32.xlu0 %v6242_v1, %s8695_s18 }
 0x6d1   : > { %v6315_v42 = vpop.permute.xlu1 %6314 }
 0x6d2   : > { %v14372_v11 = vsel %vm2947_vm5, %v15743_v46, %v6315_v42 }
 0x6d3   : > { %v6313_v60 = vpop.permute.xlu0 %6312 }
 0x6d4   : > { %v14368_v55 = vsel %vm2947_vm5, %v15742_v54, %v6313_v60  ;;  %v15750_v60 = vld [vmem:[#allocation102_spill] sm:$0xff] }
 0x6d5   : > { %8339 = vmatprep.mubr.msk.f32.mxu0 %vm2981_vm6, %v14368_v55  ;;  %8391 = vmatprep.mubr.msk.f32.mxu1 %vm2981_vm6, %v14368_v55 }
 0x6d6   : > { %8340 = vmatmul.mubr.msk.f32.gmra.mxu0 %vm2981_vm6, %v14372_v11  ;;  %8392 = vmatmul.mubr.msk.f32.gmra.mxu1 %vm2981_vm6, %v14372_v11 }
 0x6da   : > { %v8301_v0 = vpop.f32.mrf.mxu1 }
 0x6db   : > { %v6171_v12 = vadd.f32 %v8301_v0, %v14037_v16  ;;  %v15751_v0 = vld [vmem:[#allocation103_spill] sm:$0xff] }
 0x6dc   : > { %v6165_v28 = vpop.f32.mrf.mxu1 }
 0x6dd   : > { %v6245_v7 = vmax.f32 %v6171_v12, 0.0  ;;  %v6166_v8 = vadd.f32 %v14037_v16, %v6165_v28 }
 0x6df   : > { %v6244_v6 = vmax.f32 %v6166_v8, 0.0  ;;  %6330 = vrot.lane.b32.xlu1 %v6245_v7, %s8695_s18 }
 0x6e1   : > { %6328 = vrot.lane.b32.xlu0 %v6244_v6, %s8695_s18 }
 0x6f1   : > { %v6319_v58 = vpop.permute.xlu1 %6318 }
 0x6f2   : > { %v14392_v57 = vsel %vm2947_vm5, %v15745_v31, %v6319_v58 }
 0x6f3   : > { %v6317_v9 = vpop.permute.xlu0 %6316 }
 0x6f4   : > { %v14388_v30 = vsel %vm2947_vm5, %v15744_v14, %v6317_v9 }
 0x6f5   : > { %8342 = vmatprep.mubr.msk.f32.mxu0 %vm2981_vm6, %v14388_v30  ;;  %8394 = vmatprep.mubr.msk.f32.mxu1 %vm2981_vm6, %v14388_v30 }
 0x6f6   : > { %8343 = vmatmul.mubr.msk.f32.gmra.mxu0 %vm2981_vm6, %v14392_v57  ;;  %8395 = vmatmul.mubr.msk.f32.gmra.mxu1 %vm2981_vm6, %v14392_v57 }
 0x6fa   : > { %v8304_v38 = vpop.f32.mrf.mxu1 }
 0x6fb   : > { %v6181_v37 = vadd.f32 %v8304_v38, %v14037_v16 }
 0x6fc   : > { %v6175_v33 = vpop.f32.mrf.mxu1 }
 0x6fd   : > { %v6247_v10 = vmax.f32 %v6181_v37, 0.0  ;;  %v6176_v5 = vadd.f32 %v14037_v16, %v6175_v33 }
 0x6ff   : > { %v6246_v45 = vmax.f32 %v6176_v5, 0.0  ;;  %6334 = vrot.lane.b32.xlu1 %v6247_v10, %s8695_s18 }
 0x701   : > { %6332 = vrot.lane.b32.xlu0 %v6246_v45, %s8695_s18  ;;  %v15752_v45 = vld [vmem:[#allocation27_spill] sm:$0xff] }
 0x711   : > { %v6323_v47 = vpop.permute.xlu1 %6322 }
 0x712   : > { %v14412_v13 = vsel %vm2947_vm5, %v15747_v22, %v6323_v47 }
 0x713   : > { %v6321_v52 = vpop.permute.xlu0 %6320 }
 0x714   : > { %v14408_v56 = vsel %vm2947_vm5, %v15746_v32, %v6321_v52  ;;  %v15753_v52 = vld [vmem:[#allocation5_spill] sm:$0xff] }
 0x715   : > { %8345 = vmatprep.mubr.msk.f32.mxu0 %vm2981_vm6, %v14408_v56  ;;  %8397 = vmatprep.mubr.msk.f32.mxu1 %vm2981_vm6, %v14408_v56 }
 0x716   : > { %8346 = vmatmul.mubr.msk.f32.gmra.mxu0 %vm2981_vm6, %v14412_v13  ;;  %8398 = vmatmul.mubr.msk.f32.gmra.mxu1 %vm2981_vm6, %v14412_v13 }
 0x71a   : > { %v8307_v51 = vpop.f32.mrf.mxu1 }
 0x71b   : > { %v6191_v3 = vadd.f32 %v8307_v51, %v14037_v16 }
 0x71c   : > { %v6185_v18 = vpop.f32.mrf.mxu1 }
 0x71d   : > { %v6249_v39 = vmax.f32 %v6191_v3, 0.0  ;;  %v6186_v2 = vadd.f32 %v14037_v16, %v6185_v18  ;;  %v15755_v3 = vld [vmem:[#allocation28_spill] sm:$0xff] }
 0x71f   : > { %v6248_v4 = vmax.f32 %v6186_v2, 0.0  ;;  %6338 = vrot.lane.b32.xlu1 %v6249_v39, %s8695_s18 }
 0x721   : > { %6336 = vrot.lane.b32.xlu0 %v6248_v4, %s8695_s18  ;;  %v15756_v4 = vld [vmem:[#allocation29_spill] sm:$0xff] }
 0x731   : > { %v6327_v61 = vpop.permute.xlu1 %6326 }
 0x732   : > { %v14437_v59 = vsel %vm2947_vm5, %v15749_v26, %v6327_v61 }
 0x733   : > { %v6325_v19 = vpop.permute.xlu0 %6324 }
 0x734   : > { %v14433_v34 = vsel %vm2947_vm5, %v15748_v17, %v6325_v19  ;;  %v15757_v19 = vld [vmem:[#allocation3_spill] sm:$0xff] }
 0x735   : > { %8348 = vmatprep.mubr.msk.f32.mxu0 %vm2981_vm6, %v14433_v34  ;;  %8400 = vmatprep.mubr.msk.f32.mxu1 %vm2981_vm6, %v14433_v34 }
 0x736   : > { %8349 = vmatmul.mubr.msk.f32.gmra.mxu0 %vm2981_vm6, %v14437_v59  ;;  %8401 = vmatmul.mubr.msk.f32.gmra.mxu1 %vm2981_vm6, %v14437_v59 }
 0x73a   : > { %v8310_v53 = vpop.f32.mrf.mxu1 }
 0x73b   : > { %v6201_v15 = vadd.f32 %v8310_v53, %v14037_v16  ;;  %v15758_v53 = vld [vmem:[#allocation31_spill] sm:$0xff] }
 0x73c   : > { %v6195_v24 = vpop.f32.mrf.mxu1 }
 0x73d   : > { %v6251_v21 = vmax.f32 %v6201_v15, 0.0  ;;  %v6196_v20 = vadd.f32 %v14037_v16, %v6195_v24  ;;  %v15759_v24 = vld [vmem:[#allocation32_spill] sm:$0xff] }
 0x73f   : > { %v6250_v27 = vmax.f32 %v6196_v20, 0.0  ;;  %6342 = vrot.lane.b32.xlu1 %v6251_v21, %s8695_s18 }
 0x741   : > { %6340 = vrot.lane.b32.xlu0 %v6250_v27, %s8695_s18 }
 0x751   : > { %v6331_v1 = vpop.permute.xlu1 %6330 }
 0x752   : > { %v14460_v12 = vsel %vm2947_vm5, %v15751_v0, %v6331_v1  ;;  %v15760_v1 = vld [vmem:[#allocation26_spill] sm:$0xff] }
 0x753   : > { %v6329_v42 = vpop.permute.xlu0 %6328 }
 0x754   : > { %v14456_v54 = vsel %vm2947_vm5, %v15750_v60, %v6329_v42  ;;  %v8313_v46 = vpop.f32.mrf.mxu1  ;;  %v15761_v60 = vld [vmem:[#allocation35_spill] sm:$0xff] }
 0x755   : > { %v6211_v28 = vadd.f32 %v8313_v46, %v14037_v16  ;;  %8351 = vmatprep.mubr.msk.f32.mxu0 %vm2981_vm6, %v14456_v54  ;;  %8403 = vmatprep.mubr.msk.f32.mxu1 %vm2981_vm6, %v14456_v54 }
 0x756   : > { %v6205_v7 = vpop.f32.mrf.mxu1  ;;  %8352 = vmatmul.mubr.msk.f32.gmra.mxu0 %vm2981_vm6, %v14460_v12  ;;  %8404 = vmatmul.mubr.msk.f32.gmra.mxu1 %vm2981_vm6, %v14460_v12 }
 0x757   : > { %v6253_v8 = vmax.f32 %v6211_v28, 0.0  ;;  %v6206_v6 = vadd.f32 %v14037_v16, %v6205_v7 }
 0x759   : > { %v6252_v58 = vmax.f32 %v6206_v6, 0.0  ;;  %6346 = vrot.lane.b32.xlu1 %v6253_v8, %s8695_s18 }
 0x75b   : > { %6344 = vrot.lane.b32.xlu0 %v6252_v58, %s8695_s18 }
 0x763   : > { %v8316_v9 = vpop.f32.mrf.mxu1 }
 0x764   : > { %v6221_v14 = vadd.f32 %v8316_v9, %v14037_v16 }
 0x765   : > { %v6215_v31 = vpop.f32.mrf.mxu1 }
 0x766   : > { %v6255_v38 = vmax.f32 %v6221_v14, 0.0  ;;  %v6216_v37 = vadd.f32 %v14037_v16, %v6215_v31 }
 0x767   : > { %v14628_v9 = vpop.f32.mrf.mxu1 }
 0x768   : > { %v6254_v33 = vmax.f32 %v6216_v37, 0.0  ;;  %6350 = vrot.lane.b32.xlu1 %v6255_v38, %s8695_s18 }
 0x769   : > { %v14632_v31 = vpop.f32.mrf.mxu1 }
 0x76a   : > { %6348 = vrot.lane.b32.xlu0 %v6254_v33, %s8695_s18 }
 0x76b   : > { %v14638_v33 = vpop.f32.mrf.mxu1 }
 0x771   : > { %v6335_v10 = vpop.permute.xlu1 %6334 }
 0x772   : > { %v6407_v32 = vsel %vm2947_vm5, %v15753_v52, %v6335_v10 }
 0x773   : > { %v6333_v5 = vpop.permute.xlu0 %6332 }
 0x774   : > { %v6406_v47 = vsel %vm2947_vm5, %v15752_v45, %v6333_v5  ;;  %v14645_v5 = vld [vmem:[%s14945_s16] ss:$0 sm:$0xff] }
 0x775   : > { %8354 = vmatprep.mubr.msk.f32.mxu0 %vm2981_vm6, %v6406_v47  ;;  %8406 = vmatprep.mubr.msk.f32.mxu1 %vm2981_vm6, %v6406_v47 }
 0x776   : > { %8355 = vmatmul.mubr.msk.f32.gmra.mxu0 %vm2981_vm6, %v6407_v32  ;;  %8407 = vmatmul.mubr.msk.f32.gmra.mxu1 %vm2981_vm6, %v6407_v32 }
 0x791   : > { %v6339_v16 = vpop.permute.xlu1 %6338 }
 0x792   : > { %v6409_v18 = vsel %vm2947_vm5, %v15755_v3, %v6339_v16 }
 0x793   : > { %v6337_v22 = vpop.permute.xlu0 %6336 }
 0x794   : > { %v6408_v51 = vsel %vm2947_vm5, %v15754_v49, %v6337_v22 }
 0x795   : > { %8357 = vmatprep.mubr.msk.f32.mxu0 %vm2981_vm6, %v6408_v51  ;;  %8409 = vmatprep.mubr.msk.f32.mxu1 %vm2981_vm6, %v6408_v51 }
 0x796   : > { %8358 = vmatmul.mubr.msk.f32.gmra.mxu0 %vm2981_vm6, %v6409_v18  ;;  %8410 = vmatmul.mubr.msk.f32.gmra.mxu1 %vm2981_vm6, %v6409_v18 }
 0x7b1   : > { %v6343_v39 = vpop.permute.xlu1 %6342 }
 0x7b2   : > { %v6411_v17 = vsel %vm2947_vm5, %v15757_v19, %v6343_v39 }
 0x7b3   : > { %v6341_v2 = vpop.permute.xlu0 %6340 }
 0x7b4   : > { %v6410_v61 = vsel %vm2947_vm5, %v15756_v4, %v6341_v2 }
 0x7b5   : > { %8360 = vmatprep.mubr.msk.f32.mxu0 %vm2981_vm6, %v6410_v61  ;;  %8412 = vmatprep.mubr.msk.f32.mxu1 %vm2981_vm6, %v6410_v61 }
 0x7b6   : > { %8361 = vmatmul.mubr.msk.f32.gmra.mxu0 %vm2981_vm6, %v6411_v17  ;;  %8413 = vmatmul.mubr.msk.f32.gmra.mxu1 %vm2981_vm6, %v6411_v17 }
 0x7cb   : > { %v6347_v26 = vpop.permute.xlu1 %6346 }
 0x7cc   : > { %v6413_v21 = vsel %vm2947_vm5, %v15759_v24, %v6347_v26 }
 0x7cd   : > { %v6345_v48 = vpop.permute.xlu0 %6344 }
 0x7ce   : > { %v6412_v15 = vsel %vm2947_vm5, %v15758_v53, %v6345_v48 }
 0x7cf   : > { %8363 = vmatprep.mubr.msk.f32.mxu0 %vm2981_vm6, %v6412_v15  ;;  %8415 = vmatprep.mubr.msk.f32.mxu1 %vm2981_vm6, %v6412_v15 }
 0x7d0   : > { %8364 = vmatmul.mubr.msk.f32.gmra.mxu0 %vm2981_vm6, %v6413_v21  ;;  %8416 = vmatmul.mubr.msk.f32.gmra.mxu1 %vm2981_vm6, %v6413_v21 }
 0x7da   : > { %v6351_v20 = vpop.permute.xlu1 %6350 }
 0x7db   : > { %v6415_v46 = vsel %vm2947_vm5, %v15761_v60, %v6351_v20 }
 0x7dc   : > { %v6349_v27 = vpop.permute.xlu0 %6348 }
 0x7dd   : > { %v6414_v42 = vsel %vm2947_vm5, %v15760_v1, %v6349_v27 }
 0x7de   : > { %8366 = vmatprep.mubr.msk.f32.mxu0 %vm2981_vm6, %v6414_v42  ;;  %8418 = vmatprep.mubr.msk.f32.mxu1 %vm2981_vm6, %v6414_v42 }
 0x7df   : > { %8367 = vmatmul.mubr.msk.f32.gmra.mxu0 %vm2981_vm6, %v6415_v46  ;;  %8419 = vmatmul.mubr.msk.f32.gmra.mxu1 %vm2981_vm6, %v6415_v46 }
 0x7e0   : > { %8425 = vmatprep.mubr.msk.f32.mxu0 %vm2981_vm6, %v14266_v43  ;;  %v14572_v43 = vpop.f32.mrf.mxu0 }
 0x7e3   : > { %8426 = vmatmul.mubr.msk.f32.vlgmr.msra.gmra.mxu0 %vm2981_vm6, %v14271_v50  ;;  %v14574_v50 = vpop.f32.mrf.mxu0 }
 0x7e4   : > { %8428 = vmatprep.mubr.msk.f32.mxu0 %vm2981_vm6, %v14282_v23 }
 0x7e5   : > { %v14576_v23 = vpop.f32.mrf.mxu0 }
 0x7e7   : > { %8429 = vmatmul.mubr.msk.f32.gmra.mxu0 %vm2981_vm6, %v14286_v44  ;;  %v14578_v44 = vpop.f32.mrf.mxu0 }
 0x7e8   : > { %8431 = vmatprep.mubr.msk.f32.mxu0 %vm2981_vm6, %v14298_v62 }
 0x7e9   : > { %v14580_v62 = vpop.f32.mrf.mxu0 }
 0x7eb   : > { %8432 = vmatmul.mubr.msk.f32.gmra.mxu0 %vm2981_vm6, %v14302_v41  ;;  %v14582_v41 = vpop.f32.mrf.mxu0 }
 0x7ec   : > { %8434 = vmatprep.mubr.msk.f32.mxu0 %vm2981_vm6, %v14314_v35 }
 0x7ed   : > { %v14584_v35 = vpop.f32.mrf.mxu0 }
 0x7ef   : > { %8435 = vmatmul.mubr.msk.f32.gmra.mxu0 %vm2981_vm6, %v14318_v40  ;;  %v14586_v40 = vpop.f32.mrf.mxu0 }
 0x7f0   : > { %8437 = vmatprep.mubr.msk.f32.mxu0 %vm2981_vm6, %v14330_v63 }
 0x7f1   : > { %v14588_v63 = vpop.f32.mrf.mxu0 }
 0x7f3   : > { %8438 = vmatmul.mubr.msk.f32.gmra.mxu0 %vm2981_vm6, %v14334_v29  ;;  %v14590_v29 = vpop.f32.mrf.mxu0 }
 0x7f4   : > { %8440 = vmatprep.mubr.msk.f32.mxu0 %vm2981_vm6, %v14346_v36 }
 0x7f5   : > { %v14592_v36 = vpop.f32.mrf.mxu0 }
 0x7f7   : > { %8441 = vmatmul.mubr.msk.f32.gmra.mxu0 %vm2981_vm6, %v14350_v25  ;;  %v14594_v25 = vpop.f32.mrf.mxu0 }
 0x7f8   : > { %8443 = vmatprep.mubr.msk.f32.mxu0 %vm2981_vm6, %v14368_v55 }
 0x7f9   : > { %v14596_v55 = vpop.f32.mrf.mxu0 }
 0x7fb   : > { %8444 = vmatmul.mubr.msk.f32.gmra.mxu0 %vm2981_vm6, %v14372_v11  ;;  %v14598_v11 = vpop.f32.mrf.mxu0 }
 0x7fc   : > { %8446 = vmatprep.mubr.msk.f32.mxu0 %vm2981_vm6, %v14388_v30 }
 0x7fd   : > { %v14600_v30 = vpop.f32.mrf.mxu0 }
 0x7ff   : > { %8447 = vmatmul.mubr.msk.f32.gmra.mxu0 %vm2981_vm6, %v14392_v57  ;;  %v14602_v57 = vpop.f32.mrf.mxu0 }
 0x800   : > { %8449 = vmatprep.mubr.msk.f32.mxu0 %vm2981_vm6, %v14408_v56 }
 0x801   : > { %v14604_v56 = vpop.f32.mrf.mxu0 }
 0x803   : > { %8450 = vmatmul.mubr.msk.f32.gmra.mxu0 %vm2981_vm6, %v14412_v13  ;;  %v14606_v13 = vpop.f32.mrf.mxu0 }
 0x804   : > { %8452 = vmatprep.mubr.msk.f32.mxu0 %vm2981_vm6, %v14433_v34 }
 0x805   : > { %v14608_v34 = vpop.f32.mrf.mxu0 }
 0x807   : > { %8453 = vmatmul.mubr.msk.f32.gmra.mxu0 %vm2981_vm6, %v14437_v59  ;;  %v14610_v59 = vpop.f32.mrf.mxu0 }
 0x808   : > { %8455 = vmatprep.mubr.msk.f32.mxu0 %vm2981_vm6, %v14456_v54 }
 0x80b   : > { %8456 = vmatmul.mubr.msk.f32.gmra.mxu0 %vm2981_vm6, %v14460_v12 }
 0x80c   : > { %8458 = vmatprep.mubr.msk.f32.mxu0 %vm2981_vm6, %v6406_v47  ;;  %v14647_v47 = vpop.f32.mrf.mxu1 }
 0x80f   : > { %8459 = vmatmul.mubr.msk.f32.gmra.mxu0 %vm2981_vm6, %v6407_v32 }
 0x810   : > { %8461 = vmatprep.mubr.msk.f32.mxu0 %vm2981_vm6, %v6408_v51  ;;  %v14651_v51 = vpop.f32.mrf.mxu1 }
 0x812   : > { %v14655_v19 = vpop.f32.mrf.mxu1 }
 0x813   : > { %8462 = vmatmul.mubr.msk.f32.gmra.mxu0 %vm2981_vm6, %v6409_v18 }
 0x814   : > { %8464 = vmatprep.mubr.msk.f32.mxu0 %vm2981_vm6, %v6410_v61 }
 0x816   : > { %v14612_v54 = vpop.f32.mrf.mxu0 }
 0x817   : > { %8465 = vmatmul.mubr.msk.f32.gmra.mxu0 %vm2981_vm6, %v6411_v17 }
 0x818   : > { %8467 = vmatprep.mubr.msk.f32.mxu0 %vm2981_vm6, %v6412_v15  ;;  %v14614_v0 = vpop.f32.mrf.mxu0 }
 0x81b   : > { %8468 = vmatmul.mubr.msk.f32.gmra.mxu0 %vm2981_vm6, %v6413_v21  ;;  %v14659_v21 = vpop.f32.mrf.mxu1 }
 0x81c   : > { %8470 = vmatprep.mubr.msk.f32.mxu0 %vm2981_vm6, %v6414_v42 }
 0x81f   : > { %8471 = vmatmul.mubr.msk.f32.gmra.mxu0 %vm2981_vm6, %v6415_v46 }
 0x836   : > { %v14616_v12 = vpop.f32.mrf.mxu0 }
 0x838   : > { %v14618_v28 = vpop.f32.mrf.mxu0 }
 0x856   : > { %v14620_v7 = vpop.f32.mrf.mxu0 }
 0x858   : > { %v14622_v8 = vpop.f32.mrf.mxu0 }
 0x876   : > { %v14624_v6 = vpop.f32.mrf.mxu0 }
 0x878   : > { %v14626_v58 = vpop.f32.mrf.mxu0 }
 0x890   : > { %v14630_v14 = vpop.f32.mrf.mxu0 }
 0x892   : > { %v14634_v38 = vpop.f32.mrf.mxu0 }
 0x89f   : > { %v14636_v37 = vpop.f32.mrf.mxu0 }
 0x8a1   : > { %v14640_v10 = vpop.f32.mrf.mxu0 }
 0x8a2   : > { %15762 = vst [vmem:[#allocation44_spill] sm:$0xff] %v14640_v10 }
 0x8a3   : > { %v8427_v45 = vpop.f32.mrf.mxu0 }
 0x8a4   : > { %v7070_v52 = vadd.f32 %v8427_v45, %v14645_v5  ;;  %v14663_v45 = vpop.f32.mrf.mxu1 }
 0x8a5   : > { %v7064_v32 = vpop.f32.mrf.mxu0 }
 0x8a6   : > { %v7812_v16 = vmul.f32 -1.442695, %v7070_v52  ;;  %v7065_v22 = vadd.f32 %v14645_v5, %v7064_v32 }
 0x8a7   : > { %v8430_v49 = vpop.f32.mrf.mxu0 }
 0x8a8   : > { %8519 = vpow2.f32 %v7812_v16  ;;  %v7811_v3 = vmul.f32 -1.442695, %v7065_v22  ;;  %v7080_v18 = vadd.f32 %v8430_v49, %v14645_v5 }
 0x8a9   : > { %v7074_v39 = vpop.f32.mrf.mxu0 }
 0x8aa   : > { %8521 = vpow2.f32 %v7811_v3  ;;  %v7814_v2 = vmul.f32 -1.442695, %v7080_v18  ;;  %v7075_v4 = vadd.f32 %v14645_v5, %v7074_v39 }
 0x8ab   : > { %v8433_v61 = vpop.f32.mrf.mxu0 }
 0x8ac   : > { %8523 = vpow2.f32 %v7814_v2  ;;  %v7813_v17 = vmul.f32 -1.442695, %v7075_v4  ;;  %v7090_v26 = vadd.f32 %v8433_v61, %v14645_v5  ;;  %v14667_v4 = vpop.f32.mrf.mxu1 }
 0x8ad   : > { %v7084_v48 = vpop.f32.mrf.mxu0 }
 0x8ae   : > { %8525 = vpow2.f32 %v7813_v17  ;;  %v7816_v53 = vmul.f32 -1.442695, %v7090_v26  ;;  %v7085_v15 = vadd.f32 %v14645_v5, %v7084_v48 }
 0x8af   : > { %v8436_v24 = vpop.f32.mrf.mxu0 }
 0x8b0   : > { %8527 = vpow2.f32 %v7816_v53  ;;  %v7815_v20 = vmul.f32 -1.442695, %v7085_v15  ;;  %v7100_v27 = vadd.f32 %v8436_v24, %v14645_v5  ;;  %v14673_v15 = vld [vmem:[%s14941_s12] ss:$0 sm:$0xff] }
 0x8b1   : > { %v7094_v1 = vpop.f32.mrf.mxu0 }
 0x8b2   : > { %8529 = vpow2.f32 %v7815_v20  ;;  %v7818_v42 = vmul.f32 -1.442695, %v7100_v27  ;;  %v7095_v60 = vadd.f32 %v14645_v5, %v7094_v1 }
 0x8b3   : > { %v8439_v46 = vpop.f32.mrf.mxu0 }
 0x8b4   : > { %8531 = vpow2.f32 %v7818_v42  ;;  %v7817_v52 = vmul.f32 -1.442695, %v7095_v60  ;;  %v7110_v32 = vadd.f32 %v8439_v46, %v14645_v5  ;;  %v14679_v60 = vld [vmem:[%s14943_s14] ss:$0 sm:$0xff]  ;;  %v14681_v46 = vpop.f32.mrf.mxu1 }
 0x8b5   : > { %v8520_v16 = vpop.eup %8519  ;;  %v7104_v22 = vpop.f32.mrf.mxu0 }
 0x8b6   : > { %v7320_v49 = vadd.f32 1.0, %v8520_v16  ;;  %8533 = vpow2.f32 %v7817_v52  ;;  %v7820_v3 = vmul.f32 -1.442695, %v7110_v32  ;;  %v7105_v18 = vadd.f32 %v14645_v5, %v7104_v22 }
 0x8b7   : > { %v8522_v39 = vpop.eup %8521  ;;  %v8442_v2 = vpop.f32.mrf.mxu0 }
 0x8b8   : > { %8535 = vrcp.f32 %v7320_v49  ;;  %v7319_v61 = vadd.f32 1.0, %v8522_v39  ;;  %v7819_v17 = vmul.f32 -1.442695, %v7105_v18  ;;  %v7120_v26 = vadd.f32 %v8442_v2, %v14645_v5 }
 0x8b9   : > { %v8524_v48 = vpop.eup %8523  ;;  %8537 = vpow2.f32 %v7820_v3  ;;  %v7114_v53 = vpop.f32.mrf.mxu0  ;;  %v6602_v49 = vadd.f32 %v14572_v43, %v14673_v15 }
 0x8ba   : > { %8539 = vrcp.f32 %v7319_v61  ;;  %v7322_v24 = vadd.f32 1.0, %v8524_v48  ;;  %v7822_v20 = vmul.f32 -1.442695, %v7120_v26  ;;  %v7115_v27 = vadd.f32 %v14645_v5, %v7114_v53  ;;  %v14697_v53 = vpop.f32.mrf.mxu1 }
 0x8bb   : > { %v8526_v1 = vpop.eup %8525  ;;  %8541 = vpow2.f32 %v7819_v17  ;;  %v8445_v42 = vpop.f32.mrf.mxu0  ;;  %v14689_v17 = vadd.f32 %v14673_v15, %v14574_v50  ;;  %v6836_v26 = vadd.f32 %v14628_v9, %v14679_v60  ;;  %v14695_v48 = vadd.f32 %v14576_v23, %v14673_v15 }
 0x8bc   : > { %8543 = vrcp.f32 %v7322_v24  ;;  %v7321_v52 = vadd.f32 1.0, %v8526_v1  ;;  %v7821_v32 = vmul.f32 -1.442695, %v7115_v27  ;;  %v7130_v16 = vadd.f32 %v8445_v42, %v14645_v5 }
 0x8bd   : > { %v8528_v22 = vpop.eup %8527  ;;  %8545 = vpow2.f32 %v7822_v20  ;;  %v7124_v3 = vpop.f32.mrf.mxu0  ;;  %v6831_v50 = vadd.f32 %v14679_v60, %v14632_v31  ;;  %v14704_v9 = vadd.f32 %v14673_v15, %v14578_v44  ;;  %v6846_v23 = vadd.f32 %v14638_v33, %v14679_v60 }
 0x8be   : > { %8547 = vrcp.f32 %v7321_v52  ;;  %v7324_v18 = vadd.f32 1.0, %v8528_v22  ;;  %v7824_v39 = vmul.f32 -1.442695, %v7130_v16  ;;  %v7125_v2 = vadd.f32 %v14645_v5, %v7124_v3 }
 0x8bf   : > { %v8530_v61 = vpop.eup %8529  ;;  %8549 = vpow2.f32 %v7821_v32  ;;  %v8448_v43 = vpop.f32.mrf.mxu0  ;;  %v14711_v3 = vadd.f32 %v14580_v62, %v14673_v15  ;;  %v6841_v31 = vadd.f32 %v14679_v60, %v14647_v47  ;;  %v14717_v44 = vadd.f32 %v14673_v15, %v14582_v41 }
 0x8c0   : > { %8551 = vrcp.f32 %v7324_v18  ;;  %v7323_v24 = vadd.f32 1.0, %v8530_v61  ;;  %v7823_v20 = vmul.f32 -1.442695, %v7125_v2  ;;  %v7140_v27 = vadd.f32 %v8448_v43, %v14645_v5  ;;  %v14719_v18 = vpop.f32.mrf.mxu1 }
 0x8c1   : > { %v8532_v1 = vpop.eup %8531  ;;  %8553 = vpow2.f32 %v7824_v39  ;;  %v7134_v42 = vpop.f32.mrf.mxu0  ;;  %v6856_v62 = vadd.f32 %v14651_v51, %v14679_v60  ;;  %v14726_v47 = vadd.f32 %v14584_v35, %v14673_v15  ;;  %v14730_v41 = vadd.f32 %v14679_v60, %v14655_v19 }
 0x8c2   : > { %8555 = vrcp.f32 %v7323_v24  ;;  %v7326_v52 = vadd.f32 1.0, %v8532_v1  ;;  %v7826_v32 = vmul.f32 -1.442695, %v7140_v27  ;;  %v7135_v16 = vadd.f32 %v14645_v5, %v7134_v42  ;;  %v14732_v27 = vpop.f32.mrf.mxu1 }
 0x8c3   : > { %v8534_v22 = vpop.eup %8533  ;;  %8557 = vpow2.f32 %v7823_v20  ;;  %v8451_v33 = vpop.f32.mrf.mxu0  ;;  %v14744_v35 = vadd.f32 %v14673_v15, %v14586_v40  ;;  %v14748_v51 = vadd.f32 %v14659_v21, %v14679_v60 }
 0x8c4   : > { %8559 = vrcp.f32 %v7326_v52  ;;  %v7325_v39 = vadd.f32 1.0, %v8534_v22  ;;  %v7825_v2 = vmul.f32 -1.442695, %v7135_v16  ;;  %v7150_v61 = vadd.f32 %v8451_v33, %v14645_v5  ;;  %v14755_v10 = vpop.f32.mrf.mxu1 }
 0x8c5   : > { %v8536_v43 = vpop.eup %8535  ;;  %8561 = vpow2.f32 %v7826_v32  ;;  %v7144_v24 = vpop.f32.mrf.mxu0 }
 0x8c6   : > { %v8538_v20 = vpop.eup %8537  ;;  %v7416_v1 = vmul.f32 %v8536_v43, %v6836_v26  ;;  %8563 = vrcp.f32 %v7325_v39  ;;  %v7828_v42 = vmul.f32 -1.442695, %v7150_v61  ;;  %v7145_v52 = vadd.f32 %v14645_v5, %v7144_v24 }
 0x8c7   : > { %v8540_v16 = vpop.eup %8539  ;;  %v7328_v19 = vadd.f32 1.0, %v8538_v20  ;;  %8565 = vpow2.f32 %v7825_v2  ;;  %v8454_v26 = vpop.f32.mrf.mxu0  ;;  %v14752_v43 = vadd.f32 %v14588_v63, %v14673_v15  ;;  %v6861_v63 = vadd.f32 %v14679_v60, %v14663_v45 }
 0x8c8   : > { %v8542_v32 = vpop.eup %8541  ;;  %v7448_v22 = vadd.f32 %v7416_v1, %v6602_v49  ;;  %v7415_v33 = vmul.f32 %v8540_v16, %v6831_v50  ;;  %8567 = vpow2.f32 %v7828_v42  ;;  %v7827_v39 = vmul.f32 -1.442695, %v7145_v52 }
 0x8c9   : > { %v8544_v61 = vpop.eup %8543  ;;  %8569 = vrcp.f32 %v7328_v19  ;;  %v7327_v40 = vadd.f32 1.0, %v8542_v32  ;;  %v7160_v24 = vadd.f32 %v8454_v26, %v14645_v5  ;;  %v7154_v21 = vpop.f32.mrf.mxu0  ;;  %v6876_v45 = vadd.f32 %v14667_v4, %v14679_v60 }
 0x8ca   : > { %v8546_v20 = vpop.eup %8545  ;;  %7480 = vst [vmem:[%s14740_s19 + $0x8] sm:$0xff] %v7448_v22  ;;  %v7447_v49 = vadd.f32 %v7415_v33, %v14689_v17  ;;  %v7418_v50 = vmul.f32 %v8544_v61, %v6846_v23  ;;  %8571 = vpow2.f32 %v7827_v39  ;;  %v7155_v2 = vadd.f32 %v14645_v5, %v7154_v21  ;;  %v14762_v26 = vpop.f32.mrf.mxu1 }
 0x8cb   : > { %v8548_v1 = vpop.eup %8547  ;;  %8573 = vrcp.f32 %v7327_v40  ;;  %v7330_v42 = vadd.f32 1.0, %v8546_v20  ;;  %v7830_v52 = vmul.f32 -1.442695, %v7160_v24  ;;  %v8457_v16 = vpop.f32.mrf.mxu0  ;;  %v14769_v39 = vadd.f32 %v14673_v15, %v14590_v29 }
 0x8cc   : > { %v8550_v19 = vpop.eup %8549  ;;  %7479 = vst [vmem:[%s14740_s19] sm:$0xff] %v7447_v49  ;;  %v7450_v32 = vadd.f32 %v7418_v50, %v14695_v48  ;;  %v7417_v17 = vmul.f32 %v8548_v1, %v6841_v31  ;;  %v7829_v23 = vmul.f32 -1.442695, %v7155_v2  ;;  %v7170_v22 = vadd.f32 %v8457_v16, %v14645_v5  ;;  %v14780_v1 = vpop.f32.mrf.mxu1 }
 0x8cd   : > { %v8552_v33 = vpop.eup %8551  ;;  %8575 = vrcp.f32 %v7330_v42  ;;  %v7329_v61 = vadd.f32 1.0, %v8550_v19  ;;  %v7164_v40 = vpop.f32.mrf.mxu0  ;;  %v14777_v49 = vadd.f32 %v14592_v36, %v14673_v15  ;;  %v6871_v36 = vadd.f32 %v14679_v60, %v14681_v46 }
 0x8ce   : > { %v8554_v24 = vpop.eup %8553  ;;  %7482 = vst [vmem:[%s14740_s19 + $0x18] sm:$0xff] %v7450_v32  ;;  %v7449_v48 = vadd.f32 %v7417_v17, %v14704_v9  ;;  %v7420_v31 = vmul.f32 %v8552_v33, %v6856_v62  ;;  %8577 = vpow2.f32 %v7830_v52  ;;  %v7832_v21 = vmul.f32 -1.442695, %v7170_v22  ;;  %v14788_v22 = vpop.f32.mrf.mxu1 }
 0x8cf   : > { %v8556_v20 = vpop.eup %8555  ;;  %8579 = vrcp.f32 %v7329_v61  ;;  %v7332_v29 = vadd.f32 1.0, %v8554_v24  ;;  %v7165_v4 = vadd.f32 %v14645_v5, %v7164_v40  ;;  %v8460_v50 = vpop.f32.mrf.mxu0  ;;  %v14795_v61 = vadd.f32 %v14673_v15, %v14594_v25 }
 0x8d0   : > { %v8558_v2 = vpop.eup %8557  ;;  %7481 = vst [vmem:[%s14740_s19 + $0x10] sm:$0xff] %v7449_v48  ;;  %v7452_v9 = vadd.f32 %v7420_v31, %v14711_v3  ;;  %v7419_v62 = vmul.f32 %v8556_v20, %v14730_v41  ;;  %8581 = vpow2.f32 %v7829_v23  ;;  %v7180_v42 = vadd.f32 %v8460_v50, %v14645_v5 }
 0x8d1   : > { %v8560_v52 = vpop.eup %8559  ;;  %8583 = vrcp.f32 %v7332_v29  ;;  %v7331_v16 = vadd.f32 1.0, %v8558_v2  ;;  %v7831_v19 = vmul.f32 -1.442695, %v7165_v4  ;;  %v7174_v32 = vpop.f32.mrf.mxu0  ;;  %v6886_v20 = vadd.f32 %v14697_v53, %v14679_v60 }
 0x8d2   : > { %v8562_v17 = vpop.eup %8561  ;;  %7484 = vst [vmem:[%s14740_s19 + $0x28] sm:$0xff] %v7452_v9  ;;  %v7451_v3 = vadd.f32 %v7419_v62, %v14717_v44  ;;  %v7422_v41 = vmul.f32 %v8560_v52, %v14748_v51  ;;  %8585 = vpow2.f32 %v7832_v21  ;;  %v7834_v23 = vmul.f32 -1.442695, %v7180_v42  ;;  %v14805_v9 = vpop.f32.mrf.mxu1 }
 0x8d3   : > { %v8564_v33 = vpop.eup %8563  ;;  %8587 = vrcp.f32 %v7331_v16  ;;  %v7334_v46 = vadd.f32 1.0, %v8562_v17  ;;  %v7175_v40 = vadd.f32 %v14645_v5, %v7174_v32  ;;  %v8463_v24 = vpop.f32.mrf.mxu0  ;;  %v6881_v2 = vadd.f32 %v14679_v60, %v14719_v18 }
 0x8d4   : > { %v8566_v48 = vpop.eup %8565  ;;  %7483 = vst [vmem:[%s14740_s19 + $0x20] sm:$0xff] %v7451_v3  ;;  %v7454_v31 = vadd.f32 %v7422_v41, %v14726_v47  ;;  %v7421_v44 = vmul.f32 %v8564_v33, %v6861_v63  ;;  %8589 = vpow2.f32 %v7831_v19  ;;  %v7190_v51 = vadd.f32 %v8463_v24, %v14645_v5  ;;  %v14812_v17 = vpop.f32.mrf.mxu1 }
 0x8d5   : > { %v8568_v21 = vpop.eup %8567  ;;  %8591 = vrcp.f32 %v7334_v46  ;;  %v7333_v25 = vadd.f32 1.0, %v8566_v48  ;;  %v7833_v29 = vmul.f32 -1.442695, %v7175_v40  ;;  %v7184_v4 = vpop.f32.mrf.mxu0  ;;  %v6662_v32 = vadd.f32 %v14596_v55, %v14673_v15 }
 0x8d6   : > { %v8570_v50 = vpop.eup %8569  ;;  %7486 = vst [vmem:[%s14740_s19 + $0x38] sm:$0xff] %v7454_v31  ;;  %v7453_v47 = vadd.f32 %v7421_v44, %v14744_v35  ;;  %v7336_v63 = vadd.f32 1.0, %v8568_v21  ;;  %8593 = vpow2.f32 %v7834_v23  ;;  %v7836_v53 = vmul.f32 -1.442695, %v7190_v51  ;;  %v14824_v51 = vpop.f32.mrf.mxu1 }
 0x8d7   : > { %v8572_v62 = vpop.eup %8571  ;;  %v7424_v42 = vmul.f32 %v8570_v50, %v6876_v45  ;;  %8595 = vrcp.f32 %v7333_v25  ;;  %v7185_v52 = vadd.f32 %v14645_v5, %v7184_v4  ;;  %v8466_v16 = vpop.f32.mrf.mxu0  ;;  %v6896_v46 = vadd.f32 %v14732_v27, %v14679_v60 }
 0x8d8   : > { %v8574_v19 = vpop.eup %8573  ;;  %7485 = vst [vmem:[%s14740_s19 + $0x30] sm:$0xff] %v7453_v47  ;;  %8597 = vrcp.f32 %v7336_v63  ;;  %v7335_v18 = vadd.f32 1.0, %v8572_v62  ;;  %v7200_v35 = vadd.f32 %v8466_v16, %v14645_v5  ;;  %v6657_v48 = vadd.f32 %v14673_v15, %v14598_v11  ;;  %v14831_v47 = vpop.f32.mrf.mxu1 }
 0x8d9   : > { %v7456_v3 = vadd.f32 %v7424_v42, %v14752_v43  ;;  %v7423_v45 = vmul.f32 %v8574_v19, %v6871_v36  ;;  %8599 = vpow2.f32 %v7833_v29  ;;  %v7835_v41 = vmul.f32 -1.442695, %v7185_v52  ;;  %v7194_v23 = vpop.f32.mrf.mxu0 }
 0x8da   : > { %v8576_v33 = vpop.eup %8575  ;;  %8601 = vrcp.f32 %v7335_v18  ;;  %v7838_v55 = vmul.f32 -1.442695, %v7200_v35  ;;  %v7195_v40 = vadd.f32 %v14645_v5, %v7194_v23  ;;  %v6891_v4 = vadd.f32 %v14679_v60, %v14755_v10 }
 0x8db   : > { %v8578_v24 = vpop.eup %8577  ;;  %7488 = vst [vmem:[%s14740_s19 + $0x48] sm:$0xff] %v7456_v3  ;;  %v7455_v43 = vadd.f32 %v7423_v45, %v14769_v39  ;;  %v7426_v36 = vmul.f32 %v8576_v33, %v6886_v20  ;;  %8603 = vpow2.f32 %v7836_v53  ;;  %v8469_v31 = vpop.f32.mrf.mxu0  ;;  %v6672_v52 = vadd.f32 %v14600_v30, %v14673_v15 }
 0x8dc   : > { %v8580_v44 = vpop.eup %8579  ;;  %v7338_v21 = vadd.f32 1.0, %v8578_v24  ;;  %8605 = vpow2.f32 %v7835_v41  ;;  %v7837_v27 = vmul.f32 -1.442695, %v7195_v40  ;;  %v7210_v25 = vadd.f32 %v8469_v31, %v14645_v5  ;;  %v14842_v33 = vpop.f32.mrf.mxu1 }
 0x8dd   : > { %v8582_v29 = vpop.eup %8581  ;;  %7487 = vst [vmem:[%s14740_s19 + $0x40] sm:$0xff] %v7455_v43  ;;  %v7458_v11 = vadd.f32 %v7426_v36, %v14777_v49  ;;  %v7425_v39 = vmul.f32 %v8580_v44, %v6881_v2  ;;  %8607 = vpow2.f32 %v7838_v55  ;;  %v7204_v20 = vpop.f32.mrf.mxu0  ;;  %v6906_v45 = vadd.f32 %v14762_v26, %v14679_v60 }
 0x8de   : > { %v8584_v50 = vpop.eup %8583  ;;  %8609 = vrcp.f32 %v7338_v21  ;;  %v7337_v63 = vadd.f32 1.0, %v8582_v29  ;;  %v7840_v62 = vmul.f32 -1.442695, %v7210_v25  ;;  %v7205_v42 = vadd.f32 %v14645_v5, %v7204_v20  ;;  %v14850_v44 = vpop.f32.mrf.mxu1 }
 0x8df   : > { %v8586_v53 = vpop.eup %8585  ;;  %7490 = vst [vmem:[%s14740_s19 + $0x58] sm:$0xff] %v7458_v11  ;;  %v7457_v10 = vadd.f32 %v7425_v39, %v14795_v61  ;;  %v7428_v49 = vmul.f32 %v8584_v50, %v6896_v46  ;;  %8611 = vpow2.f32 %v7837_v27  ;;  %v8472_v2 = vpop.f32.mrf.mxu0  ;;  %v6901_v43 = vadd.f32 %v14679_v60, %v14780_v1 }
 0x8e0   : > { %v8588_v16 = vpop.eup %8587  ;;  %8613 = vrcp.f32 %v7337_v63  ;;  %v7340_v19 = vadd.f32 1.0, %v8586_v53  ;;  %v7839_v18 = vmul.f32 -1.442695, %v7205_v42  ;;  %v7220_v35 = vadd.f32 %v8472_v2, %v14645_v5 }
 0x8e1   : > { %v8590_v3 = vpop.eup %8589  ;;  %7489 = vst [vmem:[%s14740_s19 + $0x50] sm:$0xff] %v7457_v10  ;;  %v7460_v41 = vadd.f32 %v7428_v49, %v6662_v32  ;;  %v7427_v30 = vmul.f32 %v8588_v16, %v6891_v4  ;;  %8615 = vpow2.f32 %v7840_v62  ;;  %v7214_v23 = vpop.f32.mrf.mxu0  ;;  %v6916_v31 = vadd.f32 %v14788_v22, %v14679_v60 }
 0x8e2   : > { %v8592_v61 = vpop.eup %8591  ;;  %8617 = vrcp.f32 %v7340_v19  ;;  %v7339_v46 = vadd.f32 1.0, %v8590_v3  ;;  %v7842_v55 = vmul.f32 -1.442695, %v7220_v35  ;;  %v7215_v40 = vadd.f32 %v14645_v5, %v7214_v23  ;;  %v6940_v62 = vpop.f32.mrf.mxu1 }
 0x8e3   : > { %v8594_v24 = vpop.eup %8593  ;;  %7492 = vst [vmem:[%s14740_s19 + $0x68] sm:$0xff] %v7460_v41  ;;  %v7459_v26 = vadd.f32 %v7427_v30, %v6657_v48  ;;  %v7430_v36 = vmul.f32 %v8592_v61, %v6906_v45  ;;  %8619 = vpow2.f32 %v7839_v18  ;;  %v6667_v5 = vadd.f32 %v14673_v15, %v14602_v57 }
 0x8e4   : > { %v8596_v32 = vpop.eup %8595  ;;  %8621 = vrcp.f32 %v7339_v46  ;;  %v7342_v21 = vadd.f32 1.0, %v8594_v24  ;;  %v7841_v27 = vmul.f32 -1.442695, %v7215_v40  ;;  %v6682_v4 = vadd.f32 %v14604_v56, %v14673_v15  ;;  %v8411_v49 = vpop.f32.mrf.mxu1 }
 0x8e5   : > { %v8598_v25 = vpop.eup %8597  ;;  %7491 = vst [vmem:[%s14740_s19 + $0x60] sm:$0xff] %v7459_v26  ;;  %v7462_v1 = vadd.f32 %v7430_v36, %v6672_v52  ;;  %v7429_v29 = vmul.f32 %v8596_v32, %v6901_v43  ;;  %8623 = vpow2.f32 %v7842_v55  ;;  %v6911_v22 = vadd.f32 %v14679_v60, %v14805_v9 }
 0x8e6   : > { %v8600_v48 = vpop.eup %8599  ;;  %v7432_v11 = vmul.f32 %v8598_v25, %v6916_v31  ;;  %8625 = vrcp.f32 %v7342_v21  ;;  %v6677_v63 = vadd.f32 %v14673_v15, %v14606_v13  ;;  %v6926_v10 = vadd.f32 %v14812_v17, %v14679_v60  ;;  %v6950_v46 = vpop.f32.mrf.mxu1 }
 0x8e7   : > { %v8602_v39 = vpop.eup %8601  ;;  %7494 = vst [vmem:[%s14740_s19 + $0x78] sm:$0xff] %v7462_v1  ;;  %v7461_v20 = vadd.f32 %v7429_v29, %v6667_v5  ;;  %v7341_v50 = vadd.f32 1.0, %v8600_v48  ;;  %8627 = vpow2.f32 %v7841_v27  ;;  %v6692_v35 = vadd.f32 %v14608_v34, %v14673_v15 }
 0x8e8   : > { %v8604_v57 = vpop.eup %8603  ;;  %v7464_v42 = vadd.f32 %v7432_v11, %v6682_v4  ;;  %v7431_v53 = vmul.f32 %v8602_v39, %v6911_v22  ;;  %v6921_v3 = vadd.f32 %v14679_v60, %v14824_v51  ;;  %v6687_v23 = vadd.f32 %v14673_v15, %v14610_v59  ;;  %v8414_v36 = vpop.f32.mrf.mxu1 }
 0x8e9   : > { %v8606_v52 = vpop.eup %8605  ;;  %7493 = vst [vmem:[%s14740_s19 + $0x70] sm:$0xff] %v7461_v20  ;;  %8629 = vrcp.f32 %v7341_v50  ;;  %v7344_v56 = vadd.f32 1.0, %v8604_v57  ;;  %v6936_v61 = vadd.f32 %v14831_v47, %v14679_v60  ;;  %v6702_v43 = vadd.f32 %v14612_v54, %v14673_v15 }
 0x8ea   : > { %v8608_v9 = vpop.eup %8607  ;;  %7496 = vst [vmem:[%s14740_s19 + $0x88] sm:$0xff] %v7464_v42  ;;  %v7463_v2 = vadd.f32 %v7431_v53, %v6677_v63  ;;  %v7343_v16 = vadd.f32 1.0, %v8606_v52  ;;  %v6931_v26 = vadd.f32 %v14679_v60, %v14842_v33  ;;  %v6697_v27 = vadd.f32 %v14673_v15, %v14614_v0  ;;  %v6960_v4 = vpop.f32.mrf.mxu1 }
 0x8eb   : > { %v8610_v19 = vpop.eup %8609  ;;  %8631 = vrcp.f32 %v7344_v56  ;;  %v7346_v18 = vadd.f32 1.0, %v8608_v9  ;;  %v6946_v25 = vadd.f32 %v14850_v44, %v14679_v60  ;;  %v6712_v48 = vadd.f32 %v14616_v12, %v14673_v15 }
 0x8ec   : > { %v8612_v13 = vpop.eup %8611  ;;  %7495 = vst [vmem:[%s14740_s19 + $0x80] sm:$0xff] %v7463_v2  ;;  %v7434_v45 = vmul.f32 %v8610_v19, %v6926_v10  ;;  %8633 = vrcp.f32 %v7343_v16  ;;  %v6941_v0 = vadd.f32 %v14679_v60, %v6940_v62  ;;  %v8417_v20 = vpop.f32.mrf.mxu1  ;;  %v6707_v57 = vadd.f32 %v14673_v15, %v14618_v28 }
 0x8ed   : > { %v8614_v41 = vpop.eup %8613  ;;  %8635 = vrcp.f32 %v7346_v18  ;;  %v7345_v17 = vadd.f32 1.0, %v8612_v13  ;;  %v6956_v63 = vadd.f32 %v8411_v49, %v14679_v60  ;;  %v6951_v53 = vadd.f32 %v14679_v60, %v6950_v46 }
 0x8ee   : > { %v8616_v30 = vpop.eup %8615  ;;  %v7466_v55 = vadd.f32 %v7434_v45, %v6692_v35  ;;  %v7433_v34 = vmul.f32 %v8614_v41, %v6921_v3  ;;  %v6722_v62 = vadd.f32 %v14620_v7, %v14673_v15  ;;  %v6966_v56 = vadd.f32 %v8414_v36, %v14679_v60  ;;  %v6970_v49 = vpop.f32.mrf.mxu1 }
 0x8ef   : > { %v8618_v40 = vpop.eup %8617  ;;  %8637 = vrcp.f32 %v7345_v17  ;;  %v7348_v51 = vadd.f32 1.0, %v8616_v30  ;;  %v6717_v28 = vadd.f32 %v14673_v15, %v14622_v8  ;;  %v6732_v19 = vadd.f32 %v14624_v6, %v14673_v15 }
 0x8f0   : > { %v8620_v24 = vpop.eup %8619  ;;  %7498 = vst [vmem:[%s14740_s19 + $0x98] sm:$0xff] %v7466_v55  ;;  %v7465_v59 = vadd.f32 %v7433_v34, %v6687_v23  ;;  %v7436_v32 = vmul.f32 %v8618_v40, %v6936_v61  ;;  %v6961_v18 = vadd.f32 %v14679_v60, %v6960_v4  ;;  %v8420_v3 = vpop.f32.mrf.mxu1  ;;  %v6727_v41 = vadd.f32 %v14673_v15, %v14626_v58 }
 0x8f1   : > { %v8622_v47 = vpop.eup %8621  ;;  %8639 = vrcp.f32 %v7348_v51  ;;  %v7347_v31 = vadd.f32 1.0, %v8620_v24  ;;  %v6976_v8 = vadd.f32 %v8417_v20, %v14679_v60  ;;  %v6742_v6 = vadd.f32 %v14630_v14, %v14673_v15 }
 0x8f2   : > { %v8624_v21 = vpop.eup %8623  ;;  %7497 = vst [vmem:[%s14740_s19 + $0x90] sm:$0xff] %v7465_v59  ;;  %v7468_v54 = vadd.f32 %v7436_v32, %v6702_v43  ;;  %v7435_v5 = vmul.f32 %v8622_v47, %v6931_v26  ;;  %v6971_v61 = vadd.f32 %v14679_v60, %v6970_v49  ;;  %v6980_v58 = vpop.f32.mrf.mxu1  ;;  %v6737_v40 = vadd.f32 %v14673_v15, %v14634_v38 }
 0x8f3   : > { %v8626_v33 = vpop.eup %8625  ;;  %8641 = vrcp.f32 %v7347_v31  ;;  %v7350_v1 = vadd.f32 1.0, %v8624_v21  ;;  %v6986_v51 = vadd.f32 %v8420_v3, %v14679_v60  ;;  %v6752_v14 = vadd.f32 %v14636_v37, %v14673_v15  ;;  %v15764_v31 = vld [vmem:[#allocation44_spill] sm:$0xff] }
 0x8f4   : > { %v8628_v29 = vpop.eup %8627  ;;  %7500 = vst [vmem:[%s14740_s19 + $0xa8] sm:$0xff] %v7468_v54  ;;  %v7467_v22 = vadd.f32 %v7435_v5, %v6697_v27  ;;  %v7438_v11 = vmul.f32 %v8626_v33, %v6946_v25  ;;  %v6981_v36 = vadd.f32 %v14679_v60, %v6980_v58  ;;  %v6747_v38 = vadd.f32 %v14673_v15, %v15764_v31 }
 0x8f5   : > { %8643 = vrcp.f32 %v7350_v1  ;;  %v7349_v44 = vadd.f32 1.0, %v8628_v29 }
 0x8f6   : > { %v8630_v39 = vpop.eup %8629  ;;  %7499 = vst [vmem:[%s14740_s19 + $0xa0] sm:$0xff] %v7467_v22  ;;  %v7470_v50 = vadd.f32 %v7438_v11, %v6712_v48 }
 0x8f7   : > { %v7437_v42 = vmul.f32 %v8630_v39, %v6941_v0  ;;  %8645 = vrcp.f32 %v7349_v44 }
 0x8f8   : > { %v8632_v12 = vpop.eup %8631  ;;  %7502 = vst [vmem:[%s14740_s19 + $0xb8] sm:$0xff] %v7470_v50 }
 0x8f9   : > { %v8634_v52 = vpop.eup %8633  ;;  %v7469_v9 = vadd.f32 %v7437_v42, %v6707_v57  ;;  %v7440_v10 = vmul.f32 %v8632_v12, %v6956_v63 }
 0x8fa   : > { %v8636_v2 = vpop.eup %8635  ;;  %v7439_v16 = vmul.f32 %v8634_v52, %v6951_v53 }
 0x8fb   : > { %7501 = vst [vmem:[%s14740_s19 + $0xb0] sm:$0xff] %v7469_v9  ;;  %v7472_v7 = vadd.f32 %v7440_v10, %v6722_v62  ;;  %v7442_v13 = vmul.f32 %v8636_v2, %v6966_v56 }
 0x8fc   : > { %v8638_v35 = vpop.eup %8637  ;;  %v7471_v45 = vadd.f32 %v7439_v16, %v6717_v28 }
 0x8fd   : > { %7504 = vst [vmem:[%s14740_s19 + $0xc8] sm:$0xff] %v7472_v7  ;;  %v7474_v17 = vadd.f32 %v7442_v13, %v6732_v19  ;;  %v7441_v30 = vmul.f32 %v8638_v35, %v6961_v18 }
 0x8fe   : > { %v8640_v23 = vpop.eup %8639  ;;  %7503 = vst [vmem:[%s14740_s19 + $0xc0] sm:$0xff] %v7471_v45 }
 0x8ff   : > { %7506 = vst [vmem:[%s14740_s19 + $0xd8] sm:$0xff] %v7474_v17  ;;  %v7473_v46 = vadd.f32 %v7441_v30, %v6727_v41  ;;  %v7444_v55 = vmul.f32 %v8640_v23, %v6976_v8 }
 0x900   : > { %v8642_v34 = vpop.eup %8641 }
 0x901   : > { %7505 = vst [vmem:[%s14740_s19 + $0xd0] sm:$0xff] %v7473_v46  ;;  %v7476_v24 = vadd.f32 %v7444_v55, %v6742_v6  ;;  %v7443_v43 = vmul.f32 %v8642_v34, %v6971_v61 }
 0x902   : > { %v8644_v26 = vpop.eup %8643 }
 0x903   : > { %7508 = vst [vmem:[%s14740_s19 + $0xe8] sm:$0xff] %v7476_v24  ;;  %v7475_v59 = vadd.f32 %v7443_v43, %v6737_v40  ;;  %v7446_v32 = vmul.f32 %v8644_v26, %v6986_v51 }
 0x904   : > { %v8646_v47 = vpop.eup %8645 }
 0x905   : > { %7507 = vst [vmem:[%s14740_s19 + $0xe0] sm:$0xff] %v7475_v59  ;;  %v7478_v21 = vadd.f32 %v7446_v32, %v6752_v14  ;;  %v7445_v27 = vmul.f32 %v8646_v47, %v6981_v36 }
 0x907   : > { %7510 = vst [vmem:[%s14740_s19 + $0xf8] sm:$0xff] %v7478_v21  ;;  %v7477_v25 = vadd.f32 %v7445_v27, %v6747_v38 }
 0x909   : > { %7509 = vst [vmem:[%s14740_s19 + $0xf0] sm:$0xff] %v7477_v25 }
 0x90a PF: > { %s27_s24 = sadd.s32 1, %s8689_s24  }
 0x90b   : > { %p24_p4 = scmp.ge.s32.totalorder %s27_s24, 4  }
 0x90d   :  { %26 = sbr.rel (!%p24_p4) target bundleno = 3 (0x3), region = 118 }

</bundles_post_ra>
